<compile_context>
chip_gen: v7x
topology: tpu7x:2x2x1
jax: 0.10.0
libtpu: 0.0.40
codegen_flags: <defaults>
</compile_context>

<pallas_src>
import functools

import jax
import jax.numpy as jnp
from jax import lax
from jax.experimental import pallas as pl
from jax.experimental.pallas import tpu as pltpu

BN_EPS = 1e-5
LRELU_SLOPE = 0.2
LANE = 128
SUB = 8            # sublane padding granularity for the width dimension
VMEM_LIMIT = 32 * 1024 * 1024


def _round_up(x, m):
    return (x + m - 1) // m * m


def _largest_divisor_leq(n, cap):
    cap = max(1, min(n, cap))
    for d in range(cap, 0, -1):
        if n % d == 0:
            return d
    return 1


# ----------------------------- Pallas kernels ------------------------------

def _conv_stats_kernel(*refs, nb, t, wo, wo_p, coutp, unfold):
    """Pass 1: (optionally in-VMEM unfolded) conv matmul + batch statistics."""
    if unfold:
        zA_ref, zB_ref, w_ref, y_ref, stats_ref = refs
    else:
        zA_ref, w_ref, y_ref, stats_ref = refs

    i = pl.program_id(1)

    @pl.when(i == 0)
    def _():
        stats_ref[...] = jnp.zeros_like(stats_ref)

    if unfold:
        z_lo = zA_ref[...]                              # (nb, t, ws_p, c4p) bf16
        if t == 1:
            z_hi = zB_ref[...]                          # (nb, 1, ws_p, c4p)
        else:
            z_hi = jnp.concatenate([z_lo[:, 1:], zB_ref[...]], axis=1)
        # height taps -> channel concat (lane aligned, c4p % 128 == 0)
        zc = jnp.concatenate([z_lo, z_hi], axis=-1)     # (nb, t, ws_p, 2*c4p)
        # width taps -> channel concat (column 0 / column +1)
        patch = jnp.concatenate(
            [zc[:, :, 0:wo_p, :], zc[:, :, 1:wo_p + 1, :]], axis=-1)
    else:
        patch = zA_ref[...]                             # (nb, t, wo_p, kp)

    kp = patch.shape[-1]
    a = patch.reshape(nb * t * wo_p, kp)
    y = jnp.dot(a, w_ref[...], preferred_element_type=jnp.float32)
    yr = y.reshape(nb, t, wo_p, coutp)

    if wo_p > wo:
        # padded width columns would otherwise see real halo data: zero them so
        # they contribute nothing to the batch statistics (and stay 0 in y).
        col = lax.broadcasted_iota(jnp.int32, (nb, t, wo_p, 1), 2)
        yr = jnp.where(col < wo, yr, 0.0)

    y_ref[...] = yr.astype(y_ref.dtype)                 # bf16 writeback

    s0 = jnp.sum(yr, axis=(0, 1, 2)).reshape(1, coutp)
    s1 = jnp.sum(yr * yr, axis=(0, 1, 2)).reshape(1, coutp)
    stats_ref[...] += jnp.concatenate([s0, s1], axis=0)[None]   # (1, 2, coutp)


def _bn_lrelu_kernel(y_ref, scale_ref, shift_ref, o_ref):
    """Pass 2: y*scale + shift followed by LeakyReLU(0.2)."""
    y = y_ref[...].astype(jnp.float32)                  # (nb, t, wo_p, coutp)
    z = y * scale_ref[...] + shift_ref[...]             # broadcast (1, coutp)
    o_ref[...] = jnp.where(z >= 0, z, LRELU_SLOPE * z).astype(o_ref.dtype)


# ----------------------- fused conv + BN + LReLU layer ----------------------

def conv4x4s2_bn_lrelu(x, w_oihw, gamma, beta, *, target_m=1024):
    """x: (N,H,W,C) NHWC; w: (Cout,Cin,4,4); returns (N,Ho,Wo,Cout) bf16."""
    n, h, w_sp, c = x.shape
    assert h % 2 == 0 and w_sp % 2 == 0
    cout = int(w_oihw.shape[0])
    ho, wo = h // 2, w_sp // 2
    hs, ws = ho + 1, wo + 1
    wo_p = _round_up(wo, SUB)
    coutp = _round_up(cout, LANE)
    unfold = (16 * c) > LANE    # small-Cin layers: full patch fits one K tile

    # space-to-depth (pure relayout, bf16):
    #   z[n, i, j, r*2c + s*c + ci] = x_pad[n, 2i+r, 2j+s, ci]
    xp = jnp.pad(x.astype(jnp.bfloat16), ((0, 0), (1, 1), (1, 1), (0, 0)))
    z = xp.reshape(n, hs, 2, ws, 2, c).transpose(0, 1, 3, 2, 4, 5)
    z = z.reshape(n, hs, ws, 4 * c)

    # weight -> K-major layout matching the in-kernel/wrapper patch order
    # (b = width tap outer, a = height tap inner, then (r, s, ci)).
    wr = w_oihw.reshape(cout, c, 2, 2, 2, 2)            # (co, ci, a, r, b, s)
    wt = wr.transpose(4, 2, 3, 5, 1, 0)                 # (b, a, r, s, ci, co)

    if unfold:
        c4p = _round_up(4 * c, LANE)
        ws_p = wo_p + SUB                               # room for the +1 column
        kp = 4 * c4p
        zin = jnp.pad(z, ((0, 0), (0, 0), (0, ws_p - ws), (0, c4p - 4 * c)))
        wf = wt.reshape(2, 2, 4 * c, cout)
        wf = jnp.pad(wf, ((0, 0), (0, 0), (0, c4p - 4 * c), (0, coutp - cout)))
        wf = wf.reshape(kp, coutp).astype(jnp.bfloat16)
    else:
        kp = _round_up(16 * c, LANE)
        zin = jnp.concatenate(
            [z[:, 0:ho, 0:wo], z[:, 1:hs, 0:wo],
             z[:, 0:ho, 1:ws], z[:, 1:hs, 1:ws]], axis=-1)   # (n, ho, wo, 16c)
        zin = jnp.pad(zin, ((0, 0), (0, 0), (0, wo_p - wo), (0, kp - 16 * c)))
        wf = wt.reshape(16 * c, cout)
        wf = jnp.pad(wf, ((0, kp - 16 * c),
                          (0, coutp - cout))).astype(jnp.bfloat16)

    # tile selection: rows first, then fold batch when whole images are small
    t = _largest_divisor_leq(ho, max(1, target_m // wo_p))
    nb = _largest_divisor_leq(n, max(1, target_m // (t * wo_p)))
    grid = (n // nb, ho // t)

    kern1 = functools.partial(_conv_stats_kernel, nb=nb, t=t, wo=wo,
                              wo_p=wo_p, coutp=coutp, unfold=unfold)

    if unfold:
        in_specs = [
            pl.BlockSpec((nb, t, ws_p, c4p), lambda b, i: (b, i, 0, 0)),
            pl.BlockSpec((nb, 1, ws_p, c4p), lambda b, i: (b, i * t + t, 0, 0)),
            pl.BlockSpec((kp, coutp), lambda b, i: (0, 0)),
        ]
        args = (zin, zin, wf)
    else:
        in_specs = [
            pl.BlockSpec((nb, t, wo_p, kp), lambda b, i: (b, i, 0, 0)),
            pl.BlockSpec((kp, coutp), lambda b, i: (0, 0)),
        ]
        args = (zin, wf)

    # ---------------- pass 1: conv matmul + batch statistics ----------------
    y, stats = pl.pallas_call(
        kern1,
        grid=grid,
        in_specs=in_specs,
        out_specs=[
            pl.BlockSpec((nb, t, wo_p, coutp), lambda b, i: (b, i, 0, 0)),
            pl.BlockSpec((1, 2, coutp), lambda b, i: (b, 0, 0)),
        ],
        out_shape=[
            jax.ShapeDtypeStruct((n, ho, wo_p, coutp), jnp.bfloat16),
            jax.ShapeDtypeStruct((n // nb, 2, coutp), jnp.float32),
        ],
        compiler_params=pltpu.CompilerParams(
            dimension_semantics=("parallel", "arbitrary"),
            vmem_limit_bytes=VMEM_LIMIT),
    )(*args)

    # --- fold BN (training-mode batch stats, biased var) into scale/shift ---
    # TODO(synk): E[x^2]-E[x]^2 in f32 can cancel for very large batch*spatial;
    # switch to two-level accumulation if that regime matters.
    s = jnp.sum(stats, axis=0)
    count = float(n * ho * wo)           # padded rows/cols contribute zero
    mean = s[0] / count
    var = jnp.maximum(s[1] / count - mean * mean, 0.0)
    gamma_p = jnp.pad(gamma.astype(jnp.float32), (0, coutp - cout))
    beta_p = jnp.pad(beta.astype(jnp.float32), (0, coutp - cout))
    scale = (gamma_p * lax.rsqrt(var + BN_EPS)).reshape(1, coutp)
    shift = (beta_p - mean * scale[0]).reshape(1, coutp)

    # ------------------- pass 2: normalize + LeakyReLU ----------------------
    out = pl.pallas_call(
        _bn_lrelu_kernel,
        grid=grid,
        in_specs=[
            pl.BlockSpec((nb, t, wo_p, coutp), lambda b, i: (b, i, 0, 0)),
            pl.BlockSpec((1, coutp), lambda b, i: (0, 0)),
            pl.BlockSpec((1, coutp), lambda b, i: (0, 0)),
        ],
        out_specs=pl.BlockSpec((nb, t, wo_p, coutp), lambda b, i: (b, i, 0, 0)),
        out_shape=jax.ShapeDtypeStruct((n, ho, wo_p, coutp), jnp.bfloat16),
        compiler_params=pltpu.CompilerParams(
            dimension_semantics=("parallel", "parallel"),
            vmem_limit_bytes=VMEM_LIMIT),
    )(y, scale, shift)

    return out[:, :, :wo, :cout]


# ------------------------------- JAX glue -----------------------------------

def l2normalize(v, eps=1e-12):
    return v / (jnp.linalg.norm(v) + eps)


def spectral_norm_weight(w_bar, u, v, power_iterations=1):
    # Mirrors SpectralNorm._update_u_v (one power iteration, then sigma).
    # TODO(synk): PyTorch updates the u/v buffers in place on every forward;
    # here they are treated as fixed inputs (stateless forward).
    height = w_bar.shape[0]
    w_mat = w_bar.reshape(height, -1)
    for _ in range(power_iterations):
        v = l2normalize(w_mat.T @ u)
        u = l2normalize(w_mat @ v)
    sigma = u @ (w_mat @ v)
    return w_bar / sigma


def im2col(x_nhwc, kh, kw, stride, pad):
    n, h, w, c = x_nhwc.shape
    if pad:
        x_nhwc = jnp.pad(x_nhwc, ((0, 0), (pad, pad), (pad, pad), (0, 0)))
    hp, wp = h + 2 * pad, w + 2 * pad
    ho = (hp - kh) // stride + 1
    wo = (wp - kw) // stride + 1
    cols = []
    for i in range(kh):
        for j in range(kw):
            cols.append(
                x_nhwc[:, i:i + stride * ho:stride, j:j + stride * wo:stride, :])
    patches = jnp.concatenate(cols, axis=-1)
    return patches.reshape(n * ho * wo, kh * kw * c), (n, ho, wo)


def init_discriminator_params(key, nc=3, ndf=32, kernel_size=(2, 1)):
    layer_dims = [(nc, ndf), (ndf, ndf), (ndf, ndf * 2),
                  (ndf * 2, ndf * 4), (ndf * 4, ndf * 8)]
    params = {"main": []}
    for (cin, cout) in layer_dims:
        key, kw_, ku_, kv_ = jax.random.split(key, 4)
        w_bar = 0.05 * jax.random.normal(kw_, (cout, cin, 4, 4), jnp.float32)
        u = l2normalize(jax.random.normal(ku_, (cout,), jnp.float32))
        v = l2normalize(jax.random.normal(kv_, (cin * 16,), jnp.float32))
        params["main"].append({
            "w_bar": w_bar, "u": u, "v": v,
            "gamma": jnp.ones((cout,), jnp.float32),   # BatchNorm2d weight
            "beta": jnp.zeros((cout,), jnp.float32),   # BatchNorm2d bias
        })
    key, kc = jax.random.split(key)
    kh, kw = kernel_size
    params["cls_2"] = 0.05 * jax.random.normal(
        kc, (1, ndf * 8, kh, kw), jnp.float32)
    # TODO(synk): cls_id=True branch (self.fc over config['num_labels']) not
    # instantiated, matching the default cls_id=False constructor.
    return params


def discriminator_forward(params, x_nchw):
    # NCHW (PyTorch) -> NHWC for the kernel path.
    x = jnp.transpose(x_nchw, (0, 2, 3, 1)).astype(jnp.float32)

    # self.main: 5x [SpectralNorm(Conv2d 4x4 s2 p1) -> BatchNorm2d -> LeakyReLU]
    for layer in params["main"]:
        w = spectral_norm_weight(layer["w_bar"], layer["u"], layer["v"])
        x = conv4x4s2_bn_lrelu(x, w, layer["gamma"], layer["beta"])

    # self.cls_2: Conv2d(ndf*8, 1, kernel_size, 1, 0, bias=False) -- tiny,
    # 1-wide output; kept in plain XLA per performance review.
    w_cls = params["cls_2"]
    kh, kw = w_cls.shape[2], w_cls.shape[3]
    wmat = jnp.transpose(w_cls, (2, 3, 1, 0)).reshape(-1, 1).astype(jnp.float32)
    patches, _ = im2col(x.astype(jnp.float32), kh, kw, stride=1, pad=0)
    y = patches @ wmat                                    # (N*Ho*Wo, 1)
    # x_1.view(-1): with C_out == 1, NCHW and NHWC flatten orders coincide.
    return y.reshape(-1)


if __name__ == "__main__":
    key = jax.random.PRNGKey(0)
    k_param, k_input = jax.random.split(key)

    # nc=3, ndf=32 (module defaults); input 64x32 so five stride-2 convs give
    # a 2x1 feature map; kernel_size=(2, 1) for cls_2 (same role as the
    # default (8, 4) on 256x128 inputs).
    params = init_discriminator_params(k_param, nc=3, ndf=32,
                                       kernel_size=(2, 1))
    x = jax.random.normal(k_input, (2, 3, 64, 32), jnp.float32)

    out = jax.jit(discriminator_forward)(params, x)
    out = jax.block_until_ready(out)
    assert out.shape == (2,), out.shape
    assert jnp.all(jnp.isfinite(out))
    print("KERNEL_OK")
</pallas_src>

<mosaic_0001>
module attributes {stable_mosaic.version = 11 : i64} {
  func.func @_conv_stats_kernel(%arg0: i32, %arg1: i32, %arg2: memref<2x32x16x128xbf16, #tpu.memory_space<vmem>>, %arg3: memref<128x128xbf16, #tpu.memory_space<vmem>>, %arg4: memref<2x32x16x128xbf16, #tpu.memory_space<vmem>>, %arg5: memref<1x2x128xf32, #tpu.memory_space<vmem>>) attributes {dimension_semantics = [#tpu.dimension_semantics<parallel>, #tpu.dimension_semantics<arbitrary>], iteration_bounds = array<i64: 1, 1>, scalar_prefetch = 0 : i64, scratch_operands = 0 : i64, tpu.core_type = #tpu.core_type<tc>, window_params = [{transform_indices = @transform_0, window_bounds = array<i64: 2, 32, 16, 128>}, {pipeline_mode = #tpu.pipeline_mode<synchronous>, transform_indices = @transform_1, window_bounds = array<i64: 128, 128>}, {transform_indices = @transform_2, window_bounds = array<i64: 2, 32, 16, 128>}, {transform_indices = @transform_3, window_bounds = array<i64: 1, 2, 128>}]} {
    %c0_i32 = arith.constant 0 : i32
    %0 = arith.cmpi eq, %arg1, %c0_i32 : i32
    %1 = arith.extui %0 : i1 to i32
    %c0_i32_0 = arith.constant 0 : i32
    %2 = arith.cmpi ne, %1, %c0_i32_0 : i32
    scf.if %2 {
      %cst_18 = arith.constant 0.000000e+00 : f32
      %20 = vector.broadcast %cst_18 : f32 to vector<1x2x128xf32>
      %c0_19 = arith.constant 0 : index
      %c0_20 = arith.constant 0 : index
      %c0_21 = arith.constant 0 : index
      %21 = vector.load %arg5[%c0_19, %c0_20, %c0_21] : memref<1x2x128xf32, #tpu.memory_space<vmem>>, vector<1x2x128xf32>
      tpu.vector_store %arg5[%c0_19, %c0_20, %c0_21], %20 {strides = array<i32>} : memref<1x2x128xf32, #tpu.memory_space<vmem>>, vector<1x2x128xf32>,
    } else {
    }
    %c0 = arith.constant 0 : index
    %c0_1 = arith.constant 0 : index
    %c0_2 = arith.constant 0 : index
    %c0_3 = arith.constant 0 : index
    %3 = vector.load %arg2[%c0, %c0_1, %c0_2, %c0_3] : memref<2x32x16x128xbf16, #tpu.memory_space<vmem>>, vector<2x32x16x128xbf16>
    %4 = vector.shape_cast %3 : vector<2x32x16x128xbf16> to vector<1024x128xbf16>
    %c0_4 = arith.constant 0 : index
    %c0_5 = arith.constant 0 : index
    %5 = vector.load %arg3[%c0_4, %c0_5] : memref<128x128xbf16, #tpu.memory_space<vmem>>, vector<128x128xbf16>
    %cst = arith.constant dense<0.000000e+00> : vector<1024x128xf32>
    %6 = tpu.matmul %4, %5, %cst {dimension_numbers = #tpu.dot_dimension_numbers<[1], [0], [0], [1], [0, 0, 1, 1], [], []>} : vector<1024x128xbf16>, vector<128x128xbf16>, vector<1024x128xf32> -> vector<1024x128xf32>
    %7 = vector.shape_cast %6 : vector<1024x128xf32> to vector<2x32x16x128xf32>
    %8 = arith.truncf %7 : vector<2x32x16x128xf32> to vector<2x32x16x128xbf16>
    %c0_6 = arith.constant 0 : index
    %c0_7 = arith.constant 0 : index
    %c0_8 = arith.constant 0 : index
    %c0_9 = arith.constant 0 : index
    %9 = vector.load %arg4[%c0_6, %c0_7, %c0_8, %c0_9] : memref<2x32x16x128xbf16, #tpu.memory_space<vmem>>, vector<2x32x16x128xbf16>
    tpu.vector_store %arg4[%c0_6, %c0_7, %c0_8, %c0_9], %8 {strides = array<i32>} : memref<2x32x16x128xbf16, #tpu.memory_space<vmem>>, vector<2x32x16x128xbf16>,
    %cst_10 = arith.constant dense<0.000000e+00> : vector<128xf32>
    %10 = vector.multi_reduction <add>, %7, %cst_10 [0, 1, 2] : vector<2x32x16x128xf32> to vector<128xf32>
    %11 = vector.shape_cast %10 : vector<128xf32> to vector<1x128xf32>
    %12 = arith.mulf %7, %7 : vector<2x32x16x128xf32>
    %cst_11 = arith.constant dense<0.000000e+00> : vector<128xf32>
    %13 = vector.multi_reduction <add>, %12, %cst_11 [0, 1, 2] : vector<2x32x16x128xf32> to vector<128xf32>
    %14 = vector.shape_cast %13 : vector<128xf32> to vector<1x128xf32>
    %c0_12 = arith.constant 0 : index
    %c0_13 = arith.constant 0 : index
    %c0_14 = arith.constant 0 : index
    %15 = vector.load %arg5[%c0_12, %c0_13, %c0_14] : memref<1x2x128xf32, #tpu.memory_space<vmem>>, vector<1x2x128xf32>
    %16 = tpu.concatenate %11, %14 in 0 : vector<1x128xf32>, vector<1x128xf32> -> vector<2x128xf32>
    %17 = vector.shape_cast %16 : vector<2x128xf32> to vector<1x2x128xf32>
    %18 = arith.addf %15, %17 : vector<1x2x128xf32>
    %c0_15 = arith.constant 0 : index
    %c0_16 = arith.constant 0 : index
    %c0_17 = arith.constant 0 : index
    %19 = vector.load %arg5[%c0_15, %c0_16, %c0_17] : memref<1x2x128xf32, #tpu.memory_space<vmem>>, vector<1x2x128xf32>
    tpu.vector_store %arg5[%c0_15, %c0_16, %c0_17], %18 {strides = array<i32>} : memref<1x2x128xf32, #tpu.memory_space<vmem>>, vector<1x2x128xf32>,
    return
  }
  func.func @transform_0(%arg0: i32, %arg1: i32) -> (i32, i32, i32, i32) {
    %c0_i32 = arith.constant 0 : i32
    %c0_i32_0 = arith.constant 0 : i32
    %c0_i32_1 = arith.constant 0 : i32
    return %arg0, %arg1, %c0_i32, %c0_i32_0 : i32, i32, i32, i32
  }
  func.func @transform_1(%arg0: i32, %arg1: i32) -> (i32, i32) {
    %c0_i32 = arith.constant 0 : i32
    %c0_i32_0 = arith.constant 0 : i32
    %c0_i32_1 = arith.constant 0 : i32
    return %c0_i32, %c0_i32_0 : i32, i32
  }
  func.func @transform_2(%arg0: i32, %arg1: i32) -> (i32, i32, i32, i32) {
    %c0_i32 = arith.constant 0 : i32
    %c0_i32_0 = arith.constant 0 : i32
    %c0_i32_1 = arith.constant 0 : i32
    return %arg0, %arg1, %c0_i32, %c0_i32_0 : i32, i32, i32, i32
  }
  func.func @transform_3(%arg0: i32, %arg1: i32) -> (i32, i32, i32) {
    %c0_i32 = arith.constant 0 : i32
    %c0_i32_0 = arith.constant 0 : i32
    %c0_i32_1 = arith.constant 0 : i32
    return %arg0, %c0_i32, %c0_i32_0 : i32, i32, i32
  }
}

module attributes {stable_mosaic.version = 11 : i64} {
  func.func @_bn_lrelu_kernel(%arg0: i32, %arg1: i32, %arg2: memref<2x32x16x128xbf16, #tpu.memory_space<vmem>>, %arg3: memref<1x128xf32, #tpu.memory_space<vmem>>, %arg4: memref<1x128xf32, #tpu.memory_space<vmem>>, %arg5: memref<2x32x16x128xbf16, #tpu.memory_space<vmem>>) attributes {dimension_semantics = [#tpu.dimension_semantics<parallel>, #tpu.dimension_semantics<parallel>], iteration_bounds = array<i64: 1, 1>, scalar_prefetch = 0 : i64, scratch_operands = 0 : i64, tpu.core_type = #tpu.core_type<tc>, window_params = [{transform_indices = @transform_0, window_bounds = array<i64: 2, 32, 16, 128>}, {pipeline_mode = #tpu.pipeline_mode<synchronous>, transform_indices = @transform_1, window_bounds = array<i64: 1, 128>}, {pipeline_mode = #tpu.pipeline_mode<synchronous>, transform_indices = @transform_2, window_bounds = array<i64: 1, 128>}, {transform_indices = @transform_3, window_bounds = array<i64: 2, 32, 16, 128>}]} {
    %c0 = arith.constant 0 : index
    %c0_0 = arith.constant 0 : index
    %c0_1 = arith.constant 0 : index
    %c0_2 = arith.constant 0 : index
    %0 = vector.load %arg2[%c0, %c0_0, %c0_1, %c0_2] : memref<2x32x16x128xbf16, #tpu.memory_space<vmem>>, vector<2x32x16x128xbf16>
    %1 = arith.extf %0 : vector<2x32x16x128xbf16> to vector<2x32x16x128xf32>
    %c0_3 = arith.constant 0 : index
    %c0_4 = arith.constant 0 : index
    %2 = vector.load %arg3[%c0_3, %c0_4] : memref<1x128xf32, #tpu.memory_space<vmem>>, vector<1x128xf32>
    %3 = vector.shape_cast %2 : vector<1x128xf32> to vector<1x1x1x128xf32>
    %4 = vector.broadcast %3 : vector<1x1x1x128xf32> to vector<2x32x16x128xf32>
    %5 = arith.mulf %1, %4 : vector<2x32x16x128xf32>
    %c0_5 = arith.constant 0 : index
    %c0_6 = arith.constant 0 : index
    %6 = vector.load %arg4[%c0_5, %c0_6] : memref<1x128xf32, #tpu.memory_space<vmem>>, vector<1x128xf32>
    %7 = vector.shape_cast %6 : vector<1x128xf32> to vector<1x1x1x128xf32>
    %8 = vector.broadcast %7 : vector<1x1x1x128xf32> to vector<2x32x16x128xf32>
    %9 = arith.addf %5, %8 : vector<2x32x16x128xf32>
    %cst = arith.constant 0.000000e+00 : f32
    %10 = vector.broadcast %cst : f32 to vector<2x32x16x128xf32>
    %11 = arith.cmpf oge, %9, %10 : vector<2x32x16x128xf32>
    %cst_7 = arith.constant 2.000000e-01 : f32
    %12 = vector.broadcast %cst_7 : f32 to vector<2x32x16x128xf32>
    %13 = arith.mulf %12, %9 : vector<2x32x16x128xf32>
    %14 = arith.select %11, %9, %13 : vector<2x32x16x128xi1>, vector<2x32x16x128xf32>
    %15 = arith.truncf %14 : vector<2x32x16x128xf32> to vector<2x32x16x128xbf16>
    %c0_8 = arith.constant 0 : index
    %c0_9 = arith.constant 0 : index
    %c0_10 = arith.constant 0 : index
    %c0_11 = arith.constant 0 : index
    %16 = vector.load %arg5[%c0_8, %c0_9, %c0_10, %c0_11] : memref<2x32x16x128xbf16, #tpu.memory_space<vmem>>, vector<2x32x16x128xbf16>
    tpu.vector_store %arg5[%c0_8, %c0_9, %c0_10, %c0_11], %15 {strides = array<i32>} : memref<2x32x16x128xbf16, #tpu.memory_space<vmem>>, vector<2x32x16x128xbf16>,
    return
  }
  func.func @transform_0(%arg0: i32, %arg1: i32) -> (i32, i32, i32, i32) {
    %c0_i32 = arith.constant 0 : i32
    %c0_i32_0 = arith.constant 0 : i32
    %c0_i32_1 = arith.constant 0 : i32
    return %arg0, %arg1, %c0_i32, %c0_i32_0 : i32, i32, i32, i32
  }
  func.func @transform_1(%arg0: i32, %arg1: i32) -> (i32, i32) {
    %c0_i32 = arith.constant 0 : i32
    %c0_i32_0 = arith.constant 0 : i32
    %c0_i32_1 = arith.constant 0 : i32
    return %c0_i32, %c0_i32_0 : i32, i32
  }
  func.func @transform_2(%arg0: i32, %arg1: i32) -> (i32, i32) {
    %c0_i32 = arith.constant 0 : i32
    %c0_i32_0 = arith.constant 0 : i32
    %c0_i32_1 = arith.constant 0 : i32
    return %c0_i32, %c0_i32_0 : i32, i32
  }
  func.func @transform_3(%arg0: i32, %arg1: i32) -> (i32, i32, i32, i32) {
    %c0_i32 = arith.constant 0 : i32
    %c0_i32_0 = arith.constant 0 : i32
    %c0_i32_1 = arith.constant 0 : i32
    return %arg0, %arg1, %c0_i32, %c0_i32_0 : i32, i32, i32, i32
  }
}

module attributes {stable_mosaic.version = 11 : i64} {
  func.func @_conv_stats_kernel(%arg0: i32, %arg1: i32, %arg2: memref<2x16x16x128xbf16, #tpu.memory_space<vmem>>, %arg3: memref<2x1x16x128xbf16, #tpu.memory_space<vmem>>, %arg4: memref<512x128xbf16, #tpu.memory_space<vmem>>, %arg5: memref<2x16x8x128xbf16, #tpu.memory_space<vmem>>, %arg6: memref<1x2x128xf32, #tpu.memory_space<vmem>>) attributes {dimension_semantics = [#tpu.dimension_semantics<parallel>, #tpu.dimension_semantics<arbitrary>], iteration_bounds = array<i64: 1, 1>, scalar_prefetch = 0 : i64, scratch_operands = 0 : i64, tpu.core_type = #tpu.core_type<tc>, window_params = [{transform_indices = @transform_0, window_bounds = array<i64: 2, 16, 16, 128>}, {transform_indices = @transform_1, window_bounds = array<i64: 2, 1, 16, 128>}, {pipeline_mode = #tpu.pipeline_mode<synchronous>, transform_indices = @transform_2, window_bounds = array<i64: 512, 128>}, {transform_indices = @transform_3, window_bounds = array<i64: 2, 16, 8, 128>}, {transform_indices = @transform_4, window_bounds = array<i64: 1, 2, 128>}]} {
    %c0_i32 = arith.constant 0 : i32
    %0 = arith.cmpi eq, %arg1, %c0_i32 : i32
    %1 = arith.extui %0 : i1 to i32
    %c0_i32_0 = arith.constant 0 : i32
    %2 = arith.cmpi ne, %1, %c0_i32_0 : i32
    scf.if %2 {
      %cst_22 = arith.constant 0.000000e+00 : f32
      %27 = vector.broadcast %cst_22 : f32 to vector<1x2x128xf32>
      %c0_23 = arith.constant 0 : index
      %c0_24 = arith.constant 0 : index
      %c0_25 = arith.constant 0 : index
      %28 = vector.load %arg6[%c0_23, %c0_24, %c0_25] : memref<1x2x128xf32, #tpu.memory_space<vmem>>, vector<1x2x128xf32>
      tpu.vector_store %arg6[%c0_23, %c0_24, %c0_25], %27 {strides = array<i32>} : memref<1x2x128xf32, #tpu.memory_space<vmem>>, vector<1x2x128xf32>,
    } else {
    }
    %c0 = arith.constant 0 : index
    %c0_1 = arith.constant 0 : index
    %c0_2 = arith.constant 0 : index
    %c0_3 = arith.constant 0 : index
    %3 = vector.load %arg2[%c0, %c0_1, %c0_2, %c0_3] : memref<2x16x16x128xbf16, #tpu.memory_space<vmem>>, vector<2x16x16x128xbf16>
    %4 = vector.extract_strided_slice %3 {offsets = [0, 1, 0, 0], sizes = [2, 15, 16, 128], strides = [1, 1, 1, 1]} : vector<2x16x16x128xbf16> to vector<2x15x16x128xbf16>
    %c0_4 = arith.constant 0 : index
    %c0_5 = arith.constant 0 : index
    %c0_6 = arith.constant 0 : index
    %c0_7 = arith.constant 0 : index
    %5 = vector.load %arg3[%c0_4, %c0_5, %c0_6, %c0_7] : memref<2x1x16x128xbf16, #tpu.memory_space<vmem>>, vector<2x1x16x128xbf16>
    %6 = tpu.concatenate %4, %5 in 1 : vector<2x15x16x128xbf16>, vector<2x1x16x128xbf16> -> vector<2x16x16x128xbf16>
    %7 = tpu.concatenate %3, %6 in 3 : vector<2x16x16x128xbf16>, vector<2x16x16x128xbf16> -> vector<2x16x16x256xbf16>
    %8 = vector.extract_strided_slice %7 {offsets = [0, 0, 0, 0], sizes = [2, 16, 8, 256], strides = [1, 1, 1, 1]} : vector<2x16x16x256xbf16> to vector<2x16x8x256xbf16>
    %9 = vector.extract_strided_slice %7 {offsets = [0, 0, 1, 0], sizes = [2, 16, 8, 256], strides = [1, 1, 1, 1]} : vector<2x16x16x256xbf16> to vector<2x16x8x256xbf16>
    %10 = tpu.concatenate %8, %9 in 3 : vector<2x16x8x256xbf16>, vector<2x16x8x256xbf16> -> vector<2x16x8x512xbf16>
    %11 = vector.shape_cast %10 : vector<2x16x8x512xbf16> to vector<256x512xbf16>
    %c0_8 = arith.constant 0 : index
    %c0_9 = arith.constant 0 : index
    %12 = vector.load %arg4[%c0_8, %c0_9] : memref<512x128xbf16, #tpu.memory_space<vmem>>, vector<512x128xbf16>
    %cst = arith.constant dense<0.000000e+00> : vector<256x128xf32>
    %13 = tpu.matmul %11, %12, %cst {dimension_numbers = #tpu.dot_dimension_numbers<[1], [0], [0], [1], [0, 0, 1, 1], [], []>} : vector<256x512xbf16>, vector<512x128xbf16>, vector<256x128xf32> -> vector<256x128xf32>
    %14 = vector.shape_cast %13 : vector<256x128xf32> to vector<2x16x8x128xf32>
    %15 = arith.truncf %14 : vector<2x16x8x128xf32> to vector<2x16x8x128xbf16>
    %c0_10 = arith.constant 0 : index
    %c0_11 = arith.constant 0 : index
    %c0_12 = arith.constant 0 : index
    %c0_13 = arith.constant 0 : index
    %16 = vector.load %arg5[%c0_10, %c0_11, %c0_12, %c0_13] : memref<2x16x8x128xbf16, #tpu.memory_space<vmem>>, vector<2x16x8x128xbf16>
    tpu.vector_store %arg5[%c0_10, %c0_11, %c0_12, %c0_13], %15 {strides = array<i32>} : memref<2x16x8x128xbf16, #tpu.memory_space<vmem>>, vector<2x16x8x128xbf16>,
    %cst_14 = arith.constant dense<0.000000e+00> : vector<128xf32>
    %17 = vector.multi_reduction <add>, %14, %cst_14 [0, 1, 2] : vector<2x16x8x128xf32> to vector<128xf32>
    %18 = vector.shape_cast %17 : vector<128xf32> to vector<1x128xf32>
    %19 = arith.mulf %14, %14 : vector<2x16x8x128xf32>
    %cst_15 = arith.constant dense<0.000000e+00> : vector<128xf32>
    %20 = vector.multi_reduction <add>, %19, %cst_15 [0, 1, 2] : vector<2x16x8x128xf32> to vector<128xf32>
    %21 = vector.shape_cast %20 : vector<128xf32> to vector<1x128xf32>
    %c0_16 = arith.constant 0 : index
    %c0_17 = arith.constant 0 : index
    %c0_18 = arith.constant 0 : index
    %22 = vector.load %arg6[%c0_16, %c0_17, %c0_18] : memref<1x2x128xf32, #tpu.memory_space<vmem>>, vector<1x2x128xf32>
    %23 = tpu.concatenate %18, %21 in 0 : vector<1x128xf32>, vector<1x128xf32> -> vector<2x128xf32>
    %24 = vector.shape_cast %23 : vector<2x128xf32> to vector<1x2x128xf32>
    %25 = arith.addf %22, %24 : vector<1x2x128xf32>
    %c0_19 = arith.constant 0 : index
    %c0_20 = arith.constant 0 : index
    %c0_21 = arith.constant 0 : index
    %26 = vector.load %arg6[%c0_19, %c0_20, %c0_21] : memref<1x2x128xf32, #tpu.memory_space<vmem>>, vector<1x2x128xf32>
    tpu.vector_store %arg6[%c0_19, %c0_20, %c0_21], %25 {strides = array<i32>} : memref<1x2x128xf32, #tpu.memory_space<vmem>>, vector<1x2x128xf32>,
    return
  }
  func.func @transform_0(%arg0: i32, %arg1: i32) -> (i32, i32, i32, i32) {
    %c0_i32 = arith.constant 0 : i32
    %c0_i32_0 = arith.constant 0 : i32
    %c0_i32_1 = arith.constant 0 : i32
    return %arg0, %arg1, %c0_i32, %c0_i32_0 : i32, i32, i32, i32
  }
  func.func @transform_1(%arg0: i32, %arg1: i32) -> (i32, i32, i32, i32) {
    %c16_i32 = arith.constant 16 : i32
    %0 = arith.muli %arg1, %c16_i32 : i32
    %c16_i32_0 = arith.constant 16 : i32
    %1 = arith.addi %0, %c16_i32_0 : i32
    %c0_i32 = arith.constant 0 : i32
    %c0_i32_1 = arith.constant 0 : i32
    %c0_i32_2 = arith.constant 0 : i32
    return %arg0, %1, %c0_i32, %c0_i32_1 : i32, i32, i32, i32
  }
  func.func @transform_2(%arg0: i32, %arg1: i32) -> (i32, i32) {
    %c0_i32 = arith.constant 0 : i32
    %c0_i32_0 = arith.constant 0 : i32
    %c0_i32_1 = arith.constant 0 : i32
    return %c0_i32, %c0_i32_0 : i32, i32
  }
  func.func @transform_3(%arg0: i32, %arg1: i32) -> (i32, i32, i32, i32) {
    %c0_i32 = arith.constant 0 : i32
    %c0_i32_0 = arith.constant 0 : i32
    %c0_i32_1 = arith.constant 0 : i32
    return %arg0, %arg1, %c0_i32, %c0_i32_0 : i32, i32, i32, i32
  }
  func.func @transform_4(%arg0: i32, %arg1: i32) -> (i32, i32, i32) {
    %c0_i32 = arith.constant 0 : i32
    %c0_i32_0 = arith.constant 0 : i32
    %c0_i32_1 = arith.constant 0 : i32
    return %arg0, %c0_i32, %c0_i32_0 : i32, i32, i32
  }
}

module attributes {stable_mosaic.version = 11 : i64} {
  func.func @_bn_lrelu_kernel(%arg0: i32, %arg1: i32, %arg2: memref<2x16x8x128xbf16, #tpu.memory_space<vmem>>, %arg3: memref<1x128xf32, #tpu.memory_space<vmem>>, %arg4: memref<1x128xf32, #tpu.memory_space<vmem>>, %arg5: memref<2x16x8x128xbf16, #tpu.memory_space<vmem>>) attributes {dimension_semantics = [#tpu.dimension_semantics<parallel>, #tpu.dimension_semantics<parallel>], iteration_bounds = array<i64: 1, 1>, scalar_prefetch = 0 : i64, scratch_operands = 0 : i64, tpu.core_type = #tpu.core_type<tc>, window_params = [{transform_indices = @transform_0, window_bounds = array<i64: 2, 16, 8, 128>}, {pipeline_mode = #tpu.pipeline_mode<synchronous>, transform_indices = @transform_1, window_bounds = array<i64: 1, 128>}, {pipeline_mode = #tpu.pipeline_mode<synchronous>, transform_indices = @transform_2, window_bounds = array<i64: 1, 128>}, {transform_indices = @transform_3, window_bounds = array<i64: 2, 16, 8, 128>}]} {
    %c0 = arith.constant 0 : index
    %c0_0 = arith.constant 0 : index
    %c0_1 = arith.constant 0 : index
    %c0_2 = arith.constant 0 : index
    %0 = vector.load %arg2[%c0, %c0_0, %c0_1, %c0_2] : memref<2x16x8x128xbf16, #tpu.memory_space<vmem>>, vector<2x16x8x128xbf16>
    %1 = arith.extf %0 : vector<2x16x8x128xbf16> to vector<2x16x8x128xf32>
    %c0_3 = arith.constant 0 : index
    %c0_4 = arith.constant 0 : index
    %2 = vector.load %arg3[%c0_3, %c0_4] : memref<1x128xf32, #tpu.memory_space<vmem>>, vector<1x128xf32>
    %3 = vector.shape_cast %2 : vector<1x128xf32> to vector<1x1x1x128xf32>
    %4 = vector.broadcast %3 : vector<1x1x1x128xf32> to vector<2x16x8x128xf32>
    %5 = arith.mulf %1, %4 : vector<2x16x8x128xf32>
    %c0_5 = arith.constant 0 : index
    %c0_6 = arith.constant 0 : index
    %6 = vector.load %arg4[%c0_5, %c0_6] : memref<1x128xf32, #tpu.memory_space<vmem>>, vector<1x128xf32>
    %7 = vector.shape_cast %6 : vector<1x128xf32> to vector<1x1x1x128xf32>
    %8 = vector.broadcast %7 : vector<1x1x1x128xf32> to vector<2x16x8x128xf32>
    %9 = arith.addf %5, %8 : vector<2x16x8x128xf32>
    %cst = arith.constant 0.000000e+00 : f32
    %10 = vector.broadcast %cst : f32 to vector<2x16x8x128xf32>
    %11 = arith.cmpf oge, %9, %10 : vector<2x16x8x128xf32>
    %cst_7 = arith.constant 2.000000e-01 : f32
    %12 = vector.broadcast %cst_7 : f32 to vector<2x16x8x128xf32>
    %13 = arith.mulf %12, %9 : vector<2x16x8x128xf32>
    %14 = arith.select %11, %9, %13 : vector<2x16x8x128xi1>, vector<2x16x8x128xf32>
    %15 = arith.truncf %14 : vector<2x16x8x128xf32> to vector<2x16x8x128xbf16>
    %c0_8 = arith.constant 0 : index
    %c0_9 = arith.constant 0 : index
    %c0_10 = arith.constant 0 : index
    %c0_11 = arith.constant 0 : index
    %16 = vector.load %arg5[%c0_8, %c0_9, %c0_10, %c0_11] : memref<2x16x8x128xbf16, #tpu.memory_space<vmem>>, vector<2x16x8x128xbf16>
    tpu.vector_store %arg5[%c0_8, %c0_9, %c0_10, %c0_11], %15 {strides = array<i32>} : memref<2x16x8x128xbf16, #tpu.memory_space<vmem>>, vector<2x16x8x128xbf16>,
    return
  }
  func.func @transform_0(%arg0: i32, %arg1: i32) -> (i32, i32, i32, i32) {
    %c0_i32 = arith.constant 0 : i32
    %c0_i32_0 = arith.constant 0 : i32
    %c0_i32_1 = arith.constant 0 : i32
    return %arg0, %arg1, %c0_i32, %c0_i32_0 : i32, i32, i32, i32
  }
  func.func @transform_1(%arg0: i32, %arg1: i32) -> (i32, i32) {
    %c0_i32 = arith.constant 0 : i32
    %c0_i32_0 = arith.constant 0 : i32
    %c0_i32_1 = arith.constant 0 : i32
    return %c0_i32, %c0_i32_0 : i32, i32
  }
  func.func @transform_2(%arg0: i32, %arg1: i32) -> (i32, i32) {
    %c0_i32 = arith.constant 0 : i32
    %c0_i32_0 = arith.constant 0 : i32
    %c0_i32_1 = arith.constant 0 : i32
    return %c0_i32, %c0_i32_0 : i32, i32
  }
  func.func @transform_3(%arg0: i32, %arg1: i32) -> (i32, i32, i32, i32) {
    %c0_i32 = arith.constant 0 : i32
    %c0_i32_0 = arith.constant 0 : i32
    %c0_i32_1 = arith.constant 0 : i32
    return %arg0, %arg1, %c0_i32, %c0_i32_0 : i32, i32, i32, i32
  }
}

module attributes {stable_mosaic.version = 11 : i64} {
  func.func @_conv_stats_kernel(%arg0: i32, %arg1: i32, %arg2: memref<2x8x16x128xbf16, #tpu.memory_space<vmem>>, %arg3: memref<2x1x16x128xbf16, #tpu.memory_space<vmem>>, %arg4: memref<512x128xbf16, #tpu.memory_space<vmem>>, %arg5: memref<2x8x8x128xbf16, #tpu.memory_space<vmem>>, %arg6: memref<1x2x128xf32, #tpu.memory_space<vmem>>) attributes {dimension_semantics = [#tpu.dimension_semantics<parallel>, #tpu.dimension_semantics<arbitrary>], iteration_bounds = array<i64: 1, 1>, scalar_prefetch = 0 : i64, scratch_operands = 0 : i64, tpu.core_type = #tpu.core_type<tc>, window_params = [{transform_indices = @transform_0, window_bounds = array<i64: 2, 8, 16, 128>}, {transform_indices = @transform_1, window_bounds = array<i64: 2, 1, 16, 128>}, {pipeline_mode = #tpu.pipeline_mode<synchronous>, transform_indices = @transform_2, window_bounds = array<i64: 512, 128>}, {transform_indices = @transform_3, window_bounds = array<i64: 2, 8, 8, 128>}, {transform_indices = @transform_4, window_bounds = array<i64: 1, 2, 128>}]} {
    %c0_i32 = arith.constant 0 : i32
    %0 = arith.cmpi eq, %arg1, %c0_i32 : i32
    %1 = arith.extui %0 : i1 to i32
    %c0_i32_0 = arith.constant 0 : i32
    %2 = arith.cmpi ne, %1, %c0_i32_0 : i32
    scf.if %2 {
      %cst_23 = arith.constant 0.000000e+00 : f32
      %34 = vector.broadcast %cst_23 : f32 to vector<1x2x128xf32>
      %c0_24 = arith.constant 0 : index
      %c0_25 = arith.constant 0 : index
      %c0_26 = arith.constant 0 : index
      %35 = vector.load %arg6[%c0_24, %c0_25, %c0_26] : memref<1x2x128xf32, #tpu.memory_space<vmem>>, vector<1x2x128xf32>
      tpu.vector_store %arg6[%c0_24, %c0_25, %c0_26], %34 {strides = array<i32>} : memref<1x2x128xf32, #tpu.memory_space<vmem>>, vector<1x2x128xf32>,
    } else {
    }
    %c0 = arith.constant 0 : index
    %c0_1 = arith.constant 0 : index
    %c0_2 = arith.constant 0 : index
    %c0_3 = arith.constant 0 : index
    %3 = vector.load %arg2[%c0, %c0_1, %c0_2, %c0_3] : memref<2x8x16x128xbf16, #tpu.memory_space<vmem>>, vector<2x8x16x128xbf16>
    %4 = vector.extract_strided_slice %3 {offsets = [0, 1, 0, 0], sizes = [2, 7, 16, 128], strides = [1, 1, 1, 1]} : vector<2x8x16x128xbf16> to vector<2x7x16x128xbf16>
    %c0_4 = arith.constant 0 : index
    %c0_5 = arith.constant 0 : index
    %c0_6 = arith.constant 0 : index
    %c0_7 = arith.constant 0 : index
    %5 = vector.load %arg3[%c0_4, %c0_5, %c0_6, %c0_7] : memref<2x1x16x128xbf16, #tpu.memory_space<vmem>>, vector<2x1x16x128xbf16>
    %6 = tpu.concatenate %4, %5 in 1 : vector<2x7x16x128xbf16>, vector<2x1x16x128xbf16> -> vector<2x8x16x128xbf16>
    %7 = tpu.concatenate %3, %6 in 3 : vector<2x8x16x128xbf16>, vector<2x8x16x128xbf16> -> vector<2x8x16x256xbf16>
    %8 = vector.extract_strided_slice %7 {offsets = [0, 0, 0, 0], sizes = [2, 8, 8, 256], strides = [1, 1, 1, 1]} : vector<2x8x16x256xbf16> to vector<2x8x8x256xbf16>
    %9 = vector.extract_strided_slice %7 {offsets = [0, 0, 1, 0], sizes = [2, 8, 8, 256], strides = [1, 1, 1, 1]} : vector<2x8x16x256xbf16> to vector<2x8x8x256xbf16>
    %10 = tpu.concatenate %8, %9 in 3 : vector<2x8x8x256xbf16>, vector<2x8x8x256xbf16> -> vector<2x8x8x512xbf16>
    %11 = vector.shape_cast %10 : vector<2x8x8x512xbf16> to vector<128x512xbf16>
    %c0_8 = arith.constant 0 : index
    %c0_9 = arith.constant 0 : index
    %12 = vector.load %arg4[%c0_8, %c0_9] : memref<512x128xbf16, #tpu.memory_space<vmem>>, vector<512x128xbf16>
    %cst = arith.constant dense<0.000000e+00> : vector<128x128xf32>
    %13 = tpu.matmul %11, %12, %cst {dimension_numbers = #tpu.dot_dimension_numbers<[1], [0], [0], [1], [0, 0, 1, 1], [], []>} : vector<128x512xbf16>, vector<512x128xbf16>, vector<128x128xf32> -> vector<128x128xf32>
    %14 = vector.shape_cast %13 : vector<128x128xf32> to vector<2x8x8x128xf32>
    %15 = tpu.iota {dimensions = array<i32: 2>} : vector<2x8x8x1xi32>
    %c4_i32 = arith.constant 4 : i32
    %16 = vector.broadcast %c4_i32 : i32 to vector<2x8x8x1xi32>
    %17 = arith.cmpi slt, %15, %16 : vector<2x8x8x1xi32>
    %cst_10 = arith.constant 0.000000e+00 : f32
    %18 = vector.shape_cast %17 : vector<2x8x8x1xi1> to vector<2x8x8x1xi1>
    %19 = vector.broadcast %18 : vector<2x8x8x1xi1> to vector<2x8x8x128xi1>
    %20 = vector.broadcast %cst_10 : f32 to vector<2x8x8x128xf32>
    %21 = arith.select %19, %14, %20 : vector<2x8x8x128xi1>, vector<2x8x8x128xf32>
    %22 = arith.truncf %21 : vector<2x8x8x128xf32> to vector<2x8x8x128xbf16>
    %c0_11 = arith.constant 0 : index
    %c0_12 = arith.constant 0 : index
    %c0_13 = arith.constant 0 : index
    %c0_14 = arith.constant 0 : index
    %23 = vector.load %arg5[%c0_11, %c0_12, %c0_13, %c0_14] : memref<2x8x8x128xbf16, #tpu.memory_space<vmem>>, vector<2x8x8x128xbf16>
    tpu.vector_store %arg5[%c0_11, %c0_12, %c0_13, %c0_14], %22 {strides = array<i32>} : memref<2x8x8x128xbf16, #tpu.memory_space<vmem>>, vector<2x8x8x128xbf16>,
    %cst_15 = arith.constant dense<0.000000e+00> : vector<128xf32>
    %24 = vector.multi_reduction <add>, %21, %cst_15 [0, 1, 2] : vector<2x8x8x128xf32> to vector<128xf32>
    %25 = vector.shape_cast %24 : vector<128xf32> to vector<1x128xf32>
    %26 = arith.mulf %21, %21 : vector<2x8x8x128xf32>
    %cst_16 = arith.constant dense<0.000000e+00> : vector<128xf32>
    %27 = vector.multi_reduction <add>, %26, %cst_16 [0, 1, 2] : vector<2x8x8x128xf32> to vector<128xf32>
    %28 = vector.shape_cast %27 : vector<128xf32> to vector<1x128xf32>
    %c0_17 = arith.constant 0 : index
    %c0_18 = arith.constant 0 : index
    %c0_19 = arith.constant 0 : index
    %29 = vector.load %arg6[%c0_17, %c0_18, %c0_19] : memref<1x2x128xf32, #tpu.memory_space<vmem>>, vector<1x2x128xf32>
    %30 = tpu.concatenate %25, %28 in 0 : vector<1x128xf32>, vector<1x128xf32> -> vector<2x128xf32>
    %31 = vector.shape_cast %30 : vector<2x128xf32> to vector<1x2x128xf32>
    %32 = arith.addf %29, %31 : vector<1x2x128xf32>
    %c0_20 = arith.constant 0 : index
    %c0_21 = arith.constant 0 : index
    %c0_22 = arith.constant 0 : index
    %33 = vector.load %arg6[%c0_20, %c0_21, %c0_22] : memref<1x2x128xf32, #tpu.memory_space<vmem>>, vector<1x2x128xf32>
    tpu.vector_store %arg6[%c0_20, %c0_21, %c0_22], %32 {strides = array<i32>} : memref<1x2x128xf32, #tpu.memory_space<vmem>>, vector<1x2x128xf32>,
    return
  }
  func.func @transform_0(%arg0: i32, %arg1: i32) -> (i32, i32, i32, i32) {
    %c0_i32 = arith.constant 0 : i32
    %c0_i32_0 = arith.constant 0 : i32
    %c0_i32_1 = arith.constant 0 : i32
    return %arg0, %arg1, %c0_i32, %c0_i32_0 : i32, i32, i32, i32
  }
  func.func @transform_1(%arg0: i32, %arg1: i32) -> (i32, i32, i32, i32) {
    %c8_i32 = arith.constant 8 : i32
    %0 = arith.muli %arg1, %c8_i32 : i32
    %c8_i32_0 = arith.constant 8 : i32
    %1 = arith.addi %0, %c8_i32_0 : i32
    %c0_i32 = arith.constant 0 : i32
    %c0_i32_1 = arith.constant 0 : i32
    %c0_i32_2 = arith.constant 0 : i32
    return %arg0, %1, %c0_i32, %c0_i32_1 : i32, i32, i32, i32
  }
  func.func @transform_2(%arg0: i32, %arg1: i32) -> (i32, i32) {
    %c0_i32 = arith.constant 0 : i32
    %c0_i32_0 = arith.constant 0 : i32
    %c0_i32_1 = arith.constant 0 : i32
    return %c0_i32, %c0_i32_0 : i32, i32
  }
  func.func @transform_3(%arg0: i32, %arg1: i32) -> (i32, i32, i32, i32) {
    %c0_i32 = arith.constant 0 : i32
    %c0_i32_0 = arith.constant 0 : i32
    %c0_i32_1 = arith.constant 0 : i32
    return %arg0, %arg1, %c0_i32, %c0_i32_0 : i32, i32, i32, i32
  }
  func.func @transform_4(%arg0: i32, %arg1: i32) -> (i32, i32, i32) {
    %c0_i32 = arith.constant 0 : i32
    %c0_i32_0 = arith.constant 0 : i32
    %c0_i32_1 = arith.constant 0 : i32
    return %arg0, %c0_i32, %c0_i32_0 : i32, i32, i32
  }
}

module attributes {stable_mosaic.version = 11 : i64} {
  func.func @_bn_lrelu_kernel(%arg0: i32, %arg1: i32, %arg2: memref<2x8x8x128xbf16, #tpu.memory_space<vmem>>, %arg3: memref<1x128xf32, #tpu.memory_space<vmem>>, %arg4: memref<1x128xf32, #tpu.memory_space<vmem>>, %arg5: memref<2x8x8x128xbf16, #tpu.memory_space<vmem>>) attributes {dimension_semantics = [#tpu.dimension_semantics<parallel>, #tpu.dimension_semantics<parallel>], iteration_bounds = array<i64: 1, 1>, scalar_prefetch = 0 : i64, scratch_operands = 0 : i64, tpu.core_type = #tpu.core_type<tc>, window_params = [{transform_indices = @transform_0, window_bounds = array<i64: 2, 8, 8, 128>}, {pipeline_mode = #tpu.pipeline_mode<synchronous>, transform_indices = @transform_1, window_bounds = array<i64: 1, 128>}, {pipeline_mode = #tpu.pipeline_mode<synchronous>, transform_indices = @transform_2, window_bounds = array<i64: 1, 128>}, {transform_indices = @transform_3, window_bounds = array<i64: 2, 8, 8, 128>}]} {
    %c0 = arith.constant 0 : index
    %c0_0 = arith.constant 0 : index
    %c0_1 = arith.constant 0 : index
    %c0_2 = arith.constant 0 : index
    %0 = vector.load %arg2[%c0, %c0_0, %c0_1, %c0_2] : memref<2x8x8x128xbf16, #tpu.memory_space<vmem>>, vector<2x8x8x128xbf16>
    %1 = arith.extf %0 : vector<2x8x8x128xbf16> to vector<2x8x8x128xf32>
    %c0_3 = arith.constant 0 : index
    %c0_4 = arith.constant 0 : index
    %2 = vector.load %arg3[%c0_3, %c0_4] : memref<1x128xf32, #tpu.memory_space<vmem>>, vector<1x128xf32>
    %3 = vector.shape_cast %2 : vector<1x128xf32> to vector<1x1x1x128xf32>
    %4 = vector.broadcast %3 : vector<1x1x1x128xf32> to vector<2x8x8x128xf32>
    %5 = arith.mulf %1, %4 : vector<2x8x8x128xf32>
    %c0_5 = arith.constant 0 : index
    %c0_6 = arith.constant 0 : index
    %6 = vector.load %arg4[%c0_5, %c0_6] : memref<1x128xf32, #tpu.memory_space<vmem>>, vector<1x128xf32>
    %7 = vector.shape_cast %6 : vector<1x128xf32> to vector<1x1x1x128xf32>
    %8 = vector.broadcast %7 : vector<1x1x1x128xf32> to vector<2x8x8x128xf32>
    %9 = arith.addf %5, %8 : vector<2x8x8x128xf32>
    %cst = arith.constant 0.000000e+00 : f32
    %10 = vector.broadcast %cst : f32 to vector<2x8x8x128xf32>
    %11 = arith.cmpf oge, %9, %10 : vector<2x8x8x128xf32>
    %cst_7 = arith.constant 2.000000e-01 : f32
    %12 = vector.broadcast %cst_7 : f32 to vector<2x8x8x128xf32>
    %13 = arith.mulf %12, %9 : vector<2x8x8x128xf32>
    %14 = arith.select %11, %9, %13 : vector<2x8x8x128xi1>, vector<2x8x8x128xf32>
    %15 = arith.truncf %14 : vector<2x8x8x128xf32> to vector<2x8x8x128xbf16>
    %c0_8 = arith.constant 0 : index
    %c0_9 = arith.constant 0 : index
    %c0_10 = arith.constant 0 : index
    %c0_11 = arith.constant 0 : index
    %16 = vector.load %arg5[%c0_8, %c0_9, %c0_10, %c0_11] : memref<2x8x8x128xbf16, #tpu.memory_space<vmem>>, vector<2x8x8x128xbf16>
    tpu.vector_store %arg5[%c0_8, %c0_9, %c0_10, %c0_11], %15 {strides = array<i32>} : memref<2x8x8x128xbf16, #tpu.memory_space<vmem>>, vector<2x8x8x128xbf16>,
    return
  }
  func.func @transform_0(%arg0: i32, %arg1: i32) -> (i32, i32, i32, i32) {
    %c0_i32 = arith.constant 0 : i32
    %c0_i32_0 = arith.constant 0 : i32
    %c0_i32_1 = arith.constant 0 : i32
    return %arg0, %arg1, %c0_i32, %c0_i32_0 : i32, i32, i32, i32
  }
  func.func @transform_1(%arg0: i32, %arg1: i32) -> (i32, i32) {
    %c0_i32 = arith.constant 0 : i32
    %c0_i32_0 = arith.constant 0 : i32
    %c0_i32_1 = arith.constant 0 : i32
    return %c0_i32, %c0_i32_0 : i32, i32
  }
  func.func @transform_2(%arg0: i32, %arg1: i32) -> (i32, i32) {
    %c0_i32 = arith.constant 0 : i32
    %c0_i32_0 = arith.constant 0 : i32
    %c0_i32_1 = arith.constant 0 : i32
    return %c0_i32, %c0_i32_0 : i32, i32
  }
  func.func @transform_3(%arg0: i32, %arg1: i32) -> (i32, i32, i32, i32) {
    %c0_i32 = arith.constant 0 : i32
    %c0_i32_0 = arith.constant 0 : i32
    %c0_i32_1 = arith.constant 0 : i32
    return %arg0, %arg1, %c0_i32, %c0_i32_0 : i32, i32, i32, i32
  }
}

module attributes {stable_mosaic.version = 11 : i64} {
  func.func @_bn_lrelu_kernel(%arg0: i32, %arg1: i32, %arg2: memref<2x4x8x128xbf16, #tpu.memory_space<vmem>>, %arg3: memref<1x128xf32, #tpu.memory_space<vmem>>, %arg4: memref<1x128xf32, #tpu.memory_space<vmem>>, %arg5: memref<2x4x8x128xbf16, #tpu.memory_space<vmem>>) attributes {dimension_semantics = [#tpu.dimension_semantics<parallel>, #tpu.dimension_semantics<parallel>], iteration_bounds = array<i64: 1, 1>, scalar_prefetch = 0 : i64, scratch_operands = 0 : i64, tpu.core_type = #tpu.core_type<tc>, window_params = [{transform_indices = @transform_0, window_bounds = array<i64: 2, 4, 8, 128>}, {pipeline_mode = #tpu.pipeline_mode<synchronous>, transform_indices = @transform_1, window_bounds = array<i64: 1, 128>}, {pipeline_mode = #tpu.pipeline_mode<synchronous>, transform_indices = @transform_2, window_bounds = array<i64: 1, 128>}, {transform_indices = @transform_3, window_bounds = array<i64: 2, 4, 8, 128>}]} {
    %c0 = arith.constant 0 : index
    %c0_0 = arith.constant 0 : index
    %c0_1 = arith.constant 0 : index
    %c0_2 = arith.constant 0 : index
    %0 = vector.load %arg2[%c0, %c0_0, %c0_1, %c0_2] : memref<2x4x8x128xbf16, #tpu.memory_space<vmem>>, vector<2x4x8x128xbf16>
    %1 = arith.extf %0 : vector<2x4x8x128xbf16> to vector<2x4x8x128xf32>
    %c0_3 = arith.constant 0 : index
    %c0_4 = arith.constant 0 : index
    %2 = vector.load %arg3[%c0_3, %c0_4] : memref<1x128xf32, #tpu.memory_space<vmem>>, vector<1x128xf32>
    %3 = vector.shape_cast %2 : vector<1x128xf32> to vector<1x1x1x128xf32>
    %4 = vector.broadcast %3 : vector<1x1x1x128xf32> to vector<2x4x8x128xf32>
    %5 = arith.mulf %1, %4 : vector<2x4x8x128xf32>
    %c0_5 = arith.constant 0 : index
    %c0_6 = arith.constant 0 : index
    %6 = vector.load %arg4[%c0_5, %c0_6] : memref<1x128xf32, #tpu.memory_space<vmem>>, vector<1x128xf32>
    %7 = vector.shape_cast %6 : vector<1x128xf32> to vector<1x1x1x128xf32>
    %8 = vector.broadcast %7 : vector<1x1x1x128xf32> to vector<2x4x8x128xf32>
    %9 = arith.addf %5, %8 : vector<2x4x8x128xf32>
    %cst = arith.constant 0.000000e+00 : f32
    %10 = vector.broadcast %cst : f32 to vector<2x4x8x128xf32>
    %11 = arith.cmpf oge, %9, %10 : vector<2x4x8x128xf32>
    %cst_7 = arith.constant 2.000000e-01 : f32
    %12 = vector.broadcast %cst_7 : f32 to vector<2x4x8x128xf32>
    %13 = arith.mulf %12, %9 : vector<2x4x8x128xf32>
    %14 = arith.select %11, %9, %13 : vector<2x4x8x128xi1>, vector<2x4x8x128xf32>
    %15 = arith.truncf %14 : vector<2x4x8x128xf32> to vector<2x4x8x128xbf16>
    %c0_8 = arith.constant 0 : index
    %c0_9 = arith.constant 0 : index
    %c0_10 = arith.constant 0 : index
    %c0_11 = arith.constant 0 : index
    %16 = vector.load %arg5[%c0_8, %c0_9, %c0_10, %c0_11] : memref<2x4x8x128xbf16, #tpu.memory_space<vmem>>, vector<2x4x8x128xbf16>
    tpu.vector_store %arg5[%c0_8, %c0_9, %c0_10, %c0_11], %15 {strides = array<i32>} : memref<2x4x8x128xbf16, #tpu.memory_space<vmem>>, vector<2x4x8x128xbf16>,
    return
  }
  func.func @transform_0(%arg0: i32, %arg1: i32) -> (i32, i32, i32, i32) {
    %c0_i32 = arith.constant 0 : i32
    %c0_i32_0 = arith.constant 0 : i32
    %c0_i32_1 = arith.constant 0 : i32
    return %arg0, %arg1, %c0_i32, %c0_i32_0 : i32, i32, i32, i32
  }
  func.func @transform_1(%arg0: i32, %arg1: i32) -> (i32, i32) {
    %c0_i32 = arith.constant 0 : i32
    %c0_i32_0 = arith.constant 0 : i32
    %c0_i32_1 = arith.constant 0 : i32
    return %c0_i32, %c0_i32_0 : i32, i32
  }
  func.func @transform_2(%arg0: i32, %arg1: i32) -> (i32, i32) {
    %c0_i32 = arith.constant 0 : i32
    %c0_i32_0 = arith.constant 0 : i32
    %c0_i32_1 = arith.constant 0 : i32
    return %c0_i32, %c0_i32_0 : i32, i32
  }
  func.func @transform_3(%arg0: i32, %arg1: i32) -> (i32, i32, i32, i32) {
    %c0_i32 = arith.constant 0 : i32
    %c0_i32_0 = arith.constant 0 : i32
    %c0_i32_1 = arith.constant 0 : i32
    return %arg0, %arg1, %c0_i32, %c0_i32_0 : i32, i32, i32, i32
  }
}

module attributes {stable_mosaic.version = 11 : i64} {
  func.func @_conv_stats_kernel(%arg0: i32, %arg1: i32, %arg2: memref<2x4x16x256xbf16, #tpu.memory_space<vmem>>, %arg3: memref<2x1x16x256xbf16, #tpu.memory_space<vmem>>, %arg4: memref<1024x128xbf16, #tpu.memory_space<vmem>>, %arg5: memref<2x4x8x128xbf16, #tpu.memory_space<vmem>>, %arg6: memref<1x2x128xf32, #tpu.memory_space<vmem>>) attributes {dimension_semantics = [#tpu.dimension_semantics<parallel>, #tpu.dimension_semantics<arbitrary>], iteration_bounds = array<i64: 1, 1>, scalar_prefetch = 0 : i64, scratch_operands = 0 : i64, tpu.core_type = #tpu.core_type<tc>, window_params = [{transform_indices = @transform_0, window_bounds = array<i64: 2, 4, 16, 256>}, {transform_indices = @transform_1, window_bounds = array<i64: 2, 1, 16, 256>}, {pipeline_mode = #tpu.pipeline_mode<synchronous>, transform_indices = @transform_2, window_bounds = array<i64: 1024, 128>}, {transform_indices = @transform_3, window_bounds = array<i64: 2, 4, 8, 128>}, {transform_indices = @transform_4, window_bounds = array<i64: 1, 2, 128>}]} {
    %c0_i32 = arith.constant 0 : i32
    %0 = arith.cmpi eq, %arg1, %c0_i32 : i32
    %1 = arith.extui %0 : i1 to i32
    %c0_i32_0 = arith.constant 0 : i32
    %2 = arith.cmpi ne, %1, %c0_i32_0 : i32
    scf.if %2 {
      %cst_23 = arith.constant 0.000000e+00 : f32
      %34 = vector.broadcast %cst_23 : f32 to vector<1x2x128xf32>
      %c0_24 = arith.constant 0 : index
      %c0_25 = arith.constant 0 : index
      %c0_26 = arith.constant 0 : index
      %35 = vector.load %arg6[%c0_24, %c0_25, %c0_26] : memref<1x2x128xf32, #tpu.memory_space<vmem>>, vector<1x2x128xf32>
      tpu.vector_store %arg6[%c0_24, %c0_25, %c0_26], %34 {strides = array<i32>} : memref<1x2x128xf32, #tpu.memory_space<vmem>>, vector<1x2x128xf32>,
    } else {
    }
    %c0 = arith.constant 0 : index
    %c0_1 = arith.constant 0 : index
    %c0_2 = arith.constant 0 : index
    %c0_3 = arith.constant 0 : index
    %3 = vector.load %arg2[%c0, %c0_1, %c0_2, %c0_3] : memref<2x4x16x256xbf16, #tpu.memory_space<vmem>>, vector<2x4x16x256xbf16>
    %4 = vector.extract_strided_slice %3 {offsets = [0, 1, 0, 0], sizes = [2, 3, 16, 256], strides = [1, 1, 1, 1]} : vector<2x4x16x256xbf16> to vector<2x3x16x256xbf16>
    %c0_4 = arith.constant 0 : index
    %c0_5 = arith.constant 0 : index
    %c0_6 = arith.constant 0 : index
    %c0_7 = arith.constant 0 : index
    %5 = vector.load %arg3[%c0_4, %c0_5, %c0_6, %c0_7] : memref<2x1x16x256xbf16, #tpu.memory_space<vmem>>, vector<2x1x16x256xbf16>
    %6 = tpu.concatenate %4, %5 in 1 : vector<2x3x16x256xbf16>, vector<2x1x16x256xbf16> -> vector<2x4x16x256xbf16>
    %7 = tpu.concatenate %3, %6 in 3 : vector<2x4x16x256xbf16>, vector<2x4x16x256xbf16> -> vector<2x4x16x512xbf16>
    %8 = vector.extract_strided_slice %7 {offsets = [0, 0, 0, 0], sizes = [2, 4, 8, 512], strides = [1, 1, 1, 1]} : vector<2x4x16x512xbf16> to vector<2x4x8x512xbf16>
    %9 = vector.extract_strided_slice %7 {offsets = [0, 0, 1, 0], sizes = [2, 4, 8, 512], strides = [1, 1, 1, 1]} : vector<2x4x16x512xbf16> to vector<2x4x8x512xbf16>
    %10 = tpu.concatenate %8, %9 in 3 : vector<2x4x8x512xbf16>, vector<2x4x8x512xbf16> -> vector<2x4x8x1024xbf16>
    %11 = vector.shape_cast %10 : vector<2x4x8x1024xbf16> to vector<64x1024xbf16>
    %c0_8 = arith.constant 0 : index
    %c0_9 = arith.constant 0 : index
    %12 = vector.load %arg4[%c0_8, %c0_9] : memref<1024x128xbf16, #tpu.memory_space<vmem>>, vector<1024x128xbf16>
    %cst = arith.constant dense<0.000000e+00> : vector<64x128xf32>
    %13 = tpu.matmul %11, %12, %cst {dimension_numbers = #tpu.dot_dimension_numbers<[1], [0], [0], [1], [0, 0, 1, 1], [], []>} : vector<64x1024xbf16>, vector<1024x128xbf16>, vector<64x128xf32> -> vector<64x128xf32>
    %14 = vector.shape_cast %13 : vector<64x128xf32> to vector<2x4x8x128xf32>
    %15 = tpu.iota {dimensions = array<i32: 2>} : vector<2x4x8x1xi32>
    %c2_i32 = arith.constant 2 : i32
    %16 = vector.broadcast %c2_i32 : i32 to vector<2x4x8x1xi32>
    %17 = arith.cmpi slt, %15, %16 : vector<2x4x8x1xi32>
    %cst_10 = arith.constant 0.000000e+00 : f32
    %18 = vector.shape_cast %17 : vector<2x4x8x1xi1> to vector<2x4x8x1xi1>
    %19 = vector.broadcast %18 : vector<2x4x8x1xi1> to vector<2x4x8x128xi1>
    %20 = vector.broadcast %cst_10 : f32 to vector<2x4x8x128xf32>
    %21 = arith.select %19, %14, %20 : vector<2x4x8x128xi1>, vector<2x4x8x128xf32>
    %22 = arith.truncf %21 : vector<2x4x8x128xf32> to vector<2x4x8x128xbf16>
    %c0_11 = arith.constant 0 : index
    %c0_12 = arith.constant 0 : index
    %c0_13 = arith.constant 0 : index
    %c0_14 = arith.constant 0 : index
    %23 = vector.load %arg5[%c0_11, %c0_12, %c0_13, %c0_14] : memref<2x4x8x128xbf16, #tpu.memory_space<vmem>>, vector<2x4x8x128xbf16>
    tpu.vector_store %arg5[%c0_11, %c0_12, %c0_13, %c0_14], %22 {strides = array<i32>} : memref<2x4x8x128xbf16, #tpu.memory_space<vmem>>, vector<2x4x8x128xbf16>,
    %cst_15 = arith.constant dense<0.000000e+00> : vector<128xf32>
    %24 = vector.multi_reduction <add>, %21, %cst_15 [0, 1, 2] : vector<2x4x8x128xf32> to vector<128xf32>
    %25 = vector.shape_cast %24 : vector<128xf32> to vector<1x128xf32>
    %26 = arith.mulf %21, %21 : vector<2x4x8x128xf32>
    %cst_16 = arith.constant dense<0.000000e+00> : vector<128xf32>
    %27 = vector.multi_reduction <add>, %26, %cst_16 [0, 1, 2] : vector<2x4x8x128xf32> to vector<128xf32>
    %28 = vector.shape_cast %27 : vector<128xf32> to vector<1x128xf32>
    %c0_17 = arith.constant 0 : index
    %c0_18 = arith.constant 0 : index
    %c0_19 = arith.constant 0 : index
    %29 = vector.load %arg6[%c0_17, %c0_18, %c0_19] : memref<1x2x128xf32, #tpu.memory_space<vmem>>, vector<1x2x128xf32>
    %30 = tpu.concatenate %25, %28 in 0 : vector<1x128xf32>, vector<1x128xf32> -> vector<2x128xf32>
    %31 = vector.shape_cast %30 : vector<2x128xf32> to vector<1x2x128xf32>
    %32 = arith.addf %29, %31 : vector<1x2x128xf32>
    %c0_20 = arith.constant 0 : index
    %c0_21 = arith.constant 0 : index
    %c0_22 = arith.constant 0 : index
    %33 = vector.load %arg6[%c0_20, %c0_21, %c0_22] : memref<1x2x128xf32, #tpu.memory_space<vmem>>, vector<1x2x128xf32>
    tpu.vector_store %arg6[%c0_20, %c0_21, %c0_22], %32 {strides = array<i32>} : memref<1x2x128xf32, #tpu.memory_space<vmem>>, vector<1x2x128xf32>,
    return
  }
  func.func @transform_0(%arg0: i32, %arg1: i32) -> (i32, i32, i32, i32) {
    %c0_i32 = arith.constant 0 : i32
    %c0_i32_0 = arith.constant 0 : i32
    %c0_i32_1 = arith.constant 0 : i32
    return %arg0, %arg1, %c0_i32, %c0_i32_0 : i32, i32, i32, i32
  }
  func.func @transform_1(%arg0: i32, %arg1: i32) -> (i32, i32, i32, i32) {
    %c4_i32 = arith.constant 4 : i32
    %0 = arith.muli %arg1, %c4_i32 : i32
    %c4_i32_0 = arith.constant 4 : i32
    %1 = arith.addi %0, %c4_i32_0 : i32
    %c0_i32 = arith.constant 0 : i32
    %c0_i32_1 = arith.constant 0 : i32
    %c0_i32_2 = arith.constant 0 : i32
    return %arg0, %1, %c0_i32, %c0_i32_1 : i32, i32, i32, i32
  }
  func.func @transform_2(%arg0: i32, %arg1: i32) -> (i32, i32) {
    %c0_i32 = arith.constant 0 : i32
    %c0_i32_0 = arith.constant 0 : i32
    %c0_i32_1 = arith.constant 0 : i32
    return %c0_i32, %c0_i32_0 : i32, i32
  }
  func.func @transform_3(%arg0: i32, %arg1: i32) -> (i32, i32, i32, i32) {
    %c0_i32 = arith.constant 0 : i32
    %c0_i32_0 = arith.constant 0 : i32
    %c0_i32_1 = arith.constant 0 : i32
    return %arg0, %arg1, %c0_i32, %c0_i32_0 : i32, i32, i32, i32
  }
  func.func @transform_4(%arg0: i32, %arg1: i32) -> (i32, i32, i32) {
    %c0_i32 = arith.constant 0 : i32
    %c0_i32_0 = arith.constant 0 : i32
    %c0_i32_1 = arith.constant 0 : i32
    return %arg0, %c0_i32, %c0_i32_0 : i32, i32, i32
  }
}

module attributes {stable_mosaic.version = 11 : i64} {
  func.func @_conv_stats_kernel(%arg0: i32, %arg1: i32, %arg2: memref<2x2x16x512xbf16, #tpu.memory_space<vmem>>, %arg3: memref<2x1x16x512xbf16, #tpu.memory_space<vmem>>, %arg4: memref<2048x256xbf16, #tpu.memory_space<vmem>>, %arg5: memref<2x2x8x256xbf16, #tpu.memory_space<vmem>>, %arg6: memref<1x2x256xf32, #tpu.memory_space<vmem>>) attributes {dimension_semantics = [#tpu.dimension_semantics<parallel>, #tpu.dimension_semantics<arbitrary>], iteration_bounds = array<i64: 1, 1>, scalar_prefetch = 0 : i64, scratch_operands = 0 : i64, tpu.core_type = #tpu.core_type<tc>, window_params = [{transform_indices = @transform_0, window_bounds = array<i64: 2, 2, 16, 512>}, {transform_indices = @transform_1, window_bounds = array<i64: 2, 1, 16, 512>}, {pipeline_mode = #tpu.pipeline_mode<synchronous>, transform_indices = @transform_2, window_bounds = array<i64: 2048, 256>}, {transform_indices = @transform_3, window_bounds = array<i64: 2, 2, 8, 256>}, {transform_indices = @transform_4, window_bounds = array<i64: 1, 2, 256>}]} {
    %c0_i32 = arith.constant 0 : i32
    %0 = arith.cmpi eq, %arg1, %c0_i32 : i32
    %1 = arith.extui %0 : i1 to i32
    %c0_i32_0 = arith.constant 0 : i32
    %2 = arith.cmpi ne, %1, %c0_i32_0 : i32
    scf.if %2 {
      %cst_23 = arith.constant 0.000000e+00 : f32
      %34 = vector.broadcast %cst_23 : f32 to vector<1x2x256xf32>
      %c0_24 = arith.constant 0 : index
      %c0_25 = arith.constant 0 : index
      %c0_26 = arith.constant 0 : index
      %35 = vector.load %arg6[%c0_24, %c0_25, %c0_26] : memref<1x2x256xf32, #tpu.memory_space<vmem>>, vector<1x2x256xf32>
      tpu.vector_store %arg6[%c0_24, %c0_25, %c0_26], %34 {strides = array<i32>} : memref<1x2x256xf32, #tpu.memory_space<vmem>>, vector<1x2x256xf32>,
    } else {
    }
    %c0 = arith.constant 0 : index
    %c0_1 = arith.constant 0 : index
    %c0_2 = arith.constant 0 : index
    %c0_3 = arith.constant 0 : index
    %3 = vector.load %arg2[%c0, %c0_1, %c0_2, %c0_3] : memref<2x2x16x512xbf16, #tpu.memory_space<vmem>>, vector<2x2x16x512xbf16>
    %4 = vector.extract_strided_slice %3 {offsets = [0, 1, 0, 0], sizes = [2, 1, 16, 512], strides = [1, 1, 1, 1]} : vector<2x2x16x512xbf16> to vector<2x1x16x512xbf16>
    %c0_4 = arith.constant 0 : index
    %c0_5 = arith.constant 0 : index
    %c0_6 = arith.constant 0 : index
    %c0_7 = arith.constant 0 : index
    %5 = vector.load %arg3[%c0_4, %c0_5, %c0_6, %c0_7] : memref<2x1x16x512xbf16, #tpu.memory_space<vmem>>, vector<2x1x16x512xbf16>
    %6 = tpu.concatenate %4, %5 in 1 : vector<2x1x16x512xbf16>, vector<2x1x16x512xbf16> -> vector<2x2x16x512xbf16>
    %7 = tpu.concatenate %3, %6 in 3 : vector<2x2x16x512xbf16>, vector<2x2x16x512xbf16> -> vector<2x2x16x1024xbf16>
    %8 = vector.extract_strided_slice %7 {offsets = [0, 0, 0, 0], sizes = [2, 2, 8, 1024], strides = [1, 1, 1, 1]} : vector<2x2x16x1024xbf16> to vector<2x2x8x1024xbf16>
    %9 = vector.extract_strided_slice %7 {offsets = [0, 0, 1, 0], sizes = [2, 2, 8, 1024], strides = [1, 1, 1, 1]} : vector<2x2x16x1024xbf16> to vector<2x2x8x1024xbf16>
    %10 = tpu.concatenate %8, %9 in 3 : vector<2x2x8x1024xbf16>, vector<2x2x8x1024xbf16> -> vector<2x2x8x2048xbf16>
    %11 = vector.shape_cast %10 : vector<2x2x8x2048xbf16> to vector<32x2048xbf16>
    %c0_8 = arith.constant 0 : index
    %c0_9 = arith.constant 0 : index
    %12 = vector.load %arg4[%c0_8, %c0_9] : memref<2048x256xbf16, #tpu.memory_space<vmem>>, vector<2048x256xbf16>
    %cst = arith.constant dense<0.000000e+00> : vector<32x256xf32>
    %13 = tpu.matmul %11, %12, %cst {dimension_numbers = #tpu.dot_dimension_numbers<[1], [0], [0], [1], [0, 0, 1, 1], [], []>} : vector<32x2048xbf16>, vector<2048x256xbf16>, vector<32x256xf32> -> vector<32x256xf32>
    %14 = vector.shape_cast %13 : vector<32x256xf32> to vector<2x2x8x256xf32>
    %15 = tpu.iota {dimensions = array<i32: 2>} : vector<2x2x8x1xi32>
    %c1_i32 = arith.constant 1 : i32
    %16 = vector.broadcast %c1_i32 : i32 to vector<2x2x8x1xi32>
    %17 = arith.cmpi slt, %15, %16 : vector<2x2x8x1xi32>
    %cst_10 = arith.constant 0.000000e+00 : f32
    %18 = vector.shape_cast %17 : vector<2x2x8x1xi1> to vector<2x2x8x1xi1>
    %19 = vector.broadcast %18 : vector<2x2x8x1xi1> to vector<2x2x8x256xi1>
    %20 = vector.broadcast %cst_10 : f32 to vector<2x2x8x256xf32>
    %21 = arith.select %19, %14, %20 : vector<2x2x8x256xi1>, vector<2x2x8x256xf32>
    %22 = arith.truncf %21 : vector<2x2x8x256xf32> to vector<2x2x8x256xbf16>
    %c0_11 = arith.constant 0 : index
    %c0_12 = arith.constant 0 : index
    %c0_13 = arith.constant 0 : index
    %c0_14 = arith.constant 0 : index
    %23 = vector.load %arg5[%c0_11, %c0_12, %c0_13, %c0_14] : memref<2x2x8x256xbf16, #tpu.memory_space<vmem>>, vector<2x2x8x256xbf16>
    tpu.vector_store %arg5[%c0_11, %c0_12, %c0_13, %c0_14], %22 {strides = array<i32>} : memref<2x2x8x256xbf16, #tpu.memory_space<vmem>>, vector<2x2x8x256xbf16>,
    %cst_15 = arith.constant dense<0.000000e+00> : vector<256xf32>
    %24 = vector.multi_reduction <add>, %21, %cst_15 [0, 1, 2] : vector<2x2x8x256xf32> to vector<256xf32>
    %25 = vector.shape_cast %24 : vector<256xf32> to vector<1x256xf32>
    %26 = arith.mulf %21, %21 : vector<2x2x8x256xf32>
    %cst_16 = arith.constant dense<0.000000e+00> : vector<256xf32>
    %27 = vector.multi_reduction <add>, %26, %cst_16 [0, 1, 2] : vector<2x2x8x256xf32> to vector<256xf32>
    %28 = vector.shape_cast %27 : vector<256xf32> to vector<1x256xf32>
    %c0_17 = arith.constant 0 : index
    %c0_18 = arith.constant 0 : index
    %c0_19 = arith.constant 0 : index
    %29 = vector.load %arg6[%c0_17, %c0_18, %c0_19] : memref<1x2x256xf32, #tpu.memory_space<vmem>>, vector<1x2x256xf32>
    %30 = tpu.concatenate %25, %28 in 0 : vector<1x256xf32>, vector<1x256xf32> -> vector<2x256xf32>
    %31 = vector.shape_cast %30 : vector<2x256xf32> to vector<1x2x256xf32>
    %32 = arith.addf %29, %31 : vector<1x2x256xf32>
    %c0_20 = arith.constant 0 : index
    %c0_21 = arith.constant 0 : index
    %c0_22 = arith.constant 0 : index
    %33 = vector.load %arg6[%c0_20, %c0_21, %c0_22] : memref<1x2x256xf32, #tpu.memory_space<vmem>>, vector<1x2x256xf32>
    tpu.vector_store %arg6[%c0_20, %c0_21, %c0_22], %32 {strides = array<i32>} : memref<1x2x256xf32, #tpu.memory_space<vmem>>, vector<1x2x256xf32>,
    return
  }
  func.func @transform_0(%arg0: i32, %arg1: i32) -> (i32, i32, i32, i32) {
    %c0_i32 = arith.constant 0 : i32
    %c0_i32_0 = arith.constant 0 : i32
    %c0_i32_1 = arith.constant 0 : i32
    return %arg0, %arg1, %c0_i32, %c0_i32_0 : i32, i32, i32, i32
  }
  func.func @transform_1(%arg0: i32, %arg1: i32) -> (i32, i32, i32, i32) {
    %c2_i32 = arith.constant 2 : i32
    %0 = arith.muli %arg1, %c2_i32 : i32
    %c2_i32_0 = arith.constant 2 : i32
    %1 = arith.addi %0, %c2_i32_0 : i32
    %c0_i32 = arith.constant 0 : i32
    %c0_i32_1 = arith.constant 0 : i32
    %c0_i32_2 = arith.constant 0 : i32
    return %arg0, %1, %c0_i32, %c0_i32_1 : i32, i32, i32, i32
  }
  func.func @transform_2(%arg0: i32, %arg1: i32) -> (i32, i32) {
    %c0_i32 = arith.constant 0 : i32
    %c0_i32_0 = arith.constant 0 : i32
    %c0_i32_1 = arith.constant 0 : i32
    return %c0_i32, %c0_i32_0 : i32, i32
  }
  func.func @transform_3(%arg0: i32, %arg1: i32) -> (i32, i32, i32, i32) {
    %c0_i32 = arith.constant 0 : i32
    %c0_i32_0 = arith.constant 0 : i32
    %c0_i32_1 = arith.constant 0 : i32
    return %arg0, %arg1, %c0_i32, %c0_i32_0 : i32, i32, i32, i32
  }
  func.func @transform_4(%arg0: i32, %arg1: i32) -> (i32, i32, i32) {
    %c0_i32 = arith.constant 0 : i32
    %c0_i32_0 = arith.constant 0 : i32
    %c0_i32_1 = arith.constant 0 : i32
    return %arg0, %c0_i32, %c0_i32_0 : i32, i32, i32
  }
}

module attributes {stable_mosaic.version = 11 : i64} {
  func.func @_bn_lrelu_kernel(%arg0: i32, %arg1: i32, %arg2: memref<2x2x8x256xbf16, #tpu.memory_space<vmem>>, %arg3: memref<1x256xf32, #tpu.memory_space<vmem>>, %arg4: memref<1x256xf32, #tpu.memory_space<vmem>>, %arg5: memref<2x2x8x256xbf16, #tpu.memory_space<vmem>>) attributes {dimension_semantics = [#tpu.dimension_semantics<parallel>, #tpu.dimension_semantics<parallel>], iteration_bounds = array<i64: 1, 1>, scalar_prefetch = 0 : i64, scratch_operands = 0 : i64, tpu.core_type = #tpu.core_type<tc>, window_params = [{transform_indices = @transform_0, window_bounds = array<i64: 2, 2, 8, 256>}, {pipeline_mode = #tpu.pipeline_mode<synchronous>, transform_indices = @transform_1, window_bounds = array<i64: 1, 256>}, {pipeline_mode = #tpu.pipeline_mode<synchronous>, transform_indices = @transform_2, window_bounds = array<i64: 1, 256>}, {transform_indices = @transform_3, window_bounds = array<i64: 2, 2, 8, 256>}]} {
    %c0 = arith.constant 0 : index
    %c0_0 = arith.constant 0 : index
    %c0_1 = arith.constant 0 : index
    %c0_2 = arith.constant 0 : index
    %0 = vector.load %arg2[%c0, %c0_0, %c0_1, %c0_2] : memref<2x2x8x256xbf16, #tpu.memory_space<vmem>>, vector<2x2x8x256xbf16>
    %1 = arith.extf %0 : vector<2x2x8x256xbf16> to vector<2x2x8x256xf32>
    %c0_3 = arith.constant 0 : index
    %c0_4 = arith.constant 0 : index
    %2 = vector.load %arg3[%c0_3, %c0_4] : memref<1x256xf32, #tpu.memory_space<vmem>>, vector<1x256xf32>
    %3 = vector.shape_cast %2 : vector<1x256xf32> to vector<1x1x1x256xf32>
    %4 = vector.broadcast %3 : vector<1x1x1x256xf32> to vector<2x2x8x256xf32>
    %5 = arith.mulf %1, %4 : vector<2x2x8x256xf32>
    %c0_5 = arith.constant 0 : index
    %c0_6 = arith.constant 0 : index
    %6 = vector.load %arg4[%c0_5, %c0_6] : memref<1x256xf32, #tpu.memory_space<vmem>>, vector<1x256xf32>
    %7 = vector.shape_cast %6 : vector<1x256xf32> to vector<1x1x1x256xf32>
    %8 = vector.broadcast %7 : vector<1x1x1x256xf32> to vector<2x2x8x256xf32>
    %9 = arith.addf %5, %8 : vector<2x2x8x256xf32>
    %cst = arith.constant 0.000000e+00 : f32
    %10 = vector.broadcast %cst : f32 to vector<2x2x8x256xf32>
    %11 = arith.cmpf oge, %9, %10 : vector<2x2x8x256xf32>
    %cst_7 = arith.constant 2.000000e-01 : f32
    %12 = vector.broadcast %cst_7 : f32 to vector<2x2x8x256xf32>
    %13 = arith.mulf %12, %9 : vector<2x2x8x256xf32>
    %14 = arith.select %11, %9, %13 : vector<2x2x8x256xi1>, vector<2x2x8x256xf32>
    %15 = arith.truncf %14 : vector<2x2x8x256xf32> to vector<2x2x8x256xbf16>
    %c0_8 = arith.constant 0 : index
    %c0_9 = arith.constant 0 : index
    %c0_10 = arith.constant 0 : index
    %c0_11 = arith.constant 0 : index
    %16 = vector.load %arg5[%c0_8, %c0_9, %c0_10, %c0_11] : memref<2x2x8x256xbf16, #tpu.memory_space<vmem>>, vector<2x2x8x256xbf16>
    tpu.vector_store %arg5[%c0_8, %c0_9, %c0_10, %c0_11], %15 {strides = array<i32>} : memref<2x2x8x256xbf16, #tpu.memory_space<vmem>>, vector<2x2x8x256xbf16>,
    return
  }
  func.func @transform_0(%arg0: i32, %arg1: i32) -> (i32, i32, i32, i32) {
    %c0_i32 = arith.constant 0 : i32
    %c0_i32_0 = arith.constant 0 : i32
    %c0_i32_1 = arith.constant 0 : i32
    return %arg0, %arg1, %c0_i32, %c0_i32_0 : i32, i32, i32, i32
  }
  func.func @transform_1(%arg0: i32, %arg1: i32) -> (i32, i32) {
    %c0_i32 = arith.constant 0 : i32
    %c0_i32_0 = arith.constant 0 : i32
    %c0_i32_1 = arith.constant 0 : i32
    return %c0_i32, %c0_i32_0 : i32, i32
  }
  func.func @transform_2(%arg0: i32, %arg1: i32) -> (i32, i32) {
    %c0_i32 = arith.constant 0 : i32
    %c0_i32_0 = arith.constant 0 : i32
    %c0_i32_1 = arith.constant 0 : i32
    return %c0_i32, %c0_i32_0 : i32, i32
  }
  func.func @transform_3(%arg0: i32, %arg1: i32) -> (i32, i32, i32, i32) {
    %c0_i32 = arith.constant 0 : i32
    %c0_i32_0 = arith.constant 0 : i32
    %c0_i32_1 = arith.constant 0 : i32
    return %arg0, %arg1, %c0_i32, %c0_i32_0 : i32, i32, i32, i32
  }
}

</mosaic_0001>

<bundles_post_ra>
// kernel: discriminator_forward.10
= control target key start
LH: loop header
LB: loop body
LE: loop exit
PB: predicated region body
PF: predicated region fallthrough
CT: control target
= control target key end

     0   :  { %vm2175_vm0 = vcmask 1040384   ;;  %s4025_s1 = inlined_call_operand.vmem [shape: bf16[128,128], index: 1, kind: input, shape index: {}]   ;;  %s4026_s0 = inlined_call_operand.vmem [shape: bf16[2,32,16,128], index: 0, kind: input, shape index: {}]   ;;  %s4027_s2 = inlined_call_operand.vmem [shape: bf16[2,32,16,128], index: 2, kind: output, shape index: {0}]   ;;  %s4028_s3 = inlined_call_operand.vmem [shape: f32[1,2,128], index: 3, kind: output, shape index: {1}]  }
   0x1   :  { %v3131_v0 = vld [vmem:[%s4025_s1] sm:$0xff]   ;;  %v3132_v1 = vld [vmem:[%s4025_s1 + $0x8] sm:$0xff]   ;;  %v3133_v2 = vld [vmem:[%s4025_s1 + $0x10] sm:$0xff]  }
   0x2   :  { %2970 = vmatprep.subr.bf16.mxu0 %v3131_v0  ;;  %3114 = vmatprep.subr.bf16.mxu1 %v3131_v0  ;;  %v3134_v3 = vld [vmem:[%s4025_s1 + $0x18] sm:$0xff]   ;;  %v3139_v4 = vld [vmem:[%s4026_s0] sm:$0xff]   ;;  %v3136_v6 = vld [vmem:[%s4025_s1 + $0x28] sm:$0xff]  }
   0x3   :  { %2971 = vmatpush3.bf16.msra.mxu0 %v3131_v0  ;;  %3122 = vmatpush3.bf16.msra.mxu1 %v3131_v0  ;;  %v3135_v5 = vld [vmem:[%s4025_s1 + $0x20] sm:$0xff]   ;;  %v3137_v7 = vld [vmem:[%s4025_s1 + $0x30] sm:$0xff]   ;;  %v3138_v8 = vld [vmem:[%s4025_s1 + $0x38] sm:$0xff]  }
   0x4   :  { %2972 = vmatprep.subr.bf16.mxu0 %v3132_v1  ;;  %3115 = vmatprep.subr.bf16.mxu1 %v3132_v1  ;;  %v3140_v9 = vld [vmem:[%s4026_s0 + $0x8] sm:$0xff]   ;;  %v3141_v10 = vld [vmem:[%s4026_s0 + $0x10] sm:$0xff]   ;;  %v3142_v11 = vld [vmem:[%s4026_s0 + $0x18] sm:$0xff]  }
   0x5   :  { %2986 = vmatprep.mubr.bf16.mxu0 %v3139_v4  ;;  %v3143_v12 = vld [vmem:[%s4026_s0 + $0x20] sm:$0xff]   ;;  %v3172_v14 = vld [vmem:[%s4026_s0 + $0x108] sm:$0xff]   ;;  %v3173_v15 = vld [vmem:[%s4026_s0 + $0x110] sm:$0xff]  }
   0x6   :  { %v3171_v13 = vld [vmem:[%s4026_s0 + $0x100] sm:$0xff]   ;;  %v3144_v16 = vld [vmem:[%s4026_s0 + $0x28] sm:$0xff]   ;;  %v3145_v17 = vld [vmem:[%s4026_s0 + $0x30] sm:$0xff]  }
   0x7   :  { %2973 = vmatpush3.bf16.msra.mxu0 %v3132_v1  ;;  %3123 = vmatpush3.bf16.msra.mxu1 %v3132_v1  ;;  %v3174_v18 = vld [vmem:[%s4026_s0 + $0x118] sm:$0xff]   ;;  %v3175_v19 = vld [vmem:[%s4026_s0 + $0x120] sm:$0xff]   ;;  %v3176_v22 = vld [vmem:[%s4026_s0 + $0x128] sm:$0xff]  }
   0x8   :  { %2974 = vmatprep.subr.bf16.mxu0 %v3133_v2  ;;  %3116 = vmatprep.subr.bf16.mxu1 %v3133_v2  ;;  %v3146_v20 = vld [vmem:[%s4026_s0 + $0x38] sm:$0xff]   ;;  %v3147_v21 = vld [vmem:[%s4026_s0 + $0x40] sm:$0xff]   ;;  %v3177_v23 = vld [vmem:[%s4026_s0 + $0x130] sm:$0xff]  }
   0x9   :  { %3050 = vmatprep.mubr.bf16.mxu1 %v3171_v13  ;;  %v3148_v24 = vld [vmem:[%s4026_s0 + $0x48] sm:$0xff]   ;;  %v3149_v25 = vld [vmem:[%s4026_s0 + $0x50] sm:$0xff]   ;;  %v3178_v26 = vld [vmem:[%s4026_s0 + $0x138] sm:$0xff]  }
   0xa   :  { %v3179_v27 = vld [vmem:[%s4026_s0 + $0x140] sm:$0xff]   ;;  %v3150_v28 = vld [vmem:[%s4026_s0 + $0x58] sm:$0xff]   ;;  %v3180_v30 = vld [vmem:[%s4026_s0 + $0x148] sm:$0xff]  }
   0xb   :  { %2975 = vmatpush3.bf16.msra.mxu0 %v3133_v2  ;;  %3124 = vmatpush3.bf16.msra.mxu1 %v3133_v2  ;;  %v3151_v29 = vld [vmem:[%s4026_s0 + $0x60] sm:$0xff]   ;;  %v3181_v31 = vld [vmem:[%s4026_s0 + $0x150] sm:$0xff]   ;;  %v3152_v32 = vld [vmem:[%s4026_s0 + $0x68] sm:$0xff]  }
   0xc   :  { %2976 = vmatprep.subr.bf16.mxu0 %v3134_v3  ;;  %3117 = vmatprep.subr.bf16.mxu1 %v3134_v3  ;;  %v3153_v33 = vld [vmem:[%s4026_s0 + $0x70] sm:$0xff]   ;;  %v3182_v34 = vld [vmem:[%s4026_s0 + $0x158] sm:$0xff]   ;;  %v3183_v35 = vld [vmem:[%s4026_s0 + $0x160] sm:$0xff]  }
   0xd   :  { %v3154_v36 = vld [vmem:[%s4026_s0 + $0x78] sm:$0xff]   ;;  %v3155_v37 = vld [vmem:[%s4026_s0 + $0x80] sm:$0xff]   ;;  %v3184_v38 = vld [vmem:[%s4026_s0 + $0x168] sm:$0xff]  }
   0xe   :  { %v3185_v39 = vld [vmem:[%s4026_s0 + $0x170] sm:$0xff]   ;;  %v3156_v40 = vld [vmem:[%s4026_s0 + $0x88] sm:$0xff]   ;;  %v3186_v42 = vld [vmem:[%s4026_s0 + $0x178] sm:$0xff]  }
   0xf   :  { %2977 = vmatpush3.bf16.msra.mxu0 %v3134_v3  ;;  %3125 = vmatpush3.bf16.msra.mxu1 %v3134_v3  ;;  %v3157_v41 = vld [vmem:[%s4026_s0 + $0x90] sm:$0xff]   ;;  %v3187_v43 = vld [vmem:[%s4026_s0 + $0x180] sm:$0xff]   ;;  %v3158_v44 = vld [vmem:[%s4026_s0 + $0x98] sm:$0xff]  }
  0x10   :  { %2978 = vmatprep.subr.bf16.mxu0 %v3135_v5  ;;  %3118 = vmatprep.subr.bf16.mxu1 %v3135_v5  ;;  %v3159_v45 = vld [vmem:[%s4026_s0 + $0xa0] sm:$0xff]   ;;  %v3188_v46 = vld [vmem:[%s4026_s0 + $0x188] sm:$0xff]   ;;  %v3189_v47 = vld [vmem:[%s4026_s0 + $0x190] sm:$0xff]  }
  0x11   :  { %v3160_v48 = vld [vmem:[%s4026_s0 + $0xa8] sm:$0xff]   ;;  %v3161_v49 = vld [vmem:[%s4026_s0 + $0xb0] sm:$0xff]   ;;  %v3190_v50 = vld [vmem:[%s4026_s0 + $0x198] sm:$0xff]  }
  0x12   :  { %v3191_v51 = vld [vmem:[%s4026_s0 + $0x1a0] sm:$0xff]   ;;  %v3162_v52 = vld [vmem:[%s4026_s0 + $0xb8] sm:$0xff]   ;;  %v3192_v54 = vld [vmem:[%s4026_s0 + $0x1a8] sm:$0xff]  }
  0x13   :  { %2979 = vmatpush3.bf16.msra.mxu0 %v3135_v5  ;;  %3126 = vmatpush3.bf16.msra.mxu1 %v3135_v5  ;;  %v3163_v53 = vld [vmem:[%s4026_s0 + $0xc0] sm:$0xff]   ;;  %v3193_v55 = vld [vmem:[%s4026_s0 + $0x1b0] sm:$0xff]   ;;  %v3164_v56 = vld [vmem:[%s4026_s0 + $0xc8] sm:$0xff]  }
  0x14   :  { %2980 = vmatprep.subr.bf16.mxu0 %v3136_v6  ;;  %3119 = vmatprep.subr.bf16.mxu1 %v3136_v6  ;;  %v3165_v57 = vld [vmem:[%s4026_s0 + $0xd0] sm:$0xff]   ;;  %v3194_v58 = vld [vmem:[%s4026_s0 + $0x1b8] sm:$0xff]   ;;  %v3195_v59 = vld [vmem:[%s4026_s0 + $0x1c0] sm:$0xff]  }
  0x15   :  { %v3166_v60 = vld [vmem:[%s4026_s0 + $0xd8] sm:$0xff]   ;;  %v3167_v61 = vld [vmem:[%s4026_s0 + $0xe0] sm:$0xff]   ;;  %v3196_v62 = vld [vmem:[%s4026_s0 + $0x1c8] sm:$0xff]  }
  0x16   :  { %v3197_v63 = vld [vmem:[%s4026_s0 + $0x1d0] sm:$0xff]   ;;  %v3168_v0 = vld [vmem:[%s4026_s0 + $0xe8] sm:$0xff]   ;;  %v3198_v2 = vld [vmem:[%s4026_s0 + $0x1d8] sm:$0xff]  }
  0x17   :  { %2981 = vmatpush3.bf16.msra.mxu0 %v3136_v6  ;;  %3127 = vmatpush3.bf16.msra.mxu1 %v3136_v6  ;;  %v3169_v1 = vld [vmem:[%s4026_s0 + $0xf0] sm:$0xff]   ;;  %v3199_v3 = vld [vmem:[%s4026_s0 + $0x1e0] sm:$0xff]   ;;  %v3170_v4 = vld [vmem:[%s4026_s0 + $0xf8] sm:$0xff]  }
  0x18   :  { %2982 = vmatprep.subr.bf16.mxu0 %v3137_v7  ;;  %3120 = vmatprep.subr.bf16.mxu1 %v3137_v7  ;;  %v3200_v5 = vld [vmem:[%s4026_s0 + $0x1e8] sm:$0xff]   ;;  %v3201_v6 = vld [vmem:[%s4026_s0 + $0x1f0] sm:$0xff]  }
  0x1b   :  { %2983 = vmatpush3.bf16.msra.mxu0 %v3137_v7  ;;  %3128 = vmatpush3.bf16.msra.mxu1 %v3137_v7  ;;  %v3202_v7 = vld [vmem:[%s4026_s0 + $0x1f8] sm:$0xff]  }
  0x1c   :  { %2984 = vmatprep.subr.bf16.mxu0 %v3138_v8  ;;  %3121 = vmatprep.subr.bf16.mxu1 %v3138_v8 }
  0x1f   :  { %2985 = vmatpush3.bf16.msra.mxu0 %v3138_v8  ;;  %3129 = vmatpush3.bf16.msra.mxu1 %v3138_v8 }
  0x22   :  { %2987 = vmatmul.mubr.bf16.vlgmr.msra.gmra.mrb[0].mxu0 %v3140_v9  ;;  %3051 = vmatmul.mubr.bf16.vlgmr.msra.gmra.mrb[0].mxu1 %v3172_v14 }
  0x23   :  { %2990 = vmatprep.mubr.bf16.mxu0 %v3141_v10  ;;  %3054 = vmatprep.mubr.bf16.mxu1 %v3173_v15 }
  0x2a   :  { %2991 = vmatmul.mubr.bf16.gmra.mrb[4].mxu0 %v3142_v11  ;;  %3055 = vmatmul.mubr.bf16.gmra.mrb[4].mxu1 %v3174_v18 }
  0x2b   :  { %2994 = vmatprep.mubr.bf16.mxu0 %v3143_v12  ;;  %3058 = vmatprep.mubr.bf16.mxu1 %v3175_v19 }
  0x32   :  { %2995 = vmatmul.mubr.bf16.gmra.mrb[8].mxu0 %v3144_v16  ;;  %3059 = vmatmul.mubr.bf16.gmra.mrb[8].mxu1 %v3176_v22 }
  0x33   :  { %2998 = vmatprep.mubr.bf16.mxu0 %v3145_v17  ;;  %3062 = vmatprep.mubr.bf16.mxu1 %v3177_v23 }
  0x3a   :  { %2999 = vmatmul.mubr.bf16.gmra.mrb[12].mxu0 %v3146_v20  ;;  %3063 = vmatmul.mubr.bf16.gmra.mrb[12].mxu1 %v3178_v26 }
  0x3b   :  { %3002 = vmatprep.mubr.bf16.mxu0 %v3147_v21  ;;  %3066 = vmatprep.mubr.bf16.mxu1 %v3179_v27 }
  0x42   :  { %3003 = vmatmul.mubr.bf16.gmra.mrb[16].mxu0 %v3148_v24  ;;  %3067 = vmatmul.mubr.bf16.gmra.mrb[16].mxu1 %v3180_v30 }
  0x43   :  { %3006 = vmatprep.mubr.bf16.mxu0 %v3149_v25  ;;  %3070 = vmatprep.mubr.bf16.mxu1 %v3181_v31 }
  0x4a   :  { %3007 = vmatmul.mubr.bf16.gmra.mrb[20].mxu0 %v3150_v28  ;;  %3071 = vmatmul.mubr.bf16.gmra.mrb[20].mxu1 %v3182_v34 }
  0x4b   :  { %3010 = vmatprep.mubr.bf16.mxu0 %v3151_v29  ;;  %3074 = vmatprep.mubr.bf16.mxu1 %v3183_v35 }
  0x52   :  { %3011 = vmatmul.mubr.bf16.gmra.mrb[24].mxu0 %v3152_v32  ;;  %3075 = vmatmul.mubr.bf16.gmra.mrb[24].mxu1 %v3184_v38 }
  0x53   :  { %3014 = vmatprep.mubr.bf16.mxu0 %v3153_v33  ;;  %3078 = vmatprep.mubr.bf16.mxu1 %v3185_v39 }
  0x5a   :  { %3015 = vmatmul.mubr.bf16.gmra.mrb[28].mxu0 %v3154_v36  ;;  %3079 = vmatmul.mubr.bf16.gmra.mrb[28].mxu1 %v3186_v42 }
  0x5b   :  { %3018 = vmatprep.mubr.bf16.mxu0 %v3155_v37  ;;  %3082 = vmatprep.mubr.bf16.mxu1 %v3187_v43 }
  0x62   :  { %3019 = vmatmul.mubr.bf16.gmra.mrb[32].mxu0 %v3156_v40  ;;  %3083 = vmatmul.mubr.bf16.gmra.mrb[32].mxu1 %v3188_v46 }
  0x63   :  { %3022 = vmatprep.mubr.bf16.mxu0 %v3157_v41  ;;  %3086 = vmatprep.mubr.bf16.mxu1 %v3189_v47 }
  0x6a   :  { %3023 = vmatmul.mubr.bf16.gmra.mrb[36].mxu0 %v3158_v44  ;;  %3087 = vmatmul.mubr.bf16.gmra.mrb[36].mxu1 %v3190_v50 }
  0x6b   :  { %3026 = vmatprep.mubr.bf16.mxu0 %v3159_v45  ;;  %3090 = vmatprep.mubr.bf16.mxu1 %v3191_v51 }
  0x72   :  { %3027 = vmatmul.mubr.bf16.gmra.mrb[40].mxu0 %v3160_v48  ;;  %3091 = vmatmul.mubr.bf16.gmra.mrb[40].mxu1 %v3192_v54 }
  0x73   :  { %3030 = vmatprep.mubr.bf16.mxu0 %v3161_v49  ;;  %3094 = vmatprep.mubr.bf16.mxu1 %v3193_v55 }
  0x7a   :  { %3031 = vmatmul.mubr.bf16.gmra.mrb[44].mxu0 %v3162_v52  ;;  %3095 = vmatmul.mubr.bf16.gmra.mrb[44].mxu1 %v3194_v58 }
  0x7b   :  { %3034 = vmatprep.mubr.bf16.mxu0 %v3163_v53  ;;  %3098 = vmatprep.mubr.bf16.mxu1 %v3195_v59 }
  0x82   :  { %3035 = vmatmul.mubr.bf16.gmra.mrb[48].mxu0 %v3164_v56  ;;  %3099 = vmatmul.mubr.bf16.gmra.mrb[48].mxu1 %v3196_v62 }
  0x83   :  { %3038 = vmatprep.mubr.bf16.mxu0 %v3165_v57  ;;  %3102 = vmatprep.mubr.bf16.mxu1 %v3197_v63 }
  0x8a   :  { %3039 = vmatmul.mubr.bf16.gmra.mrb[52].mxu0 %v3166_v60  ;;  %3103 = vmatmul.mubr.bf16.gmra.mrb[52].mxu1 %v3198_v2 }
  0x8b   :  { %3042 = vmatprep.mubr.bf16.mxu0 %v3167_v61  ;;  %3106 = vmatprep.mubr.bf16.mxu1 %v3199_v3 }
  0x92   :  { %3043 = vmatmul.mubr.bf16.gmra.mrb[56].mxu0 %v3168_v0  ;;  %3107 = vmatmul.mubr.bf16.gmra.mrb[56].mxu1 %v3200_v5 }
  0x93   :  { %3046 = vmatprep.mubr.bf16.mxu0 %v3169_v1  ;;  %3110 = vmatprep.mubr.bf16.mxu1 %v3201_v6 }
  0x9a   :  { %3047 = vmatmul.mubr.bf16.gmra.mrb[60].mxu0 %v3170_v4  ;;  %3111 = vmatmul.mubr.bf16.gmra.mrb[60].mxu1 %v3202_v7 }
  0xf5   :  { %v2988_v8 = vpop.f32.mrb[0].mxu0  ;;  %v3446_v25 = vpop.f32.mrb[0].mxu1 }
  0xf6   :  { %v629_v9 = vpop.f32.mrb[1].mxu0  ;;  %v1915_v17 = vmul.f32 %v2988_v8, %v2988_v8  ;;  %v3448_v30 = vpop.f32.mrb[1].mxu1 }
  0xf7   :  { %v2989_v10 = vpop.f32.mrb[2].mxu0  ;;  %v1913_v13 = vmul.f32 %v629_v9, %v629_v9  ;;  %v3450_v33 = vpop.f32.mrb[2].mxu1 }
  0xf8   :  { %v2523_v11 = vpack.c.bf16 %v2989_v10, %v2988_v8  ;;  %v632_v12 = vpop.f32.mrb[3].mxu0  ;;  %v1916_v20 = vmul.f32 %v2989_v10, %v2989_v10  ;;  %v3452_v38 = vpop.f32.mrb[3].mxu1  ;;  %v2683_v39 = vpack.c.bf16 %v3450_v33, %v3446_v25 }
  0xf9   :  { %v2518_v14 = vpack.c.bf16 %v632_v12, %v629_v9  ;;  %v1780_v15 = vadd.f32 %v632_v12, %v629_v9  ;;  %v1914_v16 = vmul.f32 %v632_v12, %v632_v12  ;;  %v2678_v40 = vpack.c.bf16 %v3452_v38, %v3448_v30 }
  0xfa   :  { %2835 = vst [vmem:[%s4027_s2 + $0x8] sm:$0xff] %v2523_v11   ;;  %2867 = vst [vmem:[%s4027_s2 + $0x108] sm:$0xff] %v2683_v39  }
  0xfb   :  { %2519 = vst [vmem:[%s4027_s2] sm:$0xff] %v2518_v14   ;;  %v1781_v18 = vadd.f32 %v2988_v8, %v1780_v15  ;;  %v2041_v19 = vadd.f32 %v1914_v16, %v1913_v13  ;;  %2866 = vst [vmem:[%s4027_s2 + $0x100] sm:$0xff] %v2678_v40  }
  0xfd   :  { %v2042_v21 = vadd.f32 %v2041_v19, %v1915_v17  ;;  %v2992_v22 = vpop.f32.mrb[4].mxu0  ;;  %v1782_v23 = vadd.f32 %v2989_v10, %v1781_v18  ;;  %v3470_v49 = vpop.f32.mrb[4].mxu1 }
  0xfe   :  { %v645_v24 = vpop.f32.mrb[5].mxu0  ;;  %v1919_v41 = vmul.f32 %v2992_v22, %v2992_v22  ;;  %v3472_v54 = vpop.f32.mrb[5].mxu1 }
  0xff   :  { %v1783_v26 = vadd.f32 %v1782_v23, %v645_v24  ;;  %v1917_v27 = vmul.f32 %v645_v24, %v645_v24  ;;  %v2043_v28 = vadd.f32 %v2042_v21, %v1916_v20  ;;  %v2993_v29 = vpop.f32.mrb[6].mxu0  ;;  %v3474_v57 = vpop.f32.mrb[6].mxu1 }
 0x100   :  { %v2533_v31 = vpack.c.bf16 %v2993_v29, %v2992_v22  ;;  %v648_v32 = vpop.f32.mrb[7].mxu0  ;;  %v1920_v44 = vmul.f32 %v2993_v29, %v2993_v29  ;;  %v3476_v62 = vpop.f32.mrb[7].mxu1  ;;  %v2693_v63 = vpack.c.bf16 %v3474_v57, %v3470_v49 }
 0x101   :  { %v2044_v34 = vadd.f32 %v2043_v28, %v1917_v27  ;;  %v2528_v35 = vpack.c.bf16 %v648_v32, %v645_v24  ;;  %v1784_v36 = vadd.f32 %v1783_v26, %v648_v32  ;;  %v1918_v37 = vmul.f32 %v648_v32, %v648_v32 }
 0x102   :  { %2837 = vst [vmem:[%s4027_s2 + $0x18] sm:$0xff] %v2533_v31   ;;  %v2688_v0 = vpack.c.bf16 %v3476_v62, %v3472_v54  ;;  %2869 = vst [vmem:[%s4027_s2 + $0x118] sm:$0xff] %v2693_v63  }
 0x103   :  { %2836 = vst [vmem:[%s4027_s2 + $0x10] sm:$0xff] %v2528_v35   ;;  %v1785_v42 = vadd.f32 %v2992_v22, %v1784_v36  ;;  %v2045_v43 = vadd.f32 %v2044_v34, %v1918_v37 }
 0x104   :  { %2868 = vst [vmem:[%s4027_s2 + $0x110] sm:$0xff] %v2688_v0  }
 0x105   :  { %v2046_v45 = vadd.f32 %v2045_v43, %v1919_v41  ;;  %v2996_v46 = vpop.f32.mrb[8].mxu0  ;;  %v1786_v47 = vadd.f32 %v2993_v29, %v1785_v42  ;;  %v3494_v9 = vpop.f32.mrb[8].mxu1 }
 0x106   :  { %v661_v48 = vpop.f32.mrb[9].mxu0  ;;  %v1923_v1 = vmul.f32 %v2996_v46, %v2996_v46  ;;  %v3496_v14 = vpop.f32.mrb[9].mxu1 }
 0x107   :  { %v1787_v50 = vadd.f32 %v1786_v47, %v661_v48  ;;  %v1921_v51 = vmul.f32 %v661_v48, %v661_v48  ;;  %v2047_v52 = vadd.f32 %v2046_v45, %v1920_v44  ;;  %v2997_v53 = vpop.f32.mrb[10].mxu0  ;;  %v3498_v17 = vpop.f32.mrb[10].mxu1 }
 0x108   :  { %v2543_v55 = vpack.c.bf16 %v2997_v53, %v2996_v46  ;;  %v664_v56 = vpop.f32.mrb[11].mxu0  ;;  %v1924_v4 = vmul.f32 %v2997_v53, %v2997_v53  ;;  %v3500_v22 = vpop.f32.mrb[11].mxu1  ;;  %v2703_v23 = vpack.c.bf16 %v3498_v17, %v3494_v9 }
 0x109   :  { %v2048_v58 = vadd.f32 %v2047_v52, %v1921_v51  ;;  %v2538_v59 = vpack.c.bf16 %v664_v56, %v661_v48  ;;  %v1788_v60 = vadd.f32 %v1787_v50, %v664_v56  ;;  %v1922_v61 = vmul.f32 %v664_v56, %v664_v56 }
 0x10a   :  { %2839 = vst [vmem:[%s4027_s2 + $0x28] sm:$0xff] %v2543_v55   ;;  %v2698_v24 = vpack.c.bf16 %v3500_v22, %v3496_v14  ;;  %2871 = vst [vmem:[%s4027_s2 + $0x128] sm:$0xff] %v2703_v23  }
 0x10b   :  { %2838 = vst [vmem:[%s4027_s2 + $0x20] sm:$0xff] %v2538_v59   ;;  %v1789_v2 = vadd.f32 %v2996_v46, %v1788_v60  ;;  %v2049_v3 = vadd.f32 %v2048_v58, %v1922_v61 }
 0x10c   :  { %2870 = vst [vmem:[%s4027_s2 + $0x120] sm:$0xff] %v2698_v24  }
 0x10d   :  { %v2050_v5 = vadd.f32 %v2049_v3, %v1923_v1  ;;  %v3000_v6 = vpop.f32.mrb[12].mxu0  ;;  %v1790_v7 = vadd.f32 %v2997_v53, %v1789_v2  ;;  %v3518_v36 = vpop.f32.mrb[12].mxu1 }
 0x10e   :  { %v677_v8 = vpop.f32.mrb[13].mxu0  ;;  %v1927_v26 = vmul.f32 %v3000_v6, %v3000_v6  ;;  %v3520_v42 = vpop.f32.mrb[13].mxu1 }
 0x10f   :  { %v1791_v10 = vadd.f32 %v1790_v7, %v677_v8  ;;  %v1925_v11 = vmul.f32 %v677_v8, %v677_v8  ;;  %v2051_v12 = vadd.f32 %v2050_v5, %v1924_v4  ;;  %v3001_v13 = vpop.f32.mrb[14].mxu0  ;;  %v3522_v45 = vpop.f32.mrb[14].mxu1 }
 0x110   :  { %v2553_v15 = vpack.c.bf16 %v3001_v13, %v3000_v6  ;;  %v680_v16 = vpop.f32.mrb[15].mxu0  ;;  %v1928_v29 = vmul.f32 %v3001_v13, %v3001_v13  ;;  %v3524_v51 = vpop.f32.mrb[15].mxu1  ;;  %v2713_v52 = vpack.c.bf16 %v3522_v45, %v3518_v36 }
 0x111   :  { %v2052_v18 = vadd.f32 %v2051_v12, %v1925_v11  ;;  %v2548_v19 = vpack.c.bf16 %v680_v16, %v677_v8  ;;  %v1792_v20 = vadd.f32 %v1791_v10, %v680_v16  ;;  %v1926_v21 = vmul.f32 %v680_v16, %v680_v16 }
 0x112   :  { %2841 = vst [vmem:[%s4027_s2 + $0x38] sm:$0xff] %v2553_v15   ;;  %v2708_v53 = vpack.c.bf16 %v3524_v51, %v3520_v42  ;;  %2873 = vst [vmem:[%s4027_s2 + $0x138] sm:$0xff] %v2713_v52  }
 0x113   :  { %2840 = vst [vmem:[%s4027_s2 + $0x30] sm:$0xff] %v2548_v19   ;;  %v1793_v27 = vadd.f32 %v3000_v6, %v1792_v20  ;;  %v2053_v28 = vadd.f32 %v2052_v18, %v1926_v21 }
 0x114   :  { %2872 = vst [vmem:[%s4027_s2 + $0x130] sm:$0xff] %v2708_v53  }
 0x115   :  { %v2054_v31 = vadd.f32 %v2053_v28, %v1927_v26  ;;  %v3004_v32 = vpop.f32.mrb[16].mxu0  ;;  %v1794_v34 = vadd.f32 %v3001_v13, %v1793_v27  ;;  %v3542_v1 = vpop.f32.mrb[16].mxu1 }
 0x116   :  { %v693_v35 = vpop.f32.mrb[17].mxu0  ;;  %v1931_v55 = vmul.f32 %v3004_v32, %v3004_v32  ;;  %v3544_v6 = vpop.f32.mrb[17].mxu1 }
 0x117   :  { %v1795_v37 = vadd.f32 %v1794_v34, %v693_v35  ;;  %v1929_v39 = vmul.f32 %v693_v35, %v693_v35  ;;  %v2055_v40 = vadd.f32 %v2054_v31, %v1928_v29  ;;  %v3005_v41 = vpop.f32.mrb[18].mxu0  ;;  %v3546_v10 = vpop.f32.mrb[18].mxu1 }
 0x118   :  { %v2563_v43 = vpack.c.bf16 %v3005_v41, %v3004_v32  ;;  %v696_v44 = vpop.f32.mrb[19].mxu0  ;;  %v1932_v59 = vmul.f32 %v3005_v41, %v3005_v41  ;;  %v3548_v16 = vpop.f32.mrb[19].mxu1  ;;  %v2723_v18 = vpack.c.bf16 %v3546_v10, %v3542_v1 }
 0x119   :  { %v2056_v46 = vadd.f32 %v2055_v40, %v1929_v39  ;;  %v2558_v47 = vpack.c.bf16 %v696_v44, %v693_v35  ;;  %v1796_v48 = vadd.f32 %v1795_v37, %v696_v44  ;;  %v1930_v50 = vmul.f32 %v696_v44, %v696_v44 }
 0x11a   :  { %2843 = vst [vmem:[%s4027_s2 + $0x48] sm:$0xff] %v2563_v43   ;;  %v2718_v19 = vpack.c.bf16 %v3548_v16, %v3544_v6  ;;  %2875 = vst [vmem:[%s4027_s2 + $0x148] sm:$0xff] %v2723_v18  }
 0x11b   :  { %2842 = vst [vmem:[%s4027_s2 + $0x40] sm:$0xff] %v2558_v47   ;;  %v1797_v56 = vadd.f32 %v3004_v32, %v1796_v48  ;;  %v2057_v58 = vadd.f32 %v2056_v46, %v1930_v50 }
 0x11c   :  { %2874 = vst [vmem:[%s4027_s2 + $0x140] sm:$0xff] %v2718_v19  }
 0x11d   :  { %v2058_v60 = vadd.f32 %v2057_v58, %v1931_v55  ;;  %v3008_v61 = vpop.f32.mrb[20].mxu0  ;;  %v1798_v63 = vadd.f32 %v3005_v41, %v1797_v56  ;;  %v3566_v31 = vpop.f32.mrb[20].mxu1 }
 0x11e   :  { %v709_v0 = vpop.f32.mrb[21].mxu0  ;;  %v1935_v20 = vmul.f32 %v3008_v61, %v3008_v61  ;;  %v3568_v39 = vpop.f32.mrb[21].mxu1 }
 0x11f   :  { %v1799_v2 = vadd.f32 %v1798_v63, %v709_v0  ;;  %v1933_v3 = vmul.f32 %v709_v0, %v709_v0  ;;  %v2059_v4 = vadd.f32 %v2058_v60, %v1932_v59  ;;  %v3009_v5 = vpop.f32.mrb[22].mxu0  ;;  %v3570_v43 = vpop.f32.mrb[22].mxu1 }
 0x120   :  { %v2573_v7 = vpack.c.bf16 %v3009_v5, %v3008_v61  ;;  %v712_v8 = vpop.f32.mrb[23].mxu0  ;;  %v1936_v24 = vmul.f32 %v3009_v5, %v3009_v5  ;;  %v3572_v50 = vpop.f32.mrb[23].mxu1  ;;  %v2733_v52 = vpack.c.bf16 %v3570_v43, %v3566_v31 }
 0x121   :  { %v2060_v11 = vadd.f32 %v2059_v4, %v1933_v3  ;;  %v2568_v12 = vpack.c.bf16 %v712_v8, %v709_v0  ;;  %v1800_v13 = vadd.f32 %v1799_v2, %v712_v8  ;;  %v1934_v15 = vmul.f32 %v712_v8, %v712_v8 }
 0x122   :  { %2845 = vst [vmem:[%s4027_s2 + $0x58] sm:$0xff] %v2573_v7   ;;  %v2728_v53 = vpack.c.bf16 %v3572_v50, %v3568_v39  ;;  %2877 = vst [vmem:[%s4027_s2 + $0x158] sm:$0xff] %v2733_v52  }
 0x123   :  { %2844 = vst [vmem:[%s4027_s2 + $0x50] sm:$0xff] %v2568_v12   ;;  %v1801_v21 = vadd.f32 %v3008_v61, %v1800_v13  ;;  %v2061_v23 = vadd.f32 %v2060_v11, %v1934_v15 }
 0x124   :  { %2876 = vst [vmem:[%s4027_s2 + $0x150] sm:$0xff] %v2728_v53  }
 0x125   :  { %v2062_v26 = vadd.f32 %v2061_v23, %v1935_v20  ;;  %v3012_v27 = vpop.f32.mrb[24].mxu0  ;;  %v1802_v28 = vadd.f32 %v3009_v5, %v1801_v21  ;;  %v3590_v2 = vpop.f32.mrb[24].mxu1 }
 0x126   :  { %v725_v29 = vpop.f32.mrb[25].mxu0  ;;  %v1939_v55 = vmul.f32 %v3012_v27, %v3012_v27  ;;  %v3592_v8 = vpop.f32.mrb[25].mxu1 }
 0x127   :  { %v1803_v32 = vadd.f32 %v1802_v28, %v725_v29  ;;  %v1937_v34 = vmul.f32 %v725_v29, %v725_v29  ;;  %v2063_v35 = vadd.f32 %v2062_v26, %v1936_v24  ;;  %v3013_v37 = vpop.f32.mrb[26].mxu0  ;;  %v3594_v13 = vpop.f32.mrb[26].mxu1 }
 0x128   :  { %v2583_v40 = vpack.c.bf16 %v3013_v37, %v3012_v27  ;;  %v728_v41 = vpop.f32.mrb[27].mxu0  ;;  %v1940_v59 = vmul.f32 %v3013_v37, %v3013_v37  ;;  %v3596_v21 = vpop.f32.mrb[27].mxu1  ;;  %v2743_v23 = vpack.c.bf16 %v3594_v13, %v3590_v2 }
 0x129   :  { %v2064_v44 = vadd.f32 %v2063_v35, %v1937_v34  ;;  %v2578_v46 = vpack.c.bf16 %v728_v41, %v725_v29  ;;  %v1804_v47 = vadd.f32 %v1803_v32, %v728_v41  ;;  %v1938_v48 = vmul.f32 %v728_v41, %v728_v41 }
 0x12a   :  { %2847 = vst [vmem:[%s4027_s2 + $0x68] sm:$0xff] %v2583_v40   ;;  %v2738_v24 = vpack.c.bf16 %v3596_v21, %v3592_v8  ;;  %2879 = vst [vmem:[%s4027_s2 + $0x168] sm:$0xff] %v2743_v23  }
 0x12b   :  { %2846 = vst [vmem:[%s4027_s2 + $0x60] sm:$0xff] %v2578_v46   ;;  %v1805_v56 = vadd.f32 %v3012_v27, %v1804_v47  ;;  %v2065_v58 = vadd.f32 %v2064_v44, %v1938_v48 }
 0x12c   :  { %2878 = vst [vmem:[%s4027_s2 + $0x160] sm:$0xff] %v2738_v24  }
 0x12d   :  { %v2066_v60 = vadd.f32 %v2065_v58, %v1939_v55  ;;  %v3016_v61 = vpop.f32.mrb[28].mxu0  ;;  %v1806_v63 = vadd.f32 %v3013_v37, %v1805_v56  ;;  %v3614_v40 = vpop.f32.mrb[28].mxu1 }
 0x12e   :  { %v741_v0 = vpop.f32.mrb[29].mxu0  ;;  %v1943_v26 = vmul.f32 %v3016_v61, %v3016_v61  ;;  %v3616_v48 = vpop.f32.mrb[29].mxu1 }
 0x12f   :  { %v1807_v3 = vadd.f32 %v1806_v63, %v741_v0  ;;  %v1941_v4 = vmul.f32 %v741_v0, %v741_v0  ;;  %v2067_v5 = vadd.f32 %v2066_v60, %v1940_v59  ;;  %v3017_v7 = vpop.f32.mrb[30].mxu0  ;;  %v3618_v55 = vpop.f32.mrb[30].mxu1 }
 0x130   :  { %v2593_v11 = vpack.c.bf16 %v3017_v7, %v3016_v61  ;;  %v744_v12 = vpop.f32.mrb[31].mxu0  ;;  %v1944_v29 = vmul.f32 %v3017_v7, %v3017_v7  ;;  %v2753_v63 = vpack.c.bf16 %v3618_v55, %v3614_v40 }
 0x131   :  { %v2068_v15 = vadd.f32 %v2067_v5, %v1941_v4  ;;  %v2588_v18 = vpack.c.bf16 %v744_v12, %v741_v0  ;;  %v1808_v19 = vadd.f32 %v1807_v3, %v744_v12  ;;  %v1942_v20 = vmul.f32 %v744_v12, %v744_v12 }
 0x132   :  { %2849 = vst [vmem:[%s4027_s2 + $0x78] sm:$0xff] %v2593_v11   ;;  %2881 = vst [vmem:[%s4027_s2 + $0x178] sm:$0xff] %v2753_v63  }
 0x133   :  { %2848 = vst [vmem:[%s4027_s2 + $0x70] sm:$0xff] %v2588_v18   ;;  %v1809_v27 = vadd.f32 %v3016_v61, %v1808_v19  ;;  %v2069_v28 = vadd.f32 %v2068_v15, %v1942_v20  ;;  %v3620_v61 = vpop.f32.mrb[31].mxu1 }
 0x134   :  { %v2748_v0 = vpack.c.bf16 %v3620_v61, %v3616_v48 }
 0x135   :  { %v2070_v32 = vadd.f32 %v2069_v28, %v1943_v26  ;;  %v3020_v34 = vpop.f32.mrb[32].mxu0  ;;  %v1810_v35 = vadd.f32 %v3017_v7, %v1809_v27  ;;  %v3638_v19 = vpop.f32.mrb[32].mxu1 }
 0x136   :  { %v757_v37 = vpop.f32.mrb[33].mxu0  ;;  %v1947_v3 = vmul.f32 %v3020_v34, %v3020_v34  ;;  %2880 = vst [vmem:[%s4027_s2 + $0x170] sm:$0xff] %v2748_v0   ;;  %v3640_v27 = vpop.f32.mrb[33].mxu1 }
 0x137   :  { %v1811_v41 = vadd.f32 %v1810_v35, %v757_v37  ;;  %v1945_v44 = vmul.f32 %v757_v37, %v757_v37  ;;  %v2071_v46 = vadd.f32 %v2070_v32, %v1944_v29  ;;  %v3021_v47 = vpop.f32.mrb[34].mxu0  ;;  %v3642_v32 = vpop.f32.mrb[34].mxu1 }
 0x138   :  { %v2603_v52 = vpack.c.bf16 %v3021_v47, %v3020_v34  ;;  %v760_v53 = vpop.f32.mrb[35].mxu0  ;;  %v1948_v7 = vmul.f32 %v3021_v47, %v3021_v47 }
 0x139   :  { %v2072_v56 = vadd.f32 %v2071_v46, %v1945_v44  ;;  %v2598_v58 = vpack.c.bf16 %v760_v53, %v757_v37  ;;  %v1812_v59 = vadd.f32 %v1811_v41, %v760_v53  ;;  %v1946_v60 = vmul.f32 %v760_v53, %v760_v53  ;;  %v3644_v44 = vpop.f32.mrb[35].mxu1 }
 0x13a   :  { %2851 = vst [vmem:[%s4027_s2 + $0x88] sm:$0xff] %v2603_v52   ;;  %v2763_v46 = vpack.c.bf16 %v3642_v32, %v3638_v19 }
 0x13b   :  { %2850 = vst [vmem:[%s4027_s2 + $0x80] sm:$0xff] %v2598_v58   ;;  %v1813_v4 = vadd.f32 %v3020_v34, %v1812_v59  ;;  %v2073_v5 = vadd.f32 %v2072_v56, %v1946_v60 }
 0x13c   :  { %2883 = vst [vmem:[%s4027_s2 + $0x188] sm:$0xff] %v2763_v46  }
 0x13d   :  { %v2074_v11 = vadd.f32 %v2073_v5, %v1947_v3  ;;  %v3024_v12 = vpop.f32.mrb[36].mxu0  ;;  %v1814_v15 = vadd.f32 %v3021_v47, %v1813_v4  ;;  %v2758_v47 = vpack.c.bf16 %v3644_v44, %v3640_v27  ;;  %v3662_v3 = vpop.f32.mrb[36].mxu1 }
 0x13e   :  { %v773_v18 = vpop.f32.mrb[37].mxu0  ;;  %v1951_v52 = vmul.f32 %v3024_v12, %v3024_v12 }
 0x13f   :  { %v1815_v20 = vadd.f32 %v1814_v15, %v773_v18  ;;  %v1949_v23 = vmul.f32 %v773_v18, %v773_v18  ;;  %v2075_v24 = vadd.f32 %v2074_v11, %v1948_v7  ;;  %v3025_v26 = vpop.f32.mrb[38].mxu0  ;;  %2882 = vst [vmem:[%s4027_s2 + $0x180] sm:$0xff] %v2758_v47  }
 0x140   :  { %v2613_v28 = vpack.c.bf16 %v3025_v26, %v3024_v12  ;;  %v776_v29 = vpop.f32.mrb[39].mxu0  ;;  %v1952_v58 = vmul.f32 %v3025_v26, %v3025_v26 }
 0x141   :  { %v2076_v34 = vadd.f32 %v2075_v24, %v1949_v23  ;;  %v2608_v35 = vpack.c.bf16 %v776_v29, %v773_v18  ;;  %v1816_v37 = vadd.f32 %v1815_v20, %v776_v29  ;;  %v1950_v41 = vmul.f32 %v776_v29, %v776_v29 }
 0x142   :  { %2853 = vst [vmem:[%s4027_s2 + $0x98] sm:$0xff] %v2613_v28  }
 0x143   :  { %2852 = vst [vmem:[%s4027_s2 + $0x90] sm:$0xff] %v2608_v35   ;;  %v1817_v53 = vadd.f32 %v3024_v12, %v1816_v37  ;;  %v2077_v56 = vadd.f32 %v2076_v34, %v1950_v41  ;;  %v3664_v12 = vpop.f32.mrb[37].mxu1 }
 0x144   :  { %v3666_v20 = vpop.f32.mrb[38].mxu1 }
 0x145   :  { %v2078_v59 = vadd.f32 %v2077_v56, %v1951_v52  ;;  %v3028_v60 = vpop.f32.mrb[40].mxu0  ;;  %v1818_v63 = vadd.f32 %v3025_v26, %v1817_v53  ;;  %v3668_v34 = vpop.f32.mrb[39].mxu1  ;;  %v2773_v26 = vpack.c.bf16 %v3666_v20, %v3662_v3 }
 0x146   :  { %v789_v0 = vpop.f32.mrb[41].mxu0  ;;  %v2768_v35 = vpack.c.bf16 %v3668_v34, %v3664_v12  ;;  %v1955_v37 = vmul.f32 %v3028_v60, %v3028_v60 }
 0x147   :  { %v1819_v4 = vadd.f32 %v1818_v63, %v789_v0  ;;  %v1953_v5 = vmul.f32 %v789_v0, %v789_v0  ;;  %v2079_v7 = vadd.f32 %v2078_v59, %v1952_v58  ;;  %v3029_v11 = vpop.f32.mrb[42].mxu0  ;;  %2885 = vst [vmem:[%s4027_s2 + $0x198] sm:$0xff] %v2773_v26   ;;  %v3686_v59 = vpop.f32.mrb[40].mxu1 }
 0x148   :  { %v2623_v15 = vpack.c.bf16 %v3029_v11, %v3028_v60  ;;  %v792_v18 = vpop.f32.mrb[43].mxu0  ;;  %2884 = vst [vmem:[%s4027_s2 + $0x190] sm:$0xff] %v2768_v35   ;;  %v1956_v47 = vmul.f32 %v3029_v11, %v3029_v11  ;;  %4057 = vst [vmem:[#allocation2_spill] sm:$0xff] %v3686_v59 }
 0x149   :  { %v2080_v23 = vadd.f32 %v2079_v7, %v1953_v5  ;;  %v2618_v24 = vpack.c.bf16 %v792_v18, %v789_v0  ;;  %v1820_v28 = vadd.f32 %v1819_v4, %v792_v18  ;;  %v1954_v29 = vmul.f32 %v792_v18, %v792_v18  ;;  %v3688_v5 = vpop.f32.mrb[41].mxu1 }
 0x14a   :  { %2855 = vst [vmem:[%s4027_s2 + $0xa8] sm:$0xff] %v2623_v15   ;;  %v3690_v18 = vpop.f32.mrb[42].mxu1 }
 0x14b   :  { %2854 = vst [vmem:[%s4027_s2 + $0xa0] sm:$0xff] %v2618_v24   ;;  %v1821_v41 = vadd.f32 %v3028_v60, %v1820_v28  ;;  %v2081_v46 = vadd.f32 %v2080_v23, %v1954_v29  ;;  %4058 = vst [vmem:[#allocation3_spill] sm:$0xff] %v3690_v18  ;;  %v3692_v26 = vpop.f32.mrb[43].mxu1 }
 0x14c   :  { %v2778_v35 = vpack.c.bf16 %v3692_v26, %v3688_v5 }
 0x14d   :  { %v2082_v52 = vadd.f32 %v2081_v46, %v1955_v37  ;;  %v3032_v53 = vpop.f32.mrb[44].mxu0  ;;  %v1822_v56 = vadd.f32 %v3029_v11, %v1821_v41  ;;  %v2783_v11 = vpack.c.bf16 %v3690_v18, %v3686_v59 }
 0x14e   :  { %v805_v58 = vpop.f32.mrb[45].mxu0  ;;  %v1959_v37 = vmul.f32 %v3032_v53, %v3032_v53  ;;  %2886 = vst [vmem:[%s4027_s2 + $0x1a0] sm:$0xff] %v2778_v35  }
 0x14f   :  { %v1823_v63 = vadd.f32 %v1822_v56, %v805_v58  ;;  %v1957_v0 = vmul.f32 %v805_v58, %v805_v58  ;;  %v2083_v4 = vadd.f32 %v2082_v52, %v1956_v47  ;;  %v3033_v60 = vpop.f32.mrb[46].mxu0  ;;  %2887 = vst [vmem:[%s4027_s2 + $0x1a8] sm:$0xff] %v2783_v11  }
 0x150   :  { %v2633_v7 = vpack.c.bf16 %v3033_v60, %v3032_v53  ;;  %v808_v15 = vpop.f32.mrb[47].mxu0  ;;  %v1960_v47 = vmul.f32 %v3033_v60, %v3033_v60 }
 0x151   :  { %v2084_v23 = vadd.f32 %v2083_v4, %v1957_v0  ;;  %v2628_v24 = vpack.c.bf16 %v808_v15, %v805_v58  ;;  %v1824_v28 = vadd.f32 %v1823_v63, %v808_v15  ;;  %v1958_v29 = vmul.f32 %v808_v15, %v808_v15  ;;  %v3710_v0 = vpop.f32.mrb[44].mxu1 }
 0x152   :  { %2857 = vst [vmem:[%s4027_s2 + $0xb8] sm:$0xff] %v2633_v7   ;;  %4059 = vst [vmem:[#allocation4_spill] sm:$0xff] %v3710_v0 }
 0x153   :  { %2856 = vst [vmem:[%s4027_s2 + $0xb0] sm:$0xff] %v2628_v24   ;;  %v1825_v41 = vadd.f32 %v3032_v53, %v1824_v28  ;;  %v2085_v46 = vadd.f32 %v2084_v23, %v1958_v29  ;;  %v3712_v23 = vpop.f32.mrb[45].mxu1 }
 0x154   :  { %4060 = vst [vmem:[#allocation5_spill] sm:$0xff] %v3712_v23  ;;  %v3714_v29 = vpop.f32.mrb[46].mxu1 }
 0x155   :  { %v2086_v52 = vadd.f32 %v2085_v46, %v1959_v37  ;;  %v3036_v56 = vpop.f32.mrb[48].mxu0  ;;  %v1826_v58 = vadd.f32 %v3033_v60, %v1825_v41  ;;  %4061 = vst [vmem:[#allocation6_spill] sm:$0xff] %v3714_v29  ;;  %v3716_v37 = vpop.f32.mrb[47].mxu1  ;;  %v2793_v60 = vpack.c.bf16 %v3714_v29, %v3710_v0 }
 0x156   :  { %v821_v63 = vpop.f32.mrb[49].mxu0  ;;  %4062 = vst [vmem:[#allocation7_spill] sm:$0xff] %v3716_v37  ;;  %v2788_v41 = vpack.c.bf16 %v3716_v37, %v3712_v23  ;;  %v1963_v46 = vmul.f32 %v3036_v56, %v3036_v56 }
 0x157   :  { %v1827_v4 = vadd.f32 %v1826_v58, %v821_v63  ;;  %v1961_v7 = vmul.f32 %v821_v63, %v821_v63  ;;  %v2087_v15 = vadd.f32 %v2086_v52, %v1960_v47  ;;  %v3037_v53 = vpop.f32.mrb[50].mxu0  ;;  %2889 = vst [vmem:[%s4027_s2 + $0x1b8] sm:$0xff] %v2793_v60  }
 0x158   :  { %v2643_v24 = vpack.c.bf16 %v3037_v53, %v3036_v56  ;;  %v824_v28 = vpop.f32.mrb[51].mxu0  ;;  %2888 = vst [vmem:[%s4027_s2 + $0x1b0] sm:$0xff] %v2788_v41   ;;  %v1964_v58 = vmul.f32 %v3037_v53, %v3037_v53 }
 0x159   :  { %v2088_v11 = vadd.f32 %v2087_v15, %v1961_v7  ;;  %v2638_v18 = vpack.c.bf16 %v824_v28, %v821_v63  ;;  %v1828_v35 = vadd.f32 %v1827_v4, %v824_v28  ;;  %v1962_v59 = vmul.f32 %v824_v28, %v824_v28 }
 0x15a   :  { %2859 = vst [vmem:[%s4027_s2 + $0xc8] sm:$0xff] %v2643_v24   ;;  %v3734_v24 = vpop.f32.mrb[48].mxu1 }
 0x15b   :  { %2858 = vst [vmem:[%s4027_s2 + $0xc0] sm:$0xff] %v2638_v18   ;;  %v1829_v47 = vadd.f32 %v3036_v56, %v1828_v35  ;;  %v2089_v52 = vadd.f32 %v2088_v11, %v1962_v59  ;;  %4063 = vst [vmem:[#allocation8_spill] sm:$0xff] %v3734_v24  ;;  %v3736_v59 = vpop.f32.mrb[49].mxu1 }
 0x15c   :  { %4064 = vst [vmem:[#allocation9_spill] sm:$0xff] %v3736_v59  ;;  %v3738_v60 = vpop.f32.mrb[50].mxu1 }
 0x15d   :  { %v2090_v63 = vadd.f32 %v2089_v52, %v1963_v46  ;;  %v3040_v4 = vpop.f32.mrb[52].mxu0  ;;  %v1830_v7 = vadd.f32 %v3037_v53, %v1829_v47  ;;  %4065 = vst [vmem:[#allocation10_spill] sm:$0xff] %v3738_v60  ;;  %v3740_v46 = vpop.f32.mrb[51].mxu1  ;;  %v2803_v53 = vpack.c.bf16 %v3738_v60, %v3734_v24 }
 0x15e   :  { %v837_v15 = vpop.f32.mrb[53].mxu0  ;;  %4066 = vst [vmem:[#allocation11_spill] sm:$0xff] %v3740_v46  ;;  %v2798_v47 = vpack.c.bf16 %v3740_v46, %v3736_v59  ;;  %v1967_v52 = vmul.f32 %v3040_v4, %v3040_v4 }
 0x15f   :  { %v1831_v28 = vadd.f32 %v1830_v7, %v837_v15  ;;  %v1965_v29 = vmul.f32 %v837_v15, %v837_v15  ;;  %v2091_v18 = vadd.f32 %v2090_v63, %v1964_v58  ;;  %v3041_v56 = vpop.f32.mrb[54].mxu0  ;;  %2891 = vst [vmem:[%s4027_s2 + $0x1c8] sm:$0xff] %v2803_v53  }
 0x160   :  { %v2653_v11 = vpack.c.bf16 %v3041_v56, %v3040_v4  ;;  %v840_v35 = vpop.f32.mrb[55].mxu0  ;;  %2890 = vst [vmem:[%s4027_s2 + $0x1c0] sm:$0xff] %v2798_v47   ;;  %v1968_v63 = vmul.f32 %v3041_v56, %v3041_v56 }
 0x161   :  { %v2092_v0 = vadd.f32 %v2091_v18, %v1965_v29  ;;  %v2648_v37 = vpack.c.bf16 %v840_v35, %v837_v15  ;;  %v1832_v41 = vadd.f32 %v1831_v28, %v840_v35  ;;  %v1966_v23 = vmul.f32 %v840_v35, %v840_v35 }
 0x162   :  { %2861 = vst [vmem:[%s4027_s2 + $0xd8] sm:$0xff] %v2653_v11   ;;  %v3758_v11 = vpop.f32.mrb[52].mxu1 }
 0x163   :  { %2860 = vst [vmem:[%s4027_s2 + $0xd0] sm:$0xff] %v2648_v37   ;;  %v1833_v29 = vadd.f32 %v3040_v4, %v1832_v41  ;;  %v2093_v58 = vadd.f32 %v2092_v0, %v1966_v23  ;;  %4067 = vst [vmem:[#allocation12_spill] sm:$0xff] %v3758_v11  ;;  %v3760_v0 = vpop.f32.mrb[53].mxu1 }
 0x164   :  { %4068 = vst [vmem:[#allocation13_spill] sm:$0xff] %v3760_v0  ;;  %v3762_v53 = vpop.f32.mrb[54].mxu1 }
 0x165   :  { %v2094_v7 = vadd.f32 %v2093_v58, %v1967_v52  ;;  %v3044_v15 = vpop.f32.mrb[56].mxu0  ;;  %v1834_v28 = vadd.f32 %v3041_v56, %v1833_v29  ;;  %4069 = vst [vmem:[#allocation14_spill] sm:$0xff] %v3762_v53  ;;  %v3764_v52 = vpop.f32.mrb[55].mxu1  ;;  %v2813_v56 = vpack.c.bf16 %v3762_v53, %v3758_v11 }
 0x166   :  { %v853_v18 = vpop.f32.mrb[57].mxu0  ;;  %4070 = vst [vmem:[#allocation15_spill] sm:$0xff] %v3764_v52  ;;  %v2808_v29 = vpack.c.bf16 %v3764_v52, %v3760_v0  ;;  %v1971_v58 = vmul.f32 %v3044_v15, %v3044_v15 }
 0x167   :  { %v1835_v35 = vadd.f32 %v1834_v28, %v853_v18  ;;  %v1969_v60 = vmul.f32 %v853_v18, %v853_v18  ;;  %v2095_v37 = vadd.f32 %v2094_v7, %v1968_v63  ;;  %v3045_v4 = vpop.f32.mrb[58].mxu0  ;;  %2893 = vst [vmem:[%s4027_s2 + $0x1d8] sm:$0xff] %v2813_v56  }
 0x168   :  { %v2663_v23 = vpack.c.bf16 %v3045_v4, %v3044_v15  ;;  %v856_v41 = vpop.f32.mrb[59].mxu0  ;;  %2892 = vst [vmem:[%s4027_s2 + $0x1d0] sm:$0xff] %v2808_v29   ;;  %v1972_v7 = vmul.f32 %v3045_v4, %v3045_v4 }
 0x169   :  { %v2096_v24 = vadd.f32 %v2095_v37, %v1969_v60  ;;  %v2658_v46 = vpack.c.bf16 %v856_v41, %v853_v18  ;;  %v1836_v47 = vadd.f32 %v1835_v35, %v856_v41  ;;  %v1970_v59 = vmul.f32 %v856_v41, %v856_v41 }
 0x16a   :  { %2863 = vst [vmem:[%s4027_s2 + $0xe8] sm:$0xff] %v2663_v23   ;;  %v3782_v23 = vpop.f32.mrb[56].mxu1 }
 0x16b   :  { %2862 = vst [vmem:[%s4027_s2 + $0xe0] sm:$0xff] %v2658_v46   ;;  %v1837_v60 = vadd.f32 %v3044_v15, %v1836_v47  ;;  %v2097_v63 = vadd.f32 %v2096_v24, %v1970_v59  ;;  %v3784_v24 = vpop.f32.mrb[57].mxu1 }
 0x16c   :  { %v3786_v56 = vpop.f32.mrb[58].mxu1 }
 0x16d   :  { %v2098_v28 = vadd.f32 %v2097_v63, %v1971_v58  ;;  %v3048_v18 = vpop.f32.mrb[60].mxu0  ;;  %v1838_v35 = vadd.f32 %v3045_v4, %v1837_v60  ;;  %v3788_v58 = vpop.f32.mrb[59].mxu1  ;;  %v2823_v4 = vpack.c.bf16 %v3786_v56, %v3782_v23 }
 0x16e   :  { %v869_v37 = vpop.f32.mrb[61].mxu0  ;;  %v2818_v60 = vpack.c.bf16 %v3788_v58, %v3784_v24  ;;  %v1975_v63 = vmul.f32 %v3048_v18, %v3048_v18 }
 0x16f   :  { %v1839_v41 = vadd.f32 %v1838_v35, %v869_v37  ;;  %v1973_v53 = vmul.f32 %v869_v37, %v869_v37  ;;  %v2099_v46 = vadd.f32 %v2098_v28, %v1972_v7  ;;  %v3049_v15 = vpop.f32.mrb[62].mxu0  ;;  %2895 = vst [vmem:[%s4027_s2 + $0x1e8] sm:$0xff] %v2823_v4   ;;  %v3203_v28 = vmov 0.0  }
 0x170   :  { %v2673_v59 = vpack.c.bf16 %v3049_v15, %v3048_v18  ;;  %v872_v47 = vpop.f32.mrb[63].mxu0  ;;  %2894 = vst [vmem:[%s4027_s2 + $0x1e0] sm:$0xff] %v2818_v60   ;;  %18 = vst [vmem:[%s4028_s3] sm:$0x3] %v3203_v28  ;;  %v1976_v35 = vmul.f32 %v3049_v15, %v3049_v15  ;;  %v1978_v4 = vmul.f32 %v3452_v38, %v3452_v38 }
 0x171   :  { %v2100_v11 = vadd.f32 %v2099_v46, %v1973_v53  ;;  %v2668_v52 = vpack.c.bf16 %v872_v47, %v869_v37  ;;  %v1840_v29 = vadd.f32 %v1839_v41, %v872_v47  ;;  %v1974_v0 = vmul.f32 %v872_v47, %v872_v47 }
 0x172   :  { %2865 = vst [vmem:[%s4027_s2 + $0xf8] sm:$0xff] %v2673_v59  }
 0x173   :  { %2864 = vst [vmem:[%s4027_s2 + $0xf0] sm:$0xff] %v2668_v52   ;;  %v1841_v53 = vadd.f32 %v3048_v18, %v1840_v29  ;;  %v2101_v7 = vadd.f32 %v2100_v11, %v1974_v0  ;;  %v1977_v52 = vmul.f32 %v3448_v30, %v3448_v30  ;;  %v3811_v11 = vpop.f32.mrb[60].mxu1 }
 0x174   :  { %v3814_v46 = vpop.f32.mrb[61].mxu1 }
 0x175   :  { %v1842_v37 = vadd.f32 %v3049_v15, %v1841_v53  ;;  %v2102_v41 = vadd.f32 %v2101_v7, %v1975_v63  ;;  %v3816_v59 = vpop.f32.mrb[62].mxu1 }
 0x176   :  { %v2833_v15 = vpack.c.bf16 %v3816_v59, %v3811_v11  ;;  %v3823_v60 = vpop.f32.mrb[63].mxu1 }
 0x177   :  { %v2103_v0 = vadd.f32 %v2102_v41, %v1976_v35  ;;  %v1843_v18 = vadd.f32 %v1842_v37, %v3448_v30  ;;  %v2828_v63 = vpack.c.bf16 %v3823_v60, %v3814_v46  ;;  %v1979_v30 = vmul.f32 %v3446_v25, %v3446_v25 }
 0x178   :  { %2897 = vst [vmem:[%s4027_s2 + $0x1f8] sm:$0xff] %v2833_v15   ;;  %v1981_v37 = vmul.f32 %v3472_v54, %v3472_v54 }
 0x179   :  { %v2104_v47 = vadd.f32 %v2103_v0, %v1977_v52  ;;  %v1844_v29 = vadd.f32 %v1843_v18, %v3452_v38  ;;  %2896 = vst [vmem:[%s4027_s2 + $0x1f0] sm:$0xff] %v2828_v63   ;;  %v1980_v38 = vmul.f32 %v3450_v33, %v3450_v33  ;;  %v1982_v18 = vmul.f32 %v3476_v62, %v3476_v62 }
 0x17b   :  { %v1845_v53 = vadd.f32 %v3446_v25, %v1844_v29  ;;  %v2105_v7 = vadd.f32 %v2104_v47, %v1978_v4  ;;  %v1983_v47 = vmul.f32 %v3470_v49, %v3470_v49 }
 0x17d   :  { %v2106_v28 = vadd.f32 %v2105_v7, %v1979_v30  ;;  %v1846_v35 = vadd.f32 %v3450_v33, %v1845_v53  ;;  %v1984_v33 = vmul.f32 %v3474_v57, %v3474_v57 }
 0x17f   :  { %v1847_v25 = vadd.f32 %v1846_v35, %v3472_v54  ;;  %v2107_v41 = vadd.f32 %v2106_v28, %v1980_v38  ;;  %v1985_v54 = vmul.f32 %v3496_v14, %v3496_v14  ;;  %v1986_v38 = vmul.f32 %v3500_v22, %v3500_v22 }
 0x181   :  { %v2108_v52 = vadd.f32 %v2107_v41, %v1981_v37  ;;  %v1848_v0 = vadd.f32 %v1847_v25, %v3476_v62 }
 0x183   :  { %v1849_v29 = vadd.f32 %v3470_v49, %v1848_v0  ;;  %v2109_v4 = vadd.f32 %v2108_v52, %v1982_v18  ;;  %v1987_v49 = vmul.f32 %v3494_v9, %v3494_v9  ;;  %v1990_v18 = vmul.f32 %v3524_v51, %v3524_v51 }
 0x185   :  { %v2110_v15 = vadd.f32 %v2109_v4, %v1983_v47  ;;  %v1850_v63 = vadd.f32 %v3474_v57, %v1849_v29  ;;  %v1988_v57 = vmul.f32 %v3498_v17, %v3498_v17 }
 0x187   :  { %v1851_v30 = vadd.f32 %v1850_v63, %v3496_v14  ;;  %v2111_v53 = vadd.f32 %v2110_v15, %v1984_v33  ;;  %v1989_v14 = vmul.f32 %v3520_v42, %v3520_v42 }
 0x189   :  { %v2112_v7 = vadd.f32 %v2111_v53, %v1985_v54  ;;  %v1852_v62 = vadd.f32 %v1851_v30, %v3500_v22  ;;  %v1994_v30 = vmul.f32 %v3548_v16, %v3548_v16 }
 0x18b   :  { %v1853_v28 = vadd.f32 %v3494_v9, %v1852_v62  ;;  %v2113_v35 = vadd.f32 %v2112_v7, %v1986_v38  ;;  %v1991_v9 = vmul.f32 %v3518_v36, %v3518_v36 }
 0x18d   :  { %v2114_v37 = vadd.f32 %v2113_v35, %v1987_v49  ;;  %v1854_v25 = vadd.f32 %v3498_v17, %v1853_v28  ;;  %v1992_v17 = vmul.f32 %v3522_v45, %v3522_v45 }
 0x18f   :  { %v1855_v41 = vadd.f32 %v1854_v25, %v3520_v42  ;;  %v2115_v52 = vadd.f32 %v2114_v37, %v1988_v57  ;;  %v1993_v42 = vmul.f32 %v3544_v6, %v3544_v6  ;;  %v1998_v57 = vmul.f32 %v3572_v50, %v3572_v50 }
 0x191   :  { %v2116_v0 = vadd.f32 %v2115_v52, %v1989_v14  ;;  %v1856_v22 = vadd.f32 %v1855_v41, %v3524_v51 }
 0x193   :  { %v1857_v47 = vadd.f32 %v3518_v36, %v1856_v22  ;;  %v2117_v29 = vadd.f32 %v2116_v0, %v1990_v18  ;;  %v1995_v36 = vmul.f32 %v3542_v1, %v3542_v1  ;;  %v2002_v18 = vmul.f32 %v3596_v21, %v3596_v21 }
 0x195   :  { %v2118_v4 = vadd.f32 %v2117_v29, %v1991_v9  ;;  %v1858_v33 = vadd.f32 %v3522_v45, %v1857_v47  ;;  %v1996_v45 = vmul.f32 %v3546_v10, %v3546_v10 }
 0x197   :  { %v1859_v15 = vadd.f32 %v1858_v33, %v3544_v6  ;;  %v2119_v63 = vadd.f32 %v2118_v4, %v1992_v17  ;;  %v1997_v6 = vmul.f32 %v3568_v39, %v3568_v39 }
 0x199   :  { %v2120_v54 = vadd.f32 %v2119_v63, %v1993_v42  ;;  %v1860_v51 = vadd.f32 %v1859_v15, %v3548_v16  ;;  %v2006_v15 = vmul.f32 %v3620_v61, %v3620_v61 }
 0x19b   :  { %v1861_v53 = vadd.f32 %v3542_v1, %v1860_v51  ;;  %v2121_v7 = vadd.f32 %v2120_v54, %v1994_v30  ;;  %v1999_v1 = vmul.f32 %v3566_v31, %v3566_v31 }
 0x19d   :  { %v2122_v62 = vadd.f32 %v2121_v7, %v1995_v36  ;;  %v1862_v38 = vadd.f32 %v3546_v10, %v1861_v53  ;;  %v2000_v10 = vmul.f32 %v3570_v43, %v3570_v43 }
 0x19f   :  { %v1863_v49 = vadd.f32 %v1862_v38, %v3568_v39  ;;  %v2123_v28 = vadd.f32 %v2122_v62, %v1996_v45  ;;  %v2001_v39 = vmul.f32 %v3592_v8, %v3592_v8  ;;  %v2010_v45 = vmul.f32 %v3644_v44, %v3644_v44 }
 0x1a1   :  { %v2124_v35 = vadd.f32 %v2123_v28, %v1997_v6  ;;  %v1864_v16 = vadd.f32 %v1863_v49, %v3572_v50 }
 0x1a3   :  { %v1865_v37 = vadd.f32 %v3566_v31, %v1864_v16  ;;  %v2125_v25 = vadd.f32 %v2124_v35, %v1998_v57  ;;  %v2003_v31 = vmul.f32 %v3590_v2, %v3590_v2  ;;  %v2014_v57 = vmul.f32 %v3668_v34, %v3668_v34 }
 0x1a5   :  { %v2126_v14 = vadd.f32 %v2125_v25, %v1999_v1  ;;  %v1866_v41 = vadd.f32 %v3570_v43, %v1865_v37  ;;  %v2004_v43 = vmul.f32 %v3594_v13, %v3594_v13 }
 0x1a7   :  { %v1867_v52 = vadd.f32 %v1866_v41, %v3592_v8  ;;  %v2127_v0 = vadd.f32 %v2126_v14, %v2000_v10  ;;  %v2005_v8 = vmul.f32 %v3616_v48, %v3616_v48 }
 0x1a9   :  { %v2128_v22 = vadd.f32 %v2127_v0, %v2001_v39  ;;  %v1868_v50 = vadd.f32 %v1867_v52, %v3596_v21  ;;  %v2018_v52 = vmul.f32 %v3692_v26, %v3692_v26 }
 0x1ab   :  { %v1869_v9 = vadd.f32 %v3590_v2, %v1868_v50  ;;  %v2129_v47 = vadd.f32 %v2128_v22, %v2002_v18  ;;  %v2007_v2 = vmul.f32 %v3614_v40, %v3614_v40  ;;  %v4072_v18 = vld [vmem:[#allocation3_spill] sm:$0xff] }
 0x1ad   :  { %v2130_v29 = vadd.f32 %v2129_v47, %v2003_v31  ;;  %v1870_v17 = vadd.f32 %v3594_v13, %v1869_v9  ;;  %v2008_v13 = vmul.f32 %v3618_v55, %v3618_v55 }
 0x1af   :  { %v1871_v4 = vadd.f32 %v1870_v17, %v3616_v48  ;;  %v2131_v33 = vadd.f32 %v2130_v29, %v2004_v43  ;;  %v2009_v48 = vmul.f32 %v3640_v27, %v3640_v27 }
 0x1b1   :  { %v2132_v42 = vadd.f32 %v2131_v33, %v2005_v8  ;;  %v1872_v21 = vadd.f32 %v1871_v4, %v3620_v61  ;;  %v4075_v33 = vld [vmem:[#allocation4_spill] sm:$0xff] }
 0x1b3   :  { %v1873_v63 = vadd.f32 %v3614_v40, %v1872_v21  ;;  %v2133_v54 = vadd.f32 %v2132_v42, %v2006_v15  ;;  %v2011_v40 = vmul.f32 %v3638_v19, %v3638_v19  ;;  %v2023_v42 = vmul.f32 %v4075_v33, %v4075_v33 }
 0x1b5   :  { %v2134_v51 = vadd.f32 %v2133_v54, %v2007_v2  ;;  %v1874_v30 = vadd.f32 %v3618_v55, %v1873_v63  ;;  %v2012_v55 = vmul.f32 %v3642_v32, %v3642_v32  ;;  %v4076_v2 = vld [vmem:[#allocation6_spill] sm:$0xff] }
 0x1b6   :  { %v2024_v63 = vmul.f32 %v4076_v2, %v4076_v2 }
 0x1b7   :  { %v1875_v36 = vadd.f32 %v1874_v30, %v3640_v27  ;;  %v2135_v53 = vadd.f32 %v2134_v51, %v2008_v13  ;;  %v2013_v27 = vmul.f32 %v3664_v12, %v3664_v12  ;;  %v4077_v51 = vld [vmem:[#allocation9_spill] sm:$0xff] }
 0x1b8   :  { %v2025_v30 = vmul.f32 %v4077_v51, %v4077_v51 }
 0x1b9   :  { %v2136_v7 = vadd.f32 %v2135_v53, %v2009_v48  ;;  %v1876_v61 = vadd.f32 %v1875_v36, %v3644_v44 }
 0x1bb   :  { %v1877_v62 = vadd.f32 %v3638_v19, %v1876_v61  ;;  %v2137_v38 = vadd.f32 %v2136_v7, %v2010_v45  ;;  %v2015_v19 = vmul.f32 %v3662_v3, %v3662_v3  ;;  %v4078_v7 = vld [vmem:[#allocation11_spill] sm:$0xff] }
 0x1bc   :  { %v2026_v45 = vmul.f32 %v4078_v7, %v4078_v7 }
 0x1bd   :  { %v2138_v6 = vadd.f32 %v2137_v38, %v2011_v40  ;;  %v1878_v49 = vadd.f32 %v3642_v32, %v1877_v62  ;;  %v2016_v32 = vmul.f32 %v3666_v20, %v3666_v20  ;;  %v4079_v40 = vld [vmem:[#allocation8_spill] sm:$0xff] }
 0x1be   :  { %v2027_v62 = vmul.f32 %v4079_v40, %v4079_v40 }
 0x1bf   :  { %v1879_v28 = vadd.f32 %v1878_v49, %v3664_v12  ;;  %v2139_v35 = vadd.f32 %v2138_v6, %v2012_v55  ;;  %v2017_v12 = vmul.f32 %v3688_v5, %v3688_v5  ;;  %v4080_v6 = vld [vmem:[#allocation10_spill] sm:$0xff] }
 0x1c0   :  { %v2028_v49 = vmul.f32 %v4080_v6, %v4080_v6 }
 0x1c1   :  { %v2140_v16 = vadd.f32 %v2139_v35, %v2013_v27  ;;  %v1880_v44 = vadd.f32 %v1879_v28, %v3668_v34  ;;  %v4081_v35 = vld [vmem:[#allocation13_spill] sm:$0xff] }
 0x1c3   :  { %v1881_v1 = vadd.f32 %v3662_v3, %v1880_v44  ;;  %v2141_v37 = vadd.f32 %v2140_v16, %v2014_v57  ;;  %v4071_v3 = vld [vmem:[#allocation2_spill] sm:$0xff]  ;;  %v2029_v16 = vmul.f32 %v4081_v35, %v4081_v35 }
 0x1c4   :  { %v2019_v0 = vmul.f32 %v4071_v3, %v4071_v3 }
 0x1c5   :  { %v2142_v25 = vadd.f32 %v2141_v37, %v2015_v19  ;;  %v1882_v10 = vadd.f32 %v3666_v20, %v1881_v1  ;;  %v2020_v20 = vmul.f32 %v4072_v18, %v4072_v18  ;;  %v4082_v1 = vld [vmem:[#allocation15_spill] sm:$0xff] }
 0x1c7   :  { %v1883_v14 = vadd.f32 %v1882_v10, %v3688_v5  ;;  %v2143_v41 = vadd.f32 %v2142_v25, %v2016_v32  ;;  %v4073_v5 = vld [vmem:[#allocation5_spill] sm:$0xff]  ;;  %v2030_v32 = vmul.f32 %v4082_v1, %v4082_v1  ;;  %v4083_v25 = vld [vmem:[#allocation12_spill] sm:$0xff] }
 0x1c8   :  { %v2021_v47 = vmul.f32 %v4073_v5, %v4073_v5  ;;  %v2031_v10 = vmul.f32 %v4083_v25, %v4083_v25 }
 0x1c9   :  { %v2144_v39 = vadd.f32 %v2143_v41, %v2017_v12  ;;  %v1884_v34 = vadd.f32 %v1883_v14, %v3692_v26  ;;  %v4074_v26 = vld [vmem:[#allocation7_spill] sm:$0xff]  ;;  %v4084_v41 = vld [vmem:[#allocation14_spill] sm:$0xff] }
 0x1ca   :  { %v2022_v4 = vmul.f32 %v4074_v26, %v4074_v26 }
 0x1cb   :  { %v1885_v22 = vadd.f32 %v4071_v3, %v1884_v34  ;;  %v2145_v50 = vadd.f32 %v2144_v39, %v2018_v52  ;;  %v2032_v39 = vmul.f32 %v4084_v41, %v4084_v41  ;;  %v2033_v3 = vmul.f32 %v3784_v24, %v3784_v24 }
 0x1cd   :  { %v2146_v31 = vadd.f32 %v2145_v50, %v2019_v0  ;;  %v1886_v9 = vadd.f32 %v4072_v18, %v1885_v22 }
 0x1cf   :  { %v1887_v43 = vadd.f32 %v1886_v9, %v4073_v5  ;;  %v2147_v29 = vadd.f32 %v2146_v31, %v2020_v20  ;;  %v2034_v20 = vmul.f32 %v3788_v58, %v3788_v58  ;;  %v2035_v31 = vmul.f32 %v3782_v23, %v3782_v23 }
 0x1d1   :  { %v2148_v17 = vadd.f32 %v2147_v29, %v2021_v47  ;;  %v1888_v8 = vadd.f32 %v1887_v43, %v4074_v26  ;;  %v2036_v47 = vmul.f32 %v3786_v56, %v3786_v56 }
 0x1d3   :  { %v1889_v21 = vadd.f32 %v4075_v33, %v1888_v8  ;;  %v2149_v15 = vadd.f32 %v2148_v17, %v2022_v4  ;;  %v2038_v4 = vmul.f32 %v3823_v60, %v3823_v60 }
 0x1d5   :  { %v2150_v54 = vadd.f32 %v2149_v15, %v2023_v42  ;;  %v1890_v13 = vadd.f32 %v4076_v2, %v1889_v21 }
 0x1d7   :  { %v1891_v48 = vadd.f32 %v1890_v13, %v4077_v51  ;;  %v2151_v36 = vadd.f32 %v2150_v54, %v2024_v63 }
 0x1d9   :  { %v2152_v53 = vadd.f32 %v2151_v36, %v2025_v30  ;;  %v1892_v61 = vadd.f32 %v1891_v48, %v4078_v7 }
 0x1db   :  { %v1893_v38 = vadd.f32 %v4079_v40, %v1892_v61  ;;  %v2153_v55 = vadd.f32 %v2152_v53, %v2026_v45  ;;  %v2174_v61 = vld [vmem:[%s4028_s3] sm:$0x3] }
 0x1dd   :  { %v2154_v27 = vadd.f32 %v2153_v55, %v2027_v62  ;;  %v1894_v28 = vadd.f32 %v4080_v6, %v1893_v38 }
 0x1df   :  { %v1895_v44 = vadd.f32 %v1894_v28, %v4081_v35  ;;  %v2155_v57 = vadd.f32 %v2154_v27, %v2028_v49 }
 0x1e1   :  { %v2156_v19 = vadd.f32 %v2155_v57, %v2029_v16  ;;  %v1896_v37 = vadd.f32 %v1895_v44, %v4082_v1 }
 0x1e3   :  { %v1897_v12 = vadd.f32 %v4083_v25, %v1896_v37  ;;  %v2157_v14 = vadd.f32 %v2156_v19, %v2030_v32 }
 0x1e5   :  { %v2158_v34 = vadd.f32 %v2157_v14, %v2031_v10  ;;  %v1898_v52 = vadd.f32 %v4084_v41, %v1897_v12 }
 0x1e7   :  { %v1899_v0 = vadd.f32 %v1898_v52, %v3784_v24  ;;  %v2159_v22 = vadd.f32 %v2158_v34, %v2032_v39  ;;  %v2037_v24 = vmul.f32 %v3814_v46, %v3814_v46 }
 0x1e9   :  { %v2160_v50 = vadd.f32 %v2159_v22, %v2033_v3  ;;  %v1900_v18 = vadd.f32 %v1899_v0, %v3788_v58 }
 0x1eb   :  { %v1901_v9 = vadd.f32 %v3782_v23, %v1900_v18  ;;  %v2161_v5 = vadd.f32 %v2160_v50, %v2034_v20  ;;  %v2039_v23 = vmul.f32 %v3811_v11, %v3811_v11 }
 0x1ed   :  { %v2162_v43 = vadd.f32 %v2161_v5, %v2035_v31  ;;  %v1902_v29 = vadd.f32 %v3786_v56, %v1901_v9  ;;  %v2040_v56 = vmul.f32 %v3816_v59, %v3816_v59 }
 0x1ef   :  { %v1903_v17 = vadd.f32 %v1902_v29, %v3814_v46  ;;  %v2163_v26 = vadd.f32 %v2162_v43, %v2036_v47 }
 0x1f1   :  { %v2164_v8 = vadd.f32 %v2163_v26, %v2037_v24  ;;  %v1904_v58 = vadd.f32 %v1903_v17, %v3823_v60 }
 0x1f3   :  { %v1905_v33 = vadd.f32 %v3811_v11, %v1904_v58  ;;  %v2165_v42 = vadd.f32 %v2164_v8, %v2038_v4 }
 0x1f5   :  { %v1906_v21 = vadd.f32 %v3816_v59, %v1905_v33  ;;  %v2166_v15 = vadd.f32 %v2165_v42, %v2039_v23 }
 0x1f7   :  { %v1907_v46 = vrot.slane %v1906_v21, 4  ;;  %v2167_v2 = vadd.f32 %v2166_v15, %v2040_v56 }
 0x1f9   :  { %v1908_v63 = vadd.f32 %v1907_v46, %v1906_v21  ;;  %v2168_v54 = vrot.slane %v2167_v2, 4 }
 0x1fb   :  { %v1909_v13 = vrot.slane %v1908_v63, 2  ;;  %v2169_v51 = vadd.f32 %v2168_v54, %v2167_v2 }
 0x1fd   :  { %v1910_v30 = vadd.f32 %v1909_v13, %v1908_v63  ;;  %v2170_v60 = vrot.slane %v2169_v51, 2 }
 0x1ff   :  { %v1911_v48 = vrot.slane %v1910_v30, 1  ;;  %v2171_v36 = vadd.f32 %v2170_v60, %v2169_v51 }
 0x201   :  { %v2172_v53 = vrot.slane %v2171_v36, 1  ;;  %v1912_v11 = vadd.f32 %v1911_v48, %v1910_v30 }
 0x203   :  { %v2173_v7 = vadd.f32 %v2172_v53, %v2171_v36 }
 0x205   :  { %v2176_v59 = vsel %vm2175_vm0, %v1912_v11, %v2173_v7 }
 0x206   :  { %v2177_v45 = vadd.f32 %v2176_v59, %v2174_v61 }
 0x208   :  { %2178 = vst [vmem:[%s4028_s3] sm:$0x3] %v2177_v45 }

// kernel: discriminator_forward.11
= control target key start
LH: loop header
LB: loop body
LE: loop exit
PB: predicated region body
PF: predicated region fallthrough
CT: control target
= control target key end

     0   :  { %s3211_s0 = inlined_call_operand.vmem [shape: bf16[2,32,16,128], index: 0, kind: input, shape index: {}]   ;;  %s3212_s1 = inlined_call_operand.vmem [shape: f32[1,128], index: 1, kind: input, shape index: {}]   ;;  %s3213_s2 = inlined_call_operand.vmem [shape: f32[1,128], index: 2, kind: input, shape index: {}]   ;;  %s3214_s3 = inlined_call_operand.vmem [shape: bf16[2,32,16,128], index: 3, kind: output, shape index: {}]  }
   0x1   :  { %v1827_v0 = vld [vmem:[%s3211_s0] sm:$0xff]   ;;  %v2402_v4 = vld [vmem:[%s3211_s0 + $0x8] sm:$0xff]   ;;  %v2403_v5 = vld [vmem:[%s3211_s0 + $0x10] sm:$0xff]  }
   0x2   :  { %v2556_v1 = vld [vmem:[%s3212_s1] ss:$0 sm:$0xff]  ;;  %v1828_v2 = vunpack.c.l.bf16 %v1827_v0  ;;  %v1829_v3 = vunpack.c.h.bf16 %v1827_v0  ;;  %v2404_v6 = vld [vmem:[%s3211_s0 + $0x18] sm:$0xff]   ;;  %v1832_v8 = vunpack.c.l.bf16 %v2402_v4  ;;  %v1833_v9 = vunpack.c.h.bf16 %v2402_v4  ;;  %v2406_v35 = vld [vmem:[%s3211_s0 + $0x28] sm:$0xff]  }
   0x3   :  { %v2570_v7 = vld [vmem:[%s3213_s2] ss:$0 sm:$0xff]  ;;  %v1836_v10 = vunpack.c.l.bf16 %v2403_v5  ;;  %v1837_v11 = vunpack.c.h.bf16 %v2403_v5  ;;  %v1840_v14 = vunpack.c.l.bf16 %v2404_v6  ;;  %v1841_v15 = vunpack.c.h.bf16 %v2404_v6  ;;  %v2407_v48 = vld [vmem:[%s3211_s0 + $0x30] sm:$0xff]   ;;  %v2408_v4 = vld [vmem:[%s3211_s0 + $0x38] sm:$0xff]  }
   0x4   :  { %v277_v12 = vmul.f32 %v1828_v2, %v2556_v1  ;;  %v278_v13 = vmul.f32 %v1829_v3, %v2556_v1  ;;  %v279_v16 = vmul.f32 %v1832_v8, %v2556_v1  ;;  %v280_v17 = vmul.f32 %v1833_v9, %v2556_v1  ;;  %v2405_v34 = vld [vmem:[%s3211_s0 + $0x20] sm:$0xff]  }
   0x5   :  { %v281_v18 = vmul.f32 %v1836_v10, %v2556_v1  ;;  %v282_v19 = vmul.f32 %v1837_v11, %v2556_v1  ;;  %v283_v22 = vmul.f32 %v1840_v14, %v2556_v1  ;;  %v284_v23 = vmul.f32 %v1841_v15, %v2556_v1  ;;  %v2409_v15 = vld [vmem:[%s3211_s0 + $0x40] sm:$0xff]  }
   0x6   :  { %v412_v20 = vadd.f32 %v2570_v7, %v277_v12  ;;  %v413_v21 = vadd.f32 %v2570_v7, %v278_v13  ;;  %v414_v24 = vadd.f32 %v2570_v7, %v279_v16  ;;  %v415_v25 = vadd.f32 %v2570_v7, %v280_v17 }
   0x7   :  { %v416_v26 = vadd.f32 %v2570_v7, %v281_v18  ;;  %v417_v27 = vadd.f32 %v2570_v7, %v282_v19  ;;  %v418_v42 = vadd.f32 %v2570_v7, %v283_v22  ;;  %v419_v43 = vadd.f32 %v2570_v7, %v284_v23 }
   0x8   :  { %vm540_vm0 = vcmp.ge.f32.partialorder %v412_v20, 0.0  ;;  %vm541_vm1 = vcmp.ge.f32.partialorder %v413_v21, 0.0  ;;  %v668_v28 = vmul.f32 0.2, %v412_v20  ;;  %v669_v29 = vmul.f32 0.2, %v413_v21 }
   0x9   :  { %vm542_vm2 = vcmp.ge.f32.partialorder %v414_v24, 0.0  ;;  %vm543_vm3 = vcmp.ge.f32.partialorder %v415_v25, 0.0  ;;  %v670_v30 = vmul.f32 0.2, %v414_v24  ;;  %v671_v31 = vmul.f32 0.2, %v415_v25 }
   0xa   :  { %v796_v32 = vsel %vm540_vm0, %v412_v20, %v668_v28  ;;  %v797_v33 = vsel %vm541_vm1, %v413_v21, %v669_v29  ;;  %vm544_vm4 = vcmp.ge.f32.partialorder %v416_v26, 0.0  ;;  %vm545_vm5 = vcmp.ge.f32.partialorder %v417_v27, 0.0 }
   0xb   :  { %v2085_v36 = vpack.c.bf16 %v797_v33, %v796_v32  ;;  %v798_v37 = vsel %vm542_vm2, %v414_v24, %v670_v30  ;;  %v799_v38 = vsel %vm543_vm3, %v415_v25, %v671_v31  ;;  %v672_v39 = vmul.f32 0.2, %v416_v26 }
   0xc   :  { %v2090_v40 = vpack.c.bf16 %v799_v38, %v798_v37  ;;  %v673_v41 = vmul.f32 0.2, %v417_v27  ;;  %v1844_v45 = vunpack.c.l.bf16 %v2405_v34  ;;  %v1845_v46 = vunpack.c.h.bf16 %v2405_v34 }
   0xd   :  { %2086 = vst [vmem:[%s3214_s3] sm:$0xff] %v2085_v36   ;;  %v800_v44 = vsel %vm544_vm4, %v416_v26, %v672_v39  ;;  %v1848_v47 = vunpack.c.l.bf16 %v2406_v35  ;;  %vm546_vm6 = vcmp.ge.f32.partialorder %v418_v42, 0.0  ;;  %vm547_vm7 = vcmp.ge.f32.partialorder %v419_v43, 0.0  ;;  %v2410_v26 = vld [vmem:[%s3211_s0 + $0x48] sm:$0xff]  }
   0xe   :  { %2465 = vst [vmem:[%s3214_s3 + $0x8] sm:$0xff] %v2090_v40   ;;  %v801_v49 = vsel %vm545_vm5, %v417_v27, %v673_v41  ;;  %v674_v50 = vmul.f32 0.2, %v418_v42  ;;  %v675_v52 = vmul.f32 0.2, %v419_v43  ;;  %v285_v53 = vmul.f32 %v1844_v45, %v2556_v1  ;;  %v2411_v27 = vld [vmem:[%s3211_s0 + $0x50] sm:$0xff]  }
   0xf   :  { %v2095_v51 = vpack.c.bf16 %v801_v49, %v800_v44  ;;  %v286_v54 = vmul.f32 %v1845_v46, %v2556_v1  ;;  %v1849_v56 = vunpack.c.h.bf16 %v2406_v35  ;;  %v287_v57 = vmul.f32 %v1848_v47, %v2556_v1 }
  0x10   :  { %v802_v55 = vsel %vm546_vm6, %v418_v42, %v674_v50  ;;  %v1852_v58 = vunpack.c.l.bf16 %v2407_v48  ;;  %v803_v59 = vsel %vm547_vm7, %v419_v43, %v675_v52  ;;  %v420_v60 = vadd.f32 %v2570_v7, %v285_v53 }
  0x11   :  { %2466 = vst [vmem:[%s3214_s3 + $0x10] sm:$0xff] %v2095_v51   ;;  %v421_v61 = vadd.f32 %v2570_v7, %v286_v54  ;;  %v1853_v62 = vunpack.c.h.bf16 %v2407_v48  ;;  %v2100_v63 = vpack.c.bf16 %v803_v59, %v802_v55  ;;  %v288_v0 = vmul.f32 %v1849_v56, %v2556_v1  ;;  %v2412_v55 = vld [vmem:[%s3211_s0 + $0x58] sm:$0xff]  }
  0x12   :  { %v422_v2 = vadd.f32 %v2570_v7, %v287_v57  ;;  %v289_v3 = vmul.f32 %v1852_v58, %v2556_v1  ;;  %vm548_vm8 = vcmp.ge.f32.partialorder %v420_v60, 0.0  ;;  %v676_v5 = vmul.f32 0.2, %v420_v60 }
  0x13   :  { %vm549_vm9 = vcmp.ge.f32.partialorder %v421_v61, 0.0  ;;  %v677_v6 = vmul.f32 0.2, %v421_v61  ;;  %2467 = vst [vmem:[%s3214_s3 + $0x18] sm:$0xff] %v2100_v63   ;;  %v423_v8 = vadd.f32 %v2570_v7, %v288_v0  ;;  %v290_v10 = vmul.f32 %v1853_v62, %v2556_v1 }
  0x14   :  { %vm550_vm10 = vcmp.ge.f32.partialorder %v422_v2, 0.0  ;;  %v678_v9 = vmul.f32 0.2, %v422_v2  ;;  %v804_v11 = vsel %vm548_vm8, %v420_v60, %v676_v5  ;;  %v424_v13 = vadd.f32 %v2570_v7, %v289_v3  ;;  %v2413_v60 = vld [vmem:[%s3211_s0 + $0x60] sm:$0xff]  }
  0x15   :  { %v805_v12 = vsel %vm549_vm9, %v421_v61, %v677_v6  ;;  %v1856_v14 = vunpack.c.l.bf16 %v2408_v4  ;;  %vm551_vm11 = vcmp.ge.f32.partialorder %v423_v8, 0.0  ;;  %v679_v17 = vmul.f32 0.2, %v423_v8 }
  0x16   :  { %v2105_v16 = vpack.c.bf16 %v805_v12, %v804_v11  ;;  %v806_v18 = vsel %vm550_vm10, %v422_v2, %v678_v9  ;;  %v425_v19 = vadd.f32 %v2570_v7, %v290_v10  ;;  %vm552_vm12 = vcmp.ge.f32.partialorder %v424_v13, 0.0  ;;  %v2414_v9 = vld [vmem:[%s3211_s0 + $0x68] sm:$0xff]  }
  0x17   :  { %v680_v20 = vmul.f32 0.2, %v424_v13  ;;  %v1857_v21 = vunpack.c.h.bf16 %v2408_v4  ;;  %v807_v22 = vsel %vm551_vm11, %v423_v8, %v679_v17  ;;  %v291_v23 = vmul.f32 %v1856_v14, %v2556_v1 }
  0x18   :  { %2468 = vst [vmem:[%s3214_s3 + $0x20] sm:$0xff] %v2105_v16   ;;  %v1860_v24 = vunpack.c.l.bf16 %v2409_v15  ;;  %v1861_v25 = vunpack.c.h.bf16 %v2409_v15  ;;  %v2110_v28 = vpack.c.bf16 %v807_v22, %v806_v18  ;;  %vm553_vm13 = vcmp.ge.f32.partialorder %v425_v19, 0.0 }
  0x19   :  { %v681_v29 = vmul.f32 0.2, %v425_v19  ;;  %v808_v30 = vsel %vm552_vm12, %v424_v13, %v680_v20  ;;  %v292_v31 = vmul.f32 %v1857_v21, %v2556_v1  ;;  %v426_v32 = vadd.f32 %v2570_v7, %v291_v23 }
  0x1a   :  { %v293_v33 = vmul.f32 %v1860_v24, %v2556_v1  ;;  %v294_v34 = vmul.f32 %v1861_v25, %v2556_v1  ;;  %2469 = vst [vmem:[%s3214_s3 + $0x28] sm:$0xff] %v2110_v28   ;;  %v1864_v36 = vunpack.c.l.bf16 %v2410_v26  ;;  %v1865_v37 = vunpack.c.h.bf16 %v2410_v26  ;;  %v2415_v28 = vld [vmem:[%s3211_s0 + $0x70] sm:$0xff]  }
  0x1b   :  { %v809_v35 = vsel %vm553_vm13, %v425_v19, %v681_v29  ;;  %v1868_v38 = vunpack.c.l.bf16 %v2411_v27  ;;  %v427_v40 = vadd.f32 %v2570_v7, %v292_v31  ;;  %vm554_vm14 = vcmp.ge.f32.partialorder %v426_v32, 0.0 }
  0x1c   :  { %v2115_v39 = vpack.c.bf16 %v809_v35, %v808_v30  ;;  %v682_v41 = vmul.f32 0.2, %v426_v32  ;;  %v428_v42 = vadd.f32 %v2570_v7, %v293_v33  ;;  %v429_v43 = vadd.f32 %v2570_v7, %v294_v34 }
  0x1d   :  { %v295_v44 = vmul.f32 %v1864_v36, %v2556_v1  ;;  %v296_v45 = vmul.f32 %v1865_v37, %v2556_v1  ;;  %vm555_vm15 = vcmp.ge.f32.partialorder %v427_v40, 0.0  ;;  %v683_v46 = vmul.f32 0.2, %v427_v40  ;;  %v2416_v37 = vld [vmem:[%s3211_s0 + $0x78] sm:$0xff]  }
  0x1e   :  { %2470 = vst [vmem:[%s3214_s3 + $0x30] sm:$0xff] %v2115_v39   ;;  %v810_v47 = vsel %vm554_vm14, %v426_v32, %v682_v41  ;;  %v1869_v48 = vunpack.c.h.bf16 %v2411_v27  ;;  %vm556_vm0 = vcmp.ge.f32.partialorder %v428_v42, 0.0  ;;  %vm557_vm1 = vcmp.ge.f32.partialorder %v429_v43, 0.0 }
  0x1f   :  { %v684_v49 = vmul.f32 0.2, %v428_v42  ;;  %v685_v50 = vmul.f32 0.2, %v429_v43  ;;  %v811_v51 = vsel %vm555_vm15, %v427_v40, %v683_v46  ;;  %v430_v52 = vadd.f32 %v2570_v7, %v295_v44 }
  0x20   :  { %v431_v53 = vadd.f32 %v2570_v7, %v296_v45  ;;  %v297_v54 = vmul.f32 %v1868_v38, %v2556_v1  ;;  %v2120_v56 = vpack.c.bf16 %v811_v51, %v810_v47  ;;  %v298_v59 = vmul.f32 %v1869_v48, %v2556_v1 }
  0x21   :  { %v812_v57 = vsel %vm556_vm0, %v428_v42, %v684_v49  ;;  %v813_v58 = vsel %vm557_vm1, %v429_v43, %v685_v50  ;;  %vm558_vm2 = vcmp.ge.f32.partialorder %v430_v52, 0.0  ;;  %v686_v62 = vmul.f32 0.2, %v430_v52  ;;  %v2417_v42 = vld [vmem:[%s3211_s0 + $0x80] sm:$0xff]   ;;  %v2418_v50 = vld [vmem:[%s3211_s0 + $0x88] sm:$0xff]  }
  0x22   :  { %v2125_v61 = vpack.c.bf16 %v813_v58, %v812_v57  ;;  %vm559_vm3 = vcmp.ge.f32.partialorder %v431_v53, 0.0  ;;  %2471 = vst [vmem:[%s3214_s3 + $0x38] sm:$0xff] %v2120_v56   ;;  %v687_v63 = vmul.f32 0.2, %v431_v53  ;;  %v432_v0 = vadd.f32 %v2570_v7, %v297_v54 }
  0x23   :  { %v433_v2 = vadd.f32 %v2570_v7, %v298_v59  ;;  %v1872_v3 = vunpack.c.l.bf16 %v2412_v55  ;;  %v814_v4 = vsel %vm558_vm2, %v430_v52, %v686_v62  ;;  %v1873_v5 = vunpack.c.h.bf16 %v2412_v55 }
  0x24   :  { %2472 = vst [vmem:[%s3214_s3 + $0x40] sm:$0xff] %v2125_v61   ;;  %v1876_v6 = vunpack.c.l.bf16 %v2413_v60  ;;  %v1877_v8 = vunpack.c.h.bf16 %v2413_v60  ;;  %v815_v10 = vsel %vm559_vm3, %v431_v53, %v687_v63  ;;  %vm560_vm4 = vcmp.ge.f32.partialorder %v432_v0, 0.0 }
  0x25   :  { %vm561_vm5 = vcmp.ge.f32.partialorder %v433_v2, 0.0  ;;  %v688_v11 = vmul.f32 0.2, %v432_v0  ;;  %v2130_v12 = vpack.c.bf16 %v815_v10, %v814_v4  ;;  %v689_v13 = vmul.f32 0.2, %v433_v2 }
  0x26   :  { %v299_v14 = vmul.f32 %v1872_v3, %v2556_v1  ;;  %v300_v15 = vmul.f32 %v1873_v5, %v2556_v1  ;;  %v301_v17 = vmul.f32 %v1876_v6, %v2556_v1  ;;  %v302_v18 = vmul.f32 %v1877_v8, %v2556_v1 }
  0x27   :  { %v816_v16 = vsel %vm560_vm4, %v432_v0, %v688_v11  ;;  %v1880_v19 = vunpack.c.l.bf16 %v2414_v9  ;;  %2473 = vst [vmem:[%s3214_s3 + $0x48] sm:$0xff] %v2130_v12   ;;  %v817_v20 = vsel %vm561_vm5, %v433_v2, %v689_v13  ;;  %v1881_v23 = vunpack.c.h.bf16 %v2414_v9 }
  0x28   :  { %v434_v21 = vadd.f32 %v2570_v7, %v299_v14  ;;  %v435_v22 = vadd.f32 %v2570_v7, %v300_v15  ;;  %v2135_v24 = vpack.c.bf16 %v817_v20, %v816_v16  ;;  %v436_v25 = vadd.f32 %v2570_v7, %v301_v17  ;;  %v2419_v15 = vld [vmem:[%s3211_s0 + $0x90] sm:$0xff]   ;;  %v2420_v20 = vld [vmem:[%s3211_s0 + $0x98] sm:$0xff]  }
  0x29   :  { %v437_v26 = vadd.f32 %v2570_v7, %v302_v18  ;;  %v303_v27 = vmul.f32 %v1880_v19, %v2556_v1  ;;  %v304_v35 = vmul.f32 %v1881_v23, %v2556_v1  ;;  %v1884_v41 = vunpack.c.l.bf16 %v2415_v28 }
  0x2a   :  { %vm562_vm6 = vcmp.ge.f32.partialorder %v434_v21, 0.0  ;;  %vm563_vm7 = vcmp.ge.f32.partialorder %v435_v22, 0.0  ;;  %v690_v29 = vmul.f32 0.2, %v434_v21  ;;  %v691_v30 = vmul.f32 0.2, %v435_v22 }
  0x2b   :  { %2474 = vst [vmem:[%s3214_s3 + $0x50] sm:$0xff] %v2135_v24   ;;  %vm564_vm8 = vcmp.ge.f32.partialorder %v436_v25, 0.0  ;;  %vm565_vm9 = vcmp.ge.f32.partialorder %v437_v26, 0.0  ;;  %v692_v31 = vmul.f32 0.2, %v436_v25  ;;  %v438_v36 = vadd.f32 %v2570_v7, %v303_v27 }
  0x2c   :  { %v693_v32 = vmul.f32 0.2, %v437_v26  ;;  %v818_v33 = vsel %vm562_vm6, %v434_v21, %v690_v29  ;;  %v819_v34 = vsel %vm563_vm7, %v435_v22, %v691_v30  ;;  %v439_v44 = vadd.f32 %v2570_v7, %v304_v35  ;;  %v2421_v21 = vld [vmem:[%s3211_s0 + $0xa0] sm:$0xff]  }
  0x2d   :  { %v2140_v38 = vpack.c.bf16 %v819_v34, %v818_v33  ;;  %v820_v39 = vsel %vm564_vm8, %v436_v25, %v692_v31  ;;  %vm566_vm10 = vcmp.ge.f32.partialorder %v438_v36, 0.0  ;;  %v694_v45 = vmul.f32 0.2, %v438_v36 }
  0x2e   :  { %v821_v40 = vsel %vm565_vm9, %v437_v26, %v693_v32  ;;  %v1885_v46 = vunpack.c.h.bf16 %v2415_v28  ;;  %v305_v47 = vmul.f32 %v1884_v41, %v2556_v1  ;;  %v1888_v48 = vunpack.c.l.bf16 %v2416_v37 }
  0x2f   :  { %v2145_v43 = vpack.c.bf16 %v821_v40, %v820_v39  ;;  %2475 = vst [vmem:[%s3214_s3 + $0x58] sm:$0xff] %v2140_v38   ;;  %v1889_v49 = vunpack.c.h.bf16 %v2416_v37  ;;  %vm567_vm11 = vcmp.ge.f32.partialorder %v439_v44, 0.0  ;;  %v695_v51 = vmul.f32 0.2, %v439_v44  ;;  %v2422_v40 = vld [vmem:[%s3211_s0 + $0xa8] sm:$0xff]  }
  0x30   :  { %v822_v52 = vsel %vm566_vm10, %v438_v36, %v694_v45  ;;  %v1892_v53 = vunpack.c.l.bf16 %v2417_v42  ;;  %v306_v54 = vmul.f32 %v1885_v46, %v2556_v1  ;;  %v440_v55 = vadd.f32 %v2570_v7, %v305_v47 }
  0x31   :  { %2476 = vst [vmem:[%s3214_s3 + $0x60] sm:$0xff] %v2145_v43   ;;  %v307_v56 = vmul.f32 %v1888_v48, %v2556_v1  ;;  %v308_v57 = vmul.f32 %v1889_v49, %v2556_v1  ;;  %v823_v58 = vsel %vm567_vm11, %v439_v44, %v695_v51  ;;  %v1893_v59 = vunpack.c.h.bf16 %v2417_v42 }
  0x32   :  { %v309_v60 = vmul.f32 %v1892_v53, %v2556_v1  ;;  %v1896_v61 = vunpack.c.l.bf16 %v2418_v50  ;;  %v2150_v62 = vpack.c.bf16 %v823_v58, %v822_v52  ;;  %v441_v63 = vadd.f32 %v2570_v7, %v306_v54 }
  0x33   :  { %vm568_vm12 = vcmp.ge.f32.partialorder %v440_v55, 0.0  ;;  %v696_v0 = vmul.f32 0.2, %v440_v55  ;;  %v442_v2 = vadd.f32 %v2570_v7, %v307_v56  ;;  %v443_v3 = vadd.f32 %v2570_v7, %v308_v57 }
  0x34   :  { %v310_v4 = vmul.f32 %v1893_v59, %v2556_v1  ;;  %v444_v5 = vadd.f32 %v2570_v7, %v309_v60  ;;  %2477 = vst [vmem:[%s3214_s3 + $0x68] sm:$0xff] %v2150_v62   ;;  %vm569_vm13 = vcmp.ge.f32.partialorder %v441_v63, 0.0  ;;  %v697_v6 = vmul.f32 0.2, %v441_v63 }
  0x35   :  { %v824_v8 = vsel %vm568_vm12, %v440_v55, %v696_v0  ;;  %v1897_v9 = vunpack.c.h.bf16 %v2418_v50  ;;  %vm570_vm14 = vcmp.ge.f32.partialorder %v442_v2, 0.0  ;;  %vm571_vm15 = vcmp.ge.f32.partialorder %v443_v3, 0.0  ;;  %v2423_v0 = vld [vmem:[%s3211_s0 + $0xb0] sm:$0xff]  }
  0x36   :  { %v698_v10 = vmul.f32 0.2, %v442_v2  ;;  %v699_v11 = vmul.f32 0.2, %v443_v3  ;;  %v825_v12 = vsel %vm569_vm13, %v441_v63, %v697_v6  ;;  %v445_v13 = vadd.f32 %v2570_v7, %v310_v4 }
  0x37   :  { %vm572_vm0 = vcmp.ge.f32.partialorder %v444_v5, 0.0  ;;  %v700_v14 = vmul.f32 0.2, %v444_v5  ;;  %v2155_v16 = vpack.c.bf16 %v825_v12, %v824_v8  ;;  %v311_v19 = vmul.f32 %v1896_v61, %v2556_v1 }
  0x38   :  { %v826_v17 = vsel %vm570_vm14, %v442_v2, %v698_v10  ;;  %v827_v18 = vsel %vm571_vm15, %v443_v3, %v699_v11  ;;  %vm573_vm1 = vcmp.ge.f32.partialorder %v445_v13, 0.0  ;;  %v701_v23 = vmul.f32 0.2, %v445_v13  ;;  %v2424_v2 = vld [vmem:[%s3211_s0 + $0xb8] sm:$0xff]  }
  0x39   :  { %v2160_v22 = vpack.c.bf16 %v827_v18, %v826_v17  ;;  %v828_v24 = vsel %vm572_vm0, %v444_v5, %v700_v14  ;;  %2478 = vst [vmem:[%s3214_s3 + $0x70] sm:$0xff] %v2155_v16   ;;  %v312_v25 = vmul.f32 %v1897_v9, %v2556_v1  ;;  %v446_v26 = vadd.f32 %v2570_v7, %v311_v19  ;;  %v2425_v18 = vld [vmem:[%s3211_s0 + $0xc0] sm:$0xff]  }
  0x3a   :  { %v1900_v27 = vunpack.c.l.bf16 %v2419_v15  ;;  %v1901_v28 = vunpack.c.h.bf16 %v2419_v15  ;;  %v829_v29 = vsel %vm573_vm1, %v445_v13, %v701_v23  ;;  %v1904_v30 = vunpack.c.l.bf16 %v2420_v20 }
  0x3b   :  { %2479 = vst [vmem:[%s3214_s3 + $0x78] sm:$0xff] %v2160_v22   ;;  %v1905_v31 = vunpack.c.h.bf16 %v2420_v20  ;;  %v1908_v32 = vunpack.c.l.bf16 %v2421_v21  ;;  %v2165_v33 = vpack.c.bf16 %v829_v29, %v828_v24  ;;  %v447_v34 = vadd.f32 %v2570_v7, %v312_v25 }
  0x3c   :  { %vm574_vm2 = vcmp.ge.f32.partialorder %v446_v26, 0.0  ;;  %v702_v35 = vmul.f32 0.2, %v446_v26  ;;  %v313_v36 = vmul.f32 %v1900_v27, %v2556_v1  ;;  %v314_v37 = vmul.f32 %v1901_v28, %v2556_v1 }
  0x3d   :  { %v315_v38 = vmul.f32 %v1904_v30, %v2556_v1  ;;  %v316_v39 = vmul.f32 %v1905_v31, %v2556_v1  ;;  %2480 = vst [vmem:[%s3214_s3 + $0x80] sm:$0xff] %v2165_v33   ;;  %vm575_vm3 = vcmp.ge.f32.partialorder %v447_v34, 0.0  ;;  %v703_v41 = vmul.f32 0.2, %v447_v34 }
  0x3e   :  { %v830_v42 = vsel %vm574_vm2, %v446_v26, %v702_v35  ;;  %v1909_v43 = vunpack.c.h.bf16 %v2421_v21  ;;  %v448_v44 = vadd.f32 %v2570_v7, %v313_v36  ;;  %v449_v45 = vadd.f32 %v2570_v7, %v314_v37  ;;  %v2426_v36 = vld [vmem:[%s3211_s0 + $0xc8] sm:$0xff]  }
  0x3f   :  { %v450_v46 = vadd.f32 %v2570_v7, %v315_v38  ;;  %v451_v47 = vadd.f32 %v2570_v7, %v316_v39  ;;  %v831_v48 = vsel %vm575_vm3, %v447_v34, %v703_v41  ;;  %v317_v49 = vmul.f32 %v1908_v32, %v2556_v1 }
  0x40   :  { %v318_v50 = vmul.f32 %v1909_v43, %v2556_v1  ;;  %v1912_v51 = vunpack.c.l.bf16 %v2422_v40  ;;  %v2170_v52 = vpack.c.bf16 %v831_v48, %v830_v42  ;;  %vm576_vm4 = vcmp.ge.f32.partialorder %v448_v44, 0.0  ;;  %v2427_v42 = vld [vmem:[%s3211_s0 + $0xd0] sm:$0xff]  }
  0x41   :  { %vm577_vm5 = vcmp.ge.f32.partialorder %v449_v45, 0.0  ;;  %v704_v53 = vmul.f32 0.2, %v448_v44  ;;  %v705_v54 = vmul.f32 0.2, %v449_v45  ;;  %vm578_vm6 = vcmp.ge.f32.partialorder %v450_v46, 0.0 }
  0x42   :  { %vm579_vm7 = vcmp.ge.f32.partialorder %v451_v47, 0.0  ;;  %v706_v55 = vmul.f32 0.2, %v450_v46  ;;  %2481 = vst [vmem:[%s3214_s3 + $0x88] sm:$0xff] %v2170_v52   ;;  %v707_v57 = vmul.f32 0.2, %v451_v47  ;;  %v452_v58 = vadd.f32 %v2570_v7, %v317_v49 }
  0x43   :  { %v832_v56 = vsel %vm576_vm4, %v448_v44, %v704_v53  ;;  %v453_v59 = vadd.f32 %v2570_v7, %v318_v50  ;;  %v833_v60 = vsel %vm577_vm5, %v449_v45, %v705_v54  ;;  %v1913_v62 = vunpack.c.h.bf16 %v2422_v40 }
  0x44   :  { %v834_v61 = vsel %vm578_vm6, %v450_v46, %v706_v55  ;;  %v319_v63 = vmul.f32 %v1912_v51, %v2556_v1  ;;  %v2175_v3 = vpack.c.bf16 %v833_v60, %v832_v56  ;;  %v835_v4 = vsel %vm579_vm7, %v451_v47, %v707_v57  ;;  %v2428_v55 = vld [vmem:[%s3211_s0 + $0xd8] sm:$0xff]  }
  0x45   :  { %vm580_vm8 = vcmp.ge.f32.partialorder %v452_v58, 0.0  ;;  %vm581_vm9 = vcmp.ge.f32.partialorder %v453_v59, 0.0  ;;  %v2180_v5 = vpack.c.bf16 %v835_v4, %v834_v61  ;;  %v708_v6 = vmul.f32 0.2, %v452_v58 }
  0x46   :  { %v709_v8 = vmul.f32 0.2, %v453_v59  ;;  %v320_v9 = vmul.f32 %v1913_v62, %v2556_v1  ;;  %2482 = vst [vmem:[%s3214_s3 + $0x90] sm:$0xff] %v2175_v3   ;;  %v454_v10 = vadd.f32 %v2570_v7, %v319_v63  ;;  %v1916_v11 = vunpack.c.l.bf16 %v2423_v0 }
  0x47   :  { %v1917_v12 = vunpack.c.h.bf16 %v2423_v0  ;;  %v1920_v13 = vunpack.c.l.bf16 %v2424_v2  ;;  %2483 = vst [vmem:[%s3214_s3 + $0x98] sm:$0xff] %v2180_v5   ;;  %v836_v14 = vsel %vm580_vm8, %v452_v58, %v708_v6  ;;  %v1921_v17 = vunpack.c.h.bf16 %v2424_v2 }
  0x48   :  { %v837_v15 = vsel %vm581_vm9, %v453_v59, %v709_v8  ;;  %v455_v16 = vadd.f32 %v2570_v7, %v320_v9  ;;  %vm582_vm10 = vcmp.ge.f32.partialorder %v454_v10, 0.0  ;;  %v710_v20 = vmul.f32 0.2, %v454_v10 }
  0x49   :  { %v2185_v19 = vpack.c.bf16 %v837_v15, %v836_v14  ;;  %v321_v21 = vmul.f32 %v1916_v11, %v2556_v1  ;;  %v322_v23 = vmul.f32 %v1917_v12, %v2556_v1  ;;  %v323_v24 = vmul.f32 %v1920_v13, %v2556_v1  ;;  %v2430_v14 = vld [vmem:[%s3211_s0 + $0xe8] sm:$0xff]  }
  0x4a   :  { %vm583_vm11 = vcmp.ge.f32.partialorder %v455_v16, 0.0  ;;  %v711_v22 = vmul.f32 0.2, %v455_v16  ;;  %v838_v25 = vsel %vm582_vm10, %v454_v10, %v710_v20  ;;  %v324_v27 = vmul.f32 %v1921_v17, %v2556_v1  ;;  %v2429_v10 = vld [vmem:[%s3211_s0 + $0xe0] sm:$0xff]  }
  0x4b   :  { %2484 = vst [vmem:[%s3214_s3 + $0xa0] sm:$0xff] %v2185_v19   ;;  %v456_v26 = vadd.f32 %v2570_v7, %v321_v21  ;;  %v1924_v28 = vunpack.c.l.bf16 %v2425_v18  ;;  %v457_v30 = vadd.f32 %v2570_v7, %v322_v23  ;;  %v458_v31 = vadd.f32 %v2570_v7, %v323_v24 }
  0x4c   :  { %v839_v29 = vsel %vm583_vm11, %v455_v16, %v711_v22  ;;  %v1925_v32 = vunpack.c.h.bf16 %v2425_v18  ;;  %v459_v35 = vadd.f32 %v2570_v7, %v324_v27  ;;  %v1928_v46 = vunpack.c.l.bf16 %v2426_v36 }
  0x4d   :  { %v2190_v33 = vpack.c.bf16 %v839_v29, %v838_v25  ;;  %vm584_vm12 = vcmp.ge.f32.partialorder %v456_v26, 0.0  ;;  %v712_v34 = vmul.f32 0.2, %v456_v26  ;;  %vm585_vm13 = vcmp.ge.f32.partialorder %v457_v30, 0.0 }
  0x4e   :  { %v713_v37 = vmul.f32 0.2, %v457_v30  ;;  %vm586_vm14 = vcmp.ge.f32.partialorder %v458_v31, 0.0  ;;  %v714_v38 = vmul.f32 0.2, %v458_v31  ;;  %vm587_vm15 = vcmp.ge.f32.partialorder %v459_v35, 0.0 }
  0x4f   :  { %2485 = vst [vmem:[%s3214_s3 + $0xa8] sm:$0xff] %v2190_v33   ;;  %v840_v39 = vsel %vm584_vm12, %v456_v26, %v712_v34  ;;  %v715_v40 = vmul.f32 0.2, %v459_v35  ;;  %v325_v41 = vmul.f32 %v1924_v28, %v2556_v1  ;;  %v326_v45 = vmul.f32 %v1925_v32, %v2556_v1 }
  0x50   :  { %v841_v43 = vsel %vm585_vm13, %v457_v30, %v713_v37  ;;  %v842_v44 = vsel %vm586_vm14, %v458_v31, %v714_v38  ;;  %v1929_v50 = vunpack.c.h.bf16 %v2426_v36  ;;  %v327_v53 = vmul.f32 %v1928_v46, %v2556_v1  ;;  %v2431_v30 = vld [vmem:[%s3211_s0 + $0xf0] sm:$0xff]  }
  0x51   :  { %v2195_v47 = vpack.c.bf16 %v841_v43, %v840_v39  ;;  %v843_v48 = vsel %vm587_vm15, %v459_v35, %v715_v40  ;;  %v460_v49 = vadd.f32 %v2570_v7, %v325_v41  ;;  %v461_v52 = vadd.f32 %v2570_v7, %v326_v45 }
  0x52   :  { %v2200_v51 = vpack.c.bf16 %v843_v48, %v842_v44  ;;  %v1932_v54 = vunpack.c.l.bf16 %v2427_v42  ;;  %v328_v57 = vmul.f32 %v1929_v50, %v2556_v1  ;;  %v1933_v58 = vunpack.c.h.bf16 %v2427_v42  ;;  %v2432_v44 = vld [vmem:[%s3211_s0 + $0xf8] sm:$0xff]  }
  0x53   :  { %2486 = vst [vmem:[%s3214_s3 + $0xb0] sm:$0xff] %v2195_v47   ;;  %vm588_vm0 = vcmp.ge.f32.partialorder %v460_v49, 0.0  ;;  %v716_v56 = vmul.f32 0.2, %v460_v49  ;;  %vm589_vm1 = vcmp.ge.f32.partialorder %v461_v52, 0.0  ;;  %v462_v60 = vadd.f32 %v2570_v7, %v327_v53 }
  0x54   :  { %2487 = vst [vmem:[%s3214_s3 + $0xb8] sm:$0xff] %v2200_v51   ;;  %v717_v59 = vmul.f32 0.2, %v461_v52  ;;  %v329_v61 = vmul.f32 %v1932_v54, %v2556_v1  ;;  %v463_v63 = vadd.f32 %v2570_v7, %v328_v57  ;;  %v330_v0 = vmul.f32 %v1933_v58, %v2556_v1  ;;  %v2433_v54 = vld [vmem:[%s3211_s0 + $0x100] sm:$0xff]  }
  0x55   :  { %v844_v62 = vsel %vm588_vm0, %v460_v49, %v716_v56  ;;  %v1936_v2 = vunpack.c.l.bf16 %v2428_v55  ;;  %vm590_vm2 = vcmp.ge.f32.partialorder %v462_v60, 0.0  ;;  %v718_v4 = vmul.f32 0.2, %v462_v60 }
  0x56   :  { %v845_v3 = vsel %vm589_vm1, %v461_v52, %v717_v59  ;;  %v464_v5 = vadd.f32 %v2570_v7, %v329_v61  ;;  %vm591_vm3 = vcmp.ge.f32.partialorder %v463_v63, 0.0  ;;  %v719_v8 = vmul.f32 0.2, %v463_v63 }
  0x57   :  { %v2205_v6 = vpack.c.bf16 %v845_v3, %v844_v62  ;;  %v465_v9 = vadd.f32 %v2570_v7, %v330_v0  ;;  %v846_v11 = vsel %vm590_vm2, %v462_v60, %v718_v4  ;;  %v1937_v13 = vunpack.c.h.bf16 %v2428_v55  ;;  %v2434_v55 = vld [vmem:[%s3211_s0 + $0x108] sm:$0xff]  }
  0x58   :  { %vm592_vm4 = vcmp.ge.f32.partialorder %v464_v5, 0.0  ;;  %v720_v12 = vmul.f32 0.2, %v464_v5  ;;  %v847_v15 = vsel %vm591_vm3, %v463_v63, %v719_v8  ;;  %v331_v17 = vmul.f32 %v1936_v2, %v2556_v1 }
  0x59   :  { %2488 = vst [vmem:[%s3214_s3 + $0xc0] sm:$0xff] %v2205_v6   ;;  %vm593_vm5 = vcmp.ge.f32.partialorder %v465_v9, 0.0  ;;  %v721_v16 = vmul.f32 0.2, %v465_v9  ;;  %v2210_v18 = vpack.c.bf16 %v847_v15, %v846_v11  ;;  %v332_v20 = vmul.f32 %v1937_v13, %v2556_v1 }
  0x5a   :  { %v848_v19 = vsel %vm592_vm4, %v464_v5, %v720_v12  ;;  %v1940_v21 = vunpack.c.l.bf16 %v2429_v10  ;;  %v466_v23 = vadd.f32 %v2570_v7, %v331_v17  ;;  %v1941_v24 = vunpack.c.h.bf16 %v2429_v10 }
  0x5b   :  { %v849_v22 = vsel %vm593_vm5, %v465_v9, %v721_v16  ;;  %v1944_v25 = vunpack.c.l.bf16 %v2430_v14  ;;  %2489 = vst [vmem:[%s3214_s3 + $0xc8] sm:$0xff] %v2210_v18   ;;  %v467_v27 = vadd.f32 %v2570_v7, %v332_v20  ;;  %v1945_v29 = vunpack.c.h.bf16 %v2430_v14 }
  0x5c   :  { %v2215_v26 = vpack.c.bf16 %v849_v22, %v848_v19  ;;  %v333_v28 = vmul.f32 %v1940_v21, %v2556_v1  ;;  %vm594_vm6 = vcmp.ge.f32.partialorder %v466_v23, 0.0  ;;  %v722_v31 = vmul.f32 0.2, %v466_v23  ;;  %v2435_v22 = vld [vmem:[%s3211_s0 + $0x110] sm:$0xff]  }
  0x5d   :  { %v334_v32 = vmul.f32 %v1941_v24, %v2556_v1  ;;  %v335_v33 = vmul.f32 %v1944_v25, %v2556_v1  ;;  %vm595_vm7 = vcmp.ge.f32.partialorder %v467_v27, 0.0  ;;  %v723_v34 = vmul.f32 0.2, %v467_v27 }
  0x5e   :  { %2490 = vst [vmem:[%s3214_s3 + $0xd0] sm:$0xff] %v2215_v26   ;;  %v468_v35 = vadd.f32 %v2570_v7, %v333_v28  ;;  %v336_v36 = vmul.f32 %v1945_v29, %v2556_v1  ;;  %v850_v37 = vsel %vm594_vm6, %v466_v23, %v722_v31  ;;  %v1948_v40 = vunpack.c.l.bf16 %v2431_v30  ;;  %v2436_v26 = vld [vmem:[%s3211_s0 + $0x118] sm:$0xff]  }
  0x5f   :  { %v469_v38 = vadd.f32 %v2570_v7, %v334_v32  ;;  %v470_v39 = vadd.f32 %v2570_v7, %v335_v33  ;;  %v851_v41 = vsel %vm595_vm7, %v467_v27, %v723_v34  ;;  %v1949_v51 = vunpack.c.h.bf16 %v2431_v30 }
  0x60   :  { %vm596_vm8 = vcmp.ge.f32.partialorder %v468_v35, 0.0  ;;  %v724_v42 = vmul.f32 0.2, %v468_v35  ;;  %v471_v43 = vadd.f32 %v2570_v7, %v336_v36  ;;  %v2220_v45 = vpack.c.bf16 %v851_v41, %v850_v37  ;;  %v2437_v37 = vld [vmem:[%s3211_s0 + $0x120] sm:$0xff]  }
  0x61   :  { %vm597_vm9 = vcmp.ge.f32.partialorder %v469_v38, 0.0  ;;  %v725_v46 = vmul.f32 0.2, %v469_v38  ;;  %vm598_vm10 = vcmp.ge.f32.partialorder %v470_v39, 0.0  ;;  %v726_v48 = vmul.f32 0.2, %v470_v39 }
  0x62   :  { %v852_v47 = vsel %vm596_vm8, %v468_v35, %v724_v42  ;;  %vm599_vm11 = vcmp.ge.f32.partialorder %v471_v43, 0.0  ;;  %v727_v49 = vmul.f32 0.2, %v471_v43  ;;  %2491 = vst [vmem:[%s3214_s3 + $0xd8] sm:$0xff] %v2220_v45   ;;  %v337_v52 = vmul.f32 %v1948_v40, %v2556_v1 }
  0x63   :  { %v853_v50 = vsel %vm597_vm9, %v469_v38, %v725_v46  ;;  %v1952_v53 = vunpack.c.l.bf16 %v2432_v44  ;;  %v854_v57 = vsel %vm598_vm10, %v470_v39, %v726_v48  ;;  %v1953_v59 = vunpack.c.h.bf16 %v2432_v44 }
  0x64   :  { %v2225_v56 = vpack.c.bf16 %v853_v50, %v852_v47  ;;  %v855_v58 = vsel %vm599_vm11, %v471_v43, %v727_v49  ;;  %v338_v61 = vmul.f32 %v1949_v51, %v2556_v1  ;;  %v472_v62 = vadd.f32 %v2570_v7, %v337_v52  ;;  %v2919_v49 = vld [vmem:[%s3213_s2] ss:$0 sm:$0xff] }
  0x65   :  { %v2230_v60 = vpack.c.bf16 %v855_v58, %v854_v57  ;;  %v339_v63 = vmul.f32 %v1952_v53, %v2556_v1  ;;  %v340_v0 = vmul.f32 %v1953_v59, %v2556_v1  ;;  %v1956_v2 = vunpack.c.l.bf16 %v2433_v54  ;;  %v2438_v57 = vld [vmem:[%s3211_s0 + $0x128] sm:$0xff]  }
  0x66   :  { %2492 = vst [vmem:[%s3214_s3 + $0xe0] sm:$0xff] %v2225_v56   ;;  %v1957_v3 = vunpack.c.h.bf16 %v2433_v54  ;;  %v1960_v4 = vunpack.c.l.bf16 %v2434_v55  ;;  %v473_v5 = vadd.f32 %v2570_v7, %v338_v61  ;;  %vm600_vm12 = vcmp.ge.f32.partialorder %v472_v62, 0.0 }
  0x67   :  { %2493 = vst [vmem:[%s3214_s3 + $0xe8] sm:$0xff] %v2230_v60   ;;  %v728_v6 = vmul.f32 0.2, %v472_v62  ;;  %v474_v8 = vadd.f32 %v2570_v7, %v339_v63  ;;  %v475_v9 = vadd.f32 %v2570_v7, %v340_v0  ;;  %v341_v10 = vmul.f32 %v1956_v2, %v2556_v1 }
  0x68   :  { %v342_v11 = vmul.f32 %v1957_v3, %v2556_v1  ;;  %v1961_v12 = vunpack.c.h.bf16 %v2434_v55  ;;  %vm601_vm13 = vcmp.ge.f32.partialorder %v473_v5, 0.0  ;;  %v729_v13 = vmul.f32 0.2, %v473_v5  ;;  %v2439_v3 = vld [vmem:[%s3211_s0 + $0x130] sm:$0xff]  }
  0x69   :  { %v856_v14 = vsel %vm600_vm12, %v472_v62, %v728_v6  ;;  %vm602_vm14 = vcmp.ge.f32.partialorder %v474_v8, 0.0  ;;  %vm603_vm15 = vcmp.ge.f32.partialorder %v475_v9, 0.0  ;;  %v730_v15 = vmul.f32 0.2, %v474_v8 }
  0x6a   :  { %v731_v16 = vmul.f32 0.2, %v475_v9  ;;  %v476_v17 = vadd.f32 %v2570_v7, %v341_v10  ;;  %v857_v18 = vsel %vm601_vm13, %v473_v5, %v729_v13  ;;  %v477_v19 = vadd.f32 %v2570_v7, %v342_v11 }
  0x6b   :  { %v343_v20 = vmul.f32 %v1960_v4, %v2556_v1  ;;  %v344_v21 = vmul.f32 %v1961_v12, %v2556_v1  ;;  %v2235_v23 = vpack.c.bf16 %v857_v18, %v856_v14  ;;  %v858_v24 = vsel %vm602_vm14, %v474_v8, %v730_v15 }
  0x6c   :  { %v859_v25 = vsel %vm603_vm15, %v475_v9, %v731_v16  ;;  %vm604_vm0 = vcmp.ge.f32.partialorder %v476_v17, 0.0  ;;  %vm605_vm1 = vcmp.ge.f32.partialorder %v477_v19, 0.0  ;;  %v732_v28 = vmul.f32 0.2, %v476_v17  ;;  %v2440_v9 = vld [vmem:[%s3211_s0 + $0x138] sm:$0xff]  }
  0x6d   :  { %v2240_v27 = vpack.c.bf16 %v859_v25, %v858_v24  ;;  %v733_v29 = vmul.f32 0.2, %v477_v19  ;;  %2494 = vst [vmem:[%s3214_s3 + $0xf0] sm:$0xff] %v2235_v23   ;;  %v478_v1 = vadd.f32 %v2570_v7, %v343_v20  ;;  %v479_v30 = vadd.f32 %v2570_v7, %v344_v21  ;;  %v2907_v7 = vld [vmem:[%s3212_s1] ss:$0 sm:$0xff] }
  0x6e   :  { %v1964_v31 = vunpack.c.l.bf16 %v2435_v22  ;;  %v1965_v32 = vunpack.c.h.bf16 %v2435_v22  ;;  %v860_v33 = vsel %vm604_vm0, %v476_v17, %v732_v28  ;;  %v1968_v35 = vunpack.c.l.bf16 %v2436_v26  ;;  %v2441_v24 = vld [vmem:[%s3211_s0 + $0x140] sm:$0xff]  }
  0x6f   :  { %2495 = vst [vmem:[%s3214_s3 + $0xf8] sm:$0xff] %v2240_v27   ;;  %v861_v34 = vsel %vm605_vm1, %v477_v19, %v733_v29  ;;  %v1969_v36 = vunpack.c.h.bf16 %v2436_v26  ;;  %vm606_vm2 = vcmp.ge.f32.partialorder %v478_v1, 0.0  ;;  %vm607_vm3 = vcmp.ge.f32.partialorder %v479_v30, 0.0 }
  0x70   :  { %v2245_v38 = vpack.c.bf16 %v861_v34, %v860_v33  ;;  %v734_v39 = vmul.f32 0.2, %v478_v1  ;;  %v735_v40 = vmul.f32 0.2, %v479_v30  ;;  %v345_v41 = vmul.f32 %v2907_v7, %v1964_v31 }
  0x71   :  { %v346_v42 = vmul.f32 %v2907_v7, %v1965_v32  ;;  %v347_v43 = vmul.f32 %v2907_v7, %v1968_v35  ;;  %v348_v45 = vmul.f32 %v2907_v7, %v1969_v36  ;;  %v1972_v46 = vunpack.c.l.bf16 %v2437_v37 }
  0x72   :  { %2496 = vst [vmem:[%s3214_s3 + $0x100] sm:$0xff] %v2245_v38   ;;  %v862_v44 = vsel %vm606_vm2, %v478_v1, %v734_v39  ;;  %v1973_v47 = vunpack.c.h.bf16 %v2437_v37  ;;  %v863_v48 = vsel %vm607_vm3, %v479_v30, %v735_v40  ;;  %v480_v50 = vadd.f32 %v2919_v49, %v345_v41 }
  0x73   :  { %v481_v51 = vadd.f32 %v2919_v49, %v346_v42  ;;  %v482_v52 = vadd.f32 %v2919_v49, %v347_v43  ;;  %v2250_v53 = vpack.c.bf16 %v863_v48, %v862_v44  ;;  %v483_v54 = vadd.f32 %v2919_v49, %v348_v45  ;;  %v2442_v42 = vld [vmem:[%s3211_s0 + $0x148] sm:$0xff]   ;;  %v2444_v48 = vld [vmem:[%s3211_s0 + $0x158] sm:$0xff]  }
  0x74   :  { %v349_v55 = vmul.f32 %v2907_v7, %v1972_v46  ;;  %v350_v56 = vmul.f32 %v2907_v7, %v1973_v47  ;;  %vm608_vm4 = vcmp.ge.f32.partialorder %v480_v50, 0.0  ;;  %v736_v58 = vmul.f32 0.2, %v480_v50  ;;  %v2443_v47 = vld [vmem:[%s3211_s0 + $0x150] sm:$0xff]  }
  0x75   :  { %vm609_vm5 = vcmp.ge.f32.partialorder %v481_v51, 0.0  ;;  %v737_v59 = vmul.f32 0.2, %v481_v51  ;;  %2497 = vst [vmem:[%s3214_s3 + $0x108] sm:$0xff] %v2250_v53   ;;  %vm610_vm6 = vcmp.ge.f32.partialorder %v482_v52, 0.0  ;;  %vm611_vm7 = vcmp.ge.f32.partialorder %v483_v54, 0.0 }
  0x76   :  { %v738_v60 = vmul.f32 0.2, %v482_v52  ;;  %v739_v61 = vmul.f32 0.2, %v483_v54  ;;  %v864_v62 = vsel %vm608_vm4, %v480_v50, %v736_v58  ;;  %v484_v0 = vadd.f32 %v2919_v49, %v349_v55 }
  0x77   :  { %v865_v63 = vsel %vm609_vm5, %v481_v51, %v737_v59  ;;  %v485_v2 = vadd.f32 %v2919_v49, %v350_v56  ;;  %v1976_v8 = vunpack.c.l.bf16 %v2438_v57  ;;  %v1977_v13 = vunpack.c.h.bf16 %v2438_v57 }
  0x78   :  { %v2255_v4 = vpack.c.bf16 %v865_v63, %v864_v62  ;;  %v866_v5 = vsel %vm610_vm6, %v482_v52, %v738_v60  ;;  %v867_v6 = vsel %vm611_vm7, %v483_v54, %v739_v61  ;;  %vm612_vm8 = vcmp.ge.f32.partialorder %v484_v0, 0.0 }
  0x79   :  { %v2260_v10 = vpack.c.bf16 %v867_v6, %v866_v5  ;;  %vm613_vm9 = vcmp.ge.f32.partialorder %v485_v2, 0.0  ;;  %v740_v11 = vmul.f32 0.2, %v484_v0  ;;  %v741_v12 = vmul.f32 0.2, %v485_v2 }
  0x7a   :  { %2498 = vst [vmem:[%s3214_s3 + $0x110] sm:$0xff] %v2255_v4   ;;  %v351_v14 = vmul.f32 %v2907_v7, %v1976_v8  ;;  %v1980_v15 = vunpack.c.l.bf16 %v2439_v3  ;;  %v1981_v17 = vunpack.c.h.bf16 %v2439_v3  ;;  %v1984_v18 = vunpack.c.l.bf16 %v2440_v9 }
  0x7b   :  { %2499 = vst [vmem:[%s3214_s3 + $0x118] sm:$0xff] %v2260_v10   ;;  %v868_v16 = vsel %vm612_vm8, %v484_v0, %v740_v11  ;;  %v1985_v19 = vunpack.c.h.bf16 %v2440_v9  ;;  %v869_v20 = vsel %vm613_vm9, %v485_v2, %v741_v12  ;;  %v352_v21 = vmul.f32 %v2907_v7, %v1977_v13 }
  0x7c   :  { %v486_v22 = vadd.f32 %v2919_v49, %v351_v14  ;;  %v353_v23 = vmul.f32 %v2907_v7, %v1980_v15  ;;  %v2265_v25 = vpack.c.bf16 %v869_v20, %v868_v16  ;;  %v354_v26 = vmul.f32 %v2907_v7, %v1981_v17  ;;  %v2445_v16 = vld [vmem:[%s3211_s0 + $0x160] sm:$0xff]  }
  0x7d   :  { %v355_v27 = vmul.f32 %v2907_v7, %v1984_v18  ;;  %v356_v28 = vmul.f32 %v2907_v7, %v1985_v19  ;;  %v487_v29 = vadd.f32 %v2919_v49, %v352_v21  ;;  %v1988_v34 = vunpack.c.l.bf16 %v2441_v24 }
  0x7e   :  { %vm614_vm10 = vcmp.ge.f32.partialorder %v486_v22, 0.0  ;;  %v742_v1 = vmul.f32 0.2, %v486_v22  ;;  %v488_v30 = vadd.f32 %v2919_v49, %v353_v23  ;;  %2500 = vst [vmem:[%s3214_s3 + $0x120] sm:$0xff] %v2265_v25   ;;  %v489_v31 = vadd.f32 %v2919_v49, %v354_v26 }
  0x7f   :  { %v490_v32 = vadd.f32 %v2919_v49, %v355_v27  ;;  %v491_v33 = vadd.f32 %v2919_v49, %v356_v28  ;;  %vm615_vm11 = vcmp.ge.f32.partialorder %v487_v29, 0.0  ;;  %v743_v35 = vmul.f32 0.2, %v487_v29  ;;  %v2446_v27 = vld [vmem:[%s3211_s0 + $0x168] sm:$0xff]  }
  0x80   :  { %v870_v36 = vsel %vm614_vm10, %v486_v22, %v742_v1  ;;  %vm616_vm12 = vcmp.ge.f32.partialorder %v488_v30, 0.0  ;;  %vm617_vm13 = vcmp.ge.f32.partialorder %v489_v31, 0.0  ;;  %v744_v37 = vmul.f32 0.2, %v488_v30 }
  0x81   :  { %v745_v38 = vmul.f32 0.2, %v489_v31  ;;  %vm618_vm14 = vcmp.ge.f32.partialorder %v490_v32, 0.0  ;;  %v871_v39 = vsel %vm615_vm11, %v487_v29, %v743_v35  ;;  %vm619_vm15 = vcmp.ge.f32.partialorder %v491_v33, 0.0 }
  0x82   :  { %v746_v40 = vmul.f32 0.2, %v490_v32  ;;  %v747_v41 = vmul.f32 0.2, %v491_v33  ;;  %v2270_v43 = vpack.c.bf16 %v871_v39, %v870_v36  ;;  %v872_v44 = vsel %vm616_vm12, %v488_v30, %v744_v37 }
  0x83   :  { %v873_v45 = vsel %vm617_vm13, %v489_v31, %v745_v38  ;;  %v1989_v46 = vunpack.c.h.bf16 %v2441_v24  ;;  %v357_v53 = vmul.f32 %v2907_v7, %v1988_v34  ;;  %v1992_v56 = vunpack.c.l.bf16 %v2442_v42  ;;  %v2447_v31 = vld [vmem:[%s3211_s0 + $0x170] sm:$0xff]  }
  0x84   :  { %v2275_v50 = vpack.c.bf16 %v873_v45, %v872_v44  ;;  %v874_v51 = vsel %vm618_vm14, %v490_v32, %v746_v40  ;;  %v875_v52 = vsel %vm619_vm15, %v491_v33, %v747_v41  ;;  %2501 = vst [vmem:[%s3214_s3 + $0x128] sm:$0xff] %v2270_v43   ;;  %v1993_v57 = vunpack.c.h.bf16 %v2442_v42 }
  0x85   :  { %v2280_v54 = vpack.c.bf16 %v875_v52, %v874_v51  ;;  %v358_v55 = vmul.f32 %v2907_v7, %v1989_v46  ;;  %v492_v58 = vadd.f32 %v2919_v49, %v357_v53  ;;  %v1996_v59 = vunpack.c.l.bf16 %v2443_v47  ;;  %v2448_v46 = vld [vmem:[%s3211_s0 + $0x178] sm:$0xff]  }
  0x86   :  { %2502 = vst [vmem:[%s3214_s3 + $0x130] sm:$0xff] %v2275_v50   ;;  %v1997_v60 = vunpack.c.h.bf16 %v2443_v47  ;;  %v2000_v61 = vunpack.c.l.bf16 %v2444_v48  ;;  %v359_v63 = vmul.f32 %v2907_v7, %v1992_v56  ;;  %v360_v0 = vmul.f32 %v2907_v7, %v1993_v57 }
  0x87   :  { %2503 = vst [vmem:[%s3214_s3 + $0x138] sm:$0xff] %v2280_v54   ;;  %v493_v62 = vadd.f32 %v2919_v49, %v358_v55  ;;  %v2001_v2 = vunpack.c.h.bf16 %v2444_v48  ;;  %vm620_vm0 = vcmp.ge.f32.partialorder %v492_v58, 0.0  ;;  %v748_v3 = vmul.f32 0.2, %v492_v58 }
  0x88   :  { %v361_v4 = vmul.f32 %v2907_v7, %v1996_v59  ;;  %v362_v5 = vmul.f32 %v2907_v7, %v1997_v60  ;;  %v494_v8 = vadd.f32 %v2919_v49, %v359_v63  ;;  %v495_v9 = vadd.f32 %v2919_v49, %v360_v0  ;;  %v2449_v0 = vld [vmem:[%s3211_s0 + $0x180] sm:$0xff]  }
  0x89   :  { %vm621_vm1 = vcmp.ge.f32.partialorder %v493_v62, 0.0  ;;  %v749_v6 = vmul.f32 0.2, %v493_v62  ;;  %v876_v10 = vsel %vm620_vm0, %v492_v58, %v748_v3  ;;  %v363_v13 = vmul.f32 %v2907_v7, %v2000_v61 }
  0x8a   :  { %v496_v11 = vadd.f32 %v2919_v49, %v361_v4  ;;  %v497_v12 = vadd.f32 %v2919_v49, %v362_v5  ;;  %vm622_vm2 = vcmp.ge.f32.partialorder %v494_v8, 0.0  ;;  %vm623_vm3 = vcmp.ge.f32.partialorder %v495_v9, 0.0  ;;  %v2450_v5 = vld [vmem:[%s3211_s0 + $0x188] sm:$0xff]  }
  0x8b   :  { %v877_v14 = vsel %vm621_vm1, %v493_v62, %v749_v6  ;;  %v750_v15 = vmul.f32 0.2, %v494_v8  ;;  %v751_v18 = vmul.f32 0.2, %v495_v9  ;;  %v364_v22 = vmul.f32 %v2907_v7, %v2001_v2 }
  0x8c   :  { %v2285_v17 = vpack.c.bf16 %v877_v14, %v876_v10  ;;  %vm624_vm4 = vcmp.ge.f32.partialorder %v496_v11, 0.0  ;;  %vm625_vm5 = vcmp.ge.f32.partialorder %v497_v12, 0.0  ;;  %v752_v20 = vmul.f32 0.2, %v496_v11 }
  0x8d   :  { %v878_v19 = vsel %vm622_vm2, %v494_v8, %v750_v15  ;;  %v753_v21 = vmul.f32 0.2, %v497_v12  ;;  %v879_v23 = vsel %vm623_vm3, %v495_v9, %v751_v18  ;;  %v498_v24 = vadd.f32 %v2919_v49, %v363_v13 }
  0x8e   :  { %2504 = vst [vmem:[%s3214_s3 + $0x140] sm:$0xff] %v2285_v17   ;;  %v2004_v25 = vunpack.c.l.bf16 %v2445_v16  ;;  %v2005_v26 = vunpack.c.h.bf16 %v2445_v16  ;;  %v2290_v28 = vpack.c.bf16 %v879_v23, %v878_v19  ;;  %v880_v29 = vsel %vm624_vm4, %v496_v11, %v752_v20 }
  0x8f   :  { %v881_v1 = vsel %vm625_vm5, %v497_v12, %v753_v21  ;;  %v499_v30 = vadd.f32 %v2919_v49, %v364_v22  ;;  %vm626_vm6 = vcmp.ge.f32.partialorder %v498_v24, 0.0  ;;  %v754_v33 = vmul.f32 0.2, %v498_v24  ;;  %v2451_v22 = vld [vmem:[%s3211_s0 + $0x190] sm:$0xff]  }
  0x90   :  { %v2295_v32 = vpack.c.bf16 %v881_v1, %v880_v29  ;;  %v365_v34 = vmul.f32 %v2907_v7, %v2004_v25  ;;  %2505 = vst [vmem:[%s3214_s3 + $0x148] sm:$0xff] %v2290_v28   ;;  %v366_v36 = vmul.f32 %v2907_v7, %v2005_v26  ;;  %v2008_v37 = vunpack.c.l.bf16 %v2446_v27 }
  0x91   :  { %vm627_vm7 = vcmp.ge.f32.partialorder %v499_v30, 0.0  ;;  %v755_v35 = vmul.f32 0.2, %v499_v30  ;;  %v882_v38 = vsel %vm626_vm6, %v498_v24, %v754_v33  ;;  %v2009_v40 = vunpack.c.h.bf16 %v2446_v27 }
  0x92   :  { %2506 = vst [vmem:[%s3214_s3 + $0x150] sm:$0xff] %v2295_v32   ;;  %v500_v39 = vadd.f32 %v2919_v49, %v365_v34  ;;  %v2012_v41 = vunpack.c.l.bf16 %v2447_v31  ;;  %v501_v43 = vadd.f32 %v2919_v49, %v366_v36  ;;  %v367_v44 = vmul.f32 %v2907_v7, %v2008_v37 }
  0x93   :  { %v883_v42 = vsel %vm627_vm7, %v499_v30, %v755_v35  ;;  %v2013_v45 = vunpack.c.h.bf16 %v2447_v31  ;;  %v368_v50 = vmul.f32 %v2907_v7, %v2009_v40  ;;  %v2016_v57 = vunpack.c.l.bf16 %v2448_v46  ;;  %v2452_v35 = vld [vmem:[%s3211_s0 + $0x198] sm:$0xff]  }
  0x94   :  { %v2300_v47 = vpack.c.bf16 %v883_v42, %v882_v38  ;;  %vm628_vm8 = vcmp.ge.f32.partialorder %v500_v39, 0.0  ;;  %v756_v48 = vmul.f32 0.2, %v500_v39  ;;  %vm629_vm9 = vcmp.ge.f32.partialorder %v501_v43, 0.0 }
  0x95   :  { %v757_v51 = vmul.f32 0.2, %v501_v43  ;;  %v502_v52 = vadd.f32 %v2919_v49, %v367_v44  ;;  %v369_v53 = vmul.f32 %v2907_v7, %v2012_v41  ;;  %v503_v55 = vadd.f32 %v2919_v49, %v368_v50 }
  0x96   :  { %2507 = vst [vmem:[%s3214_s3 + $0x158] sm:$0xff] %v2300_v47   ;;  %v884_v54 = vsel %vm628_vm8, %v500_v39, %v756_v48  ;;  %v370_v56 = vmul.f32 %v2907_v7, %v2013_v45  ;;  %v2017_v4 = vunpack.c.h.bf16 %v2448_v46  ;;  %v371_v9 = vmul.f32 %v2907_v7, %v2016_v57  ;;  %v2453_v45 = vld [vmem:[%s3211_s0 + $0x1a0] sm:$0xff]   ;;  %v2454_v46 = vld [vmem:[%s3211_s0 + $0x1a8] sm:$0xff]  }
  0x97   :  { %v885_v58 = vsel %vm629_vm9, %v501_v43, %v757_v51  ;;  %vm630_vm10 = vcmp.ge.f32.partialorder %v502_v52, 0.0  ;;  %v758_v59 = vmul.f32 0.2, %v502_v52  ;;  %v504_v60 = vadd.f32 %v2919_v49, %v369_v53 }
  0x98   :  { %v2305_v61 = vpack.c.bf16 %v885_v58, %v884_v54  ;;  %vm631_vm11 = vcmp.ge.f32.partialorder %v503_v55, 0.0  ;;  %v759_v62 = vmul.f32 0.2, %v503_v55  ;;  %v505_v63 = vadd.f32 %v2919_v49, %v370_v56 }
  0x99   :  { %v886_v2 = vsel %vm630_vm10, %v502_v52, %v758_v59  ;;  %vm632_vm12 = vcmp.ge.f32.partialorder %v504_v60, 0.0  ;;  %v760_v3 = vmul.f32 0.2, %v504_v60  ;;  %v372_v12 = vmul.f32 %v2907_v7, %v2017_v4 }
  0x9a   :  { %2508 = vst [vmem:[%s3214_s3 + $0x160] sm:$0xff] %v2305_v61   ;;  %v887_v6 = vsel %vm631_vm11, %v503_v55, %v759_v62  ;;  %vm633_vm13 = vcmp.ge.f32.partialorder %v505_v63, 0.0  ;;  %v761_v8 = vmul.f32 0.2, %v505_v63  ;;  %v2020_v13 = vunpack.c.l.bf16 %v2449_v0 }
  0x9b   :  { %v2310_v10 = vpack.c.bf16 %v887_v6, %v886_v2  ;;  %v888_v11 = vsel %vm632_vm12, %v504_v60, %v760_v3  ;;  %v506_v15 = vadd.f32 %v2919_v49, %v371_v9  ;;  %v2021_v16 = vunpack.c.h.bf16 %v2449_v0 }
  0x9c   :  { %v889_v14 = vsel %vm633_vm13, %v505_v63, %v761_v8  ;;  %v2024_v17 = vunpack.c.l.bf16 %v2450_v5  ;;  %v507_v19 = vadd.f32 %v2919_v49, %v372_v12  ;;  %v373_v20 = vmul.f32 %v2907_v7, %v2020_v13 }
  0x9d   :  { %2509 = vst [vmem:[%s3214_s3 + $0x168] sm:$0xff] %v2310_v10   ;;  %v2315_v18 = vpack.c.bf16 %v889_v14, %v888_v11  ;;  %v2025_v21 = vunpack.c.h.bf16 %v2450_v5  ;;  %vm634_vm14 = vcmp.ge.f32.partialorder %v506_v15, 0.0  ;;  %v762_v23 = vmul.f32 0.2, %v506_v15  ;;  %v2455_v14 = vld [vmem:[%s3211_s0 + $0x1b0] sm:$0xff]  }
  0x9e   :  { %v374_v24 = vmul.f32 %v2907_v7, %v2021_v16  ;;  %v375_v25 = vmul.f32 %v2907_v7, %v2024_v17  ;;  %vm635_vm15 = vcmp.ge.f32.partialorder %v507_v19, 0.0  ;;  %v763_v26 = vmul.f32 0.2, %v507_v19 }
  0x9f   :  { %2510 = vst [vmem:[%s3214_s3 + $0x170] sm:$0xff] %v2315_v18   ;;  %v508_v27 = vadd.f32 %v2919_v49, %v373_v20  ;;  %v376_v28 = vmul.f32 %v2907_v7, %v2025_v21  ;;  %v890_v29 = vsel %vm634_vm14, %v506_v15, %v762_v23  ;;  %v2028_v31 = vunpack.c.l.bf16 %v2451_v22  ;;  %v2456_v18 = vld [vmem:[%s3211_s0 + $0x1b8] sm:$0xff]  }
  0xa0   :  { %v509_v1 = vadd.f32 %v2919_v49, %v374_v24  ;;  %v510_v30 = vadd.f32 %v2919_v49, %v375_v25  ;;  %v891_v32 = vsel %vm635_vm15, %v507_v19, %v763_v26  ;;  %v2029_v42 = vunpack.c.h.bf16 %v2451_v22 }
  0xa1   :  { %vm636_vm0 = vcmp.ge.f32.partialorder %v508_v27, 0.0  ;;  %v764_v33 = vmul.f32 0.2, %v508_v27  ;;  %v511_v34 = vadd.f32 %v2919_v49, %v376_v28  ;;  %v2320_v36 = vpack.c.bf16 %v891_v32, %v890_v29 }
  0xa2   :  { %vm637_vm1 = vcmp.ge.f32.partialorder %v509_v1, 0.0  ;;  %v765_v37 = vmul.f32 0.2, %v509_v1  ;;  %vm638_vm2 = vcmp.ge.f32.partialorder %v510_v30, 0.0  ;;  %v766_v39 = vmul.f32 0.2, %v510_v30 }
  0xa3   :  { %v892_v38 = vsel %vm636_vm0, %v508_v27, %v764_v33  ;;  %vm639_vm3 = vcmp.ge.f32.partialorder %v511_v34, 0.0  ;;  %v767_v40 = vmul.f32 0.2, %v511_v34  ;;  %2511 = vst [vmem:[%s3214_s3 + $0x178] sm:$0xff] %v2320_v36   ;;  %v377_v43 = vmul.f32 %v2907_v7, %v2028_v31 }
  0xa4   :  { %v893_v41 = vsel %vm637_vm1, %v509_v1, %v765_v37  ;;  %v2032_v44 = vunpack.c.l.bf16 %v2452_v35  ;;  %v894_v48 = vsel %vm638_vm2, %v510_v30, %v766_v39  ;;  %v2033_v51 = vunpack.c.h.bf16 %v2452_v35  ;;  %v2457_v1 = vld [vmem:[%s3211_s0 + $0x1c0] sm:$0xff]  }
  0xa5   :  { %v2325_v47 = vpack.c.bf16 %v893_v41, %v892_v38  ;;  %v895_v50 = vsel %vm639_vm3, %v511_v34, %v767_v40  ;;  %v378_v53 = vmul.f32 %v2907_v7, %v2029_v42  ;;  %v512_v54 = vadd.f32 %v2919_v49, %v377_v43 }
  0xa6   :  { %v2330_v52 = vpack.c.bf16 %v895_v50, %v894_v48  ;;  %v379_v55 = vmul.f32 %v2907_v7, %v2032_v44  ;;  %v380_v56 = vmul.f32 %v2907_v7, %v2033_v51  ;;  %v2036_v57 = vunpack.c.l.bf16 %v2453_v45  ;;  %v2458_v48 = vld [vmem:[%s3211_s0 + $0x1c8] sm:$0xff]  }
  0xa7   :  { %2512 = vst [vmem:[%s3214_s3 + $0x180] sm:$0xff] %v2325_v47   ;;  %v2037_v58 = vunpack.c.h.bf16 %v2453_v45  ;;  %v2040_v59 = vunpack.c.l.bf16 %v2454_v46  ;;  %v513_v60 = vadd.f32 %v2919_v49, %v378_v53  ;;  %vm640_vm4 = vcmp.ge.f32.partialorder %v512_v54, 0.0 }
  0xa8   :  { %2513 = vst [vmem:[%s3214_s3 + $0x188] sm:$0xff] %v2330_v52   ;;  %v768_v61 = vmul.f32 0.2, %v512_v54  ;;  %v514_v62 = vadd.f32 %v2919_v49, %v379_v55  ;;  %v515_v63 = vadd.f32 %v2919_v49, %v380_v56  ;;  %v381_v0 = vmul.f32 %v2907_v7, %v2036_v57 }
  0xa9   :  { %v382_v2 = vmul.f32 %v2907_v7, %v2037_v58  ;;  %v2041_v3 = vunpack.c.h.bf16 %v2454_v46  ;;  %vm641_vm5 = vcmp.ge.f32.partialorder %v513_v60, 0.0  ;;  %v769_v4 = vmul.f32 0.2, %v513_v60  ;;  %v2459_v58 = vld [vmem:[%s3211_s0 + $0x1d0] sm:$0xff]  }
  0xaa   :  { %v896_v5 = vsel %vm640_vm4, %v512_v54, %v768_v61  ;;  %vm642_vm6 = vcmp.ge.f32.partialorder %v514_v62, 0.0  ;;  %vm643_vm7 = vcmp.ge.f32.partialorder %v515_v63, 0.0  ;;  %v770_v6 = vmul.f32 0.2, %v514_v62 }
  0xab   :  { %v771_v8 = vmul.f32 0.2, %v515_v63  ;;  %v516_v9 = vadd.f32 %v2919_v49, %v381_v0  ;;  %v897_v10 = vsel %vm641_vm5, %v513_v60, %v769_v4  ;;  %v517_v11 = vadd.f32 %v2919_v49, %v382_v2 }
  0xac   :  { %v383_v12 = vmul.f32 %v2907_v7, %v2040_v59  ;;  %v384_v13 = vmul.f32 %v2907_v7, %v2041_v3  ;;  %v2335_v15 = vpack.c.bf16 %v897_v10, %v896_v5  ;;  %v898_v16 = vsel %vm642_vm6, %v514_v62, %v770_v6 }
  0xad   :  { %v899_v17 = vsel %vm643_vm7, %v515_v63, %v771_v8  ;;  %vm644_vm8 = vcmp.ge.f32.partialorder %v516_v9, 0.0  ;;  %vm645_vm9 = vcmp.ge.f32.partialorder %v517_v11, 0.0  ;;  %v772_v20 = vmul.f32 0.2, %v516_v9  ;;  %v2460_v63 = vld [vmem:[%s3211_s0 + $0x1d8] sm:$0xff]  }
  0xae   :  { %v2340_v19 = vpack.c.bf16 %v899_v17, %v898_v16  ;;  %v773_v21 = vmul.f32 0.2, %v517_v11  ;;  %2514 = vst [vmem:[%s3214_s3 + $0x190] sm:$0xff] %v2335_v15   ;;  %v518_v22 = vadd.f32 %v2919_v49, %v383_v12  ;;  %v519_v23 = vadd.f32 %v2919_v49, %v384_v13  ;;  %v2461_v16 = vld [vmem:[%s3211_s0 + $0x1e0] sm:$0xff]  }
  0xaf   :  { %v2044_v24 = vunpack.c.l.bf16 %v2455_v14  ;;  %v2045_v25 = vunpack.c.h.bf16 %v2455_v14  ;;  %v900_v26 = vsel %vm644_vm8, %v516_v9, %v772_v20  ;;  %v2048_v28 = vunpack.c.l.bf16 %v2456_v18 }
  0xb0   :  { %2515 = vst [vmem:[%s3214_s3 + $0x198] sm:$0xff] %v2340_v19   ;;  %v901_v27 = vsel %vm645_vm9, %v517_v11, %v773_v21  ;;  %v2049_v29 = vunpack.c.h.bf16 %v2456_v18  ;;  %vm646_vm10 = vcmp.ge.f32.partialorder %v518_v22, 0.0  ;;  %vm647_vm11 = vcmp.ge.f32.partialorder %v519_v23, 0.0 }
  0xb1   :  { %v2345_v30 = vpack.c.bf16 %v901_v27, %v900_v26  ;;  %v774_v31 = vmul.f32 0.2, %v518_v22  ;;  %v775_v32 = vmul.f32 0.2, %v519_v23  ;;  %v385_v33 = vmul.f32 %v2907_v7, %v2044_v24 }
  0xb2   :  { %v386_v34 = vmul.f32 %v2907_v7, %v2045_v25  ;;  %v387_v35 = vmul.f32 %v2907_v7, %v2048_v28  ;;  %v388_v37 = vmul.f32 %v2907_v7, %v2049_v29  ;;  %v2052_v38 = vunpack.c.l.bf16 %v2457_v1 }
  0xb3   :  { %2516 = vst [vmem:[%s3214_s3 + $0x1a0] sm:$0xff] %v2345_v30   ;;  %v902_v36 = vsel %vm646_vm10, %v518_v22, %v774_v31  ;;  %v2053_v39 = vunpack.c.h.bf16 %v2457_v1  ;;  %v903_v40 = vsel %vm647_vm11, %v519_v23, %v775_v32  ;;  %v520_v41 = vadd.f32 %v2919_v49, %v385_v33 }
  0xb4   :  { %v521_v42 = vadd.f32 %v2919_v49, %v386_v34  ;;  %v522_v43 = vadd.f32 %v2919_v49, %v387_v35  ;;  %v2350_v44 = vpack.c.bf16 %v903_v40, %v902_v36  ;;  %v523_v45 = vadd.f32 %v2919_v49, %v388_v37  ;;  %v2462_v34 = vld [vmem:[%s3211_s0 + $0x1e8] sm:$0xff]   ;;  %v2464_v40 = vld [vmem:[%s3211_s0 + $0x1f8] sm:$0xff]  }
  0xb5   :  { %v389_v46 = vmul.f32 %v2907_v7, %v2052_v38  ;;  %v390_v47 = vmul.f32 %v2907_v7, %v2053_v39  ;;  %vm648_vm12 = vcmp.ge.f32.partialorder %v520_v41, 0.0  ;;  %v776_v50 = vmul.f32 0.2, %v520_v41  ;;  %v2463_v39 = vld [vmem:[%s3211_s0 + $0x1f0] sm:$0xff]  }
  0xb6   :  { %vm649_vm13 = vcmp.ge.f32.partialorder %v521_v42, 0.0  ;;  %v777_v51 = vmul.f32 0.2, %v521_v42  ;;  %2517 = vst [vmem:[%s3214_s3 + $0x1a8] sm:$0xff] %v2350_v44   ;;  %vm650_vm14 = vcmp.ge.f32.partialorder %v522_v43, 0.0  ;;  %vm651_vm15 = vcmp.ge.f32.partialorder %v523_v45, 0.0 }
  0xb7   :  { %v778_v52 = vmul.f32 0.2, %v522_v43  ;;  %v779_v53 = vmul.f32 0.2, %v523_v45  ;;  %v904_v54 = vsel %vm648_vm12, %v520_v41, %v776_v50  ;;  %v524_v56 = vadd.f32 %v2919_v49, %v389_v46 }
  0xb8   :  { %v905_v55 = vsel %vm649_vm13, %v521_v42, %v777_v51  ;;  %v525_v57 = vadd.f32 %v2919_v49, %v390_v47  ;;  %v2056_v62 = vunpack.c.l.bf16 %v2458_v48  ;;  %v2057_v4 = vunpack.c.h.bf16 %v2458_v48 }
  0xb9   :  { %v2355_v59 = vpack.c.bf16 %v905_v55, %v904_v54  ;;  %v906_v60 = vsel %vm650_vm14, %v522_v43, %v778_v52  ;;  %v907_v61 = vsel %vm651_vm15, %v523_v45, %v779_v53  ;;  %vm652_vm0 = vcmp.ge.f32.partialorder %v524_v56, 0.0 }
  0xba   :  { %v2360_v0 = vpack.c.bf16 %v907_v61, %v906_v60  ;;  %vm653_vm1 = vcmp.ge.f32.partialorder %v525_v57, 0.0  ;;  %v780_v2 = vmul.f32 0.2, %v524_v56  ;;  %v781_v3 = vmul.f32 0.2, %v525_v57 }
  0xbb   :  { %2518 = vst [vmem:[%s3214_s3 + $0x1b0] sm:$0xff] %v2355_v59   ;;  %v391_v5 = vmul.f32 %v2907_v7, %v2056_v62  ;;  %v2060_v6 = vunpack.c.l.bf16 %v2459_v58  ;;  %v2061_v9 = vunpack.c.h.bf16 %v2459_v58  ;;  %v2064_v10 = vunpack.c.l.bf16 %v2460_v63 }
  0xbc   :  { %2519 = vst [vmem:[%s3214_s3 + $0x1b8] sm:$0xff] %v2360_v0   ;;  %v908_v8 = vsel %vm652_vm0, %v524_v56, %v780_v2  ;;  %v2065_v11 = vunpack.c.h.bf16 %v2460_v63  ;;  %v909_v12 = vsel %vm653_vm1, %v525_v57, %v781_v3  ;;  %v392_v13 = vmul.f32 %v2907_v7, %v2057_v4 }
  0xbd   :  { %v526_v14 = vadd.f32 %v2919_v49, %v391_v5  ;;  %v393_v15 = vmul.f32 %v2907_v7, %v2060_v6  ;;  %v2365_v17 = vpack.c.bf16 %v909_v12, %v908_v8  ;;  %v394_v18 = vmul.f32 %v2907_v7, %v2061_v9 }
  0xbe   :  { %v395_v19 = vmul.f32 %v2907_v7, %v2064_v10  ;;  %v396_v20 = vmul.f32 %v2907_v7, %v2065_v11  ;;  %v527_v21 = vadd.f32 %v2919_v49, %v392_v13  ;;  %v2068_v27 = vunpack.c.l.bf16 %v2461_v16 }
  0xbf   :  { %vm654_vm2 = vcmp.ge.f32.partialorder %v526_v14, 0.0  ;;  %v782_v22 = vmul.f32 0.2, %v526_v14  ;;  %v528_v23 = vadd.f32 %v2919_v49, %v393_v15  ;;  %2520 = vst [vmem:[%s3214_s3 + $0x1c0] sm:$0xff] %v2365_v17   ;;  %v529_v24 = vadd.f32 %v2919_v49, %v394_v18 }
  0xc0   :  { %v530_v25 = vadd.f32 %v2919_v49, %v395_v19  ;;  %v531_v26 = vadd.f32 %v2919_v49, %v396_v20  ;;  %vm655_vm3 = vcmp.ge.f32.partialorder %v527_v21, 0.0  ;;  %v783_v28 = vmul.f32 0.2, %v527_v21 }
  0xc1   :  { %v910_v29 = vsel %vm654_vm2, %v526_v14, %v782_v22  ;;  %vm656_vm4 = vcmp.ge.f32.partialorder %v528_v23, 0.0  ;;  %vm657_vm5 = vcmp.ge.f32.partialorder %v529_v24, 0.0  ;;  %v784_v1 = vmul.f32 0.2, %v528_v23 }
  0xc2   :  { %v785_v30 = vmul.f32 0.2, %v529_v24  ;;  %vm658_vm6 = vcmp.ge.f32.partialorder %v530_v25, 0.0  ;;  %v911_v31 = vsel %vm655_vm3, %v527_v21, %v783_v28  ;;  %vm659_vm7 = vcmp.ge.f32.partialorder %v531_v26, 0.0 }
  0xc3   :  { %v786_v32 = vmul.f32 0.2, %v530_v25  ;;  %v787_v33 = vmul.f32 0.2, %v531_v26  ;;  %v2370_v35 = vpack.c.bf16 %v911_v31, %v910_v29  ;;  %v912_v36 = vsel %vm656_vm4, %v528_v23, %v784_v1 }
  0xc4   :  { %v913_v37 = vsel %vm657_vm5, %v529_v24, %v785_v30  ;;  %v2069_v38 = vunpack.c.h.bf16 %v2461_v16  ;;  %v397_v44 = vmul.f32 %v2907_v7, %v2068_v27  ;;  %v2072_v47 = vunpack.c.l.bf16 %v2462_v34 }
  0xc5   :  { %v2375_v41 = vpack.c.bf16 %v913_v37, %v912_v36  ;;  %v914_v42 = vsel %vm658_vm6, %v530_v25, %v786_v32  ;;  %v915_v43 = vsel %vm659_vm7, %v531_v26, %v787_v33  ;;  %2521 = vst [vmem:[%s3214_s3 + $0x1c8] sm:$0xff] %v2370_v35   ;;  %v2073_v48 = vunpack.c.h.bf16 %v2462_v34 }
  0xc6   :  { %v2380_v45 = vpack.c.bf16 %v915_v43, %v914_v42  ;;  %v398_v46 = vmul.f32 %v2907_v7, %v2069_v38  ;;  %v532_v50 = vadd.f32 %v2919_v49, %v397_v44  ;;  %v2076_v51 = vunpack.c.l.bf16 %v2463_v39 }
  0xc7   :  { %2522 = vst [vmem:[%s3214_s3 + $0x1d0] sm:$0xff] %v2375_v41   ;;  %v2077_v52 = vunpack.c.h.bf16 %v2463_v39  ;;  %v2080_v53 = vunpack.c.l.bf16 %v2464_v40  ;;  %v399_v55 = vmul.f32 %v2907_v7, %v2072_v47  ;;  %v400_v56 = vmul.f32 %v2907_v7, %v2073_v48 }
  0xc8   :  { %2523 = vst [vmem:[%s3214_s3 + $0x1d8] sm:$0xff] %v2380_v45   ;;  %v533_v54 = vadd.f32 %v2919_v49, %v398_v46  ;;  %v2081_v57 = vunpack.c.h.bf16 %v2464_v40  ;;  %vm660_vm8 = vcmp.ge.f32.partialorder %v532_v50, 0.0  ;;  %v788_v58 = vmul.f32 0.2, %v532_v50 }
  0xc9   :  { %v401_v59 = vmul.f32 %v2907_v7, %v2076_v51  ;;  %v402_v60 = vmul.f32 %v2907_v7, %v2077_v52  ;;  %v534_v62 = vadd.f32 %v2919_v49, %v399_v55  ;;  %v535_v63 = vadd.f32 %v2919_v49, %v400_v56 }
  0xca   :  { %vm661_vm9 = vcmp.ge.f32.partialorder %v533_v54, 0.0  ;;  %v789_v61 = vmul.f32 0.2, %v533_v54  ;;  %v916_v0 = vsel %vm660_vm8, %v532_v50, %v788_v58  ;;  %v403_v4 = vmul.f32 %v2907_v7, %v2080_v53 }
  0xcb   :  { %v536_v2 = vadd.f32 %v2919_v49, %v401_v59  ;;  %v537_v3 = vadd.f32 %v2919_v49, %v402_v60  ;;  %vm662_vm10 = vcmp.ge.f32.partialorder %v534_v62, 0.0  ;;  %vm663_vm11 = vcmp.ge.f32.partialorder %v535_v63, 0.0 }
  0xcc   :  { %v917_v5 = vsel %vm661_vm9, %v533_v54, %v789_v61  ;;  %v790_v6 = vmul.f32 0.2, %v534_v62  ;;  %v791_v9 = vmul.f32 0.2, %v535_v63  ;;  %v404_v13 = vmul.f32 %v2907_v7, %v2081_v57 }
  0xcd   :  { %v2385_v8 = vpack.c.bf16 %v917_v5, %v916_v0  ;;  %vm664_vm12 = vcmp.ge.f32.partialorder %v536_v2, 0.0  ;;  %vm665_vm13 = vcmp.ge.f32.partialorder %v537_v3, 0.0  ;;  %v792_v11 = vmul.f32 0.2, %v536_v2 }
  0xce   :  { %v918_v10 = vsel %vm662_vm10, %v534_v62, %v790_v6  ;;  %v793_v12 = vmul.f32 0.2, %v537_v3  ;;  %v919_v14 = vsel %vm663_vm11, %v535_v63, %v791_v9  ;;  %v538_v15 = vadd.f32 %v2919_v49, %v403_v4 }
  0xcf   :  { %2524 = vst [vmem:[%s3214_s3 + $0x1e0] sm:$0xff] %v2385_v8   ;;  %v2390_v16 = vpack.c.bf16 %v919_v14, %v918_v10  ;;  %v920_v17 = vsel %vm664_vm12, %v536_v2, %v792_v11  ;;  %v539_v19 = vadd.f32 %v2919_v49, %v404_v13 }
  0xd0   :  { %v921_v18 = vsel %vm665_vm13, %v537_v3, %v793_v12  ;;  %vm666_vm14 = vcmp.ge.f32.partialorder %v538_v15, 0.0  ;;  %v794_v21 = vmul.f32 0.2, %v538_v15 }
  0xd1   :  { %v2395_v20 = vpack.c.bf16 %v921_v18, %v920_v17  ;;  %2525 = vst [vmem:[%s3214_s3 + $0x1e8] sm:$0xff] %v2390_v16   ;;  %vm667_vm15 = vcmp.ge.f32.partialorder %v539_v19, 0.0  ;;  %v795_v7 = vmul.f32 0.2, %v539_v19 }
  0xd2   :  { %v922_v22 = vsel %vm666_vm14, %v538_v15, %v794_v21 }
  0xd3   :  { %2526 = vst [vmem:[%s3214_s3 + $0x1f0] sm:$0xff] %v2395_v20   ;;  %v923_v23 = vsel %vm667_vm15, %v539_v19, %v795_v7 }
  0xd4   :  { %v2400_v24 = vpack.c.bf16 %v923_v23, %v922_v22 }
  0xd6   :  { %2527 = vst [vmem:[%s3214_s3 + $0x1f8] sm:$0xff] %v2400_v24  }

// kernel: discriminator_forward.13
= control target key start
LH: loop header
LB: loop body
LE: loop exit
PB: predicated region body
PF: predicated region fallthrough
CT: control target
= control target key end

     0   :  { %s687_s0 = inlined_call_operand.vmem [shape: bf16[2,16,8,128], index: 0, kind: input, shape index: {}]   ;;  %s688_s1 = inlined_call_operand.vmem [shape: f32[1,128], index: 1, kind: input, shape index: {}]   ;;  %s689_s2 = inlined_call_operand.vmem [shape: f32[1,128], index: 2, kind: input, shape index: {}]   ;;  %s690_s3 = inlined_call_operand.vmem [shape: bf16[2,16,8,128], index: 3, kind: output, shape index: {}]  }
   0x1   :  { %v323_v0 = vld [vmem:[%s687_s0] sm:$0xff]   ;;  %v466_v4 = vld [vmem:[%s687_s0 + $0x8] sm:$0xff]   ;;  %v467_v5 = vld [vmem:[%s687_s0 + $0x10] sm:$0xff]  }
   0x2   :  { %v522_v1 = vld [vmem:[%s688_s1] ss:$0 sm:$0xff]  ;;  %v324_v2 = vunpack.c.l.bf16 %v323_v0  ;;  %v325_v3 = vunpack.c.h.bf16 %v323_v0  ;;  %v468_v6 = vld [vmem:[%s687_s0 + $0x18] sm:$0xff]   ;;  %v328_v8 = vunpack.c.l.bf16 %v466_v4  ;;  %v329_v9 = vunpack.c.h.bf16 %v466_v4  ;;  %v470_v35 = vld [vmem:[%s687_s0 + $0x28] sm:$0xff]  }
   0x3   :  { %v536_v7 = vld [vmem:[%s689_s2] ss:$0 sm:$0xff]  ;;  %v332_v10 = vunpack.c.l.bf16 %v467_v5  ;;  %v333_v11 = vunpack.c.h.bf16 %v467_v5  ;;  %v336_v14 = vunpack.c.l.bf16 %v468_v6  ;;  %v337_v15 = vunpack.c.h.bf16 %v468_v6  ;;  %v471_v48 = vld [vmem:[%s687_s0 + $0x30] sm:$0xff]   ;;  %v472_v4 = vld [vmem:[%s687_s0 + $0x38] sm:$0xff]  }
   0x4   :  { %v85_v12 = vmul.f32 %v324_v2, %v522_v1  ;;  %v86_v13 = vmul.f32 %v325_v3, %v522_v1  ;;  %v87_v16 = vmul.f32 %v328_v8, %v522_v1  ;;  %v88_v17 = vmul.f32 %v329_v9, %v522_v1  ;;  %v469_v34 = vld [vmem:[%s687_s0 + $0x20] sm:$0xff]  }
   0x5   :  { %v89_v18 = vmul.f32 %v332_v10, %v522_v1  ;;  %v90_v19 = vmul.f32 %v333_v11, %v522_v1  ;;  %v91_v22 = vmul.f32 %v336_v14, %v522_v1  ;;  %v92_v23 = vmul.f32 %v337_v15, %v522_v1  ;;  %v473_v15 = vld [vmem:[%s687_s0 + $0x40] sm:$0xff]  }
   0x6   :  { %v124_v20 = vadd.f32 %v536_v7, %v85_v12  ;;  %v125_v21 = vadd.f32 %v536_v7, %v86_v13  ;;  %v126_v24 = vadd.f32 %v536_v7, %v87_v16  ;;  %v127_v25 = vadd.f32 %v536_v7, %v88_v17 }
   0x7   :  { %v128_v26 = vadd.f32 %v536_v7, %v89_v18  ;;  %v129_v27 = vadd.f32 %v536_v7, %v90_v19  ;;  %v130_v42 = vadd.f32 %v536_v7, %v91_v22  ;;  %v131_v43 = vadd.f32 %v536_v7, %v92_v23 }
   0x8   :  { %vm156_vm0 = vcmp.ge.f32.partialorder %v124_v20, 0.0  ;;  %vm157_vm1 = vcmp.ge.f32.partialorder %v125_v21, 0.0  ;;  %v188_v28 = vmul.f32 0.2, %v124_v20  ;;  %v189_v29 = vmul.f32 0.2, %v125_v21 }
   0x9   :  { %vm158_vm2 = vcmp.ge.f32.partialorder %v126_v24, 0.0  ;;  %vm159_vm3 = vcmp.ge.f32.partialorder %v127_v25, 0.0  ;;  %v190_v30 = vmul.f32 0.2, %v126_v24  ;;  %v191_v31 = vmul.f32 0.2, %v127_v25 }
   0xa   :  { %v220_v32 = vsel %vm156_vm0, %v124_v20, %v188_v28  ;;  %v221_v33 = vsel %vm157_vm1, %v125_v21, %v189_v29  ;;  %vm160_vm4 = vcmp.ge.f32.partialorder %v128_v26, 0.0  ;;  %vm161_vm5 = vcmp.ge.f32.partialorder %v129_v27, 0.0 }
   0xb   :  { %v389_v36 = vpack.c.bf16 %v221_v33, %v220_v32  ;;  %v222_v37 = vsel %vm158_vm2, %v126_v24, %v190_v30  ;;  %v223_v38 = vsel %vm159_vm3, %v127_v25, %v191_v31  ;;  %v192_v39 = vmul.f32 0.2, %v128_v26 }
   0xc   :  { %v394_v40 = vpack.c.bf16 %v223_v38, %v222_v37  ;;  %v193_v41 = vmul.f32 0.2, %v129_v27  ;;  %v340_v45 = vunpack.c.l.bf16 %v469_v34  ;;  %v341_v46 = vunpack.c.h.bf16 %v469_v34 }
   0xd   :  { %390 = vst [vmem:[%s690_s3] sm:$0xff] %v389_v36   ;;  %v224_v44 = vsel %vm160_vm4, %v128_v26, %v192_v39  ;;  %v344_v47 = vunpack.c.l.bf16 %v470_v35  ;;  %vm162_vm6 = vcmp.ge.f32.partialorder %v130_v42, 0.0  ;;  %vm163_vm7 = vcmp.ge.f32.partialorder %v131_v43, 0.0  ;;  %v474_v26 = vld [vmem:[%s687_s0 + $0x48] sm:$0xff]  }
   0xe   :  { %481 = vst [vmem:[%s690_s3 + $0x8] sm:$0xff] %v394_v40   ;;  %v225_v49 = vsel %vm161_vm5, %v129_v27, %v193_v41  ;;  %v194_v50 = vmul.f32 0.2, %v130_v42  ;;  %v195_v52 = vmul.f32 0.2, %v131_v43  ;;  %v93_v53 = vmul.f32 %v340_v45, %v522_v1  ;;  %v475_v27 = vld [vmem:[%s687_s0 + $0x50] sm:$0xff]  }
   0xf   :  { %v399_v51 = vpack.c.bf16 %v225_v49, %v224_v44  ;;  %v94_v54 = vmul.f32 %v341_v46, %v522_v1  ;;  %v345_v56 = vunpack.c.h.bf16 %v470_v35  ;;  %v95_v57 = vmul.f32 %v344_v47, %v522_v1 }
  0x10   :  { %v226_v55 = vsel %vm162_vm6, %v130_v42, %v194_v50  ;;  %v348_v58 = vunpack.c.l.bf16 %v471_v48  ;;  %v227_v59 = vsel %vm163_vm7, %v131_v43, %v195_v52  ;;  %v132_v60 = vadd.f32 %v536_v7, %v93_v53 }
  0x11   :  { %482 = vst [vmem:[%s690_s3 + $0x10] sm:$0xff] %v399_v51   ;;  %v133_v61 = vadd.f32 %v536_v7, %v94_v54  ;;  %v349_v62 = vunpack.c.h.bf16 %v471_v48  ;;  %v404_v63 = vpack.c.bf16 %v227_v59, %v226_v55  ;;  %v96_v0 = vmul.f32 %v345_v56, %v522_v1  ;;  %v476_v55 = vld [vmem:[%s687_s0 + $0x58] sm:$0xff]  }
  0x12   :  { %v134_v2 = vadd.f32 %v536_v7, %v95_v57  ;;  %v97_v3 = vmul.f32 %v348_v58, %v522_v1  ;;  %vm164_vm8 = vcmp.ge.f32.partialorder %v132_v60, 0.0  ;;  %v196_v5 = vmul.f32 0.2, %v132_v60 }
  0x13   :  { %vm165_vm9 = vcmp.ge.f32.partialorder %v133_v61, 0.0  ;;  %v197_v6 = vmul.f32 0.2, %v133_v61  ;;  %483 = vst [vmem:[%s690_s3 + $0x18] sm:$0xff] %v404_v63   ;;  %v135_v8 = vadd.f32 %v536_v7, %v96_v0  ;;  %v98_v10 = vmul.f32 %v349_v62, %v522_v1 }
  0x14   :  { %vm166_vm10 = vcmp.ge.f32.partialorder %v134_v2, 0.0  ;;  %v198_v9 = vmul.f32 0.2, %v134_v2  ;;  %v228_v11 = vsel %vm164_vm8, %v132_v60, %v196_v5  ;;  %v136_v13 = vadd.f32 %v536_v7, %v97_v3  ;;  %v477_v60 = vld [vmem:[%s687_s0 + $0x60] sm:$0xff]  }
  0x15   :  { %v229_v12 = vsel %vm165_vm9, %v133_v61, %v197_v6  ;;  %v352_v14 = vunpack.c.l.bf16 %v472_v4  ;;  %vm167_vm11 = vcmp.ge.f32.partialorder %v135_v8, 0.0  ;;  %v199_v17 = vmul.f32 0.2, %v135_v8 }
  0x16   :  { %v409_v16 = vpack.c.bf16 %v229_v12, %v228_v11  ;;  %v230_v18 = vsel %vm166_vm10, %v134_v2, %v198_v9  ;;  %v137_v19 = vadd.f32 %v536_v7, %v98_v10  ;;  %vm168_vm12 = vcmp.ge.f32.partialorder %v136_v13, 0.0  ;;  %v478_v9 = vld [vmem:[%s687_s0 + $0x68] sm:$0xff]  }
  0x17   :  { %v200_v20 = vmul.f32 0.2, %v136_v13  ;;  %v353_v21 = vunpack.c.h.bf16 %v472_v4  ;;  %v231_v22 = vsel %vm167_vm11, %v135_v8, %v199_v17  ;;  %v99_v23 = vmul.f32 %v352_v14, %v522_v1 }
  0x18   :  { %484 = vst [vmem:[%s690_s3 + $0x20] sm:$0xff] %v409_v16   ;;  %v356_v24 = vunpack.c.l.bf16 %v473_v15  ;;  %v357_v25 = vunpack.c.h.bf16 %v473_v15  ;;  %v414_v28 = vpack.c.bf16 %v231_v22, %v230_v18  ;;  %vm169_vm13 = vcmp.ge.f32.partialorder %v137_v19, 0.0 }
  0x19   :  { %v201_v29 = vmul.f32 0.2, %v137_v19  ;;  %v232_v30 = vsel %vm168_vm12, %v136_v13, %v200_v20  ;;  %v100_v31 = vmul.f32 %v353_v21, %v522_v1  ;;  %v138_v32 = vadd.f32 %v536_v7, %v99_v23 }
  0x1a   :  { %v101_v33 = vmul.f32 %v356_v24, %v522_v1  ;;  %v102_v34 = vmul.f32 %v357_v25, %v522_v1  ;;  %485 = vst [vmem:[%s690_s3 + $0x28] sm:$0xff] %v414_v28   ;;  %v360_v36 = vunpack.c.l.bf16 %v474_v26  ;;  %v361_v37 = vunpack.c.h.bf16 %v474_v26  ;;  %v479_v28 = vld [vmem:[%s687_s0 + $0x70] sm:$0xff]  }
  0x1b   :  { %v233_v35 = vsel %vm169_vm13, %v137_v19, %v201_v29  ;;  %v364_v38 = vunpack.c.l.bf16 %v475_v27  ;;  %v139_v40 = vadd.f32 %v536_v7, %v100_v31  ;;  %vm170_vm14 = vcmp.ge.f32.partialorder %v138_v32, 0.0 }
  0x1c   :  { %v419_v39 = vpack.c.bf16 %v233_v35, %v232_v30  ;;  %v202_v41 = vmul.f32 0.2, %v138_v32  ;;  %v140_v42 = vadd.f32 %v536_v7, %v101_v33  ;;  %v141_v43 = vadd.f32 %v536_v7, %v102_v34 }
  0x1d   :  { %v103_v44 = vmul.f32 %v360_v36, %v522_v1  ;;  %v104_v45 = vmul.f32 %v361_v37, %v522_v1  ;;  %vm171_vm15 = vcmp.ge.f32.partialorder %v139_v40, 0.0  ;;  %v203_v46 = vmul.f32 0.2, %v139_v40  ;;  %v480_v37 = vld [vmem:[%s687_s0 + $0x78] sm:$0xff]  }
  0x1e   :  { %486 = vst [vmem:[%s690_s3 + $0x30] sm:$0xff] %v419_v39   ;;  %v234_v47 = vsel %vm170_vm14, %v138_v32, %v202_v41  ;;  %v365_v48 = vunpack.c.h.bf16 %v475_v27  ;;  %vm172_vm0 = vcmp.ge.f32.partialorder %v140_v42, 0.0  ;;  %vm173_vm1 = vcmp.ge.f32.partialorder %v141_v43, 0.0 }
  0x1f   :  { %v204_v49 = vmul.f32 0.2, %v140_v42  ;;  %v205_v50 = vmul.f32 0.2, %v141_v43  ;;  %v235_v51 = vsel %vm171_vm15, %v139_v40, %v203_v46  ;;  %v142_v52 = vadd.f32 %v536_v7, %v103_v44 }
  0x20   :  { %v143_v53 = vadd.f32 %v536_v7, %v104_v45  ;;  %v105_v54 = vmul.f32 %v364_v38, %v522_v1  ;;  %v424_v56 = vpack.c.bf16 %v235_v51, %v234_v47  ;;  %v106_v59 = vmul.f32 %v365_v48, %v522_v1 }
  0x21   :  { %v236_v57 = vsel %vm172_vm0, %v140_v42, %v204_v49  ;;  %v237_v58 = vsel %vm173_vm1, %v141_v43, %v205_v50  ;;  %vm174_vm2 = vcmp.ge.f32.partialorder %v142_v52, 0.0  ;;  %v206_v62 = vmul.f32 0.2, %v142_v52 }
  0x22   :  { %v429_v61 = vpack.c.bf16 %v237_v58, %v236_v57  ;;  %vm175_vm3 = vcmp.ge.f32.partialorder %v143_v53, 0.0  ;;  %487 = vst [vmem:[%s690_s3 + $0x38] sm:$0xff] %v424_v56   ;;  %v207_v63 = vmul.f32 0.2, %v143_v53  ;;  %v144_v0 = vadd.f32 %v536_v7, %v105_v54 }
  0x23   :  { %v145_v2 = vadd.f32 %v536_v7, %v106_v59  ;;  %v368_v3 = vunpack.c.l.bf16 %v476_v55  ;;  %v238_v4 = vsel %vm174_vm2, %v142_v52, %v206_v62  ;;  %v369_v5 = vunpack.c.h.bf16 %v476_v55 }
  0x24   :  { %488 = vst [vmem:[%s690_s3 + $0x40] sm:$0xff] %v429_v61   ;;  %v372_v6 = vunpack.c.l.bf16 %v477_v60  ;;  %v373_v8 = vunpack.c.h.bf16 %v477_v60  ;;  %v239_v10 = vsel %vm175_vm3, %v143_v53, %v207_v63  ;;  %vm176_vm4 = vcmp.ge.f32.partialorder %v144_v0, 0.0 }
  0x25   :  { %vm177_vm5 = vcmp.ge.f32.partialorder %v145_v2, 0.0  ;;  %v208_v11 = vmul.f32 0.2, %v144_v0  ;;  %v434_v12 = vpack.c.bf16 %v239_v10, %v238_v4  ;;  %v209_v13 = vmul.f32 0.2, %v145_v2 }
  0x26   :  { %v107_v14 = vmul.f32 %v368_v3, %v522_v1  ;;  %v108_v15 = vmul.f32 %v369_v5, %v522_v1  ;;  %v109_v17 = vmul.f32 %v372_v6, %v522_v1  ;;  %v110_v18 = vmul.f32 %v373_v8, %v522_v1 }
  0x27   :  { %v240_v16 = vsel %vm176_vm4, %v144_v0, %v208_v11  ;;  %v376_v19 = vunpack.c.l.bf16 %v478_v9  ;;  %489 = vst [vmem:[%s690_s3 + $0x48] sm:$0xff] %v434_v12   ;;  %v241_v20 = vsel %vm177_vm5, %v145_v2, %v209_v13  ;;  %v377_v23 = vunpack.c.h.bf16 %v478_v9 }
  0x28   :  { %v146_v21 = vadd.f32 %v536_v7, %v107_v14  ;;  %v147_v22 = vadd.f32 %v536_v7, %v108_v15  ;;  %v439_v24 = vpack.c.bf16 %v241_v20, %v240_v16  ;;  %v148_v25 = vadd.f32 %v536_v7, %v109_v17 }
  0x29   :  { %v149_v26 = vadd.f32 %v536_v7, %v110_v18  ;;  %v111_v27 = vmul.f32 %v376_v19, %v522_v1  ;;  %v112_v35 = vmul.f32 %v377_v23, %v522_v1  ;;  %v380_v41 = vunpack.c.l.bf16 %v479_v28 }
  0x2a   :  { %vm178_vm6 = vcmp.ge.f32.partialorder %v146_v21, 0.0  ;;  %vm179_vm7 = vcmp.ge.f32.partialorder %v147_v22, 0.0  ;;  %v210_v29 = vmul.f32 0.2, %v146_v21  ;;  %v211_v30 = vmul.f32 0.2, %v147_v22 }
  0x2b   :  { %490 = vst [vmem:[%s690_s3 + $0x50] sm:$0xff] %v439_v24   ;;  %vm180_vm8 = vcmp.ge.f32.partialorder %v148_v25, 0.0  ;;  %vm181_vm9 = vcmp.ge.f32.partialorder %v149_v26, 0.0  ;;  %v212_v31 = vmul.f32 0.2, %v148_v25  ;;  %v150_v36 = vadd.f32 %v536_v7, %v111_v27 }
  0x2c   :  { %v213_v32 = vmul.f32 0.2, %v149_v26  ;;  %v242_v33 = vsel %vm178_vm6, %v146_v21, %v210_v29  ;;  %v243_v34 = vsel %vm179_vm7, %v147_v22, %v211_v30  ;;  %v151_v43 = vadd.f32 %v536_v7, %v112_v35 }
  0x2d   :  { %v444_v38 = vpack.c.bf16 %v243_v34, %v242_v33  ;;  %v244_v39 = vsel %vm180_vm8, %v148_v25, %v212_v31  ;;  %vm182_vm10 = vcmp.ge.f32.partialorder %v150_v36, 0.0  ;;  %v214_v44 = vmul.f32 0.2, %v150_v36 }
  0x2e   :  { %v245_v40 = vsel %vm181_vm9, %v149_v26, %v213_v32  ;;  %v381_v45 = vunpack.c.h.bf16 %v479_v28  ;;  %v113_v46 = vmul.f32 %v380_v41, %v522_v1  ;;  %v384_v47 = vunpack.c.l.bf16 %v480_v37 }
  0x2f   :  { %v449_v42 = vpack.c.bf16 %v245_v40, %v244_v39  ;;  %491 = vst [vmem:[%s690_s3 + $0x58] sm:$0xff] %v444_v38   ;;  %v385_v48 = vunpack.c.h.bf16 %v480_v37  ;;  %vm183_vm11 = vcmp.ge.f32.partialorder %v151_v43, 0.0  ;;  %v215_v49 = vmul.f32 0.2, %v151_v43 }
  0x30   :  { %v246_v50 = vsel %vm182_vm10, %v150_v36, %v214_v44  ;;  %v114_v51 = vmul.f32 %v381_v45, %v522_v1  ;;  %v152_v52 = vadd.f32 %v536_v7, %v113_v46  ;;  %v115_v53 = vmul.f32 %v384_v47, %v522_v1 }
  0x31   :  { %492 = vst [vmem:[%s690_s3 + $0x60] sm:$0xff] %v449_v42   ;;  %v116_v54 = vmul.f32 %v385_v48, %v522_v1  ;;  %v247_v55 = vsel %vm183_vm11, %v151_v43, %v215_v49 }
  0x32   :  { %v454_v56 = vpack.c.bf16 %v247_v55, %v246_v50  ;;  %v153_v57 = vadd.f32 %v536_v7, %v114_v51  ;;  %vm184_vm12 = vcmp.ge.f32.partialorder %v152_v52, 0.0  ;;  %v216_v58 = vmul.f32 0.2, %v152_v52 }
  0x33   :  { %v154_v59 = vadd.f32 %v536_v7, %v115_v53  ;;  %v155_v60 = vadd.f32 %v536_v7, %v116_v54 }
  0x34   :  { %493 = vst [vmem:[%s690_s3 + $0x68] sm:$0xff] %v454_v56   ;;  %vm185_vm13 = vcmp.ge.f32.partialorder %v153_v57, 0.0  ;;  %v217_v61 = vmul.f32 0.2, %v153_v57  ;;  %v248_v62 = vsel %vm184_vm12, %v152_v52, %v216_v58 }
  0x35   :  { %vm186_vm14 = vcmp.ge.f32.partialorder %v154_v59, 0.0  ;;  %vm187_vm15 = vcmp.ge.f32.partialorder %v155_v60, 0.0  ;;  %v218_v1 = vmul.f32 0.2, %v154_v59  ;;  %v219_v63 = vmul.f32 0.2, %v155_v60 }
  0x36   :  { %v249_v0 = vsel %vm185_vm13, %v153_v57, %v217_v61 }
  0x37   :  { %v459_v2 = vpack.c.bf16 %v249_v0, %v248_v62  ;;  %v250_v3 = vsel %vm186_vm14, %v154_v59, %v218_v1  ;;  %v251_v4 = vsel %vm187_vm15, %v155_v60, %v219_v63 }
  0x38   :  { %v464_v5 = vpack.c.bf16 %v251_v4, %v250_v3 }
  0x39   :  { %494 = vst [vmem:[%s690_s3 + $0x70] sm:$0xff] %v459_v2  }
  0x3a   :  { %495 = vst [vmem:[%s690_s3 + $0x78] sm:$0xff] %v464_v5  }

// kernel: discriminator_forward.12
= control target key start
LH: loop header
LB: loop body
LE: loop exit
PB: predicated region body
PF: predicated region fallthrough
CT: control target
= control target key end

     0   :  { %vm1762_vm0 = vcmask 1040384   ;;  %s2712_s0 = inlined_call_operand.vmem [shape: bf16[2,17,16,128], index: 0, kind: input, shape index: {}, may-alias: {0,1}]   ;;  %s2713_s1 = inlined_call_operand.vmem [shape: bf16[2,17,16,128], index: 1, kind: input, shape index: {}, may-alias: {0,1}]   ;;  %s2714_s2 = inlined_call_operand.vmem [shape: bf16[512,128], index: 2, kind: input, shape index: {}]   ;;  %s2715_s3 = inlined_call_operand.vmem [shape: bf16[2,16,8,128], index: 3, kind: output, shape index: {0}]   ;;  %s2716_s4 = inlined_call_operand.vmem [shape: f32[1,2,128], index: 4, kind: output, shape index: {1}]  }
   0x1   :  { %v2237_v0 = vld [vmem:[%s2714_s2 + $0x40] sm:$0xff]   ;;  %v2241_v4 = vld [vmem:[%s2714_s2 + $0x48] sm:$0xff]   ;;  %v2245_v8 = vld [vmem:[%s2714_s2 + $0x50] sm:$0xff]  }
   0x2   :  { %v2238_v1 = vld [vmem:[%s2714_s2 + $0xc0] sm:$0xff]   ;;  %2012 = vmatprep.subr.bf16.mxu0 %v2237_v0  ;;  %v2242_v5 = vld [vmem:[%s2714_s2 + $0xc8] sm:$0xff]   ;;  %v2246_v9 = vld [vmem:[%s2714_s2 + $0xd0] sm:$0xff]  }
   0x3   :  { %v2239_v2 = vld [vmem:[%s2714_s2] sm:$0xff]   ;;  %2124 = vmatprep.subr.bf16.mxu1 %v2238_v1  ;;  %v2243_v6 = vld [vmem:[%s2714_s2 + $0x8] sm:$0xff]   ;;  %v2247_v10 = vld [vmem:[%s2714_s2 + $0x10] sm:$0xff]  }
   0x4   :  { %v2240_v3 = vld [vmem:[%s2714_s2 + $0x80] sm:$0xff]   ;;  %2013 = vmatpush3.bf16.msra.mxu0 %v2239_v2  ;;  %v2244_v7 = vld [vmem:[%s2714_s2 + $0x88] sm:$0xff]   ;;  %v2248_v11 = vld [vmem:[%s2714_s2 + $0x90] sm:$0xff]  }
   0x5   :  { %2125 = vmatpush3.bf16.msra.mxu1 %v2240_v3  ;;  %2014 = vmatprep.subr.bf16.mxu0 %v2241_v4  ;;  %v2249_v12 = vld [vmem:[%s2714_s2 + $0x58] sm:$0xff]   ;;  %v2253_v16 = vld [vmem:[%s2714_s2 + $0x60] sm:$0xff]   ;;  %v2257_v20 = vld [vmem:[%s2714_s2 + $0x68] sm:$0xff]  }
   0x6   :  { %2126 = vmatprep.subr.bf16.mxu1 %v2242_v5  ;;  %v2250_v13 = vld [vmem:[%s2714_s2 + $0xd8] sm:$0xff]   ;;  %v2254_v17 = vld [vmem:[%s2714_s2 + $0xe0] sm:$0xff]   ;;  %v2258_v21 = vld [vmem:[%s2714_s2 + $0xe8] sm:$0xff]  }
   0x7   :  { %v2251_v14 = vld [vmem:[%s2714_s2 + $0x18] sm:$0xff]   ;;  %v2255_v18 = vld [vmem:[%s2714_s2 + $0x20] sm:$0xff]   ;;  %v2259_v22 = vld [vmem:[%s2714_s2 + $0x28] sm:$0xff]  }
   0x8   :  { %2015 = vmatpush3.bf16.msra.mxu0 %v2243_v6  ;;  %v2252_v15 = vld [vmem:[%s2714_s2 + $0x98] sm:$0xff]   ;;  %v2256_v19 = vld [vmem:[%s2714_s2 + $0xa0] sm:$0xff]   ;;  %v2260_v23 = vld [vmem:[%s2714_s2 + $0xa8] sm:$0xff]  }
   0x9   :  { %2127 = vmatpush3.bf16.msra.mxu1 %v2244_v7  ;;  %2016 = vmatprep.subr.bf16.mxu0 %v2245_v8  ;;  %v2261_v24 = vld [vmem:[%s2714_s2 + $0x70] sm:$0xff]   ;;  %v2265_v28 = vld [vmem:[%s2714_s2 + $0x78] sm:$0xff]   ;;  %v31_v32 = vld [vmem:[%s2712_s0 + $0x8] sm:$0xff]  }
   0xa   :  { %2128 = vmatprep.subr.bf16.mxu1 %v2246_v9  ;;  %v2262_v25 = vld [vmem:[%s2714_s2 + $0xf0] sm:$0xff]   ;;  %v2266_v29 = vld [vmem:[%s2714_s2 + $0xf8] sm:$0xff]   ;;  %v27_v34 = vld [vmem:[%s2712_s0] sm:$0xff]   ;;  %32 = vst [vmem:[#allocation2 + $0x8] sm:$0xff] %v31_v32  }
   0xb   :  { %v2263_v26 = vld [vmem:[%s2714_s2 + $0x30] sm:$0xff]   ;;  %v2267_v30 = vld [vmem:[%s2714_s2 + $0x38] sm:$0xff]   ;;  %28 = vst [vmem:[#allocation2] sm:$0xff] %v27_v34   ;;  %v43_v36 = vld [vmem:[%s2712_s0 + $0x20] sm:$0xff]  }
   0xc   :  { %2017 = vmatpush3.bf16.msra.mxu0 %v2247_v10  ;;  %v2264_v27 = vld [vmem:[%s2714_s2 + $0xb0] sm:$0xff]   ;;  %v2268_v31 = vld [vmem:[%s2714_s2 + $0xb8] sm:$0xff]   ;;  %v47_v37 = vld [vmem:[%s2712_s0 + $0x28] sm:$0xff]   ;;  %44 = vst [vmem:[#allocation2 + $0x20] sm:$0xff] %v43_v36  }
   0xd   :  { %2129 = vmatpush3.bf16.msra.mxu1 %v2248_v11  ;;  %2018 = vmatprep.subr.bf16.mxu0 %v2249_v12  ;;  %v35_v33 = vld [vmem:[%s2712_s0 + $0x10] sm:$0xff]   ;;  %v39_v35 = vld [vmem:[%s2712_s0 + $0x18] sm:$0xff]   ;;  %48 = vst [vmem:[#allocation2 + $0x28] sm:$0xff] %v47_v37   ;;  %v59_v40 = vld [vmem:[%s2712_s0 + $0x40] sm:$0xff]  }
   0xe   :  { %2130 = vmatprep.subr.bf16.mxu1 %v2250_v13  ;;  %36 = vst [vmem:[#allocation2 + $0x10] sm:$0xff] %v35_v33   ;;  %40 = vst [vmem:[#allocation2 + $0x18] sm:$0xff] %v39_v35   ;;  %v51_v38 = vld [vmem:[%s2712_s0 + $0x30] sm:$0xff]   ;;  %v55_v39 = vld [vmem:[%s2712_s0 + $0x38] sm:$0xff]  }
   0xf   :  { %52 = vst [vmem:[#allocation2 + $0x30] sm:$0xff] %v51_v38   ;;  %56 = vst [vmem:[#allocation2 + $0x38] sm:$0xff] %v55_v39   ;;  %v63_v41 = vld [vmem:[%s2712_s0 + $0x48] sm:$0xff]   ;;  %v67_v42 = vld [vmem:[%s2712_s0 + $0x50] sm:$0xff]  }
  0x10   :  { %2019 = vmatpush3.bf16.msra.mxu0 %v2251_v14  ;;  %60 = vst [vmem:[#allocation2 + $0x40] sm:$0xff] %v59_v40   ;;  %v71_v43 = vld [vmem:[%s2712_s0 + $0x58] sm:$0xff]   ;;  %64 = vst [vmem:[#allocation2 + $0x48] sm:$0xff] %v63_v41   ;;  %v75_v44 = vld [vmem:[%s2712_s0 + $0x60] sm:$0xff]  }
  0x11   :  { %2131 = vmatpush3.bf16.msra.mxu1 %v2252_v15  ;;  %2020 = vmatprep.subr.bf16.mxu0 %v2253_v16  ;;  %68 = vst [vmem:[#allocation2 + $0x50] sm:$0xff] %v67_v42   ;;  %72 = vst [vmem:[#allocation2 + $0x58] sm:$0xff] %v71_v43   ;;  %v79_v45 = vld [vmem:[%s2712_s0 + $0x68] sm:$0xff]   ;;  %v83_v46 = vld [vmem:[%s2712_s0 + $0x70] sm:$0xff]  }
  0x12   :  { %2132 = vmatprep.subr.bf16.mxu1 %v2254_v17  ;;  %76 = vst [vmem:[#allocation2 + $0x60] sm:$0xff] %v75_v44   ;;  %80 = vst [vmem:[#allocation2 + $0x68] sm:$0xff] %v79_v45   ;;  %v87_v47 = vld [vmem:[%s2712_s0 + $0x78] sm:$0xff]   ;;  %v1783_v48 = vld [vmem:[%s2713_s1 + $0x80] sm:$0xff]  }
  0x13   :  { %84 = vst [vmem:[#allocation2 + $0x70] sm:$0xff] %v83_v46   ;;  %v95_v49 = vld [vmem:[%s2712_s0 + $0x90] sm:$0xff]   ;;  %88 = vst [vmem:[#allocation2 + $0x78] sm:$0xff] %v87_v47   ;;  %v99_v50 = vld [vmem:[%s2712_s0 + $0x98] sm:$0xff]  }
  0x14   :  { %2021 = vmatpush3.bf16.msra.mxu0 %v2255_v18  ;;  %326 = vst [vmem:[#allocation3] sm:$0xff] %v1783_v48   ;;  %96 = vst [vmem:[#allocation2 + $0x88] sm:$0xff] %v95_v49   ;;  %v91_v51 = vld [vmem:[%s2712_s0 + $0x88] sm:$0xff]   ;;  %v103_v52 = vld [vmem:[%s2712_s0 + $0xa0] sm:$0xff]  }
  0x15   :  { %2133 = vmatpush3.bf16.msra.mxu1 %v2256_v19  ;;  %2022 = vmatprep.subr.bf16.mxu0 %v2257_v20  ;;  %100 = vst [vmem:[#allocation2 + $0x90] sm:$0xff] %v99_v50   ;;  %92 = vst [vmem:[#allocation2 + $0x80] sm:$0xff] %v91_v51   ;;  %v107_v53 = vld [vmem:[%s2712_s0 + $0xa8] sm:$0xff]   ;;  %v111_v54 = vld [vmem:[%s2712_s0 + $0xb0] sm:$0xff]  }
  0x16   :  { %2134 = vmatprep.subr.bf16.mxu1 %v2258_v21  ;;  %104 = vst [vmem:[#allocation2 + $0x98] sm:$0xff] %v103_v52   ;;  %v115_v55 = vld [vmem:[%s2712_s0 + $0xb8] sm:$0xff]   ;;  %v377_v56 = vld [vmem:[#allocation2 + $0x8] sm:$0xf]  ;;  %v378_v57 = vld [vmem:[#allocation2 + $0xc] sm:$0xf] }
  0x17   :  { %v2511_v58 = vld [vmem:[#allocation2 + $0x10] sm:$0xf]  ;;  %108 = vst [vmem:[#allocation2 + $0xa0] sm:$0xff] %v107_v53   ;;  %112 = vst [vmem:[#allocation2 + $0xa8] sm:$0xff] %v111_v54   ;;  %v380_v59 = vld [vmem:[#allocation2 + $0x14] sm:$0xf]  ;;  %v1788_v60 = vcombine.low %v377_v56, %v378_v57 }
  0x18   :  { %2023 = vmatpush3.bf16.msra.mxu0 %v2259_v22  ;;  %116 = vst [vmem:[#allocation2 + $0xb0] sm:$0xff] %v115_v55   ;;  %v1822_v61 = vcombine.low %v377_v56, %v2511_v58  ;;  %v375_v62 = vld [vmem:[#allocation2] sm:$0xf]  ;;  %v376_v63 = vld [vmem:[#allocation2 + $0x4] sm:$0xf]  ;;  %v1789_v0 = vcombine.low %v2511_v58, %v380_v59  ;;  %v123_v32 = vld [vmem:[%s2712_s0 + $0xc8] sm:$0xff]  }
  0x19   :  { %2135 = vmatpush3.bf16.msra.mxu1 %v2260_v23  ;;  %2024 = vmatprep.subr.bf16.mxu0 %v2261_v24  ;;  %v1787_v1 = vcombine.low %v375_v62, %v376_v63  ;;  %v1821_v2 = vcombine.low %v375_v62, %v377_v56  ;;  %v381_v3 = vld [vmem:[#allocation2 + $0x18] sm:$0xf]  ;;  %v382_v4 = vld [vmem:[#allocation2 + $0x1c] sm:$0xf]  ;;  %v2515_v5 = vld [vmem:[#allocation2 + $0x20] sm:$0xf] }
  0x1a   :  { %2136 = vmatprep.subr.bf16.mxu1 %v2262_v25  ;;  %1301 = vmatprep.mubr.bf16.mxu0 %v1822_v61  ;;  %v621_v6 = vshrl.u32 %v1788_v60, 16  ;;  %v623_v7 = vshll.u32 %v1788_v60, 16  ;;  %v384_v8 = vld [vmem:[#allocation2 + $0x24] sm:$0xf]  ;;  %v1790_v9 = vcombine.low %v381_v3, %v382_v4  ;;  %v1826_v10 = vcombine.low %v381_v3, %v2515_v5  ;;  %v2518_v11 = vld [vmem:[#allocation2 + $0x28] sm:$0xf] }
  0x1b   :  { %v628_v12 = vshrl.u32 %v1789_v0, 16  ;;  %v630_v13 = vshll.u32 %v1789_v0, 16  ;;  %v616_v14 = vshll.u32 %v1787_v1, 16  ;;  %v614_v15 = vshrl.u32 %v1787_v1, 16  ;;  %v386_v16 = vld [vmem:[#allocation2 + $0x2c] sm:$0xf] }
  0x1c   :  { %2025 = vmatpush3.bf16.msra.mxu0 %v2263_v26  ;;  %v625_v17 = vrot.slane %v623_v7, 1  ;;  %v1791_v18 = vcombine.low %v2515_v5, %v384_v8  ;;  %v635_v19 = vshrl.u32 %v1790_v9, 16  ;;  %v637_v20 = vshll.u32 %v1790_v9, 16  ;;  %v2521_v21 = vld [vmem:[#allocation2 + $0x30] sm:$0xf]  ;;  %v119_v22 = vld [vmem:[%s2712_s0 + $0xc0] sm:$0xff]  }
  0x1d   :  { %2137 = vmatpush3.bf16.msra.mxu1 %v2264_v27  ;;  %2026 = vmatprep.subr.bf16.mxu0 %v2265_v28  ;;  %v632_v23 = vrot.slane %v630_v13, 1  ;;  %v618_v24 = vrot.slane %v616_v14, 1  ;;  %v1825_v25 = vcombine.low %v2511_v58, %v381_v3  ;;  %v388_v26 = vld [vmem:[#allocation2 + $0x34] sm:$0xf]  ;;  %v1792_v27 = vcombine.low %v2518_v11, %v386_v16  ;;  %120 = vst [vmem:[#allocation2 + $0xb8] sm:$0xff] %v119_v22   ;;  %v131_v52 = vld [vmem:[%s2712_s0 + $0xd8] sm:$0xff]  }
  0x1e   :  { %2138 = vmatprep.subr.bf16.mxu1 %v2266_v29  ;;  %v626_v28 = vor.u32 %v625_v17, %v621_v6  ;;  %v639_v29 = vrot.slane %v637_v20, 1  ;;  %v1793_v35 = vcombine.low %v2521_v21, %v388_v26  ;;  %v1830_v36 = vcombine.low %v2518_v11, %v2521_v21  ;;  %v2536_v37 = vld [vmem:[#allocation2 + $0x38] sm:$0xf]  ;;  %v390_v38 = vld [vmem:[#allocation2 + $0x3c] sm:$0xf]  ;;  %124 = vst [vmem:[#allocation2 + $0xc0] sm:$0xff] %v123_v32  }
  0x1f   :  { %v2531_v33 = vor.u32 %v632_v23, %v628_v12  ;;  %v619_v34 = vor.u32 %v618_v24, %v614_v15  ;;  %v2538_v39 = vld [vmem:[#allocation2 + $0x40] sm:$0xf]  ;;  %v649_v42 = vshrl.u32 %v1792_v27, 16  ;;  %v651_v43 = vshll.u32 %v1792_v27, 16  ;;  %v392_v44 = vld [vmem:[#allocation2 + $0x44] sm:$0xf] }
  0x20   :  { %2027 = vmatpush3.bf16.msra.mxu0 %v2267_v30  ;;  %v642_v30 = vshrl.u32 %v1791_v18, 16  ;;  %v640_v40 = vor.u32 %v639_v29, %v635_v19  ;;  %v127_v45 = vld [vmem:[%s2712_s0 + $0xd0] sm:$0xff]   ;;  %v656_v48 = vshrl.u32 %v1793_v35, 16  ;;  %v658_v49 = vshll.u32 %v1793_v35, 16  ;;  %132 = vst [vmem:[#allocation2 + $0xd0] sm:$0xff] %v131_v52   ;;  %v135_v56 = vld [vmem:[%s2712_s0 + $0xe0] sm:$0xff]  }
  0x21   :  { %2139 = vmatpush3.bf16.msra.mxu1 %v2268_v31  ;;  %v644_v31 = vshll.u32 %v1791_v18, 16  ;;  %v1824_v46 = vcombine.low %v626_v28, %v2531_v33  ;;  %v1823_v47 = vcombine.low %v619_v34, %v626_v28  ;;  %128 = vst [vmem:[#allocation2 + $0xc8] sm:$0xff] %v127_v45   ;;  %v653_v51 = vrot.slane %v651_v43, 1  ;;  %136 = vst [vmem:[#allocation2 + $0xd8] sm:$0xff] %v135_v56   ;;  %v2557_v61 = vld [vmem:[#allocation2 + $0x48] sm:$0xf] }
  0x22   :  { %v660_v53 = vrot.slane %v658_v49, 1  ;;  %v1794_v54 = vcombine.low %v2536_v37, %v390_v38  ;;  %v1795_v55 = vcombine.low %v2538_v39, %v392_v44  ;;  %v394_v62 = vld [vmem:[#allocation2 + $0x4c] sm:$0xf]  ;;  %v2562_v1 = vld [vmem:[#allocation2 + $0x50] sm:$0xf]  ;;  %v1827_v4 = vcombine.low %v2531_v33, %v640_v40  ;;  %v147_v7 = vld [vmem:[%s2712_s0 + $0xf8] sm:$0xff]  }
  0x23   :  { %1302 = vmatmul.mubr.bf16.vlgmr.msra.gmra.mrb[0].mxu0 %v1821_v2  ;;  %v646_v41 = vrot.slane %v644_v31, 1  ;;  %1462 = vmatprep.mubr.bf16.mxu1 %v1824_v46  ;;  %v654_v58 = vor.u32 %v653_v51, %v649_v42  ;;  %v139_v63 = vld [vmem:[%s2712_s0 + $0xe8] sm:$0xff]   ;;  %v396_v2 = vld [vmem:[#allocation2 + $0x54] sm:$0xf]  ;;  %v1829_v6 = vcombine.low %v2515_v5, %v2518_v11  ;;  %v1834_v8 = vcombine.low %v2536_v37, %v2538_v39  ;;  %v151_v5 = vld [vmem:[%s2712_s0 + $0x100] sm:$0xff]  }
  0x24   :  { %1309 = vmatprep.mubr.bf16.mxu0 %v1826_v10  ;;  %1463 = vmatmul.mubr.bf16.vlgmr.msra.gmra.mrb[0].mxu1 %v1823_v47  ;;  %v2555_v59 = vor.u32 %v660_v53, %v656_v48  ;;  %v665_v60 = vshll.u32 %v1794_v54, 16  ;;  %v672_v0 = vshll.u32 %v1795_v55, 16  ;;  %140 = vst [vmem:[#allocation2 + $0xe0] sm:$0xff] %v139_v63   ;;  %v143_v3 = vld [vmem:[%s2712_s0 + $0xf0] sm:$0xff]   ;;  %v663_v9 = vshrl.u32 %v1794_v54, 16  ;;  %148 = vst [vmem:[#allocation2 + $0xf0] sm:$0xff] %v147_v7  }
  0x25   :  { %v2544_v50 = vor.u32 %v646_v41, %v642_v30  ;;  %144 = vst [vmem:[#allocation2 + $0xe8] sm:$0xff] %v143_v3   ;;  %v670_v10 = vshrl.u32 %v1795_v55, 16  ;;  %v1796_v12 = vcombine.low %v2557_v61, %v394_v62  ;;  %v1797_v16 = vcombine.low %v2562_v1, %v396_v2  ;;  %152 = vst [vmem:[#allocation2 + $0xf8] sm:$0xff] %v151_v5   ;;  %v1785_v11 = vld [vmem:[%s2713_s1 + $0x108] sm:$0xff]   ;;  %v397_v22 = vld [vmem:[#allocation2 + $0x58] sm:$0xf] }
  0x26   :  { %v1832_v13 = vcombine.low %v654_v58, %v2555_v59  ;;  %v667_v14 = vrot.slane %v665_v60, 1  ;;  %v674_v15 = vrot.slane %v672_v0, 1  ;;  %330 = vst [vmem:[#allocation3 + $0x8] sm:$0xff] %v1785_v11   ;;  %v398_v23 = vld [vmem:[#allocation2 + $0x5c] sm:$0xf]  ;;  %v1833_v27 = vcombine.low %v2521_v21, %v2536_v37 }
  0x27   :  { %v1828_v57 = vcombine.low %v640_v40, %v2544_v50  ;;  %v679_v19 = vshll.u32 %v1796_v12, 16  ;;  %v686_v20 = vshll.u32 %v1797_v16, 16  ;;  %v2584_v24 = vld [vmem:[#allocation2 + $0x60] sm:$0xf]  ;;  %v1831_v26 = vcombine.low %v2544_v50, %v654_v58  ;;  %v401_v21 = vld [vmem:[#allocation2 + $0x68] sm:$0xf] }
  0x28   :  { %v668_v17 = vor.u32 %v667_v14, %v663_v9  ;;  %v675_v18 = vor.u32 %v674_v15, %v670_v10  ;;  %v1838_v28 = vcombine.low %v2557_v61, %v2562_v1  ;;  %v677_v29 = vshrl.u32 %v1796_v12, 16  ;;  %v402_v37 = vld [vmem:[#allocation2 + $0x6c] sm:$0xf]  ;;  %v2592_v42 = vld [vmem:[#allocation2 + $0x70] sm:$0xf] }
  0x29   :  { %1470 = vmatprep.mubr.bf16.mxu1 %v1828_v57  ;;  %v684_v30 = vshrl.u32 %v1797_v16, 16  ;;  %v1798_v31 = vcombine.low %v397_v22, %v398_v23  ;;  %v681_v33 = vrot.slane %v679_v19, 1  ;;  %v688_v34 = vrot.slane %v686_v20, 1  ;;  %v404_v43 = vld [vmem:[#allocation2 + $0x74] sm:$0xf] }
  0x2a   :  { %v1836_v32 = vcombine.low %v668_v17, %v675_v18  ;;  %v1837_v44 = vcombine.low %v2538_v39, %v2557_v61  ;;  %v1842_v45 = vcombine.low %v397_v22, %v2584_v24  ;;  %v1835_v46 = vcombine.low %v2555_v59, %v668_v17  ;;  %v405_v57 = vld [vmem:[#allocation2 + $0x78] sm:$0xf]  ;;  %v406_v58 = vld [vmem:[#allocation2 + $0x7c] sm:$0xf]  ;;  %v439_v59 = vld [vmem:[#allocation3] sm:$0xf] }
  0x2b   :  { %1310 = vmatmul.mubr.bf16.gmra.mrb[4].mxu0 %v1825_v25  ;;  %v400_v25 = vld [vmem:[#allocation2 + $0x64] sm:$0xf]  ;;  %v682_v38 = vor.u32 %v681_v33, %v677_v29  ;;  %v689_v40 = vor.u32 %v688_v34, %v684_v30  ;;  %v691_v47 = vshrl.u32 %v1798_v31, 16  ;;  %v1800_v52 = vcombine.low %v401_v21, %v402_v37  ;;  %v410_v14 = vld [vmem:[#allocation2 + $0x8c] sm:$0xf] }
  0x2c   :  { %1317 = vmatprep.mubr.bf16.mxu0 %v1830_v36  ;;  %1471 = vmatmul.mubr.bf16.gmra.mrb[4].mxu1 %v1827_v4  ;;  %v1799_v35 = vcombine.low %v2584_v24, %v400_v25  ;;  %v693_v36 = vshll.u32 %v1798_v31, 16  ;;  %v1801_v53 = vcombine.low %v2592_v42, %v404_v43  ;;  %v440_v60 = vld [vmem:[#allocation3 + $0x4] sm:$0xf]  ;;  %v1841_v62 = vcombine.low %v2562_v1, %v397_v22  ;;  %v2606_v1 = vld [vmem:[#allocation2 + $0x88] sm:$0xf] }
  0x2d   :  { %1478 = vmatprep.mubr.bf16.mxu1 %v1832_v13  ;;  %v1840_v50 = vcombine.low %v682_v38, %v689_v40  ;;  %v707_v39 = vshll.u32 %v1800_v52, 16  ;;  %v1839_v61 = vcombine.low %v675_v18, %v682_v38  ;;  %v1846_v63 = vcombine.low %v401_v21, %v2592_v42  ;;  %v2608_v15 = vld [vmem:[#allocation2 + $0x90] sm:$0xf]  ;;  %v412_v16 = vld [vmem:[#allocation2 + $0x94] sm:$0xf] }
  0x2e   :  { %v700_v41 = vshll.u32 %v1799_v35, 16  ;;  %v695_v48 = vrot.slane %v693_v36, 1  ;;  %v698_v49 = vshrl.u32 %v1799_v35, 16  ;;  %v714_v56 = vshll.u32 %v1801_v53, 16  ;;  %v408_v29 = vld [vmem:[#allocation2 + $0x84] sm:$0xf] }
  0x2f   :  { %v705_v0 = vshrl.u32 %v1800_v52, 16  ;;  %v712_v2 = vshrl.u32 %v1801_v53, 16  ;;  %v1802_v3 = vcombine.low %v405_v57, %v406_v58  ;;  %v1845_v11 = vcombine.low %v2584_v24, %v401_v21  ;;  %v414_v33 = vld [vmem:[#allocation2 + $0x9c] sm:$0xf]  ;;  %v2616_v34 = vld [vmem:[#allocation2 + $0xa0] sm:$0xf] }
  0x30   :  { %v702_v51 = vrot.slane %v700_v41, 1  ;;  %v696_v54 = vor.u32 %v695_v48, %v691_v47  ;;  %v716_v7 = vrot.slane %v714_v56, 1  ;;  %v1850_v17 = vcombine.low %v405_v57, %v439_v59  ;;  %v416_v35 = vld [vmem:[#allocation2 + $0xa4] sm:$0xf]  ;;  %v417_v52 = vld [vmem:[#allocation2 + $0xa8] sm:$0xf] }
  0x31   :  { %v721_v13 = vshll.u32 %v1802_v3, 16  ;;  %v719_v18 = vshrl.u32 %v1802_v3, 16  ;;  %v1804_v20 = vcombine.low %v2606_v1, %v410_v14  ;;  %v1849_v38 = vcombine.low %v2592_v42, %v405_v57  ;;  %v418_v53 = vld [vmem:[#allocation2 + $0xac] sm:$0xf] }
  0x32   :  { %v2599_v55 = vor.u32 %v702_v51, %v698_v49  ;;  %v2604_v10 = vor.u32 %v716_v7, %v712_v2  ;;  %v1843_v5 = vcombine.low %v689_v40, %v696_v54  ;;  %v1854_v41 = vcombine.low %v2606_v1, %v2608_v15 }
  0x33   :  { %1318 = vmatmul.mubr.bf16.gmra.mrb[8].mxu0 %v1829_v6  ;;  %v709_v6 = vrot.slane %v707_v39, 1  ;;  %v723_v23 = vrot.slane %v721_v13, 1  ;;  %v740_v21 = vshrl.u32 %v1804_v20, 16  ;;  %v1807_v47 = vcombine.low %v2616_v34, %v416_v35  ;;  %v2634_v13 = vld [vmem:[#allocation2 + $0xc0] sm:$0xf] }
  0x34   :  { %1325 = vmatprep.mubr.bf16.mxu0 %v1834_v8  ;;  %1479 = vmatmul.mubr.bf16.gmra.mrb[8].mxu1 %v1831_v26  ;;  %v1844_v4 = vcombine.low %v696_v54, %v2599_v55  ;;  %v1819_v8 = vcombine.low %v439_v59, %v440_v60  ;;  %v1805_v26 = vcombine.low %v2608_v15, %v412_v16  ;;  %v2626_v54 = vld [vmem:[#allocation2 + $0xb0] sm:$0xf] }
  0x35   :  { %1486 = vmatprep.mubr.bf16.mxu1 %v1836_v32  ;;  %v710_v9 = vor.u32 %v709_v6, %v705_v0  ;;  %v724_v30 = vor.u32 %v723_v23, %v719_v18  ;;  %v2614_v32 = vld [vmem:[#allocation2 + $0x98] sm:$0xf]  ;;  %v763_v51 = vshll.u32 %v1807_v47, 16 }
  0x36   :  { %v728_v12 = vshll.u32 %v1819_v8, 16  ;;  %v726_v19 = vshrl.u32 %v1819_v8, 16  ;;  %v749_v31 = vshll.u32 %v1805_v26, 16  ;;  %v747_v43 = vshrl.u32 %v1805_v26, 16 }
  0x37   :  { %v1848_v22 = vcombine.low %v710_v9, %v2604_v10  ;;  %v1847_v36 = vcombine.low %v2599_v55, %v710_v9  ;;  %v420_v55 = vld [vmem:[#allocation2 + $0xb4] sm:$0xf]  ;;  %v1851_v39 = vcombine.low %v2604_v10, %v724_v30  ;;  %v1858_v59 = vcombine.low %v2614_v32, %v2616_v34  ;;  %v421_v10 = vld [vmem:[#allocation2 + $0xb8] sm:$0xf] }
  0x38   :  { %v730_v25 = vrot.slane %v728_v12, 1  ;;  %v765_v2 = vrot.slane %v763_v51, 1  ;;  %v1809_v3 = vcombine.low %v2626_v54, %v420_v55  ;;  %v422_v12 = vld [vmem:[#allocation2 + $0xbc] sm:$0xf]  ;;  %v1857_v16 = vcombine.low %v2608_v15, %v2614_v32  ;;  %v426_v15 = vld [vmem:[#allocation2 + $0xcc] sm:$0xf] }
  0x39   :  { %v1810_v18 = vcombine.low %v421_v10, %v422_v12 }
  0x3a   :  { %v731_v24 = vor.u32 %v730_v25, %v726_v19  ;;  %v777_v9 = vshll.u32 %v1809_v3, 16 }
  0x3b   :  { %1326 = vmatmul.mubr.bf16.gmra.mrb[12].mxu0 %v1833_v27  ;;  %v742_v27 = vshll.u32 %v1804_v20, 16  ;;  %v782_v35 = vshrl.u32 %v1810_v18, 16 }
  0x3c   :  { %1333 = vmatprep.mubr.bf16.mxu0 %v1838_v28  ;;  %1487 = vmatmul.mubr.bf16.gmra.mrb[12].mxu1 %v1835_v46  ;;  %v407_v28 = vld [vmem:[#allocation2 + $0x80] sm:$0xf]  ;;  %v1806_v46 = vcombine.low %v2614_v32, %v414_v33  ;;  %v1866_v32 = vcombine.low %v421_v10, %v2634_v13 }
  0x3d   :  { %1494 = vmatprep.mubr.bf16.mxu1 %v1840_v50  ;;  %v1803_v40 = vcombine.low %v407_v28, %v408_v29  ;;  %v744_v37 = vrot.slane %v742_v27, 1  ;;  %v1853_v56 = vcombine.low %v407_v28, %v2606_v1  ;;  %v424_v1 = vld [vmem:[#allocation2 + $0xc4] sm:$0xf]  ;;  %v784_v27 = vshll.u32 %v1810_v18, 16  ;;  %v425_v29 = vld [vmem:[#allocation2 + $0xc8] sm:$0xf] }
  0x3e   :  { %v756_v50 = vshll.u32 %v1806_v46, 16  ;;  %v754_v60 = vshrl.u32 %v1806_v46, 16  ;;  %v1811_v23 = vcombine.low %v2634_v13, %v424_v1  ;;  %v429_v46 = vld [vmem:[#allocation2 + $0xd8] sm:$0xf] }
  0x3f   :  { %v735_v48 = vshll.u32 %v1803_v40, 16  ;;  %v745_v49 = vor.u32 %v744_v37, %v740_v21  ;;  %v733_v57 = vshrl.u32 %v1803_v40, 16  ;;  %v437_v18 = vld [vmem:[#allocation2 + $0xf8] sm:$0xf] }
  0x40   :  { %v758_v0 = vrot.slane %v756_v50, 1  ;;  %v791_v28 = vshll.u32 %v1811_v23, 16  ;;  %v1865_v50 = vcombine.low %v2626_v54, %v421_v10 }
  0x41   :  { %v737_v58 = vrot.slane %v735_v48, 1  ;;  %v2646_v48 = vld [vmem:[#allocation2 + $0xe0] sm:$0xf] }
  0x42   :  { %v759_v6 = vor.u32 %v758_v0, %v754_v60  ;;  %v793_v21 = vrot.slane %v791_v28, 1  ;;  %v435_v0 = vld [vmem:[#allocation2 + $0xf0] sm:$0xf] }
  0x43   :  { %1334 = vmatmul.mubr.bf16.gmra.mrb[16].mxu0 %v1837_v44  ;;  %v1852_v44 = vcombine.low %v724_v30, %v731_v24  ;;  %v2640_v30 = vld [vmem:[#allocation2 + $0xd0] sm:$0xf]  ;;  %v428_v24 = vld [vmem:[#allocation2 + $0xd4] sm:$0xf] }
  0x44   :  { %1341 = vmatprep.mubr.bf16.mxu0 %v1842_v45  ;;  %1495 = vmatmul.mubr.bf16.gmra.mrb[16].mxu1 %v1839_v61  ;;  %v751_v45 = vrot.slane %v749_v31, 1  ;;  %v761_v61 = vshrl.u32 %v1807_v47, 16  ;;  %v1861_v31 = vcombine.low %v2616_v34, %v417_v52  ;;  %v1813_v37 = vcombine.low %v2640_v30, %v428_v24  ;;  %v430_v47 = vld [vmem:[#allocation2 + $0xdc] sm:$0xf] }
  0x45   :  { %1502 = vmatprep.mubr.bf16.mxu1 %v1844_v4  ;;  %v738_v4 = vor.u32 %v737_v58, %v733_v57  ;;  %v1870_v51 = vcombine.low %v425_v29, %v2640_v30  ;;  %v1814_v57 = vcombine.low %v429_v46, %v430_v47 }
  0x46   :  { %v2624_v42 = vor.u32 %v751_v45, %v747_v43  ;;  %v766_v7 = vor.u32 %v765_v2, %v761_v61  ;;  %v805_v34 = vshll.u32 %v1813_v37, 16  ;;  %v803_v55 = vshrl.u32 %v1813_v37, 16  ;;  %v436_v2 = vld [vmem:[#allocation2 + $0xf4] sm:$0xf] }
  0x47   :  { %v1855_v14 = vcombine.low %v738_v4, %v745_v49  ;;  %v812_v61 = vshll.u32 %v1814_v57, 16  ;;  %v1869_v4 = vcombine.low %v2634_v13, %v425_v29  ;;  %v441_v13 = vld [vmem:[#allocation3 + $0x8] sm:$0xf] }
  0x48   :  { %v1860_v19 = vcombine.low %v759_v6, %v766_v7  ;;  %v1859_v33 = vcombine.low %v2624_v42, %v759_v6  ;;  %v1874_v6 = vcombine.low %v429_v46, %v2646_v48 }
  0x49   :  { %v814_v12 = vrot.slane %v812_v61, 1  ;;  %v2317_v61 = vmov 0.0  }
  0x4a   :  { %374 = vst [vmem:[%s2716_s4] sm:$0x3] %v2317_v61 }
  0x4b   :  { %1342 = vmatmul.mubr.bf16.gmra.mrb[20].mxu0 %v1841_v62  ;;  %v1808_v62 = vcombine.low %v417_v52, %v418_v53 }
  0x4c   :  { %1349 = vmatprep.mubr.bf16.mxu0 %v1846_v63  ;;  %1503 = vmatmul.mubr.bf16.gmra.mrb[20].mxu1 %v1843_v5  ;;  %v1856_v63 = vcombine.low %v745_v49, %v2624_v42  ;;  %v1862_v5 = vcombine.low %v417_v52, %v2626_v54  ;;  %v432_v49 = vld [vmem:[#allocation2 + $0xe4] sm:$0xf]  ;;  %v434_v54 = vld [vmem:[#allocation2 + $0xec] sm:$0xf] }
  0x4d   :  { %1510 = vmatprep.mubr.bf16.mxu1 %v1848_v22  ;;  %v770_v8 = vshll.u32 %v1808_v62, 16  ;;  %v779_v22 = vrot.slane %v777_v9, 1  ;;  %v1815_v58 = vcombine.low %v2646_v48, %v432_v49 }
  0x4f   :  { %v772_v20 = vrot.slane %v770_v8, 1  ;;  %v817_v8 = vshrl.u32 %v1815_v58, 16 }
  0x53   :  { %1350 = vmatmul.mubr.bf16.gmra.mrb[24].mxu0 %v1845_v11  ;;  %v768_v11 = vshrl.u32 %v1808_v62, 16  ;;  %v819_v62 = vshll.u32 %v1815_v58, 16 }
  0x54   :  { %1357 = vmatprep.mubr.bf16.mxu0 %v1850_v17  ;;  %1511 = vmatmul.mubr.bf16.gmra.mrb[24].mxu1 %v1847_v36  ;;  %v775_v17 = vshrl.u32 %v1809_v3, 16  ;;  %v789_v36 = vshrl.u32 %v1811_v23, 16  ;;  %v1873_v23 = vcombine.low %v2640_v30, %v429_v46  ;;  %v1882_v30 = vcombine.low %v437_v18, %v441_v13 }
  0x55   :  { %1518 = vmatprep.mubr.bf16.mxu1 %v1852_v44  ;;  %v773_v25 = vor.u32 %v772_v20, %v768_v11  ;;  %v821_v1 = vrot.slane %v819_v62, 1  ;;  %v442_v20 = vld [vmem:[#allocation3 + $0xc] sm:$0xf]  ;;  %v1881_v46 = vcombine.low %v435_v0, %v437_v18 }
  0x56   :  { %v780_v26 = vor.u32 %v779_v22, %v775_v17  ;;  %v794_v45 = vor.u32 %v793_v21, %v789_v36 }
  0x57   :  { %v1863_v42 = vcombine.low %v766_v7, %v773_v25  ;;  %v810_v7 = vshrl.u32 %v1814_v57, 16 }
  0x58   :  { %v1864_v40 = vcombine.low %v773_v25, %v780_v26 }
  0x5b   :  { %1358 = vmatmul.mubr.bf16.gmra.mrb[28].mxu0 %v1849_v38  ;;  %v1812_v38 = vcombine.low %v425_v29, %v426_v15 }
  0x5c   :  { %1365 = vmatprep.mubr.bf16.mxu0 %v1854_v41  ;;  %1519 = vmatmul.mubr.bf16.gmra.mrb[28].mxu1 %v1851_v39  ;;  %v786_v41 = vrot.slane %v784_v27, 1 }
  0x5d   :  { %1526 = vmatprep.mubr.bf16.mxu1 %v1856_v63  ;;  %v798_v43 = vshll.u32 %v1812_v38, 16  ;;  %v796_v52 = vshrl.u32 %v1812_v38, 16  ;;  %v433_v63 = vld [vmem:[#allocation2 + $0xe8] sm:$0xf] }
  0x5e   :  { %v787_v44 = vor.u32 %v786_v41, %v782_v35  ;;  %v1816_v9 = vcombine.low %v433_v63, %v434_v54  ;;  %v1878_v25 = vcombine.low %v433_v63, %v435_v0  ;;  %v1877_v38 = vcombine.low %v2646_v48, %v433_v63 }
  0x5f   :  { %v800_v53 = vrot.slane %v798_v43, 1 }
  0x60   :  { %v1868_v39 = vcombine.low %v787_v44, %v794_v45  ;;  %v1867_v3 = vcombine.low %v780_v26, %v787_v44  ;;  %v826_v11 = vshll.u32 %v1816_v9, 16  ;;  %v824_v26 = vshrl.u32 %v1816_v9, 16 }
  0x62   :  { %v828_v15 = vrot.slane %v826_v11, 1 }
  0x63   :  { %1366 = vmatmul.mubr.bf16.gmra.mrb[32].mxu0 %v1853_v56  ;;  %v807_v56 = vrot.slane %v805_v34, 1 }
  0x64   :  { %1373 = vmatprep.mubr.bf16.mxu0 %v1858_v59  ;;  %1527 = vmatmul.mubr.bf16.gmra.mrb[32].mxu1 %v1855_v14  ;;  %v801_v59 = vor.u32 %v800_v53, %v796_v52  ;;  %v1817_v14 = vcombine.low %v435_v0, %v436_v2 }
  0x65   :  { %1534 = vmatprep.mubr.bf16.mxu1 %v1860_v19  ;;  %v808_v60 = vor.u32 %v807_v56, %v803_v55  ;;  %v438_v19 = vld [vmem:[#allocation2 + $0xfc] sm:$0xf] }
  0x66   :  { %v833_v17 = vshll.u32 %v1817_v14, 16  ;;  %v1871_v22 = vcombine.low %v794_v45, %v801_v59  ;;  %v831_v27 = vshrl.u32 %v1817_v14, 16  ;;  %v1818_v28 = vcombine.low %v437_v18, %v438_v19 }
  0x67   :  { %v1872_v10 = vcombine.low %v801_v59, %v808_v60 }
  0x68   :  { %v835_v24 = vrot.slane %v833_v17, 1  ;;  %v840_v36 = vshll.u32 %v1818_v28, 16  ;;  %v838_v41 = vshrl.u32 %v1818_v28, 16 }
  0x6a   :  { %v842_v37 = vrot.slane %v840_v36, 1 }
  0x6b   :  { %1374 = vmatmul.mubr.bf16.gmra.mrb[36].mxu0 %v1857_v16  ;;  %v815_v16 = vor.u32 %v814_v12, %v810_v7 }
  0x6c   :  { %1381 = vmatprep.mubr.bf16.mxu0 %v1862_v5  ;;  %1535 = vmatmul.mubr.bf16.gmra.mrb[36].mxu1 %v1859_v33  ;;  %v822_v5 = vor.u32 %v821_v1, %v817_v8  ;;  %v836_v33 = vor.u32 %v835_v24, %v831_v27  ;;  %v843_v45 = vor.u32 %v842_v37, %v838_v41 }
  0x6d   :  { %1542 = vmatprep.mubr.bf16.mxu1 %v1864_v40  ;;  %v1875_v40 = vcombine.low %v808_v60, %v815_v16 }
  0x6e   :  { %v1876_v29 = vcombine.low %v815_v16, %v822_v5  ;;  %v1883_v48 = vcombine.low %v836_v33, %v843_v45 }
  0x73   :  { %1382 = vmatmul.mubr.bf16.gmra.mrb[40].mxu0 %v1861_v31  ;;  %v1820_v31 = vcombine.low %v441_v13, %v442_v20 }
  0x74   :  { %1389 = vmatprep.mubr.bf16.mxu0 %v1866_v32  ;;  %1543 = vmatmul.mubr.bf16.gmra.mrb[40].mxu1 %v1863_v42  ;;  %v829_v32 = vor.u32 %v828_v15, %v824_v26 }
  0x75   :  { %1550 = vmatprep.mubr.bf16.mxu1 %v1868_v39  ;;  %v847_v35 = vshll.u32 %v1820_v31, 16  ;;  %v845_v43 = vshrl.u32 %v1820_v31, 16 }
  0x76   :  { %v1880_v21 = vcombine.low %v829_v32, %v836_v33  ;;  %v1879_v47 = vcombine.low %v822_v5, %v829_v32 }
  0x77   :  { %v849_v44 = vrot.slane %v847_v35, 1 }
  0x79   :  { %v850_v34 = vor.u32 %v849_v44, %v845_v43 }
  0x7b   :  { %1390 = vmatmul.mubr.bf16.gmra.mrb[44].mxu0 %v1865_v50  ;;  %v1884_v49 = vcombine.low %v843_v45, %v850_v34 }
  0x7c   :  { %1397 = vmatprep.mubr.bf16.mxu0 %v1870_v51  ;;  %1551 = vmatmul.mubr.bf16.gmra.mrb[44].mxu1 %v1867_v3 }
  0x7d   :  { %1558 = vmatprep.mubr.bf16.mxu1 %v1872_v10 }
  0x83   :  { %1398 = vmatmul.mubr.bf16.gmra.mrb[48].mxu0 %v1869_v4 }
  0x84   :  { %1405 = vmatprep.mubr.bf16.mxu0 %v1874_v6  ;;  %1559 = vmatmul.mubr.bf16.gmra.mrb[48].mxu1 %v1871_v22 }
  0x85   :  { %1566 = vmatprep.mubr.bf16.mxu1 %v1876_v29 }
  0x8b   :  { %1406 = vmatmul.mubr.bf16.gmra.mrb[52].mxu0 %v1873_v23 }
  0x8c   :  { %1413 = vmatprep.mubr.bf16.mxu0 %v1878_v25  ;;  %1567 = vmatmul.mubr.bf16.gmra.mrb[52].mxu1 %v1875_v40 }
  0x8d   :  { %1574 = vmatprep.mubr.bf16.mxu1 %v1880_v21 }
  0x93   :  { %1414 = vmatmul.mubr.bf16.gmra.mrb[56].mxu0 %v1877_v38 }
  0x94   :  { %1421 = vmatprep.mubr.bf16.mxu0 %v1882_v30  ;;  %1575 = vmatmul.mubr.bf16.gmra.mrb[56].mxu1 %v1879_v47 }
  0x95   :  { %1582 = vmatprep.mubr.bf16.mxu1 %v1884_v49 }
  0x9b   :  { %1422 = vmatmul.mubr.bf16.gmra.mrb[60].mxu0 %v1881_v46 }
  0x9c   :  { %1583 = vmatmul.mubr.bf16.gmra.mrb[60].mxu1 %v1883_v48 }
  0xf6   :  { %v2028_v42 = vpop.f32.mrb[0].mxu0 }
  0xf7   :  { %v2029_v50 = vpop.f32.mrb[1].mxu0  ;;  %v2140_v56 = vpop.f32.mrb[0].mxu1 }
  0xf8   :  { %v2030_v51 = vadd.f32 %v2029_v50, %v2028_v42  ;;  %v2031_v52 = vpop.f32.mrb[2].mxu0  ;;  %v2141_v58 = vpop.f32.mrb[1].mxu1 }
  0xf9   :  { %v2032_v53 = vpop.f32.mrb[3].mxu0  ;;  %v2142_v62 = vadd.f32 %v2141_v58, %v2140_v56  ;;  %v2143_v63 = vpop.f32.mrb[2].mxu1 }
  0xfa   :  { %v2033_v55 = vadd.f32 %v2032_v53, %v2031_v52  ;;  %v2144_v0 = vpop.f32.mrb[3].mxu1 }
  0xfb   :  { %v1465_v3 = vadd.f32 %v2142_v62, %v2030_v51  ;;  %v2145_v4 = vadd.f32 %v2144_v0, %v2143_v63 }
  0xfd   :  { %v1468_v6 = vadd.f32 %v2145_v4, %v2033_v55  ;;  %v1692_v8 = vmul.f32 %v1465_v3, %v1465_v3 }
  0xfe   :  { %v2034_v39 = vpop.f32.mrb[4].mxu0 }
  0xff   :  { %v2035_v57 = vpop.f32.mrb[5].mxu0  ;;  %v1920_v9 = vpack.c.bf16 %v1468_v6, %v1465_v3  ;;  %v1655_v10 = vadd.f32 %v1468_v6, %v1465_v3  ;;  %v1693_v12 = vmul.f32 %v1468_v6, %v1468_v6  ;;  %v2146_v1 = vpop.f32.mrb[4].mxu1 }
 0x100   :  { %v2036_v59 = vadd.f32 %v2035_v57, %v2034_v39  ;;  %v2037_v60 = vpop.f32.mrb[6].mxu0  ;;  %v2147_v16 = vpop.f32.mrb[5].mxu1 }
 0x101   :  { %v2038_v54 = vpop.f32.mrb[7].mxu0  ;;  %1921 = vst [vmem:[%s2715_s3] sm:$0xff] %v1920_v9   ;;  %v1724_v17 = vadd.f32 %v1693_v12, %v1692_v8  ;;  %v2148_v18 = vadd.f32 %v2147_v16, %v2146_v1  ;;  %v2149_v19 = vpop.f32.mrb[6].mxu1 }
 0x102   :  { %v2039_v2 = vadd.f32 %v2038_v54, %v2037_v60  ;;  %v2150_v20 = vpop.f32.mrb[7].mxu1 }
 0x103   :  { %v1473_v23 = vadd.f32 %v2148_v18, %v2036_v59  ;;  %v2151_v25 = vadd.f32 %v2150_v20, %v2149_v19 }
 0x105   :  { %v1656_v26 = vadd.f32 %v1655_v10, %v1473_v23  ;;  %v1694_v27 = vmul.f32 %v1473_v23, %v1473_v23  ;;  %v1476_v28 = vadd.f32 %v2151_v25, %v2039_v2 }
 0x106   :  { %v2040_v7 = vpop.f32.mrb[8].mxu0 }
 0x107   :  { %v2041_v14 = vpop.f32.mrb[9].mxu0  ;;  %v1725_v15 = vadd.f32 %v1724_v17, %v1694_v27  ;;  %v1925_v24 = vpack.c.bf16 %v1476_v28, %v1473_v23  ;;  %v1657_v31 = vadd.f32 %v1656_v26, %v1476_v28  ;;  %v1695_v32 = vmul.f32 %v1476_v28, %v1476_v28  ;;  %v2152_v33 = vpop.f32.mrb[8].mxu1 }
 0x108   :  { %v2042_v5 = vadd.f32 %v2041_v14, %v2040_v7  ;;  %v2043_v11 = vpop.f32.mrb[10].mxu0  ;;  %v2153_v36 = vpop.f32.mrb[9].mxu1 }
 0x109   :  { %v2044_v13 = vpop.f32.mrb[11].mxu0  ;;  %1997 = vst [vmem:[%s2715_s3 + $0x8] sm:$0xff] %v1925_v24   ;;  %v1726_v30 = vadd.f32 %v1725_v15, %v1695_v32  ;;  %v2154_v41 = vadd.f32 %v2153_v36, %v2152_v33  ;;  %v2155_v21 = vpop.f32.mrb[10].mxu1 }
 0x10a   :  { %v2045_v22 = vadd.f32 %v2044_v13, %v2043_v11  ;;  %v2156_v43 = vpop.f32.mrb[11].mxu1 }
 0x10b   :  { %v1481_v45 = vadd.f32 %v2154_v41, %v2042_v5  ;;  %v2157_v34 = vadd.f32 %v2156_v43, %v2155_v21 }
 0x10d   :  { %v1658_v46 = vadd.f32 %v1657_v31, %v1481_v45  ;;  %v1696_v47 = vmul.f32 %v1481_v45, %v1481_v45  ;;  %v1484_v49 = vadd.f32 %v2157_v34, %v2045_v22 }
 0x10e   :  { %v2046_v29 = vpop.f32.mrb[12].mxu0 }
 0x10f   :  { %v2047_v35 = vpop.f32.mrb[13].mxu0  ;;  %v1727_v42 = vadd.f32 %v1726_v30, %v1696_v47  ;;  %v1930_v50 = vpack.c.bf16 %v1484_v49, %v1481_v45  ;;  %v1659_v51 = vadd.f32 %v1658_v46, %v1484_v49  ;;  %v1697_v52 = vmul.f32 %v1484_v49, %v1484_v49  ;;  %v2158_v53 = vpop.f32.mrb[12].mxu1 }
 0x110   :  { %v2048_v38 = vadd.f32 %v2047_v35, %v2046_v29  ;;  %v2049_v40 = vpop.f32.mrb[14].mxu0  ;;  %v2159_v39 = vpop.f32.mrb[13].mxu1 }
 0x111   :  { %v2050_v37 = vpop.f32.mrb[15].mxu0  ;;  %1998 = vst [vmem:[%s2715_s3 + $0x10] sm:$0xff] %v1930_v50   ;;  %v1728_v58 = vadd.f32 %v1727_v42, %v1697_v52  ;;  %v2160_v59 = vadd.f32 %v2159_v39, %v2158_v53  ;;  %v2161_v60 = vpop.f32.mrb[14].mxu1 }
 0x112   :  { %v2051_v44 = vadd.f32 %v2050_v37, %v2049_v40  ;;  %v2162_v62 = vpop.f32.mrb[15].mxu1 }
 0x113   :  { %v1489_v54 = vadd.f32 %v2160_v59, %v2048_v38  ;;  %v2163_v0 = vadd.f32 %v2162_v62, %v2161_v60 }
 0x115   :  { %v1660_v2 = vadd.f32 %v1659_v51, %v1489_v54  ;;  %v1698_v3 = vmul.f32 %v1489_v54, %v1489_v54  ;;  %v1492_v4 = vadd.f32 %v2163_v0, %v2051_v44 }
 0x116   :  { %v2052_v48 = vpop.f32.mrb[16].mxu0 }
 0x117   :  { %v2053_v55 = vpop.f32.mrb[17].mxu0  ;;  %v1729_v7 = vadd.f32 %v1728_v58, %v1698_v3  ;;  %v1935_v8 = vpack.c.bf16 %v1492_v4, %v1489_v54  ;;  %v1661_v9 = vadd.f32 %v1660_v2, %v1492_v4  ;;  %v1699_v10 = vmul.f32 %v1492_v4, %v1492_v4  ;;  %v2164_v12 = vpop.f32.mrb[16].mxu1 }
 0x118   :  { %v2054_v56 = vadd.f32 %v2053_v55, %v2052_v48  ;;  %v2055_v57 = vpop.f32.mrb[18].mxu0  ;;  %v2165_v14 = vpop.f32.mrb[17].mxu1 }
 0x119   :  { %v2056_v61 = vpop.f32.mrb[19].mxu0  ;;  %1999 = vst [vmem:[%s2715_s3 + $0x18] sm:$0xff] %v1935_v8   ;;  %v1730_v11 = vadd.f32 %v1729_v7, %v1699_v10  ;;  %v2166_v17 = vadd.f32 %v2165_v14, %v2164_v12  ;;  %v2167_v18 = vpop.f32.mrb[18].mxu1 }
 0x11a   :  { %v2057_v63 = vadd.f32 %v2056_v61, %v2055_v57  ;;  %v2168_v13 = vpop.f32.mrb[19].mxu1 }
 0x11b   :  { %v1497_v22 = vadd.f32 %v2166_v17, %v2054_v56  ;;  %v2169_v23 = vadd.f32 %v2168_v13, %v2167_v18 }
 0x11d   :  { %v1662_v25 = vadd.f32 %v1661_v9, %v1497_v22  ;;  %v1700_v26 = vmul.f32 %v1497_v22, %v1497_v22  ;;  %v1500_v27 = vadd.f32 %v2169_v23, %v2057_v63 }
 0x11e   :  { %v2058_v6 = vpop.f32.mrb[20].mxu0 }
 0x11f   :  { %v2059_v1 = vpop.f32.mrb[21].mxu0  ;;  %v1731_v29 = vadd.f32 %v1730_v11, %v1700_v26  ;;  %v1940_v15 = vpack.c.bf16 %v1500_v27, %v1497_v22  ;;  %v1663_v24 = vadd.f32 %v1662_v25, %v1500_v27  ;;  %v1701_v31 = vmul.f32 %v1500_v27, %v1500_v27  ;;  %v2170_v32 = vpop.f32.mrb[20].mxu1 }
 0x120   :  { %v2060_v16 = vadd.f32 %v2059_v1, %v2058_v6  ;;  %v2061_v5 = vpop.f32.mrb[22].mxu0  ;;  %v2171_v35 = vpop.f32.mrb[21].mxu1 }
 0x121   :  { %v2062_v19 = vpop.f32.mrb[23].mxu0  ;;  %2000 = vst [vmem:[%s2715_s3 + $0x20] sm:$0xff] %v1940_v15   ;;  %v1732_v40 = vadd.f32 %v1731_v29, %v1701_v31  ;;  %v2172_v30 = vadd.f32 %v2171_v35, %v2170_v32  ;;  %v2173_v41 = vpop.f32.mrb[22].mxu1 }
 0x122   :  { %v2063_v20 = vadd.f32 %v2062_v19, %v2061_v5  ;;  %v2174_v37 = vpop.f32.mrb[23].mxu1 }
 0x123   :  { %v1505_v44 = vadd.f32 %v2172_v30, %v2060_v16  ;;  %v2175_v45 = vadd.f32 %v2174_v37, %v2173_v41 }
 0x125   :  { %v1664_v34 = vadd.f32 %v1663_v24, %v1505_v44  ;;  %v1702_v46 = vmul.f32 %v1505_v44, %v1505_v44  ;;  %v1508_v47 = vadd.f32 %v2175_v45, %v2063_v20 }
 0x126   :  { %v2064_v28 = vpop.f32.mrb[24].mxu0 }
 0x127   :  { %v2065_v33 = vpop.f32.mrb[25].mxu0  ;;  %v1733_v48 = vadd.f32 %v1732_v40, %v1702_v46  ;;  %v1945_v42 = vpack.c.bf16 %v1508_v47, %v1505_v44  ;;  %v1665_v50 = vadd.f32 %v1664_v34, %v1508_v47  ;;  %v1703_v51 = vmul.f32 %v1508_v47, %v1508_v47  ;;  %v2176_v52 = vpop.f32.mrb[24].mxu1 }
 0x128   :  { %v2066_v36 = vadd.f32 %v2065_v33, %v2064_v28  ;;  %v2067_v38 = vpop.f32.mrb[26].mxu0  ;;  %v2177_v55 = vpop.f32.mrb[25].mxu1 }
 0x129   :  { %v2068_v21 = vpop.f32.mrb[27].mxu0  ;;  %2001 = vst [vmem:[%s2715_s3 + $0x28] sm:$0xff] %v1945_v42   ;;  %v1734_v57 = vadd.f32 %v1733_v48, %v1703_v51  ;;  %v2178_v58 = vadd.f32 %v2177_v55, %v2176_v52  ;;  %v2179_v59 = vpop.f32.mrb[26].mxu1 }
 0x12a   :  { %v2069_v43 = vadd.f32 %v2068_v21, %v2067_v38  ;;  %v2180_v61 = vpop.f32.mrb[27].mxu1 }
 0x12b   :  { %v1513_v63 = vadd.f32 %v2178_v58, %v2066_v36  ;;  %v2181_v54 = vadd.f32 %v2180_v61, %v2179_v59 }
 0x12d   :  { %v1666_v0 = vadd.f32 %v1665_v50, %v1513_v63  ;;  %v1704_v2 = vmul.f32 %v1513_v63, %v1513_v63  ;;  %v1516_v3 = vadd.f32 %v2181_v54, %v2069_v43 }
 0x12e   :  { %v2070_v49 = vpop.f32.mrb[28].mxu0 }
 0x12f   :  { %v2071_v53 = vpop.f32.mrb[29].mxu0  ;;  %v1735_v6 = vadd.f32 %v1734_v57, %v1704_v2  ;;  %v1950_v7 = vpack.c.bf16 %v1516_v3, %v1513_v63  ;;  %v1667_v8 = vadd.f32 %v1666_v0, %v1516_v3  ;;  %v1705_v9 = vmul.f32 %v1516_v3, %v1516_v3  ;;  %v2182_v10 = vpop.f32.mrb[28].mxu1 }
 0x130   :  { %v2072_v39 = vadd.f32 %v2071_v53, %v2070_v49  ;;  %v2073_v56 = vpop.f32.mrb[30].mxu0  ;;  %v2183_v1 = vpop.f32.mrb[29].mxu1 }
 0x131   :  { %v2074_v60 = vpop.f32.mrb[31].mxu0  ;;  %2002 = vst [vmem:[%s2715_s3 + $0x30] sm:$0xff] %v1950_v7   ;;  %v1736_v5 = vadd.f32 %v1735_v6, %v1705_v9  ;;  %v2184_v11 = vadd.f32 %v2183_v1, %v2182_v10  ;;  %v2185_v17 = vpop.f32.mrb[30].mxu1 }
 0x132   :  { %v2075_v62 = vadd.f32 %v2074_v60, %v2073_v56  ;;  %v2186_v19 = vpop.f32.mrb[31].mxu1 }
 0x133   :  { %v1521_v20 = vadd.f32 %v2184_v11, %v2072_v39  ;;  %v2187_v22 = vadd.f32 %v2186_v19, %v2185_v17 }
 0x135   :  { %v1668_v23 = vadd.f32 %v1667_v8, %v1521_v20  ;;  %v1706_v25 = vmul.f32 %v1521_v20, %v1521_v20  ;;  %v1524_v26 = vadd.f32 %v2187_v22, %v2075_v62 }
 0x136   :  { %v2076_v4 = vpop.f32.mrb[32].mxu0 }
 0x137   :  { %v2077_v12 = vpop.f32.mrb[33].mxu0  ;;  %v1737_v28 = vadd.f32 %v1736_v5, %v1706_v25  ;;  %v1955_v29 = vpack.c.bf16 %v1524_v26, %v1521_v20  ;;  %v1669_v15 = vadd.f32 %v1668_v23, %v1524_v26  ;;  %v1707_v24 = vmul.f32 %v1524_v26, %v1524_v26  ;;  %v2188_v31 = vpop.f32.mrb[32].mxu1 }
 0x138   :  { %v2078_v14 = vadd.f32 %v2077_v12, %v2076_v4  ;;  %v2079_v16 = vpop.f32.mrb[34].mxu0  ;;  %v2189_v33 = vpop.f32.mrb[33].mxu1 }
 0x139   :  { %v2080_v18 = vpop.f32.mrb[35].mxu0  ;;  %2003 = vst [vmem:[%s2715_s3 + $0x38] sm:$0xff] %v1955_v29   ;;  %v1738_v38 = vadd.f32 %v1737_v28, %v1707_v24  ;;  %v2190_v40 = vadd.f32 %v2189_v33, %v2188_v31  ;;  %v2191_v30 = vpop.f32.mrb[34].mxu1 }
 0x13a   :  { %v2081_v13 = vadd.f32 %v2080_v18, %v2079_v16  ;;  %v2192_v21 = vpop.f32.mrb[35].mxu1 }
 0x13b   :  { %v1529_v43 = vadd.f32 %v2190_v40, %v2078_v14  ;;  %v2193_v44 = vadd.f32 %v2192_v21, %v2191_v30 }
 0x13d   :  { %v1670_v45 = vadd.f32 %v1669_v15, %v1529_v43  ;;  %v1708_v34 = vmul.f32 %v1529_v43, %v1529_v43  ;;  %v1532_v46 = vadd.f32 %v2193_v44, %v2081_v13 }
 0x13e   :  { %v2082_v27 = vpop.f32.mrb[36].mxu0 }
 0x13f   :  { %v2083_v32 = vpop.f32.mrb[37].mxu0  ;;  %v1739_v49 = vadd.f32 %v1738_v38, %v1708_v34  ;;  %v1960_v48 = vpack.c.bf16 %v1532_v46, %v1529_v43  ;;  %v1671_v42 = vadd.f32 %v1670_v45, %v1532_v46  ;;  %v1709_v50 = vmul.f32 %v1532_v46, %v1532_v46  ;;  %v2194_v51 = vpop.f32.mrb[36].mxu1 }
 0x140   :  { %v2084_v35 = vadd.f32 %v2083_v32, %v2082_v27  ;;  %v2085_v36 = vpop.f32.mrb[38].mxu0  ;;  %v2195_v53 = vpop.f32.mrb[37].mxu1 }
 0x141   :  { %v2086_v41 = vpop.f32.mrb[39].mxu0  ;;  %2004 = vst [vmem:[%s2715_s3 + $0x40] sm:$0xff] %v1960_v48   ;;  %v1740_v56 = vadd.f32 %v1739_v49, %v1709_v50  ;;  %v2196_v57 = vadd.f32 %v2195_v53, %v2194_v51  ;;  %v2197_v58 = vpop.f32.mrb[38].mxu1 }
 0x142   :  { %v2087_v37 = vadd.f32 %v2086_v41, %v2085_v36  ;;  %v2198_v60 = vpop.f32.mrb[39].mxu1 }
 0x143   :  { %v1537_v62 = vadd.f32 %v2196_v57, %v2084_v35  ;;  %v2199_v63 = vadd.f32 %v2198_v60, %v2197_v58 }
 0x145   :  { %v1672_v54 = vadd.f32 %v1671_v42, %v1537_v62  ;;  %v1710_v0 = vmul.f32 %v1537_v62, %v1537_v62  ;;  %v1540_v2 = vadd.f32 %v2199_v63, %v2087_v37 }
 0x146   :  { %v2088_v47 = vpop.f32.mrb[40].mxu0 }
 0x147   :  { %v2089_v52 = vpop.f32.mrb[41].mxu0  ;;  %v1741_v4 = vadd.f32 %v1740_v56, %v1710_v0  ;;  %v1965_v6 = vpack.c.bf16 %v1540_v2, %v1537_v62  ;;  %v1673_v7 = vadd.f32 %v1672_v54, %v1540_v2  ;;  %v1711_v8 = vmul.f32 %v1540_v2, %v1540_v2  ;;  %v2200_v9 = vpop.f32.mrb[40].mxu1 }
 0x148   :  { %v2090_v55 = vadd.f32 %v2089_v52, %v2088_v47  ;;  %v2091_v39 = vpop.f32.mrb[42].mxu0  ;;  %v2201_v12 = vpop.f32.mrb[41].mxu1 }
 0x149   :  { %v2092_v59 = vpop.f32.mrb[43].mxu0  ;;  %2005 = vst [vmem:[%s2715_s3 + $0x48] sm:$0xff] %v1965_v6   ;;  %v1742_v16 = vadd.f32 %v1741_v4, %v1711_v8  ;;  %v2202_v5 = vadd.f32 %v2201_v12, %v2200_v9  ;;  %v2203_v11 = vpop.f32.mrb[42].mxu1 }
 0x14a   :  { %v2093_v61 = vadd.f32 %v2092_v59, %v2091_v39  ;;  %v2204_v18 = vpop.f32.mrb[43].mxu1 }
 0x14b   :  { %v1545_v13 = vadd.f32 %v2202_v5, %v2090_v55  ;;  %v2205_v20 = vadd.f32 %v2204_v18, %v2203_v11 }
 0x14d   :  { %v1674_v22 = vadd.f32 %v1673_v7, %v1545_v13  ;;  %v1712_v23 = vmul.f32 %v1545_v13, %v1545_v13  ;;  %v1548_v25 = vadd.f32 %v2205_v20, %v2093_v61 }
 0x14e   :  { %v2094_v3 = vpop.f32.mrb[44].mxu0 }
 0x14f   :  { %v2095_v10 = vpop.f32.mrb[45].mxu0  ;;  %v1743_v27 = vadd.f32 %v1742_v16, %v1712_v23  ;;  %v1970_v28 = vpack.c.bf16 %v1548_v25, %v1545_v13  ;;  %v1675_v29 = vadd.f32 %v1674_v22, %v1548_v25  ;;  %v1713_v15 = vmul.f32 %v1548_v25, %v1548_v25  ;;  %v2206_v24 = vpop.f32.mrb[44].mxu1 }
 0x150   :  { %v2096_v1 = vadd.f32 %v2095_v10, %v2094_v3  ;;  %v2097_v14 = vpop.f32.mrb[46].mxu0  ;;  %v2207_v32 = vpop.f32.mrb[45].mxu1 }
 0x151   :  { %v2098_v17 = vpop.f32.mrb[47].mxu0  ;;  %2006 = vst [vmem:[%s2715_s3 + $0x50] sm:$0xff] %v1970_v28   ;;  %v1744_v36 = vadd.f32 %v1743_v27, %v1713_v15  ;;  %v2208_v38 = vadd.f32 %v2207_v32, %v2206_v24  ;;  %v2209_v40 = vpop.f32.mrb[46].mxu1 }
 0x152   :  { %v2099_v19 = vadd.f32 %v2098_v17, %v2097_v14  ;;  %v2210_v41 = vpop.f32.mrb[47].mxu1 }
 0x153   :  { %v1553_v37 = vadd.f32 %v2208_v38, %v2096_v1  ;;  %v2211_v43 = vadd.f32 %v2210_v41, %v2209_v40 }
 0x155   :  { %v1676_v44 = vadd.f32 %v1675_v29, %v1553_v37  ;;  %v1714_v45 = vmul.f32 %v1553_v37, %v1553_v37  ;;  %v1556_v34 = vadd.f32 %v2211_v43, %v2099_v19 }
 0x156   :  { %v2100_v26 = vpop.f32.mrb[48].mxu0 }
 0x157   :  { %v2101_v31 = vpop.f32.mrb[49].mxu0  ;;  %v1745_v47 = vadd.f32 %v1744_v36, %v1714_v45  ;;  %v1975_v49 = vpack.c.bf16 %v1556_v34, %v1553_v37  ;;  %v1677_v48 = vadd.f32 %v1676_v44, %v1556_v34  ;;  %v1715_v42 = vmul.f32 %v1556_v34, %v1556_v34  ;;  %v2212_v50 = vpop.f32.mrb[48].mxu1 }
 0x158   :  { %v2102_v33 = vadd.f32 %v2101_v31, %v2100_v26  ;;  %v2103_v35 = vpop.f32.mrb[50].mxu0  ;;  %v2213_v52 = vpop.f32.mrb[49].mxu1 }
 0x159   :  { %v2104_v30 = vpop.f32.mrb[51].mxu0  ;;  %2007 = vst [vmem:[%s2715_s3 + $0x58] sm:$0xff] %v1975_v49   ;;  %v1746_v39 = vadd.f32 %v1745_v47, %v1715_v42  ;;  %v2214_v56 = vadd.f32 %v2213_v52, %v2212_v50  ;;  %v2215_v57 = vpop.f32.mrb[50].mxu1 }
 0x15a   :  { %v2105_v21 = vadd.f32 %v2104_v30, %v2103_v35  ;;  %v2216_v59 = vpop.f32.mrb[51].mxu1 }
 0x15b   :  { %v1561_v61 = vadd.f32 %v2214_v56, %v2102_v33  ;;  %v2217_v62 = vadd.f32 %v2216_v59, %v2215_v57 }
 0x15d   :  { %v1678_v63 = vadd.f32 %v1677_v48, %v1561_v61  ;;  %v1716_v54 = vmul.f32 %v1561_v61, %v1561_v61  ;;  %v1564_v0 = vadd.f32 %v2217_v62, %v2105_v21 }
 0x15e   :  { %v2106_v46 = vpop.f32.mrb[52].mxu0 }
 0x15f   :  { %v2107_v51 = vpop.f32.mrb[53].mxu0  ;;  %v1747_v3 = vadd.f32 %v1746_v39, %v1716_v54  ;;  %v1980_v4 = vpack.c.bf16 %v1564_v0, %v1561_v61  ;;  %v1679_v6 = vadd.f32 %v1678_v63, %v1564_v0  ;;  %v1717_v7 = vmul.f32 %v1564_v0, %v1564_v0  ;;  %v2218_v8 = vpop.f32.mrb[52].mxu1 }
 0x160   :  { %v2108_v53 = vadd.f32 %v2107_v51, %v2106_v46  ;;  %v2109_v55 = vpop.f32.mrb[54].mxu0  ;;  %v2219_v10 = vpop.f32.mrb[53].mxu1 }
 0x161   :  { %v2110_v58 = vpop.f32.mrb[55].mxu0  ;;  %2008 = vst [vmem:[%s2715_s3 + $0x60] sm:$0xff] %v1980_v4   ;;  %v1748_v14 = vadd.f32 %v1747_v3, %v1717_v7  ;;  %v2220_v16 = vadd.f32 %v2219_v10, %v2218_v8  ;;  %v2221_v5 = vpop.f32.mrb[54].mxu1 }
 0x162   :  { %v2111_v60 = vadd.f32 %v2110_v58, %v2109_v55  ;;  %v2222_v17 = vpop.f32.mrb[55].mxu1 }
 0x163   :  { %v1569_v19 = vadd.f32 %v2220_v16, %v2108_v53  ;;  %v2223_v13 = vadd.f32 %v2222_v17, %v2221_v5 }
 0x165   :  { %v1680_v20 = vadd.f32 %v1679_v6, %v1569_v19  ;;  %v1718_v22 = vmul.f32 %v1569_v19, %v1569_v19  ;;  %v1572_v23 = vadd.f32 %v2223_v13, %v2111_v60 }
 0x166   :  { %v2112_v2 = vpop.f32.mrb[56].mxu0 }
 0x167   :  { %v2113_v9 = vpop.f32.mrb[57].mxu0  ;;  %v1749_v26 = vadd.f32 %v1748_v14, %v1718_v22  ;;  %v1985_v27 = vpack.c.bf16 %v1572_v23, %v1569_v19  ;;  %v1681_v28 = vadd.f32 %v1680_v20, %v1572_v23  ;;  %v1719_v29 = vmul.f32 %v1572_v23, %v1572_v23  ;;  %v2224_v15 = vpop.f32.mrb[56].mxu1  ;;  %v1761_v14 = vld [vmem:[%s2716_s4] sm:$0x3] }
 0x168   :  { %v2114_v12 = vadd.f32 %v2113_v9, %v2112_v2  ;;  %v2115_v1 = vpop.f32.mrb[58].mxu0  ;;  %v2225_v31 = vpop.f32.mrb[57].mxu1 }
 0x169   :  { %v2116_v11 = vpop.f32.mrb[59].mxu0  ;;  %2009 = vst [vmem:[%s2715_s3 + $0x68] sm:$0xff] %v1985_v27   ;;  %v1750_v35 = vadd.f32 %v1749_v26, %v1719_v29  ;;  %v2226_v36 = vadd.f32 %v2225_v31, %v2224_v15  ;;  %v2227_v38 = vpop.f32.mrb[58].mxu1 }
 0x16a   :  { %v2117_v18 = vadd.f32 %v2116_v11, %v2115_v1  ;;  %v2228_v30 = vpop.f32.mrb[59].mxu1 }
 0x16b   :  { %v1577_v21 = vadd.f32 %v2226_v36, %v2114_v12  ;;  %v2229_v37 = vadd.f32 %v2228_v30, %v2227_v38 }
 0x16d   :  { %v1682_v43 = vadd.f32 %v1681_v28, %v1577_v21  ;;  %v1720_v44 = vmul.f32 %v1577_v21, %v1577_v21  ;;  %v1580_v45 = vadd.f32 %v2229_v37, %v2117_v18 }
 0x16e   :  { %v2118_v25 = vpop.f32.mrb[60].mxu0 }
 0x16f   :  { %v2119_v24 = vpop.f32.mrb[61].mxu0  ;;  %v1751_v34 = vadd.f32 %v1750_v35, %v1720_v44  ;;  %v1990_v46 = vpack.c.bf16 %v1580_v45, %v1577_v21  ;;  %v1683_v47 = vadd.f32 %v1682_v43, %v1580_v45  ;;  %v1721_v49 = vmul.f32 %v1580_v45, %v1580_v45  ;;  %v2230_v48 = vpop.f32.mrb[60].mxu1 }
 0x170   :  { %v2120_v32 = vadd.f32 %v2119_v24, %v2118_v25  ;;  %v2121_v33 = vpop.f32.mrb[62].mxu0  ;;  %v2231_v42 = vpop.f32.mrb[61].mxu1 }
 0x171   :  { %v2122_v40 = vpop.f32.mrb[63].mxu0  ;;  %2010 = vst [vmem:[%s2715_s3 + $0x70] sm:$0xff] %v1990_v46   ;;  %v1752_v50 = vadd.f32 %v1751_v34, %v1721_v49  ;;  %v2232_v51 = vadd.f32 %v2231_v42, %v2230_v48  ;;  %v2233_v52 = vpop.f32.mrb[62].mxu1 }
 0x172   :  { %v2123_v41 = vadd.f32 %v2122_v40, %v2121_v33  ;;  %v2234_v53 = vpop.f32.mrb[63].mxu1 }
 0x173   :  { %v1585_v55 = vadd.f32 %v2232_v51, %v2120_v32  ;;  %v2235_v39 = vadd.f32 %v2234_v53, %v2233_v52 }
 0x175   :  { %v1684_v56 = vadd.f32 %v1683_v47, %v1585_v55  ;;  %v1722_v57 = vmul.f32 %v1585_v55, %v1585_v55  ;;  %v1588_v58 = vadd.f32 %v2235_v39, %v2123_v41 }
 0x177   :  { %v1753_v59 = vadd.f32 %v1752_v50, %v1722_v57  ;;  %v1995_v60 = vpack.c.bf16 %v1588_v58, %v1585_v55  ;;  %v1685_v61 = vadd.f32 %v1684_v56, %v1588_v58  ;;  %v1723_v62 = vmul.f32 %v1588_v58, %v1588_v58 }
 0x179   :  { %2011 = vst [vmem:[%s2715_s3 + $0x78] sm:$0xff] %v1995_v60   ;;  %v1686_v63 = vrot.slane %v1685_v61, 4  ;;  %v1754_v54 = vadd.f32 %v1753_v59, %v1723_v62 }
 0x17b   :  { %v1687_v0 = vadd.f32 %v1686_v63, %v1685_v61  ;;  %v1755_v2 = vrot.slane %v1754_v54, 4 }
 0x17d   :  { %v1688_v3 = vrot.slane %v1687_v0, 2  ;;  %v1756_v4 = vadd.f32 %v1755_v2, %v1754_v54 }
 0x17f   :  { %v1689_v6 = vadd.f32 %v1688_v3, %v1687_v0  ;;  %v1757_v7 = vrot.slane %v1756_v4, 2 }
 0x181   :  { %v1690_v8 = vrot.slane %v1689_v6, 1  ;;  %v1758_v9 = vadd.f32 %v1757_v7, %v1756_v4 }
 0x183   :  { %v1759_v10 = vrot.slane %v1758_v9, 1  ;;  %v1691_v12 = vadd.f32 %v1690_v8, %v1689_v6 }
 0x185   :  { %v1760_v1 = vadd.f32 %v1759_v10, %v1758_v9 }
 0x187   :  { %v1763_v16 = vsel %vm1762_vm0, %v1691_v12, %v1760_v1 }
 0x188   :  { %v1764_v5 = vadd.f32 %v1763_v16, %v1761_v14 }
 0x18a   :  { %1765 = vst [vmem:[%s2716_s4] sm:$0x3] %v1764_v5 }

// kernel: discriminator_forward.15
= control target key start
LH: loop header
LB: loop body
LE: loop exit
PB: predicated region body
PF: predicated region fallthrough
CT: control target
= control target key end

     0   :  { %s375_s0 = inlined_call_operand.vmem [shape: bf16[2,8,8,128], index: 0, kind: input, shape index: {}]   ;;  %s376_s1 = inlined_call_operand.vmem [shape: f32[1,128], index: 1, kind: input, shape index: {}]   ;;  %s377_s2 = inlined_call_operand.vmem [shape: f32[1,128], index: 2, kind: input, shape index: {}]   ;;  %s378_s3 = inlined_call_operand.vmem [shape: bf16[2,8,8,128], index: 3, kind: output, shape index: {}]  }
   0x1   :  { %v179_v0 = vld [vmem:[%s375_s0] sm:$0xff]   ;;  %v250_v4 = vld [vmem:[%s375_s0 + $0x8] sm:$0xff]   ;;  %v251_v5 = vld [vmem:[%s375_s0 + $0x10] sm:$0xff]  }
   0x2   :  { %v290_v1 = vld [vmem:[%s376_s1] ss:$0 sm:$0xff]  ;;  %v180_v2 = vunpack.c.l.bf16 %v179_v0  ;;  %v181_v3 = vunpack.c.h.bf16 %v179_v0  ;;  %v252_v6 = vld [vmem:[%s375_s0 + $0x18] sm:$0xff]   ;;  %v184_v8 = vunpack.c.l.bf16 %v250_v4  ;;  %v185_v9 = vunpack.c.h.bf16 %v250_v4  ;;  %v254_v35 = vld [vmem:[%s375_s0 + $0x28] sm:$0xff]  }
   0x3   :  { %v304_v7 = vld [vmem:[%s377_s2] ss:$0 sm:$0xff]  ;;  %v188_v10 = vunpack.c.l.bf16 %v251_v5  ;;  %v189_v11 = vunpack.c.h.bf16 %v251_v5  ;;  %v192_v14 = vunpack.c.l.bf16 %v252_v6  ;;  %v193_v15 = vunpack.c.h.bf16 %v252_v6  ;;  %v255_v48 = vld [vmem:[%s375_s0 + $0x30] sm:$0xff]   ;;  %v256_v4 = vld [vmem:[%s375_s0 + $0x38] sm:$0xff]  }
   0x4   :  { %v53_v12 = vmul.f32 %v180_v2, %v290_v1  ;;  %v54_v13 = vmul.f32 %v181_v3, %v290_v1  ;;  %v55_v16 = vmul.f32 %v184_v8, %v290_v1  ;;  %v56_v17 = vmul.f32 %v185_v9, %v290_v1  ;;  %v253_v34 = vld [vmem:[%s375_s0 + $0x20] sm:$0xff]  }
   0x5   :  { %v57_v18 = vmul.f32 %v188_v10, %v290_v1  ;;  %v58_v19 = vmul.f32 %v189_v11, %v290_v1  ;;  %v59_v22 = vmul.f32 %v192_v14, %v290_v1  ;;  %v60_v23 = vmul.f32 %v193_v15, %v290_v1 }
   0x6   :  { %v76_v20 = vadd.f32 %v304_v7, %v53_v12  ;;  %v77_v21 = vadd.f32 %v304_v7, %v54_v13  ;;  %v78_v24 = vadd.f32 %v304_v7, %v55_v16  ;;  %v79_v25 = vadd.f32 %v304_v7, %v56_v17 }
   0x7   :  { %v80_v26 = vadd.f32 %v304_v7, %v57_v18  ;;  %v81_v27 = vadd.f32 %v304_v7, %v58_v19  ;;  %v82_v42 = vadd.f32 %v304_v7, %v59_v22  ;;  %v83_v43 = vadd.f32 %v304_v7, %v60_v23 }
   0x8   :  { %vm92_vm0 = vcmp.ge.f32.partialorder %v76_v20, 0.0  ;;  %vm93_vm1 = vcmp.ge.f32.partialorder %v77_v21, 0.0  ;;  %v108_v28 = vmul.f32 0.2, %v76_v20  ;;  %v109_v29 = vmul.f32 0.2, %v77_v21 }
   0x9   :  { %vm94_vm2 = vcmp.ge.f32.partialorder %v78_v24, 0.0  ;;  %vm95_vm3 = vcmp.ge.f32.partialorder %v79_v25, 0.0  ;;  %v110_v30 = vmul.f32 0.2, %v78_v24  ;;  %v111_v31 = vmul.f32 0.2, %v79_v25 }
   0xa   :  { %v124_v32 = vsel %vm92_vm0, %v76_v20, %v108_v28  ;;  %v125_v33 = vsel %vm93_vm1, %v77_v21, %v109_v29  ;;  %vm96_vm4 = vcmp.ge.f32.partialorder %v80_v26, 0.0  ;;  %vm97_vm5 = vcmp.ge.f32.partialorder %v81_v27, 0.0 }
   0xb   :  { %v213_v36 = vpack.c.bf16 %v125_v33, %v124_v32  ;;  %v126_v37 = vsel %vm94_vm2, %v78_v24, %v110_v30  ;;  %v127_v38 = vsel %vm95_vm3, %v79_v25, %v111_v31  ;;  %v112_v39 = vmul.f32 0.2, %v80_v26 }
   0xc   :  { %v218_v40 = vpack.c.bf16 %v127_v38, %v126_v37  ;;  %v113_v41 = vmul.f32 0.2, %v81_v27  ;;  %v196_v45 = vunpack.c.l.bf16 %v253_v34  ;;  %v197_v46 = vunpack.c.h.bf16 %v253_v34 }
   0xd   :  { %214 = vst [vmem:[%s378_s3] sm:$0xff] %v213_v36   ;;  %v128_v44 = vsel %vm96_vm4, %v80_v26, %v112_v39  ;;  %v200_v47 = vunpack.c.l.bf16 %v254_v35  ;;  %vm98_vm6 = vcmp.ge.f32.partialorder %v82_v42, 0.0  ;;  %vm99_vm7 = vcmp.ge.f32.partialorder %v83_v43, 0.0 }
   0xe   :  { %257 = vst [vmem:[%s378_s3 + $0x8] sm:$0xff] %v218_v40   ;;  %v129_v49 = vsel %vm97_vm5, %v81_v27, %v113_v41  ;;  %v114_v50 = vmul.f32 0.2, %v82_v42  ;;  %v115_v52 = vmul.f32 0.2, %v83_v43  ;;  %v61_v53 = vmul.f32 %v196_v45, %v290_v1 }
   0xf   :  { %v223_v51 = vpack.c.bf16 %v129_v49, %v128_v44  ;;  %v62_v54 = vmul.f32 %v197_v46, %v290_v1  ;;  %v201_v56 = vunpack.c.h.bf16 %v254_v35  ;;  %v63_v57 = vmul.f32 %v200_v47, %v290_v1 }
  0x10   :  { %v130_v55 = vsel %vm98_vm6, %v82_v42, %v114_v50  ;;  %v204_v58 = vunpack.c.l.bf16 %v255_v48  ;;  %v131_v59 = vsel %vm99_vm7, %v83_v43, %v115_v52  ;;  %v84_v60 = vadd.f32 %v304_v7, %v61_v53 }
  0x11   :  { %258 = vst [vmem:[%s378_s3 + $0x10] sm:$0xff] %v223_v51   ;;  %v85_v61 = vadd.f32 %v304_v7, %v62_v54  ;;  %v205_v62 = vunpack.c.h.bf16 %v255_v48  ;;  %v228_v63 = vpack.c.bf16 %v131_v59, %v130_v55  ;;  %v64_v0 = vmul.f32 %v201_v56, %v290_v1 }
  0x12   :  { %v86_v2 = vadd.f32 %v304_v7, %v63_v57  ;;  %v65_v3 = vmul.f32 %v204_v58, %v290_v1  ;;  %vm100_vm8 = vcmp.ge.f32.partialorder %v84_v60, 0.0  ;;  %v116_v5 = vmul.f32 0.2, %v84_v60 }
  0x13   :  { %vm101_vm9 = vcmp.ge.f32.partialorder %v85_v61, 0.0  ;;  %v117_v6 = vmul.f32 0.2, %v85_v61  ;;  %259 = vst [vmem:[%s378_s3 + $0x18] sm:$0xff] %v228_v63   ;;  %v87_v8 = vadd.f32 %v304_v7, %v64_v0  ;;  %v66_v10 = vmul.f32 %v205_v62, %v290_v1 }
  0x14   :  { %vm102_vm10 = vcmp.ge.f32.partialorder %v86_v2, 0.0  ;;  %v118_v9 = vmul.f32 0.2, %v86_v2  ;;  %v132_v11 = vsel %vm100_vm8, %v84_v60, %v116_v5  ;;  %v88_v13 = vadd.f32 %v304_v7, %v65_v3 }
  0x15   :  { %v133_v12 = vsel %vm101_vm9, %v85_v61, %v117_v6  ;;  %v208_v14 = vunpack.c.l.bf16 %v256_v4  ;;  %vm103_vm11 = vcmp.ge.f32.partialorder %v87_v8, 0.0  ;;  %v119_v16 = vmul.f32 0.2, %v87_v8 }
  0x16   :  { %v233_v15 = vpack.c.bf16 %v133_v12, %v132_v11  ;;  %v134_v17 = vsel %vm102_vm10, %v86_v2, %v118_v9  ;;  %v89_v18 = vadd.f32 %v304_v7, %v66_v10  ;;  %vm104_vm12 = vcmp.ge.f32.partialorder %v88_v13, 0.0 }
  0x17   :  { %v120_v19 = vmul.f32 0.2, %v88_v13  ;;  %v209_v20 = vunpack.c.h.bf16 %v256_v4  ;;  %v135_v21 = vsel %vm103_vm11, %v87_v8, %v119_v16  ;;  %v67_v22 = vmul.f32 %v208_v14, %v290_v1 }
  0x18   :  { %260 = vst [vmem:[%s378_s3 + $0x20] sm:$0xff] %v233_v15   ;;  %v238_v23 = vpack.c.bf16 %v135_v21, %v134_v17  ;;  %vm105_vm13 = vcmp.ge.f32.partialorder %v89_v18, 0.0  ;;  %v121_v24 = vmul.f32 0.2, %v89_v18 }
  0x19   :  { %v136_v25 = vsel %vm104_vm12, %v88_v13, %v120_v19  ;;  %v68_v26 = vmul.f32 %v209_v20, %v290_v1  ;;  %v90_v27 = vadd.f32 %v304_v7, %v67_v22 }
  0x1a   :  { %261 = vst [vmem:[%s378_s3 + $0x28] sm:$0xff] %v238_v23   ;;  %v137_v28 = vsel %vm105_vm13, %v89_v18, %v121_v24 }
  0x1b   :  { %v243_v29 = vpack.c.bf16 %v137_v28, %v136_v25  ;;  %v91_v30 = vadd.f32 %v304_v7, %v68_v26  ;;  %vm106_vm14 = vcmp.ge.f32.partialorder %v90_v27, 0.0  ;;  %v122_v31 = vmul.f32 0.2, %v90_v27 }
  0x1d   :  { %262 = vst [vmem:[%s378_s3 + $0x30] sm:$0xff] %v243_v29   ;;  %vm107_vm15 = vcmp.ge.f32.partialorder %v91_v30, 0.0  ;;  %v123_v32 = vmul.f32 0.2, %v91_v30  ;;  %v138_v33 = vsel %vm106_vm14, %v90_v27, %v122_v31 }
  0x1f   :  { %v139_v1 = vsel %vm107_vm15, %v91_v30, %v123_v32 }
  0x20   :  { %v248_v34 = vpack.c.bf16 %v139_v1, %v138_v33 }
  0x22   :  { %263 = vst [vmem:[%s378_s3 + $0x38] sm:$0xff] %v248_v34  }

// kernel: discriminator_forward.14
= control target key start
LH: loop header
LB: loop body
LE: loop exit
PB: predicated region body
PF: predicated region fallthrough
CT: control target
= control target key end

     0   :  { %vm1143_vm1 = vcmask 1040384   ;;  %s1770_s0 = inlined_call_operand.vmem [shape: bf16[2,9,16,128], index: 0, kind: input, shape index: {}, may-alias: {0,1}]   ;;  %s1771_s1 = inlined_call_operand.vmem [shape: bf16[2,9,16,128], index: 1, kind: input, shape index: {}, may-alias: {0,1}]   ;;  %s1772_s2 = inlined_call_operand.vmem [shape: bf16[512,128], index: 2, kind: input, shape index: {}]   ;;  %s1773_s3 = inlined_call_operand.vmem [shape: bf16[2,8,8,128], index: 3, kind: output, shape index: {0}]   ;;  %s1774_s4 = inlined_call_operand.vmem [shape: f32[1,2,128], index: 4, kind: output, shape index: {1}]  }
   0x1   :  { %v1426_v0 = vld [vmem:[%s1772_s2 + $0x40] sm:$0xff]   ;;  %v1430_v4 = vld [vmem:[%s1772_s2 + $0x48] sm:$0xff]   ;;  %v1434_v8 = vld [vmem:[%s1772_s2 + $0x50] sm:$0xff]  }
   0x2   :  { %v1427_v1 = vld [vmem:[%s1772_s2 + $0xc0] sm:$0xff]   ;;  %1297 = vmatprep.subr.bf16.mxu0 %v1426_v0  ;;  %v1431_v5 = vld [vmem:[%s1772_s2 + $0xc8] sm:$0xff]   ;;  %v1435_v9 = vld [vmem:[%s1772_s2 + $0xd0] sm:$0xff]  }
   0x3   :  { %v1428_v2 = vld [vmem:[%s1772_s2] sm:$0xff]   ;;  %1361 = vmatprep.subr.bf16.mxu1 %v1427_v1  ;;  %v1432_v6 = vld [vmem:[%s1772_s2 + $0x8] sm:$0xff]   ;;  %v1436_v10 = vld [vmem:[%s1772_s2 + $0x10] sm:$0xff]  }
   0x4   :  { %v1429_v3 = vld [vmem:[%s1772_s2 + $0x80] sm:$0xff]   ;;  %1298 = vmatpush3.bf16.msra.mxu0 %v1428_v2  ;;  %v1433_v7 = vld [vmem:[%s1772_s2 + $0x88] sm:$0xff]   ;;  %v1437_v11 = vld [vmem:[%s1772_s2 + $0x90] sm:$0xff]  }
   0x5   :  { %1362 = vmatpush3.bf16.msra.mxu1 %v1429_v3  ;;  %1299 = vmatprep.subr.bf16.mxu0 %v1430_v4  ;;  %v1438_v12 = vld [vmem:[%s1772_s2 + $0x58] sm:$0xff]   ;;  %v1442_v16 = vld [vmem:[%s1772_s2 + $0x60] sm:$0xff]   ;;  %v1446_v20 = vld [vmem:[%s1772_s2 + $0x68] sm:$0xff]  }
   0x6   :  { %1363 = vmatprep.subr.bf16.mxu1 %v1431_v5  ;;  %v1439_v13 = vld [vmem:[%s1772_s2 + $0xd8] sm:$0xff]   ;;  %v1443_v17 = vld [vmem:[%s1772_s2 + $0xe0] sm:$0xff]   ;;  %v1447_v21 = vld [vmem:[%s1772_s2 + $0xe8] sm:$0xff]  }
   0x7   :  { %v1440_v14 = vld [vmem:[%s1772_s2 + $0x18] sm:$0xff]   ;;  %v1444_v18 = vld [vmem:[%s1772_s2 + $0x20] sm:$0xff]   ;;  %v1448_v22 = vld [vmem:[%s1772_s2 + $0x28] sm:$0xff]  }
   0x8   :  { %1300 = vmatpush3.bf16.msra.mxu0 %v1432_v6  ;;  %v1441_v15 = vld [vmem:[%s1772_s2 + $0x98] sm:$0xff]   ;;  %v1445_v19 = vld [vmem:[%s1772_s2 + $0xa0] sm:$0xff]   ;;  %v1449_v23 = vld [vmem:[%s1772_s2 + $0xa8] sm:$0xff]  }
   0x9   :  { %1364 = vmatpush3.bf16.msra.mxu1 %v1433_v7  ;;  %1301 = vmatprep.subr.bf16.mxu0 %v1434_v8  ;;  %v1450_v24 = vld [vmem:[%s1772_s2 + $0x70] sm:$0xff]   ;;  %v1454_v28 = vld [vmem:[%s1772_s2 + $0x78] sm:$0xff]   ;;  %v31_v32 = vld [vmem:[%s1770_s0 + $0x8] sm:$0xff]  }
   0xa   :  { %1365 = vmatprep.subr.bf16.mxu1 %v1435_v9  ;;  %v1451_v25 = vld [vmem:[%s1772_s2 + $0xf0] sm:$0xff]   ;;  %v1455_v29 = vld [vmem:[%s1772_s2 + $0xf8] sm:$0xff]   ;;  %v27_v34 = vld [vmem:[%s1770_s0] sm:$0xff]   ;;  %32 = vst [vmem:[#allocation2 + $0x8] sm:$0xff] %v31_v32  }
   0xb   :  { %v1452_v26 = vld [vmem:[%s1772_s2 + $0x30] sm:$0xff]   ;;  %v1456_v30 = vld [vmem:[%s1772_s2 + $0x38] sm:$0xff]   ;;  %28 = vst [vmem:[#allocation2] sm:$0xff] %v27_v34   ;;  %v43_v36 = vld [vmem:[%s1770_s0 + $0x20] sm:$0xff]  }
   0xc   :  { %1302 = vmatpush3.bf16.msra.mxu0 %v1436_v10  ;;  %v1453_v27 = vld [vmem:[%s1772_s2 + $0xb0] sm:$0xff]   ;;  %v1457_v31 = vld [vmem:[%s1772_s2 + $0xb8] sm:$0xff]   ;;  %v47_v37 = vld [vmem:[%s1770_s0 + $0x28] sm:$0xff]   ;;  %44 = vst [vmem:[#allocation2 + $0x20] sm:$0xff] %v43_v36  }
   0xd   :  { %1366 = vmatpush3.bf16.msra.mxu1 %v1437_v11  ;;  %1303 = vmatprep.subr.bf16.mxu0 %v1438_v12  ;;  %v35_v33 = vld [vmem:[%s1770_s0 + $0x10] sm:$0xff]   ;;  %v39_v35 = vld [vmem:[%s1770_s0 + $0x18] sm:$0xff]   ;;  %48 = vst [vmem:[#allocation2 + $0x28] sm:$0xff] %v47_v37   ;;  %v1164_v40 = vld [vmem:[%s1771_s1 + $0x40] sm:$0xff]  }
   0xe   :  { %1367 = vmatprep.subr.bf16.mxu1 %v1439_v13  ;;  %36 = vst [vmem:[#allocation2 + $0x10] sm:$0xff] %v35_v33   ;;  %40 = vst [vmem:[#allocation2 + $0x18] sm:$0xff] %v39_v35   ;;  %v51_v38 = vld [vmem:[%s1770_s0 + $0x30] sm:$0xff]   ;;  %v55_v39 = vld [vmem:[%s1770_s0 + $0x38] sm:$0xff]  }
   0xf   :  { %52 = vst [vmem:[#allocation2 + $0x30] sm:$0xff] %v51_v38   ;;  %56 = vst [vmem:[#allocation2 + $0x38] sm:$0xff] %v55_v39   ;;  %v63_v41 = vld [vmem:[%s1770_s0 + $0x50] sm:$0xff]   ;;  %v67_v42 = vld [vmem:[%s1770_s0 + $0x58] sm:$0xff]  }
  0x10   :  { %1304 = vmatpush3.bf16.msra.mxu0 %v1440_v14  ;;  %198 = vst [vmem:[#allocation3] sm:$0xff] %v1164_v40   ;;  %v59_v43 = vld [vmem:[%s1770_s0 + $0x48] sm:$0xff]   ;;  %64 = vst [vmem:[#allocation2 + $0x48] sm:$0xff] %v63_v41   ;;  %v71_v44 = vld [vmem:[%s1770_s0 + $0x60] sm:$0xff]  }
  0x11   :  { %1368 = vmatpush3.bf16.msra.mxu1 %v1441_v15  ;;  %1305 = vmatprep.subr.bf16.mxu0 %v1442_v16  ;;  %68 = vst [vmem:[#allocation2 + $0x50] sm:$0xff] %v67_v42   ;;  %60 = vst [vmem:[#allocation2 + $0x40] sm:$0xff] %v59_v43   ;;  %v75_v45 = vld [vmem:[%s1770_s0 + $0x68] sm:$0xff]   ;;  %v79_v46 = vld [vmem:[%s1770_s0 + $0x70] sm:$0xff]  }
  0x12   :  { %1369 = vmatprep.subr.bf16.mxu1 %v1443_v17  ;;  %72 = vst [vmem:[#allocation2 + $0x58] sm:$0xff] %v71_v44   ;;  %76 = vst [vmem:[#allocation2 + $0x60] sm:$0xff] %v75_v45   ;;  %v83_v47 = vld [vmem:[%s1770_s0 + $0x78] sm:$0xff]   ;;  %v87_v48 = vld [vmem:[%s1770_s0 + $0x80] sm:$0xff]  }
  0x13   :  { %80 = vst [vmem:[#allocation2 + $0x68] sm:$0xff] %v79_v46   ;;  %v1166_v49 = vld [vmem:[%s1771_s1 + $0x88] sm:$0xff]   ;;  %84 = vst [vmem:[#allocation2 + $0x70] sm:$0xff] %v83_v47   ;;  %v247_v56 = vld [vmem:[#allocation2] sm:$0xf] }
  0x14   :  { %1306 = vmatpush3.bf16.msra.mxu0 %v1444_v18  ;;  %88 = vst [vmem:[#allocation2 + $0x78] sm:$0xff] %v87_v48   ;;  %202 = vst [vmem:[#allocation3 + $0x8] sm:$0xff] %v1166_v49   ;;  %v249_v50 = vld [vmem:[#allocation2 + $0x8] sm:$0xf]  ;;  %v250_v51 = vld [vmem:[#allocation2 + $0xc] sm:$0xf] }
  0x15   :  { %1370 = vmatpush3.bf16.msra.mxu1 %v1445_v19  ;;  %1307 = vmatprep.subr.bf16.mxu0 %v1446_v20  ;;  %v251_v52 = vld [vmem:[#allocation2 + $0x10] sm:$0xf]  ;;  %v252_v53 = vld [vmem:[#allocation2 + $0x14] sm:$0xf]  ;;  %v1169_v54 = vcombine.low %v249_v50, %v250_v51  ;;  %v248_v57 = vld [vmem:[#allocation2 + $0x4] sm:$0xf]  ;;  %v1186_v60 = vcombine.low %v247_v56, %v249_v50 }
  0x16   :  { %1371 = vmatprep.subr.bf16.mxu1 %v1447_v21  ;;  %v1187_v55 = vcombine.low %v249_v50, %v251_v52  ;;  %v1170_v58 = vcombine.low %v251_v52, %v252_v53  ;;  %v1168_v59 = vcombine.low %v247_v56, %v248_v57  ;;  %v253_v61 = vld [vmem:[#allocation2 + $0x18] sm:$0xf]  ;;  %v254_v62 = vld [vmem:[#allocation2 + $0x1c] sm:$0xf]  ;;  %v1658_v63 = vld [vmem:[#allocation2 + $0x20] sm:$0xf] }
  0x17   :  { %v381_v0 = vshrl.u32 %v1169_v54, 16  ;;  %v383_v1 = vshll.u32 %v1169_v54, 16  ;;  %v256_v2 = vld [vmem:[#allocation2 + $0x24] sm:$0xf]  ;;  %v1171_v3 = vcombine.low %v253_v61, %v254_v62  ;;  %v1191_v4 = vcombine.low %v253_v61, %v1658_v63  ;;  %v1661_v5 = vld [vmem:[#allocation2 + $0x28] sm:$0xf] }
  0x18   :  { %1308 = vmatpush3.bf16.msra.mxu0 %v1448_v22  ;;  %869 = vmatprep.mubr.bf16.mxu0 %v1187_v55  ;;  %v388_v6 = vshrl.u32 %v1170_v58, 16  ;;  %v390_v7 = vshll.u32 %v1170_v58, 16  ;;  %v376_v8 = vshll.u32 %v1168_v59, 16  ;;  %v374_v9 = vshrl.u32 %v1168_v59, 16  ;;  %v258_v10 = vld [vmem:[#allocation2 + $0x2c] sm:$0xf] }
  0x19   :  { %1372 = vmatpush3.bf16.msra.mxu1 %v1449_v23  ;;  %1309 = vmatprep.subr.bf16.mxu0 %v1450_v24  ;;  %v385_v11 = vrot.slane %v383_v1, 1  ;;  %v1172_v12 = vcombine.low %v1658_v63, %v256_v2  ;;  %v395_v13 = vshrl.u32 %v1171_v3, 16  ;;  %v397_v14 = vshll.u32 %v1171_v3, 16  ;;  %v1664_v15 = vld [vmem:[#allocation2 + $0x30] sm:$0xf] }
  0x1a   :  { %1373 = vmatprep.subr.bf16.mxu1 %v1451_v25  ;;  %v392_v16 = vrot.slane %v390_v7, 1  ;;  %v378_v17 = vrot.slane %v376_v8, 1  ;;  %v1190_v18 = vcombine.low %v251_v52, %v253_v61  ;;  %v260_v19 = vld [vmem:[#allocation2 + $0x34] sm:$0xf]  ;;  %v1173_v20 = vcombine.low %v1661_v5, %v258_v10  ;;  %v280_v36 = vld [vmem:[#allocation3 + $0x4] sm:$0xf] }
  0x1b   :  { %v386_v21 = vor.u32 %v385_v11, %v381_v0  ;;  %v399_v22 = vrot.slane %v397_v14, 1  ;;  %v402_v23 = vshrl.u32 %v1172_v12, 16  ;;  %v404_v24 = vshll.u32 %v1172_v12, 16  ;;  %v1675_v51 = vld [vmem:[#allocation2 + $0x48] sm:$0xf] }
  0x1c   :  { %1310 = vmatpush3.bf16.msra.mxu0 %v1452_v26  ;;  %v393_v25 = vor.u32 %v392_v16, %v388_v6  ;;  %v379_v26 = vor.u32 %v378_v17, %v374_v9  ;;  %v409_v34 = vshrl.u32 %v1173_v20, 16  ;;  %v411_v35 = vshll.u32 %v1173_v20, 16  ;;  %v266_v52 = vld [vmem:[#allocation2 + $0x4c] sm:$0xf]  ;;  %v1677_v53 = vld [vmem:[#allocation2 + $0x50] sm:$0xf] }
  0x1d   :  { %1374 = vmatpush3.bf16.msra.mxu1 %v1453_v27  ;;  %1311 = vmatprep.subr.bf16.mxu0 %v1454_v28  ;;  %v1174_v27 = vcombine.low %v1664_v15, %v260_v19  ;;  %v1195_v28 = vcombine.low %v1661_v5, %v1664_v15  ;;  %v400_v32 = vor.u32 %v399_v22, %v395_v13  ;;  %v406_v33 = vrot.slane %v404_v24, 1  ;;  %v268_v54 = vld [vmem:[#allocation2 + $0x54] sm:$0xf]  ;;  %v263_v3 = vld [vmem:[#allocation2 + $0x40] sm:$0xf] }
  0x1e   :  { %1375 = vmatprep.subr.bf16.mxu1 %v1455_v29  ;;  %v1670_v29 = vld [vmem:[#allocation2 + $0x38] sm:$0xf]  ;;  %v1189_v37 = vcombine.low %v386_v21, %v393_v25  ;;  %v1188_v38 = vcombine.low %v379_v26, %v386_v21  ;;  %v413_v42 = vrot.slane %v411_v35, 1  ;;  %v1194_v56 = vcombine.low %v1658_v63, %v1661_v5  ;;  %v264_v6 = vld [vmem:[#allocation2 + $0x44] sm:$0xf] }
  0x1f   :  { %v416_v39 = vshrl.u32 %v1174_v27, 16  ;;  %v418_v40 = vshll.u32 %v1174_v27, 16  ;;  %v407_v41 = vor.u32 %v406_v33, %v402_v23  ;;  %v1192_v55 = vcombine.low %v393_v25, %v400_v32  ;;  %v1685_v7 = vld [vmem:[#allocation2 + $0x58] sm:$0xf]  ;;  %v270_v8 = vld [vmem:[#allocation2 + $0x5c] sm:$0xf] }
  0x20   :  { %1312 = vmatpush3.bf16.msra.mxu0 %v1456_v30  ;;  %v262_v30 = vld [vmem:[#allocation2 + $0x3c] sm:$0xf]  ;;  %966 = vmatprep.mubr.bf16.mxu1 %v1189_v37  ;;  %v414_v47 = vor.u32 %v413_v42, %v409_v34  ;;  %v1178_v1 = vcombine.low %v1677_v53, %v268_v54  ;;  %v1687_v9 = vld [vmem:[#allocation2 + $0x60] sm:$0xf]  ;;  %v272_v10 = vld [vmem:[#allocation2 + $0x64] sm:$0xf]  ;;  %v1198_v12 = vcombine.low %v1664_v15, %v1670_v29 }
  0x21   :  { %1376 = vmatpush3.bf16.msra.mxu1 %v1457_v31  ;;  %v279_v31 = vld [vmem:[#allocation3] sm:$0xf]  ;;  %v420_v43 = vrot.slane %v418_v40, 1  ;;  %v1175_v44 = vcombine.low %v1670_v29, %v262_v30  ;;  %v1193_v46 = vcombine.low %v400_v32, %v407_v41  ;;  %v1203_v13 = vcombine.low %v1675_v51, %v1677_v53  ;;  %v273_v27 = vld [vmem:[#allocation2 + $0x68] sm:$0xf] }
  0x22   :  { %v1184_v45 = vcombine.low %v279_v31, %v280_v36  ;;  %v1199_v57 = vcombine.low %v1670_v29, %v279_v31  ;;  %v453_v5 = vshll.u32 %v1178_v1, 16  ;;  %v1196_v11 = vcombine.low %v407_v41, %v414_v47  ;;  %v275_v29 = vld [vmem:[#allocation2 + $0x70] sm:$0xf]  ;;  %v276_v30 = vld [vmem:[#allocation2 + $0x74] sm:$0xf] }
  0x23   :  { %870 = vmatmul.mubr.bf16.vlgmr.msra.gmra.mrb[0].mxu0 %v1186_v60  ;;  %v1673_v48 = vor.u32 %v420_v43, %v416_v39  ;;  %v425_v50 = vshll.u32 %v1175_v44, 16  ;;  %v423_v58 = vshrl.u32 %v1175_v44, 16  ;;  %v1177_v60 = vcombine.low %v1675_v51, %v266_v52 }
  0x24   :  { %877 = vmatprep.mubr.bf16.mxu0 %v1191_v4  ;;  %967 = vmatmul.mubr.bf16.vlgmr.msra.gmra.mrb[0].mxu1 %v1188_v38  ;;  %v432_v49 = vshll.u32 %v1184_v45, 16  ;;  %v430_v59 = vshrl.u32 %v1184_v45, 16  ;;  %v451_v17 = vshrl.u32 %v1178_v1, 16  ;;  %v455_v20 = vrot.slane %v453_v5, 1 }
  0x25   :  { %974 = vmatprep.mubr.bf16.mxu1 %v1193_v46  ;;  %v1197_v61 = vcombine.low %v414_v47, %v1673_v48  ;;  %v427_v62 = vrot.slane %v425_v50, 1  ;;  %v446_v2 = vshll.u32 %v1177_v60, 16  ;;  %v444_v14 = vshrl.u32 %v1177_v60, 16  ;;  %v281_v50 = vld [vmem:[#allocation3 + $0x8] sm:$0xf] }
  0x26   :  { %v434_v0 = vrot.slane %v432_v49, 1  ;;  %v1179_v21 = vcombine.low %v1685_v7, %v270_v8  ;;  %v1180_v22 = vcombine.low %v1687_v9, %v272_v10  ;;  %v456_v15 = vor.u32 %v455_v20, %v451_v17  ;;  %v278_v49 = vld [vmem:[#allocation2 + $0x7c] sm:$0xf] }
  0x27   :  { %v428_v4 = vor.u32 %v427_v62, %v423_v58  ;;  %v448_v16 = vrot.slane %v446_v2, 1  ;;  %v1202_v32 = vcombine.low %v263_v3, %v1675_v51  ;;  %v1207_v34 = vcombine.low %v1685_v7, %v1687_v9  ;;  %v282_v51 = vld [vmem:[#allocation3 + $0xc] sm:$0xf] }
  0x28   :  { %v435_v63 = vor.u32 %v434_v0, %v430_v59  ;;  %v460_v25 = vshll.u32 %v1179_v21, 16  ;;  %v467_v26 = vshll.u32 %v1180_v22, 16  ;;  %v458_v36 = vshrl.u32 %v1179_v21, 16 }
  0x29   :  { %v449_v24 = vor.u32 %v448_v16, %v444_v14  ;;  %v1200_v31 = vcombine.low %v1673_v48, %v428_v4  ;;  %v465_v37 = vshrl.u32 %v1180_v22, 16  ;;  %v1182_v42 = vcombine.low %v275_v29, %v276_v30  ;;  %v277_v48 = vld [vmem:[#allocation2 + $0x78] sm:$0xf] }
  0x2a   :  { %v1201_v19 = vcombine.low %v428_v4, %v435_v63  ;;  %v462_v40 = vrot.slane %v460_v25, 1  ;;  %v469_v41 = vrot.slane %v467_v26, 1  ;;  %v1206_v52 = vcombine.low %v1677_v53, %v1685_v7 }
  0x2b   :  { %878 = vmatmul.mubr.bf16.gmra.mrb[4].mxu0 %v1190_v18  ;;  %v1176_v18 = vcombine.low %v263_v3, %v264_v6  ;;  %v1205_v39 = vcombine.low %v449_v24, %v456_v15  ;;  %v481_v47 = vshll.u32 %v1182_v42, 16  ;;  %v1211_v54 = vcombine.low %v273_v27, %v275_v29 }
  0x2c   :  { %885 = vmatprep.mubr.bf16.mxu0 %v1195_v28  ;;  %975 = vmatmul.mubr.bf16.gmra.mrb[4].mxu1 %v1192_v55  ;;  %v274_v28 = vld [vmem:[#allocation2 + $0x6c] sm:$0xf]  ;;  %v463_v45 = vor.u32 %v462_v40, %v458_v36  ;;  %v470_v46 = vor.u32 %v469_v41, %v465_v37  ;;  %v479_v58 = vshrl.u32 %v1182_v42, 16  ;;  %v1185_v62 = vcombine.low %v281_v50, %v282_v51 }
  0x2d   :  { %982 = vmatprep.mubr.bf16.mxu1 %v1197_v61  ;;  %v439_v23 = vshll.u32 %v1176_v18, 16  ;;  %v437_v33 = vshrl.u32 %v1176_v18, 16  ;;  %v1181_v38 = vcombine.low %v273_v27, %v274_v28  ;;  %v483_v60 = vrot.slane %v481_v47, 1 }
  0x2e   :  { %v1209_v59 = vcombine.low %v463_v45, %v470_v46  ;;  %v1183_v61 = vcombine.low %v277_v48, %v278_v49  ;;  %v495_v2 = vshll.u32 %v1185_v62, 16  ;;  %v1210_v4 = vcombine.low %v1687_v9, %v273_v27 }
  0x2f   :  { %v441_v35 = vrot.slane %v439_v23, 1  ;;  %v474_v44 = vshll.u32 %v1181_v38, 16  ;;  %v484_v1 = vor.u32 %v483_v60, %v479_v58  ;;  %v1208_v53 = vcombine.low %v456_v15, %v463_v45 }
  0x30   :  { %v488_v3 = vshll.u32 %v1183_v61, 16  ;;  %v1215_v63 = vcombine.low %v277_v48, %v281_v50  ;;  %v486_v5 = vshrl.u32 %v1183_v61, 16  ;;  %v493_v8 = vshrl.u32 %v1185_v62, 16 }
  0x31   :  { %v442_v43 = vor.u32 %v441_v35, %v437_v33  ;;  %v497_v10 = vrot.slane %v495_v2, 1  ;;  %v1482_v17 = vmov 0.0   ;;  %v1031_v23 = vlaneseq }
  0x32   :  { %v490_v7 = vrot.slane %v488_v3, 1  ;;  %246 = vst [vmem:[%s1774_s4] sm:$0x3] %v1482_v17 }
  0x33   :  { %886 = vmatmul.mubr.bf16.gmra.mrb[8].mxu0 %v1194_v56  ;;  %v1204_v55 = vcombine.low %v442_v43, %v449_v24  ;;  %v472_v56 = vshrl.u32 %v1181_v38, 16  ;;  %v1705_v15 = vshrl.u32 %v1031_v23, 7 }
  0x34   :  { %893 = vmatprep.mubr.bf16.mxu0 %v1199_v57  ;;  %983 = vmatmul.mubr.bf16.gmra.mrb[8].mxu1 %v1196_v11  ;;  %v476_v57 = vrot.slane %v474_v44, 1  ;;  %v491_v11 = vor.u32 %v490_v7, %v486_v5 }
  0x35   :  { %990 = vmatprep.mubr.bf16.mxu1 %v1201_v19  ;;  %vm1033_vm0 = vcmp.lt.s32.totalorder %v1705_v15, 4 }
  0x36   :  { %v477_v0 = vor.u32 %v476_v57, %v472_v56  ;;  %v1216_v9 = vcombine.low %v484_v1, %v491_v11 }
  0x38   :  { %v1213_v6 = vcombine.low %v477_v0, %v484_v1  ;;  %v1212_v14 = vcombine.low %v470_v46, %v477_v0 }
  0x3b   :  { %894 = vmatmul.mubr.bf16.gmra.mrb[12].mxu0 %v1198_v12  ;;  %v498_v12 = vor.u32 %v497_v10, %v493_v8 }
  0x3c   :  { %901 = vmatprep.mubr.bf16.mxu0 %v1203_v13  ;;  %991 = vmatmul.mubr.bf16.gmra.mrb[12].mxu1 %v1200_v31  ;;  %v1214_v13 = vcombine.low %v275_v29, %v277_v48 }
  0x3d   :  { %998 = vmatprep.mubr.bf16.mxu1 %v1205_v39  ;;  %v1217_v16 = vcombine.low %v491_v11, %v498_v12 }
  0x43   :  { %902 = vmatmul.mubr.bf16.gmra.mrb[16].mxu0 %v1202_v32 }
  0x44   :  { %909 = vmatprep.mubr.bf16.mxu0 %v1207_v34  ;;  %999 = vmatmul.mubr.bf16.gmra.mrb[16].mxu1 %v1204_v55 }
  0x45   :  { %1006 = vmatprep.mubr.bf16.mxu1 %v1209_v59 }
  0x4b   :  { %910 = vmatmul.mubr.bf16.gmra.mrb[20].mxu0 %v1206_v52 }
  0x4c   :  { %917 = vmatprep.mubr.bf16.mxu0 %v1211_v54  ;;  %1007 = vmatmul.mubr.bf16.gmra.mrb[20].mxu1 %v1208_v53 }
  0x4d   :  { %1014 = vmatprep.mubr.bf16.mxu1 %v1213_v6 }
  0x53   :  { %918 = vmatmul.mubr.bf16.gmra.mrb[24].mxu0 %v1210_v4 }
  0x54   :  { %925 = vmatprep.mubr.bf16.mxu0 %v1215_v63  ;;  %1015 = vmatmul.mubr.bf16.gmra.mrb[24].mxu1 %v1212_v14 }
  0x55   :  { %1022 = vmatprep.mubr.bf16.mxu1 %v1217_v16 }
  0x5b   :  { %926 = vmatmul.mubr.bf16.gmra.mrb[28].mxu0 %v1214_v13 }
  0x5c   :  { %1023 = vmatmul.mubr.bf16.gmra.mrb[28].mxu1 %v1216_v9 }
  0xf6   :  { %v1313_v18 = vpop.f32.mrb[0].mxu0 }
  0xf7   :  { %v1314_v19 = vpop.f32.mrb[1].mxu0  ;;  %v1377_v26 = vpop.f32.mrb[0].mxu1 }
  0xf8   :  { %v1315_v20 = vadd.f32 %v1314_v19, %v1313_v18  ;;  %v1316_v21 = vpop.f32.mrb[2].mxu0  ;;  %v1378_v28 = vpop.f32.mrb[1].mxu1 }
  0xf9   :  { %v1317_v22 = vpop.f32.mrb[3].mxu0  ;;  %v1379_v31 = vadd.f32 %v1378_v28, %v1377_v26  ;;  %v1380_v32 = vpop.f32.mrb[2].mxu1 }
  0xfa   :  { %v1318_v24 = vadd.f32 %v1317_v22, %v1316_v21  ;;  %v1381_v34 = vpop.f32.mrb[3].mxu1 }
  0xfb   :  { %v969_v36 = vadd.f32 %v1379_v31, %v1315_v20  ;;  %v1382_v37 = vadd.f32 %v1381_v34, %v1380_v32 }
  0xfd   :  { %v1036_v38 = vsel %vm1033_vm0, %v969_v36, 0.0  ;;  %v972_v39 = vadd.f32 %v1382_v37, %v1318_v24 }
  0xfe   :  { %v1319_v25 = vpop.f32.mrb[4].mxu0  ;;  %v1105_v41 = vmul.f32 %v1036_v38, %v1036_v38 }
  0xff   :  { %v1320_v27 = vpop.f32.mrb[5].mxu0  ;;  %v1037_v42 = vsel %vm1033_vm0, %v972_v39, 0.0  ;;  %v1383_v43 = vpop.f32.mrb[4].mxu1 }
 0x100   :  { %v1321_v29 = vadd.f32 %v1320_v27, %v1319_v25  ;;  %v1322_v30 = vpop.f32.mrb[6].mxu0  ;;  %v1253_v45 = vpack.c.bf16 %v1037_v42, %v1036_v38  ;;  %v1084_v46 = vadd.f32 %v1037_v42, %v1036_v38  ;;  %v1106_v47 = vmul.f32 %v1037_v42, %v1037_v42  ;;  %v1384_v48 = vpop.f32.mrb[5].mxu1 }
 0x101   :  { %v1323_v33 = vpop.f32.mrb[7].mxu0  ;;  %v1385_v51 = vadd.f32 %v1384_v48, %v1383_v43  ;;  %v1386_v52 = vpop.f32.mrb[6].mxu1 }
 0x102   :  { %v1324_v35 = vadd.f32 %v1323_v33, %v1322_v30  ;;  %1254 = vst [vmem:[%s1773_s3] sm:$0xff] %v1253_v45   ;;  %v1121_v55 = vadd.f32 %v1106_v47, %v1105_v41  ;;  %v1387_v56 = vpop.f32.mrb[7].mxu1 }
 0x103   :  { %v977_v58 = vadd.f32 %v1385_v51, %v1321_v29  ;;  %v1388_v59 = vadd.f32 %v1387_v56, %v1386_v52 }
 0x105   :  { %v1038_v60 = vsel %vm1033_vm0, %v977_v58, 0.0  ;;  %v980_v61 = vadd.f32 %v1388_v59, %v1324_v35 }
 0x106   :  { %v1325_v40 = vpop.f32.mrb[8].mxu0  ;;  %v1085_v62 = vadd.f32 %v1084_v46, %v1038_v60  ;;  %v1107_v0 = vmul.f32 %v1038_v60, %v1038_v60 }
 0x107   :  { %v1326_v44 = vpop.f32.mrb[9].mxu0  ;;  %v1039_v2 = vsel %vm1033_vm0, %v980_v61, 0.0  ;;  %v1389_v3 = vpop.f32.mrb[8].mxu1 }
 0x108   :  { %v1327_v49 = vadd.f32 %v1326_v44, %v1325_v40  ;;  %v1328_v50 = vpop.f32.mrb[10].mxu0  ;;  %v1122_v53 = vadd.f32 %v1121_v55, %v1107_v0  ;;  %v1258_v63 = vpack.c.bf16 %v1039_v2, %v1038_v60  ;;  %v1086_v5 = vadd.f32 %v1085_v62, %v1039_v2  ;;  %v1390_v7 = vpop.f32.mrb[9].mxu1 }
 0x109   :  { %v1329_v54 = vpop.f32.mrb[11].mxu0  ;;  %v1108_v6 = vmul.f32 %v1039_v2, %v1039_v2  ;;  %v1391_v10 = vadd.f32 %v1390_v7, %v1389_v3  ;;  %v1392_v11 = vpop.f32.mrb[10].mxu1 }
 0x10a   :  { %v1330_v57 = vadd.f32 %v1329_v54, %v1328_v50  ;;  %1290 = vst [vmem:[%s1773_s3 + $0x8] sm:$0xff] %v1258_v63   ;;  %v1393_v16 = vpop.f32.mrb[11].mxu1 }
 0x10b   :  { %v1123_v14 = vadd.f32 %v1122_v53, %v1108_v6  ;;  %v985_v17 = vadd.f32 %v1391_v10, %v1327_v49  ;;  %v1394_v18 = vadd.f32 %v1393_v16, %v1392_v11 }
 0x10d   :  { %v1040_v19 = vsel %vm1033_vm0, %v985_v17, 0.0  ;;  %v988_v20 = vadd.f32 %v1394_v18, %v1330_v57 }
 0x10e   :  { %v1331_v1 = vpop.f32.mrb[12].mxu0  ;;  %v1087_v21 = vadd.f32 %v1086_v5, %v1040_v19  ;;  %v1109_v22 = vmul.f32 %v1040_v19, %v1040_v19 }
 0x10f   :  { %v1332_v4 = vpop.f32.mrb[13].mxu0  ;;  %v1041_v24 = vsel %vm1033_vm0, %v988_v20, 0.0  ;;  %v1395_v25 = vpop.f32.mrb[12].mxu1 }
 0x110   :  { %v1334_v8 = vpop.f32.mrb[14].mxu0  ;;  %v1333_v12 = vadd.f32 %v1332_v4, %v1331_v1  ;;  %v1124_v27 = vadd.f32 %v1123_v14, %v1109_v22  ;;  %v1263_v28 = vpack.c.bf16 %v1041_v24, %v1040_v19  ;;  %v1088_v29 = vadd.f32 %v1087_v21, %v1041_v24  ;;  %v1396_v31 = vpop.f32.mrb[13].mxu1 }
 0x111   :  { %v1335_v13 = vpop.f32.mrb[15].mxu0  ;;  %v1110_v30 = vmul.f32 %v1041_v24, %v1041_v24  ;;  %v1397_v33 = vadd.f32 %v1396_v31, %v1395_v25  ;;  %v1398_v34 = vpop.f32.mrb[14].mxu1 }
 0x112   :  { %v1336_v9 = vadd.f32 %v1335_v13, %v1334_v8  ;;  %1291 = vst [vmem:[%s1773_s3 + $0x10] sm:$0xff] %v1263_v28   ;;  %v1399_v38 = vpop.f32.mrb[15].mxu1 }
 0x113   :  { %v1125_v37 = vadd.f32 %v1124_v27, %v1110_v30  ;;  %v993_v40 = vadd.f32 %v1397_v33, %v1333_v12  ;;  %v1400_v41 = vadd.f32 %v1399_v38, %v1398_v34 }
 0x115   :  { %v1042_v42 = vsel %vm1033_vm0, %v993_v40, 0.0  ;;  %v996_v43 = vadd.f32 %v1400_v41, %v1336_v9 }
 0x116   :  { %v1337_v23 = vpop.f32.mrb[16].mxu0  ;;  %v1089_v44 = vadd.f32 %v1088_v29, %v1042_v42  ;;  %v1111_v45 = vmul.f32 %v1042_v42, %v1042_v42 }
 0x117   :  { %v1338_v26 = vpop.f32.mrb[17].mxu0  ;;  %v1043_v47 = vsel %vm1033_vm0, %v996_v43, 0.0  ;;  %v1401_v48 = vpop.f32.mrb[16].mxu1 }
 0x118   :  { %v1340_v32 = vpop.f32.mrb[18].mxu0  ;;  %v1339_v35 = vadd.f32 %v1338_v26, %v1337_v23  ;;  %v1126_v50 = vadd.f32 %v1125_v37, %v1111_v45  ;;  %v1268_v51 = vpack.c.bf16 %v1043_v47, %v1042_v42  ;;  %v1090_v52 = vadd.f32 %v1089_v44, %v1043_v47  ;;  %v1402_v55 = vpop.f32.mrb[17].mxu1 }
 0x119   :  { %v1341_v36 = vpop.f32.mrb[19].mxu0  ;;  %v1112_v54 = vmul.f32 %v1043_v47, %v1043_v47  ;;  %v1403_v57 = vadd.f32 %v1402_v55, %v1401_v48  ;;  %v1404_v58 = vpop.f32.mrb[18].mxu1 }
 0x11a   :  { %v1342_v39 = vadd.f32 %v1341_v36, %v1340_v32  ;;  %1292 = vst [vmem:[%s1773_s3 + $0x18] sm:$0xff] %v1268_v51   ;;  %v1405_v62 = vpop.f32.mrb[19].mxu1 }
 0x11b   :  { %v1127_v61 = vadd.f32 %v1126_v50, %v1112_v54  ;;  %v1001_v1 = vadd.f32 %v1403_v57, %v1339_v35  ;;  %v1406_v2 = vadd.f32 %v1405_v62, %v1404_v58 }
 0x11d   :  { %v1044_v3 = vsel %vm1033_vm0, %v1001_v1, 0.0  ;;  %v1004_v4 = vadd.f32 %v1406_v2, %v1342_v39 }
 0x11e   :  { %v1343_v46 = vpop.f32.mrb[20].mxu0  ;;  %v1091_v53 = vadd.f32 %v1090_v52, %v1044_v3  ;;  %v1113_v63 = vmul.f32 %v1044_v3, %v1044_v3 }
 0x11f   :  { %v1344_v49 = vpop.f32.mrb[21].mxu0  ;;  %v1045_v6 = vsel %vm1033_vm0, %v1004_v4, 0.0  ;;  %v1407_v7 = vpop.f32.mrb[20].mxu1 }
 0x120   :  { %v1346_v56 = vpop.f32.mrb[22].mxu0  ;;  %v1345_v59 = vadd.f32 %v1344_v49, %v1343_v46  ;;  %v1128_v10 = vadd.f32 %v1127_v61, %v1113_v63  ;;  %v1273_v11 = vpack.c.bf16 %v1045_v6, %v1044_v3  ;;  %v1092_v12 = vadd.f32 %v1091_v53, %v1045_v6  ;;  %v1408_v14 = vpop.f32.mrb[21].mxu1 }
 0x121   :  { %v1347_v60 = vpop.f32.mrb[23].mxu0  ;;  %v1114_v13 = vmul.f32 %v1045_v6, %v1045_v6  ;;  %v1409_v9 = vadd.f32 %v1408_v14, %v1407_v7  ;;  %v1410_v17 = vpop.f32.mrb[22].mxu1 }
 0x122   :  { %v1348_v0 = vadd.f32 %v1347_v60, %v1346_v56  ;;  %1293 = vst [vmem:[%s1773_s3 + $0x20] sm:$0xff] %v1273_v11   ;;  %v1411_v21 = vpop.f32.mrb[23].mxu1 }
 0x123   :  { %v1129_v20 = vadd.f32 %v1128_v10, %v1114_v13  ;;  %v1009_v23 = vadd.f32 %v1409_v9, %v1345_v59  ;;  %v1412_v24 = vadd.f32 %v1411_v21, %v1410_v17 }
 0x125   :  { %v1046_v25 = vsel %vm1033_vm0, %v1009_v23, 0.0  ;;  %v1012_v26 = vadd.f32 %v1412_v24, %v1348_v0  ;;  %v1142_v23 = vld [vmem:[%s1774_s4] sm:$0x3] }
 0x126   :  { %v1349_v5 = vpop.f32.mrb[24].mxu0  ;;  %v1093_v27 = vadd.f32 %v1092_v12, %v1046_v25  ;;  %v1115_v28 = vmul.f32 %v1046_v25, %v1046_v25 }
 0x127   :  { %v1350_v8 = vpop.f32.mrb[25].mxu0  ;;  %v1047_v30 = vsel %vm1033_vm0, %v1012_v26, 0.0  ;;  %v1413_v31 = vpop.f32.mrb[24].mxu1 }
 0x128   :  { %v1352_v16 = vpop.f32.mrb[26].mxu0  ;;  %v1351_v18 = vadd.f32 %v1350_v8, %v1349_v5  ;;  %v1130_v33 = vadd.f32 %v1129_v20, %v1115_v28  ;;  %v1278_v34 = vpack.c.bf16 %v1047_v30, %v1046_v25  ;;  %v1094_v35 = vadd.f32 %v1093_v27, %v1047_v30  ;;  %v1414_v37 = vpop.f32.mrb[25].mxu1 }
 0x129   :  { %v1353_v19 = vpop.f32.mrb[27].mxu0  ;;  %v1116_v36 = vmul.f32 %v1047_v30, %v1047_v30  ;;  %v1415_v39 = vadd.f32 %v1414_v37, %v1413_v31  ;;  %v1416_v40 = vpop.f32.mrb[26].mxu1 }
 0x12a   :  { %v1354_v22 = vadd.f32 %v1353_v19, %v1352_v16  ;;  %1294 = vst [vmem:[%s1773_s3 + $0x28] sm:$0xff] %v1278_v34   ;;  %v1417_v44 = vpop.f32.mrb[27].mxu1 }
 0x12b   :  { %v1131_v43 = vadd.f32 %v1130_v33, %v1116_v36  ;;  %v1017_v46 = vadd.f32 %v1415_v39, %v1351_v18  ;;  %v1418_v47 = vadd.f32 %v1417_v44, %v1416_v40 }
 0x12d   :  { %v1048_v48 = vsel %vm1033_vm0, %v1017_v46, 0.0  ;;  %v1020_v49 = vadd.f32 %v1418_v47, %v1354_v22 }
 0x12e   :  { %v1355_v29 = vpop.f32.mrb[28].mxu0  ;;  %v1095_v50 = vadd.f32 %v1094_v35, %v1048_v48  ;;  %v1117_v51 = vmul.f32 %v1048_v48, %v1048_v48 }
 0x12f   :  { %v1356_v32 = vpop.f32.mrb[29].mxu0  ;;  %v1049_v52 = vsel %vm1033_vm0, %v1020_v49, 0.0  ;;  %v1419_v54 = vpop.f32.mrb[28].mxu1 }
 0x130   :  { %v1358_v38 = vpop.f32.mrb[30].mxu0  ;;  %v1357_v41 = vadd.f32 %v1356_v32, %v1355_v29  ;;  %v1132_v55 = vadd.f32 %v1131_v43, %v1117_v51  ;;  %v1283_v56 = vpack.c.bf16 %v1049_v52, %v1048_v48  ;;  %v1096_v57 = vadd.f32 %v1095_v50, %v1049_v52  ;;  %v1420_v59 = vpop.f32.mrb[29].mxu1 }
 0x131   :  { %v1359_v42 = vpop.f32.mrb[31].mxu0  ;;  %v1118_v58 = vmul.f32 %v1049_v52, %v1049_v52  ;;  %v1421_v60 = vadd.f32 %v1420_v59, %v1419_v54  ;;  %v1422_v61 = vpop.f32.mrb[30].mxu1 }
 0x132   :  { %v1360_v45 = vadd.f32 %v1359_v42, %v1358_v38  ;;  %1295 = vst [vmem:[%s1773_s3 + $0x30] sm:$0xff] %v1283_v56   ;;  %v1423_v0 = vpop.f32.mrb[31].mxu1 }
 0x133   :  { %v1133_v62 = vadd.f32 %v1132_v55, %v1118_v58  ;;  %v1025_v1 = vadd.f32 %v1421_v60, %v1357_v41  ;;  %v1424_v2 = vadd.f32 %v1423_v0, %v1422_v61 }
 0x135   :  { %v1050_v3 = vsel %vm1033_vm0, %v1025_v1, 0.0  ;;  %v1028_v4 = vadd.f32 %v1424_v2, %v1360_v45 }
 0x136   :  { %v1097_v53 = vadd.f32 %v1096_v57, %v1050_v3  ;;  %v1119_v63 = vmul.f32 %v1050_v3, %v1050_v3 }
 0x137   :  { %v1051_v5 = vsel %vm1033_vm0, %v1028_v4, 0.0 }
 0x138   :  { %v1134_v6 = vadd.f32 %v1133_v62, %v1119_v63  ;;  %v1288_v7 = vpack.c.bf16 %v1051_v5, %v1050_v3  ;;  %v1098_v8 = vadd.f32 %v1097_v53, %v1051_v5  ;;  %v1120_v10 = vmul.f32 %v1051_v5, %v1051_v5 }
 0x13a   :  { %1296 = vst [vmem:[%s1773_s3 + $0x38] sm:$0xff] %v1288_v7   ;;  %v1099_v11 = vrot.slane %v1098_v8, 4  ;;  %v1135_v12 = vadd.f32 %v1134_v6, %v1120_v10 }
 0x13c   :  { %v1100_v13 = vadd.f32 %v1099_v11, %v1098_v8  ;;  %v1136_v14 = vrot.slane %v1135_v12, 4 }
 0x13e   :  { %v1101_v16 = vrot.slane %v1100_v13, 2  ;;  %v1137_v9 = vadd.f32 %v1136_v14, %v1135_v12 }
 0x140   :  { %v1102_v17 = vadd.f32 %v1101_v16, %v1100_v13  ;;  %v1138_v18 = vrot.slane %v1137_v9, 2 }
 0x142   :  { %v1103_v19 = vrot.slane %v1102_v17, 1  ;;  %v1139_v20 = vadd.f32 %v1138_v18, %v1137_v9 }
 0x144   :  { %v1140_v15 = vrot.slane %v1139_v20, 1  ;;  %v1104_v21 = vadd.f32 %v1103_v19, %v1102_v17 }
 0x146   :  { %v1141_v22 = vadd.f32 %v1140_v15, %v1139_v20 }
 0x148   :  { %v1144_v24 = vsel %vm1143_vm1, %v1104_v21, %v1141_v22 }
 0x149   :  { %v1145_v25 = vadd.f32 %v1144_v24, %v1142_v23 }
 0x14b   :  { %1146 = vst [vmem:[%s1774_s4] sm:$0x3] %v1145_v25 }

// kernel: discriminator_forward.17
= control target key start
LH: loop header
LB: loop body
LE: loop exit
PB: predicated region body
PF: predicated region fallthrough
CT: control target
= control target key end

     0   :  { %s198_s0 = inlined_call_operand.vmem [shape: bf16[2,4,8,128], index: 0, kind: input, shape index: {}]   ;;  %s199_s1 = inlined_call_operand.vmem [shape: f32[1,128], index: 1, kind: input, shape index: {}]   ;;  %s200_s2 = inlined_call_operand.vmem [shape: f32[1,128], index: 2, kind: input, shape index: {}]   ;;  %s201_s3 = inlined_call_operand.vmem [shape: bf16[2,4,8,128], index: 3, kind: output, shape index: {}]  }
   0x1   :  { %v107_v0 = vld [vmem:[%s198_s0] sm:$0xff]   ;;  %v142_v4 = vld [vmem:[%s198_s0 + $0x8] sm:$0xff]   ;;  %v143_v5 = vld [vmem:[%s198_s0 + $0x10] sm:$0xff]  }
   0x2   :  { %v104_v1 = vld [vmem:[%s199_s1] ss:$0 sm:$0xff]  ;;  %v108_v2 = vunpack.c.l.bf16 %v107_v0  ;;  %v109_v3 = vunpack.c.h.bf16 %v107_v0  ;;  %v144_v6 = vld [vmem:[%s198_s0 + $0x18] sm:$0xff]   ;;  %v112_v8 = vunpack.c.l.bf16 %v142_v4  ;;  %v113_v9 = vunpack.c.h.bf16 %v142_v4 }
   0x3   :  { %v105_v7 = vld [vmem:[%s200_s2] ss:$0 sm:$0xff]  ;;  %v116_v10 = vunpack.c.l.bf16 %v143_v5  ;;  %v117_v11 = vunpack.c.h.bf16 %v143_v5  ;;  %v120_v14 = vunpack.c.l.bf16 %v144_v6  ;;  %v121_v15 = vunpack.c.h.bf16 %v144_v6 }
   0x4   :  { %v37_v12 = vmul.f32 %v108_v2, %v104_v1  ;;  %v38_v13 = vmul.f32 %v109_v3, %v104_v1  ;;  %v39_v16 = vmul.f32 %v112_v8, %v104_v1  ;;  %v40_v17 = vmul.f32 %v113_v9, %v104_v1 }
   0x5   :  { %v41_v18 = vmul.f32 %v116_v10, %v104_v1  ;;  %v42_v19 = vmul.f32 %v117_v11, %v104_v1  ;;  %v43_v22 = vmul.f32 %v120_v14, %v104_v1  ;;  %v44_v23 = vmul.f32 %v121_v15, %v104_v1 }
   0x6   :  { %v52_v20 = vadd.f32 %v105_v7, %v37_v12  ;;  %v53_v21 = vadd.f32 %v105_v7, %v38_v13  ;;  %v54_v24 = vadd.f32 %v105_v7, %v39_v16  ;;  %v55_v25 = vadd.f32 %v105_v7, %v40_v17 }
   0x7   :  { %v56_v26 = vadd.f32 %v105_v7, %v41_v18  ;;  %v57_v27 = vadd.f32 %v105_v7, %v42_v19  ;;  %v58_v40 = vadd.f32 %v105_v7, %v43_v22  ;;  %v59_v41 = vadd.f32 %v105_v7, %v44_v23 }
   0x8   :  { %vm60_vm0 = vcmp.ge.f32.partialorder %v52_v20, 0.0  ;;  %vm61_vm1 = vcmp.ge.f32.partialorder %v53_v21, 0.0  ;;  %v68_v28 = vmul.f32 0.2, %v52_v20  ;;  %v69_v29 = vmul.f32 0.2, %v53_v21 }
   0x9   :  { %vm62_vm2 = vcmp.ge.f32.partialorder %v54_v24, 0.0  ;;  %vm63_vm3 = vcmp.ge.f32.partialorder %v55_v25, 0.0  ;;  %v70_v30 = vmul.f32 0.2, %v54_v24  ;;  %v71_v31 = vmul.f32 0.2, %v55_v25 }
   0xa   :  { %v76_v32 = vsel %vm60_vm0, %v52_v20, %v68_v28  ;;  %v77_v33 = vsel %vm61_vm1, %v53_v21, %v69_v29  ;;  %vm64_vm4 = vcmp.ge.f32.partialorder %v56_v26, 0.0  ;;  %vm65_vm5 = vcmp.ge.f32.partialorder %v57_v27, 0.0 }
   0xb   :  { %v125_v34 = vpack.c.bf16 %v77_v33, %v76_v32  ;;  %v78_v35 = vsel %vm62_vm2, %v54_v24, %v70_v30  ;;  %v79_v36 = vsel %vm63_vm3, %v55_v25, %v71_v31  ;;  %v72_v37 = vmul.f32 0.2, %v56_v26 }
   0xc   :  { %v130_v38 = vpack.c.bf16 %v79_v36, %v78_v35  ;;  %v73_v39 = vmul.f32 0.2, %v57_v27  ;;  %vm66_vm6 = vcmp.ge.f32.partialorder %v58_v40, 0.0  ;;  %vm67_vm7 = vcmp.ge.f32.partialorder %v59_v41, 0.0 }
   0xd   :  { %126 = vst [vmem:[%s201_s3] sm:$0xff] %v125_v34   ;;  %v80_v42 = vsel %vm64_vm4, %v56_v26, %v72_v37  ;;  %v74_v44 = vmul.f32 0.2, %v58_v40  ;;  %v75_v46 = vmul.f32 0.2, %v59_v41 }
   0xe   :  { %145 = vst [vmem:[%s201_s3 + $0x8] sm:$0xff] %v130_v38   ;;  %v81_v43 = vsel %vm65_vm5, %v57_v27, %v73_v39 }
   0xf   :  { %v135_v45 = vpack.c.bf16 %v81_v43, %v80_v42  ;;  %v82_v47 = vsel %vm66_vm6, %v58_v40, %v74_v44  ;;  %v83_v48 = vsel %vm67_vm7, %v59_v41, %v75_v46 }
  0x10   :  { %v140_v49 = vpack.c.bf16 %v83_v48, %v82_v47 }
  0x11   :  { %146 = vst [vmem:[%s201_s3 + $0x10] sm:$0xff] %v135_v45  }
  0x12   :  { %147 = vst [vmem:[%s201_s3 + $0x18] sm:$0xff] %v140_v49  }

// kernel: discriminator_forward.16
= control target key start
LH: loop header
LB: loop body
LE: loop exit
PB: predicated region body
PF: predicated region fallthrough
CT: control target
= control target key end

     0   :  { %vm1329_vm1 = vcmask 1040384   ;;  %s2158_s0 = inlined_call_operand.vmem [shape: bf16[2,5,16,256], index: 0, kind: input, shape index: {}, may-alias: {0,1}]   ;;  %s2159_s1 = inlined_call_operand.vmem [shape: bf16[2,5,16,256], index: 1, kind: input, shape index: {}, may-alias: {0,1}]   ;;  %s2160_s2 = inlined_call_operand.vmem [shape: bf16[1024,128], index: 2, kind: input, shape index: {}]   ;;  %s2161_s3 = inlined_call_operand.vmem [shape: bf16[2,4,8,128], index: 3, kind: output, shape index: {0}]   ;;  %s2162_s4 = inlined_call_operand.vmem [shape: f32[1,2,128], index: 4, kind: output, shape index: {1}]  }
   0x1   :  { %v1654_v0 = vld [vmem:[%s2160_s2 + $0x40] sm:$0xff]   ;;  %v1658_v4 = vld [vmem:[%s2160_s2 + $0x48] sm:$0xff]   ;;  %v1662_v8 = vld [vmem:[%s2160_s2 + $0x50] sm:$0xff]  }
   0x2   :  { %v1655_v1 = vld [vmem:[%s2160_s2 + $0xc0] sm:$0xff]   ;;  %1493 = vmatprep.subr.bf16.mxu0 %v1654_v0  ;;  %v1659_v5 = vld [vmem:[%s2160_s2 + $0xc8] sm:$0xff]   ;;  %v1663_v9 = vld [vmem:[%s2160_s2 + $0xd0] sm:$0xff]  }
   0x3   :  { %v1656_v2 = vld [vmem:[%s2160_s2] sm:$0xff]   ;;  %1533 = vmatprep.subr.bf16.mxu1 %v1655_v1  ;;  %v1660_v6 = vld [vmem:[%s2160_s2 + $0x8] sm:$0xff]   ;;  %v1664_v10 = vld [vmem:[%s2160_s2 + $0x10] sm:$0xff]  }
   0x4   :  { %v1657_v3 = vld [vmem:[%s2160_s2 + $0x80] sm:$0xff]   ;;  %1494 = vmatpush3.bf16.msra.mxu0 %v1656_v2  ;;  %v1661_v7 = vld [vmem:[%s2160_s2 + $0x88] sm:$0xff]   ;;  %v1665_v11 = vld [vmem:[%s2160_s2 + $0x90] sm:$0xff]  }
   0x5   :  { %1534 = vmatpush3.bf16.msra.mxu1 %v1657_v3  ;;  %1495 = vmatprep.subr.bf16.mxu0 %v1658_v4  ;;  %v1666_v12 = vld [vmem:[%s2160_s2 + $0x58] sm:$0xff]   ;;  %v1670_v16 = vld [vmem:[%s2160_s2 + $0x60] sm:$0xff]   ;;  %v1674_v20 = vld [vmem:[%s2160_s2 + $0x68] sm:$0xff]  }
   0x6   :  { %1535 = vmatprep.subr.bf16.mxu1 %v1659_v5  ;;  %v1667_v13 = vld [vmem:[%s2160_s2 + $0xd8] sm:$0xff]   ;;  %v1671_v17 = vld [vmem:[%s2160_s2 + $0xe0] sm:$0xff]   ;;  %v1675_v21 = vld [vmem:[%s2160_s2 + $0xe8] sm:$0xff]  }
   0x7   :  { %v1668_v14 = vld [vmem:[%s2160_s2 + $0x18] sm:$0xff]   ;;  %v1672_v18 = vld [vmem:[%s2160_s2 + $0x20] sm:$0xff]   ;;  %v1676_v22 = vld [vmem:[%s2160_s2 + $0x28] sm:$0xff]  }
   0x8   :  { %1496 = vmatpush3.bf16.msra.mxu0 %v1660_v6  ;;  %v1669_v15 = vld [vmem:[%s2160_s2 + $0x98] sm:$0xff]   ;;  %v1673_v19 = vld [vmem:[%s2160_s2 + $0xa0] sm:$0xff]   ;;  %v1677_v23 = vld [vmem:[%s2160_s2 + $0xa8] sm:$0xff]  }
   0x9   :  { %1536 = vmatpush3.bf16.msra.mxu1 %v1661_v7  ;;  %1497 = vmatprep.subr.bf16.mxu0 %v1662_v8  ;;  %v1678_v24 = vld [vmem:[%s2160_s2 + $0x70] sm:$0xff]   ;;  %v1682_v28 = vld [vmem:[%s2160_s2 + $0x78] sm:$0xff]   ;;  %v1875_v32 = vld [vmem:[%s2158_s0] sm:$0xff] }
   0xa   :  { %1537 = vmatprep.subr.bf16.mxu1 %v1663_v9  ;;  %v1679_v25 = vld [vmem:[%s2160_s2 + $0xf0] sm:$0xff]   ;;  %v1683_v29 = vld [vmem:[%s2160_s2 + $0xf8] sm:$0xff]   ;;  %v1887_v35 = vld [vmem:[%s2158_s0 + $0x20] sm:$0xff] }
   0xb   :  { %v1680_v26 = vld [vmem:[%s2160_s2 + $0x30] sm:$0xff]   ;;  %v1684_v30 = vld [vmem:[%s2160_s2 + $0x38] sm:$0xff]   ;;  %v1692_v39 = vld [vmem:[%s2160_s2 + $0x140] sm:$0xff]  }
   0xc   :  { %1498 = vmatpush3.bf16.msra.mxu0 %v1664_v10  ;;  %v1681_v27 = vld [vmem:[%s2160_s2 + $0xb0] sm:$0xff]   ;;  %v1685_v31 = vld [vmem:[%s2160_s2 + $0xb8] sm:$0xff]   ;;  %v1693_v40 = vld [vmem:[%s2160_s2 + $0x1c0] sm:$0xff]  }
   0xd   :  { %1538 = vmatpush3.bf16.msra.mxu1 %v1665_v11  ;;  %1499 = vmatprep.subr.bf16.mxu0 %v1666_v12  ;;  %v1880_v33 = vld [vmem:[%s2158_s0 + $0x10] sm:$0xff]  ;;  %v1694_v41 = vld [vmem:[%s2160_s2 + $0x100] sm:$0xff]   ;;  %v1696_v43 = vld [vmem:[%s2160_s2 + $0x148] sm:$0xff]  }
   0xe   :  { %1539 = vmatprep.subr.bf16.mxu1 %v1667_v13  ;;  %v1375_v34 = vcombine.high %v1875_v32, %v1880_v33  ;;  %v1374_v36 = vcombine.low %v1875_v32, %v1880_v33  ;;  %v1377_v37 = vcombine.high %v1880_v33, %v1887_v35  ;;  %v1376_v38 = vcombine.low %v1880_v33, %v1887_v35  ;;  %v1695_v42 = vld [vmem:[%s2160_s2 + $0x180] sm:$0xff]   ;;  %v1697_v44 = vld [vmem:[%s2160_s2 + $0x1c8] sm:$0xff]   ;;  %v1922_v47 = vld [vmem:[%s2158_s0 + $0x30] sm:$0xff] }
   0xf   :  { %v1698_v45 = vld [vmem:[%s2160_s2 + $0x108] sm:$0xff]   ;;  %v1927_v48 = vld [vmem:[%s2159_s1 + $0x40] sm:$0xff]  ;;  %v1383_v49 = vcombine.high %v1887_v35, %v1922_v47  ;;  %v1382_v51 = vcombine.low %v1887_v35, %v1922_v47  ;;  %v1702_v53 = vld [vmem:[%s2160_s2 + $0x150] sm:$0xff]  }
  0x10   :  { %1500 = vmatpush3.bf16.msra.mxu0 %v1668_v14  ;;  %1037 = vmatprep.mubr.bf16.mxu0 %v1375_v34  ;;  %v1699_v46 = vld [vmem:[%s2160_s2 + $0x188] sm:$0xff]   ;;  %v1385_v50 = vcombine.high %v1922_v47, %v1927_v48  ;;  %v1384_v52 = vcombine.low %v1922_v47, %v1927_v48  ;;  %v1703_v54 = vld [vmem:[%s2160_s2 + $0x1d0] sm:$0xff]   ;;  %v1706_v57 = vld [vmem:[%s2160_s2 + $0x158] sm:$0xff]  }
  0x11   :  { %1540 = vmatpush3.bf16.msra.mxu1 %v1669_v15  ;;  %1501 = vmatprep.subr.bf16.mxu0 %v1670_v16  ;;  %v1704_v55 = vld [vmem:[%s2160_s2 + $0x110] sm:$0xff]   ;;  %v1707_v58 = vld [vmem:[%s2160_s2 + $0x1d8] sm:$0xff]   ;;  %v71_v60 = vld [vmem:[%s2158_s0 + $0x8] sm:$0xff] }
  0x12   :  { %1541 = vmatprep.subr.bf16.mxu1 %v1671_v17  ;;  %1102 = vmatprep.mubr.bf16.mxu1 %v1377_v37  ;;  %v1705_v56 = vld [vmem:[%s2160_s2 + $0x190] sm:$0xff]   ;;  %v1708_v59 = vld [vmem:[%s2160_s2 + $0x118] sm:$0xff]   ;;  %v1972_v63 = vld [vmem:[%s2158_s0 + $0x60] sm:$0xff]  ;;  %v1354_v8 = vcombine.low %v1875_v32, %v71_v60  ;;  %v1355_v11 = vcombine.high %v1875_v32, %v71_v60 }
  0x13   :  { %v1709_v61 = vld [vmem:[%s2160_s2 + $0x198] sm:$0xff]   ;;  %v1967_v62 = vld [vmem:[%s2158_s0 + $0x50] sm:$0xff]  ;;  %v1714_v4 = vld [vmem:[%s2160_s2 + $0x160] sm:$0xff]  }
  0x14   :  { %1502 = vmatpush3.bf16.msra.mxu0 %v1672_v18  ;;  %v1977_v0 = vld [vmem:[%s2158_s0 + $0x70] sm:$0xff]  ;;  %v1391_v1 = vcombine.high %v1967_v62, %v1972_v63  ;;  %v1390_v3 = vcombine.low %v1967_v62, %v1972_v63  ;;  %v1715_v6 = vld [vmem:[%s2160_s2 + $0x1e0] sm:$0xff]   ;;  %v1718_v10 = vld [vmem:[%s2160_s2 + $0x168] sm:$0xff]   ;;  %v272_v14 = vshll.u32 %v1354_v8, 16 }
  0x15   :  { %1542 = vmatpush3.bf16.msra.mxu1 %v1673_v19  ;;  %1503 = vmatprep.subr.bf16.mxu0 %v1674_v20  ;;  %v1393_v2 = vcombine.high %v1972_v63, %v1977_v0  ;;  %v1392_v5 = vcombine.low %v1972_v63, %v1977_v0  ;;  %v1716_v7 = vld [vmem:[%s2160_s2 + $0x120] sm:$0xff]   ;;  %v1719_v12 = vld [vmem:[%s2160_s2 + $0x1e8] sm:$0xff]   ;;  %v2021_v17 = vld [vmem:[%s2159_s1 + $0x90] sm:$0xff] }
  0x16   :  { %1543 = vmatprep.subr.bf16.mxu1 %v1675_v21  ;;  %v1717_v9 = vld [vmem:[%s2160_s2 + $0x1a0] sm:$0xff]   ;;  %v1720_v13 = vld [vmem:[%s2160_s2 + $0x128] sm:$0xff]   ;;  %v1724_v21 = vld [vmem:[%s2160_s2 + $0x170] sm:$0xff]  }
  0x17   :  { %v1721_v15 = vld [vmem:[%s2160_s2 + $0x1a8] sm:$0xff]   ;;  %v2016_v16 = vld [vmem:[%s2158_s0 + $0x80] sm:$0xff]  ;;  %v1729_v32 = vld [vmem:[%s2160_s2 + $0x1f8] sm:$0xff]  }
  0x18   :  { %1504 = vmatpush3.bf16.msra.mxu0 %v1676_v22  ;;  %v1399_v18 = vcombine.high %v1977_v0, %v2016_v16  ;;  %v1401_v19 = vcombine.high %v2016_v16, %v2021_v17  ;;  %v1398_v20 = vcombine.low %v1977_v0, %v2016_v16  ;;  %v279_v22 = vshll.u32 %v1355_v11, 16  ;;  %v1730_v34 = vld [vmem:[%s2160_s2 + $0x138] sm:$0xff]  }
  0x19   :  { %1544 = vmatpush3.bf16.msra.mxu1 %v1677_v23  ;;  %1505 = vmatprep.subr.bf16.mxu0 %v1678_v24  ;;  %v270_v23 = vshrl.u32 %v1354_v8, 16  ;;  %v1400_v24 = vcombine.low %v2016_v16, %v2021_v17  ;;  %v75_v37 = vld [vmem:[%s2158_s0 + $0x18] sm:$0xff] }
  0x1a   :  { %1545 = vmatprep.subr.bf16.mxu1 %v1679_v25  ;;  %v1725_v25 = vld [vmem:[%s2160_s2 + $0x1f0] sm:$0xff]  }
  0x1c   :  { %1506 = vmatpush3.bf16.msra.mxu0 %v1680_v26  ;;  %v274_v26 = vrot.slane %v272_v14, 1 }
  0x1d   :  { %1546 = vmatpush3.bf16.msra.mxu1 %v1681_v27  ;;  %1507 = vmatprep.subr.bf16.mxu0 %v1682_v28  ;;  %v1726_v27 = vld [vmem:[%s2160_s2 + $0x130] sm:$0xff]  }
  0x1e   :  { %1547 = vmatprep.subr.bf16.mxu1 %v1683_v29  ;;  %v1727_v28 = vld [vmem:[%s2160_s2 + $0x1b0] sm:$0xff]   ;;  %v277_v29 = vshrl.u32 %v1355_v11, 16  ;;  %v87_v11 = vld [vmem:[%s2158_s0 + $0x58] sm:$0xff] }
  0x20   :  { %1508 = vmatpush3.bf16.msra.mxu0 %v1684_v30  ;;  %v1728_v30 = vld [vmem:[%s2160_s2 + $0x178] sm:$0xff]  }
  0x21   :  { %1548 = vmatpush3.bf16.msra.mxu1 %v1685_v31  ;;  %1573 = vmatprep.subr.bf16.mxu0 %v1692_v39  ;;  %v281_v31 = vrot.slane %v279_v22, 1  ;;  %v1356_v39 = vcombine.low %v1880_v33, %v75_v37 }
  0x22   :  { %1613 = vmatprep.subr.bf16.mxu1 %v1693_v40  ;;  %v1357_v40 = vcombine.high %v1880_v33, %v75_v37 }
  0x23   :  { %1038 = vmatmul.mubr.bf16.vlgmr.msra.gmra.mrb[0].mxu0 %v1374_v36  ;;  %v1731_v36 = vld [vmem:[%s2160_s2 + $0x1b8] sm:$0xff]  }
  0x24   :  { %1103 = vmatmul.mubr.bf16.vlgmr.msra.gmra.mrb[0].mxu1 %v1376_v38  ;;  %1574 = vmatpush3.bf16.msra.mxu0 %v1694_v41  ;;  %v275_v38 = vor.u32 %v274_v26, %v270_v23  ;;  %v282_v41 = vor.u32 %v281_v31, %v277_v29  ;;  %v291_v33 = vshrl.u32 %v1357_v40, 16 }
  0x25   :  { %1614 = vmatpush3.bf16.msra.mxu1 %v1695_v42  ;;  %1575 = vmatprep.subr.bf16.mxu0 %v1696_v43  ;;  %v79_v42 = vld [vmem:[%s2158_s0 + $0x28] sm:$0xff]  ;;  %v83_v43 = vld [vmem:[%s2158_s0 + $0x38] sm:$0xff] }
  0x26   :  { %1615 = vmatprep.subr.bf16.mxu1 %v1697_v44  ;;  %1045 = vmatprep.mubr.bf16.mxu0 %v1383_v49  ;;  %v1358_v44 = vcombine.low %v1887_v35, %v79_v42  ;;  %v284_v49 = vshrl.u32 %v1356_v39, 16 }
  0x27   :  { %1110 = vmatprep.mubr.bf16.mxu1 %v1385_v50  ;;  %v286_v50 = vshll.u32 %v1356_v39, 16 }
  0x28   :  { %1576 = vmatpush3.bf16.msra.mxu0 %v1698_v45  ;;  %v1359_v45 = vcombine.high %v1887_v35, %v79_v42 }
  0x29   :  { %1616 = vmatpush3.bf16.msra.mxu1 %v1699_v46  ;;  %1577 = vmatprep.subr.bf16.mxu0 %v1702_v53  ;;  %v1361_v46 = vcombine.high %v1922_v47, %v83_v43  ;;  %v298_v53 = vshrl.u32 %v1358_v44, 16 }
  0x2a   :  { %1617 = vmatprep.subr.bf16.mxu1 %v1703_v54  ;;  %v300_v54 = vshll.u32 %v1358_v44, 16 }
  0x2b   :  { %1046 = vmatmul.mubr.bf16.gmra.mrb[4].mxu0 %v1382_v51  ;;  %v293_v51 = vshll.u32 %v1357_v40, 16  ;;  %v321_v60 = vshll.u32 %v1361_v46, 16 }
  0x2c   :  { %1111 = vmatmul.mubr.bf16.gmra.mrb[4].mxu1 %v1384_v52  ;;  %1578 = vmatpush3.bf16.msra.mxu0 %v1704_v55  ;;  %v1351_v52 = vld [vmem:[%s2159_s1 + $0x48] sm:$0xff]  ;;  %v305_v55 = vshrl.u32 %v1359_v45, 16 }
  0x2d   :  { %1618 = vmatpush3.bf16.msra.mxu1 %v1705_v56  ;;  %1579 = vmatprep.subr.bf16.mxu0 %v1706_v57  ;;  %v307_v56 = vshll.u32 %v1359_v45, 16  ;;  %v288_v57 = vrot.slane %v286_v50, 1  ;;  %v99_v50 = vld [vmem:[%s2158_s0 + $0x88] sm:$0xff] }
  0x2e   :  { %1619 = vmatprep.subr.bf16.mxu1 %v1707_v58  ;;  %1053 = vmatprep.mubr.bf16.mxu0 %v1391_v1  ;;  %v295_v58 = vrot.slane %v293_v51, 1  ;;  %v1371_v1 = vcombine.high %v1927_v48, %v1351_v52 }
  0x2f   :  { %1118 = vmatprep.mubr.bf16.mxu1 %v1393_v2  ;;  %v309_v35 = vrot.slane %v307_v56, 1  ;;  %v1360_v2 = vcombine.low %v1922_v47, %v83_v43  ;;  %v91_v47 = vld [vmem:[%s2158_s0 + $0x68] sm:$0xff] }
  0x30   :  { %1580 = vmatpush3.bf16.msra.mxu0 %v1708_v59  ;;  %v319_v59 = vshrl.u32 %v1361_v46, 16  ;;  %v1364_v46 = vcombine.low %v1972_v63, %v91_v47 }
  0x31   :  { %1620 = vmatpush3.bf16.msra.mxu1 %v1709_v61  ;;  %1581 = vmatprep.subr.bf16.mxu0 %v1714_v4  ;;  %v302_v61 = vrot.slane %v300_v54, 1  ;;  %v289_v4 = vor.u32 %v288_v57, %v284_v49 }
  0x32   :  { %1621 = vmatprep.subr.bf16.mxu1 %v1715_v6  ;;  %v1370_v6 = vcombine.low %v1927_v48, %v1351_v52  ;;  %v95_v48 = vld [vmem:[%s2158_s0 + $0x78] sm:$0xff]  ;;  %v356_v56 = vshll.u32 %v1364_v46, 16 }
  0x33   :  { %1054 = vmatmul.mubr.bf16.gmra.mrb[8].mxu0 %v1390_v3  ;;  %v296_v3 = vor.u32 %v295_v58, %v291_v33  ;;  %v303_v8 = vor.u32 %v302_v61, %v298_v53  ;;  %v1367_v29 = vcombine.high %v1977_v0, %v95_v48  ;;  %v1366_v57 = vcombine.low %v1977_v0, %v95_v48 }
  0x34   :  { %1119 = vmatmul.mubr.bf16.gmra.mrb[8].mxu1 %v1392_v5  ;;  %1582 = vmatpush3.bf16.msra.mxu0 %v1716_v7  ;;  %v323_v5 = vrot.slane %v321_v60, 1  ;;  %v310_v7 = vor.u32 %v309_v35, %v305_v55  ;;  %v326_v23 = vshrl.u32 %v1370_v6, 16  ;;  %v354_v55 = vshrl.u32 %v1364_v46, 16 }
  0x35   :  { %1622 = vmatpush3.bf16.msra.mxu1 %v1717_v9  ;;  %1583 = vmatprep.subr.bf16.mxu0 %v1718_v10  ;;  %v333_v9 = vshrl.u32 %v1371_v1, 16  ;;  %v335_v10 = vshll.u32 %v1371_v1, 16  ;;  %v375_v42 = vshrl.u32 %v1367_v29, 16  ;;  %v377_v43 = vshll.u32 %v1367_v29, 16 }
  0x36   :  { %1623 = vmatprep.subr.bf16.mxu1 %v1719_v12  ;;  %1061 = vmatprep.mubr.bf16.mxu0 %v1399_v18  ;;  %v1379_v12 = vcombine.low %v282_v41, %v296_v3  ;;  %v324_v14 = vor.u32 %v323_v5, %v319_v59  ;;  %v1381_v18 = vcombine.low %v296_v3, %v310_v7  ;;  %v358_v35 = vrot.slane %v356_v56, 1 }
  0x37   :  { %1126 = vmatprep.mubr.bf16.mxu1 %v1401_v19  ;;  %v1380_v19 = vcombine.low %v289_v4, %v303_v8  ;;  %v379_v52 = vrot.slane %v377_v43, 1  ;;  %v1369_v59 = vcombine.high %v2016_v16, %v99_v50  ;;  %v368_v1 = vshrl.u32 %v1366_v57, 16 }
  0x38   :  { %1584 = vmatpush3.bf16.msra.mxu0 %v1720_v13  ;;  %v1378_v13 = vcombine.low %v275_v38, %v289_v4  ;;  %v1387_v22 = vcombine.low %v310_v7, %v324_v14  ;;  %v359_v7 = vor.u32 %v358_v35, %v354_v55  ;;  %v1750_v29 = vmov 0.0  }
  0x39   :  { %1624 = vmatpush3.bf16.msra.mxu1 %v1721_v15  ;;  %1585 = vmatprep.subr.bf16.mxu0 %v1724_v21  ;;  %v312_v15 = vshrl.u32 %v1360_v2, 16  ;;  %v314_v21 = vshll.u32 %v1360_v2, 16  ;;  %v380_v58 = vor.u32 %v379_v52, %v375_v42  ;;  %v370_v2 = vshll.u32 %v1366_v57, 16  ;;  %168 = vst [vmem:[%s2162_s4] sm:$0x3] %v1750_v29 }
  0x3a   :  { %1625 = vmatprep.subr.bf16.mxu1 %v1725_v25  ;;  %v1363_v25 = vcombine.high %v1967_v62, %v87_v11  ;;  %v389_v5 = vshrl.u32 %v1369_v59, 16 }
  0x3b   :  { %1062 = vmatmul.mubr.bf16.gmra.mrb[12].mxu0 %v1398_v20  ;;  %v337_v20 = vrot.slane %v335_v10, 1 }
  0x3c   :  { %1127 = vmatmul.mubr.bf16.gmra.mrb[12].mxu1 %v1400_v24  ;;  %1586 = vmatpush3.bf16.msra.mxu0 %v1726_v27  ;;  %v328_v24 = vshll.u32 %v1370_v6, 16  ;;  %v316_v27 = vrot.slane %v314_v21, 1  ;;  %v347_v31 = vshrl.u32 %v1363_v25, 16  ;;  %v391_v6 = vshll.u32 %v1369_v59, 16 }
  0x3d   :  { %1626 = vmatpush3.bf16.msra.mxu1 %v1727_v28  ;;  %1587 = vmatprep.subr.bf16.mxu0 %v1728_v30  ;;  %v338_v26 = vor.u32 %v337_v20, %v333_v9  ;;  %v1365_v28 = vcombine.high %v1972_v63, %v91_v47 }
  0x3e   :  { %1627 = vmatprep.subr.bf16.mxu1 %v1729_v32  ;;  %1167 = vmatprep.mubr.bf16.mxu0 %v1379_v12  ;;  %v330_v30 = vrot.slane %v328_v24, 1  ;;  %v349_v32 = vshll.u32 %v1363_v25, 16  ;;  %v317_v37 = vor.u32 %v316_v27, %v312_v15  ;;  %v393_v10 = vrot.slane %v391_v6, 1 }
  0x3f   :  { %1232 = vmatprep.mubr.bf16.mxu1 %v1381_v18  ;;  %v361_v38 = vshrl.u32 %v1365_v28, 16  ;;  %v363_v39 = vshll.u32 %v1365_v28, 16 }
  0x40   :  { %1588 = vmatpush3.bf16.msra.mxu0 %v1730_v34  ;;  %v1362_v34 = vcombine.low %v1967_v62, %v87_v11  ;;  %v331_v40 = vor.u32 %v330_v30, %v326_v23  ;;  %v351_v41 = vrot.slane %v349_v32, 1  ;;  %v1386_v44 = vcombine.low %v303_v8, %v317_v37  ;;  %v1353_v62 = vld [vmem:[%s2159_s1 + $0x98] sm:$0xff] }
  0x41   :  { %1628 = vmatpush3.bf16.msra.mxu1 %v1731_v36  ;;  %v1389_v36 = vcombine.low %v324_v14, %v338_v26  ;;  %v365_v45 = vrot.slane %v363_v39, 1  ;;  %v1373_v60 = vcombine.high %v2021_v17, %v1353_v62  ;;  %v372_v8 = vrot.slane %v370_v2, 1 }
  0x42   :  { %v340_v49 = vshrl.u32 %v1362_v34, 16  ;;  %v1388_v33 = vcombine.low %v317_v37, %v331_v40  ;;  %v352_v51 = vor.u32 %v351_v41, %v347_v31  ;;  %v342_v53 = vshll.u32 %v1362_v34, 16 }
  0x43   :  { %1168 = vmatmul.mubr.bf16.vlgmr.msra.gmra.mrb[16].mxu0 %v1378_v13  ;;  %v366_v54 = vor.u32 %v365_v45, %v361_v38  ;;  %v403_v0 = vshrl.u32 %v1373_v60, 16  ;;  %v405_v9 = vshll.u32 %v1373_v60, 16  ;;  %v1368_v11 = vcombine.low %v2016_v16, %v99_v50 }
  0x44   :  { %1233 = vmatmul.mubr.bf16.vlgmr.msra.gmra.mrb[16].mxu1 %v1380_v19  ;;  %1175 = vmatprep.mubr.bf16.mxu0 %v1387_v22  ;;  %v344_v63 = vrot.slane %v342_v53, 1  ;;  %v1372_v12 = vcombine.low %v2021_v17, %v1353_v62  ;;  %v373_v14 = vor.u32 %v372_v8, %v368_v1  ;;  %v394_v47 = vor.u32 %v393_v10, %v389_v5 }
  0x45   :  { %1240 = vmatprep.mubr.bf16.mxu1 %v1389_v36  ;;  %v1395_v61 = vcombine.low %v352_v51, %v366_v54  ;;  %v1397_v3 = vcombine.low %v366_v54, %v380_v58  ;;  %v407_v15 = vrot.slane %v405_v9, 1  ;;  %v382_v48 = vshrl.u32 %v1368_v11, 16 }
  0x46   :  { %v345_v4 = vor.u32 %v344_v63, %v340_v49  ;;  %v384_v18 = vshll.u32 %v1368_v11, 16  ;;  %v1396_v19 = vcombine.low %v359_v7, %v373_v14  ;;  %v396_v21 = vshrl.u32 %v1372_v12, 16 }
  0x47   :  { %v408_v20 = vor.u32 %v407_v15, %v403_v0  ;;  %v398_v22 = vshll.u32 %v1372_v12, 16  ;;  %v1403_v23 = vcombine.low %v380_v58, %v394_v47 }
  0x48   :  { %v1394_v13 = vcombine.low %v345_v4, %v359_v7  ;;  %v386_v24 = vrot.slane %v384_v18, 1 }
  0x49   :  { %v1405_v25 = vcombine.low %v394_v47, %v408_v20  ;;  %v400_v26 = vrot.slane %v398_v22, 1 }
  0x4a   :  { %v387_v16 = vor.u32 %v386_v24, %v382_v48  ;;  %v1265_v24 = vlaneseq }
  0x4b   :  { %1176 = vmatmul.mubr.bf16.gmra.mrb[20].mxu0 %v1386_v44  ;;  %v401_v17 = vor.u32 %v400_v26, %v396_v21 }
  0x4c   :  { %1241 = vmatmul.mubr.bf16.gmra.mrb[20].mxu1 %v1388_v33  ;;  %1183 = vmatprep.mubr.bf16.mxu0 %v1395_v61  ;;  %v1402_v27 = vcombine.low %v373_v14, %v387_v16 }
  0x4d   :  { %1248 = vmatprep.mubr.bf16.mxu1 %v1397_v3  ;;  %v1404_v28 = vcombine.low %v387_v16, %v401_v17  ;;  %v2115_v17 = vshrl.u32 %v1265_v24, 7 }
  0x4f   :  { %vm1267_vm0 = vcmp.lt.s32.totalorder %v2115_v17, 2 }
  0x53   :  { %1184 = vmatmul.mubr.bf16.gmra.mrb[24].mxu0 %v1394_v13 }
  0x54   :  { %1249 = vmatmul.mubr.bf16.gmra.mrb[24].mxu1 %v1396_v19  ;;  %1191 = vmatprep.mubr.bf16.mxu0 %v1403_v23 }
  0x55   :  { %1256 = vmatprep.mubr.bf16.mxu1 %v1405_v25 }
  0x5b   :  { %1192 = vmatmul.mubr.bf16.gmra.mrb[28].mxu0 %v1402_v27 }
  0x5c   :  { %1257 = vmatmul.mubr.bf16.gmra.mrb[28].mxu1 %v1404_v28 }
  0xf6   :  { %v1509_v30 = vpop.f32.mrb[0].mxu0 }
  0xf7   :  { %v1549_v31 = vpop.f32.mrb[0].mxu1  ;;  %v1510_v32 = vpop.f32.mrb[1].mxu0 }
  0xf8   :  { %v1511_v34 = vadd.f32 %v1510_v32, %v1509_v30  ;;  %v1550_v36 = vpop.f32.mrb[1].mxu1  ;;  %v1512_v37 = vpop.f32.mrb[2].mxu0 }
  0xf9   :  { %v1551_v38 = vadd.f32 %v1550_v36, %v1549_v31  ;;  %v1552_v39 = vpop.f32.mrb[2].mxu1  ;;  %v1513_v40 = vpop.f32.mrb[3].mxu0 }
  0xfa   :  { %v1514_v41 = vadd.f32 %v1513_v40, %v1512_v37  ;;  %v1553_v42 = vpop.f32.mrb[3].mxu1 }
  0xfb   :  { %v1105_v43 = vadd.f32 %v1551_v38, %v1511_v34  ;;  %v1554_v44 = vadd.f32 %v1553_v42, %v1552_v39 }
  0xfd   :  { %v1108_v45 = vadd.f32 %v1554_v44, %v1514_v41 }
  0xfe   :  { %v1515_v46 = vpop.f32.mrb[4].mxu0 }
  0xff   :  { %v1555_v49 = vpop.f32.mrb[4].mxu1  ;;  %v1516_v50 = vpop.f32.mrb[5].mxu0 }
 0x100   :  { %v1556_v62 = vpop.f32.mrb[5].mxu1  ;;  %v1517_v33 = vadd.f32 %v1516_v50, %v1515_v46  ;;  %v1518_v52 = vpop.f32.mrb[6].mxu0 }
 0x101   :  { %v1557_v51 = vadd.f32 %v1556_v62, %v1555_v49  ;;  %v1558_v53 = vpop.f32.mrb[6].mxu1  ;;  %v1519_v54 = vpop.f32.mrb[7].mxu0 }
 0x102   :  { %v1559_v55 = vpop.f32.mrb[7].mxu1  ;;  %v1520_v57 = vadd.f32 %v1519_v54, %v1518_v52 }
 0x103   :  { %v2103_v56 = vadd.f32 %v1557_v51, %v1517_v33  ;;  %v1560_v58 = vadd.f32 %v1559_v55, %v1558_v53 }
 0x105   :  { %v2105_v63 = vadd.f32 %v1560_v58, %v1520_v57 }
 0x106   :  { %v1521_v59 = vpop.f32.mrb[8].mxu0 }
 0x107   :  { %v1561_v60 = vpop.f32.mrb[8].mxu1  ;;  %v1522_v61 = vpop.f32.mrb[9].mxu0 }
 0x108   :  { %v1562_v35 = vpop.f32.mrb[9].mxu1  ;;  %v1523_v1 = vadd.f32 %v1522_v61, %v1521_v59  ;;  %v1524_v3 = vpop.f32.mrb[10].mxu0 }
 0x109   :  { %v1563_v2 = vadd.f32 %v1562_v35, %v1561_v60  ;;  %v1564_v4 = vpop.f32.mrb[10].mxu1  ;;  %v1525_v5 = vpop.f32.mrb[11].mxu0 }
 0x10a   :  { %v1565_v6 = vpop.f32.mrb[11].mxu1  ;;  %v1526_v8 = vadd.f32 %v1525_v5, %v1524_v3 }
 0x10b   :  { %v2107_v7 = vadd.f32 %v1563_v2, %v1523_v1  ;;  %v1566_v0 = vadd.f32 %v1565_v6, %v1564_v4 }
 0x10d   :  { %v2109_v9 = vadd.f32 %v1566_v0, %v1526_v8 }
 0x10e   :  { %v1527_v10 = vpop.f32.mrb[12].mxu0 }
 0x10f   :  { %v1567_v11 = vpop.f32.mrb[12].mxu1  ;;  %v1528_v12 = vpop.f32.mrb[13].mxu0 }
 0x110   :  { %v1568_v13 = vpop.f32.mrb[13].mxu1  ;;  %v1529_v14 = vadd.f32 %v1528_v12, %v1527_v10  ;;  %v1530_v47 = vpop.f32.mrb[14].mxu0 }
 0x111   :  { %v1569_v15 = vadd.f32 %v1568_v13, %v1567_v11  ;;  %v1570_v48 = vpop.f32.mrb[14].mxu1  ;;  %v1531_v18 = vpop.f32.mrb[15].mxu0 }
 0x112   :  { %v1571_v19 = vpop.f32.mrb[15].mxu1  ;;  %v1532_v21 = vadd.f32 %v1531_v18, %v1530_v47 }
 0x113   :  { %v2111_v20 = vadd.f32 %v1569_v15, %v1529_v14  ;;  %v1572_v22 = vadd.f32 %v1571_v19, %v1570_v48 }
 0x115   :  { %v2113_v23 = vadd.f32 %v1572_v22, %v1532_v21 }
 0x116   :  { %v1589_v25 = vpop.f32.mrb[16].mxu0 }
 0x117   :  { %v1629_v26 = vpop.f32.mrb[16].mxu1  ;;  %v1590_v16 = vpop.f32.mrb[17].mxu0 }
 0x118   :  { %v1591_v27 = vadd.f32 %v1590_v16, %v1589_v25  ;;  %v1630_v28 = vpop.f32.mrb[17].mxu1  ;;  %v1592_v29 = vpop.f32.mrb[18].mxu0 }
 0x119   :  { %v1631_v30 = vadd.f32 %v1630_v28, %v1629_v26  ;;  %v1632_v31 = vpop.f32.mrb[18].mxu1  ;;  %v1593_v32 = vpop.f32.mrb[19].mxu0 }
 0x11a   :  { %v1170_v34 = vadd.f32 %v1591_v27, %v1105_v43  ;;  %v1594_v36 = vadd.f32 %v1593_v32, %v1592_v29  ;;  %v1633_v37 = vpop.f32.mrb[19].mxu1 }
 0x11b   :  { %v1634_v38 = vadd.f32 %v1633_v37, %v1632_v31 }
 0x11c   :  { %v1235_v39 = vadd.f32 %v1631_v30, %v1170_v34  ;;  %v1173_v40 = vadd.f32 %v1594_v36, %v1108_v45 }
 0x11e   :  { %v1270_v41 = vsel %vm1267_vm0, %v1235_v39, 0.0  ;;  %v1238_v42 = vadd.f32 %v1634_v38, %v1173_v40  ;;  %v1595_v44 = vpop.f32.mrb[20].mxu0 }
 0x11f   :  { %v1635_v46 = vpop.f32.mrb[20].mxu1  ;;  %v1596_v49 = vpop.f32.mrb[21].mxu0  ;;  %v1307_v50 = vmul.f32 %v1270_v41, %v1270_v41 }
 0x120   :  { %v1271_v62 = vsel %vm1267_vm0, %v1238_v42, 0.0  ;;  %v1597_v33 = vadd.f32 %v1596_v49, %v1595_v44  ;;  %v1636_v43 = vpop.f32.mrb[21].mxu1  ;;  %v1598_v51 = vpop.f32.mrb[22].mxu0 }
 0x121   :  { %v1473_v52 = vpack.c.bf16 %v1271_v62, %v1270_v41  ;;  %v1294_v53 = vadd.f32 %v1271_v62, %v1270_v41  ;;  %v1308_v54 = vmul.f32 %v1271_v62, %v1271_v62  ;;  %v1637_v55 = vadd.f32 %v1636_v43, %v1635_v46  ;;  %v1638_v57 = vpop.f32.mrb[22].mxu1  ;;  %v1599_v45 = vpop.f32.mrb[23].mxu0 }
 0x122   :  { %v1178_v58 = vadd.f32 %v1597_v33, %v2103_v56  ;;  %v1600_v59 = vadd.f32 %v1599_v45, %v1598_v51  ;;  %v1639_v60 = vpop.f32.mrb[23].mxu1 }
 0x123   :  { %1474 = vst [vmem:[%s2161_s3] sm:$0xff] %v1473_v52   ;;  %v1315_v61 = vadd.f32 %v1308_v54, %v1307_v50  ;;  %v1640_v35 = vadd.f32 %v1639_v60, %v1638_v57 }
 0x124   :  { %v1243_v1 = vadd.f32 %v1637_v55, %v1178_v58  ;;  %v1181_v2 = vadd.f32 %v1600_v59, %v2105_v63 }
 0x126   :  { %v1272_v3 = vsel %vm1267_vm0, %v1243_v1, 0.0  ;;  %v1246_v4 = vadd.f32 %v1640_v35, %v1181_v2  ;;  %v1601_v5 = vpop.f32.mrb[24].mxu0 }
 0x127   :  { %v1295_v6 = vadd.f32 %v1294_v53, %v1272_v3  ;;  %v1309_v8 = vmul.f32 %v1272_v3, %v1272_v3  ;;  %v1641_v0 = vpop.f32.mrb[24].mxu1  ;;  %v1602_v56 = vpop.f32.mrb[25].mxu0 }
 0x128   :  { %v1273_v10 = vsel %vm1267_vm0, %v1246_v4, 0.0  ;;  %v1603_v11 = vadd.f32 %v1602_v56, %v1601_v5  ;;  %v1642_v12 = vpop.f32.mrb[25].mxu1  ;;  %v1604_v13 = vpop.f32.mrb[26].mxu0 }
 0x129   :  { %v1316_v14 = vadd.f32 %v1315_v61, %v1309_v8  ;;  %v1478_v15 = vpack.c.bf16 %v1273_v10, %v1272_v3  ;;  %v1296_v47 = vadd.f32 %v1295_v6, %v1273_v10  ;;  %v1310_v48 = vmul.f32 %v1273_v10, %v1273_v10  ;;  %v1644_v63 = vpop.f32.mrb[26].mxu1  ;;  %v1605_v18 = vpop.f32.mrb[27].mxu0 }
 0x12a   :  { %v1186_v19 = vadd.f32 %v1603_v11, %v2107_v7  ;;  %v1643_v21 = vadd.f32 %v1642_v12, %v1641_v0  ;;  %v1606_v22 = vadd.f32 %v1605_v18, %v1604_v13  ;;  %v1645_v24 = vpop.f32.mrb[27].mxu1  ;;  %v1328_v11 = vld [vmem:[%s2162_s4] sm:$0x3] }
 0x12b   :  { %1490 = vst [vmem:[%s2161_s3 + $0x8] sm:$0xff] %v1478_v15   ;;  %v1317_v25 = vadd.f32 %v1316_v14, %v1310_v48  ;;  %v1646_v26 = vadd.f32 %v1645_v24, %v1644_v63 }
 0x12c   :  { %v1251_v16 = vadd.f32 %v1643_v21, %v1186_v19  ;;  %v1189_v27 = vadd.f32 %v1606_v22, %v2109_v9 }
 0x12e   :  { %v1274_v28 = vsel %vm1267_vm0, %v1251_v16, 0.0  ;;  %v1254_v29 = vadd.f32 %v1646_v26, %v1189_v27  ;;  %v1607_v30 = vpop.f32.mrb[28].mxu0 }
 0x12f   :  { %v1297_v31 = vadd.f32 %v1296_v47, %v1274_v28  ;;  %v1311_v32 = vmul.f32 %v1274_v28, %v1274_v28  ;;  %v1647_v7 = vpop.f32.mrb[28].mxu1  ;;  %v1608_v34 = vpop.f32.mrb[29].mxu0 }
 0x130   :  { %v1275_v36 = vsel %vm1267_vm0, %v1254_v29, 0.0  ;;  %v1609_v37 = vadd.f32 %v1608_v34, %v1607_v30  ;;  %v1648_v38 = vpop.f32.mrb[29].mxu1  ;;  %v1610_v39 = vpop.f32.mrb[30].mxu0 }
 0x131   :  { %v1318_v40 = vadd.f32 %v1317_v25, %v1311_v32  ;;  %v1483_v41 = vpack.c.bf16 %v1275_v36, %v1274_v28  ;;  %v1298_v42 = vadd.f32 %v1297_v31, %v1275_v36  ;;  %v1312_v44 = vmul.f32 %v1275_v36, %v1275_v36  ;;  %v1650_v9 = vpop.f32.mrb[30].mxu1  ;;  %v1611_v46 = vpop.f32.mrb[31].mxu0 }
 0x132   :  { %v1194_v49 = vadd.f32 %v1609_v37, %v2111_v20  ;;  %v1649_v50 = vadd.f32 %v1648_v38, %v1647_v7  ;;  %v1612_v62 = vadd.f32 %v1611_v46, %v1610_v39  ;;  %v1651_v33 = vpop.f32.mrb[31].mxu1 }
 0x133   :  { %1491 = vst [vmem:[%s2161_s3 + $0x10] sm:$0xff] %v1483_v41   ;;  %v1319_v43 = vadd.f32 %v1318_v40, %v1312_v44  ;;  %v1652_v51 = vadd.f32 %v1651_v33, %v1650_v9 }
 0x134   :  { %v1259_v52 = vadd.f32 %v1649_v50, %v1194_v49  ;;  %v1197_v53 = vadd.f32 %v1612_v62, %v2113_v23 }
 0x136   :  { %v1276_v54 = vsel %vm1267_vm0, %v1259_v52, 0.0  ;;  %v1262_v55 = vadd.f32 %v1652_v51, %v1197_v53 }
 0x137   :  { %v1299_v57 = vadd.f32 %v1298_v42, %v1276_v54  ;;  %v1313_v45 = vmul.f32 %v1276_v54, %v1276_v54 }
 0x138   :  { %v1277_v20 = vsel %vm1267_vm0, %v1262_v55, 0.0 }
 0x139   :  { %v1320_v58 = vadd.f32 %v1319_v43, %v1313_v45  ;;  %v1488_v59 = vpack.c.bf16 %v1277_v20, %v1276_v54  ;;  %v1300_v60 = vadd.f32 %v1299_v57, %v1277_v20  ;;  %v1314_v61 = vmul.f32 %v1277_v20, %v1277_v20 }
 0x13b   :  { %1492 = vst [vmem:[%s2161_s3 + $0x18] sm:$0xff] %v1488_v59   ;;  %v1301_v35 = vrot.slane %v1300_v60, 4  ;;  %v1321_v1 = vadd.f32 %v1320_v58, %v1314_v61 }
 0x13d   :  { %v1302_v23 = vadd.f32 %v1301_v35, %v1300_v60  ;;  %v1322_v2 = vrot.slane %v1321_v1, 4 }
 0x13f   :  { %v1303_v3 = vrot.slane %v1302_v23, 2  ;;  %v1323_v4 = vadd.f32 %v1322_v2, %v1321_v1 }
 0x141   :  { %v1304_v5 = vadd.f32 %v1303_v3, %v1302_v23  ;;  %v1324_v6 = vrot.slane %v1323_v4, 2 }
 0x143   :  { %v1305_v8 = vrot.slane %v1304_v5, 1  ;;  %v1325_v0 = vadd.f32 %v1324_v6, %v1323_v4 }
 0x145   :  { %v1326_v17 = vrot.slane %v1325_v0, 1  ;;  %v1306_v56 = vadd.f32 %v1305_v8, %v1304_v5 }
 0x147   :  { %v1327_v10 = vadd.f32 %v1326_v17, %v1325_v0 }
 0x149   :  { %v1330_v12 = vsel %vm1329_vm1, %v1306_v56, %v1327_v10 }
 0x14a   :  { %v1331_v13 = vadd.f32 %v1330_v12, %v1328_v11 }
 0x14c   :  { %1332 = vst [vmem:[%s2162_s4] sm:$0x3] %v1331_v13 }

// kernel: discriminator_forward.18
= control target key start
LH: loop header
LB: loop body
LE: loop exit
PB: predicated region body
PF: predicated region fallthrough
CT: control target
= control target key end

     0   :  { %vm2540_vm1 = vcmask 1040384   ;;  %s4383_s0 = inlined_call_operand.vmem [shape: bf16[2,3,16,512], index: 0, kind: input, shape index: {}, may-alias: {0,1}]   ;;  %s4384_s1 = inlined_call_operand.vmem [shape: bf16[2,3,16,512], index: 1, kind: input, shape index: {}, may-alias: {0,1}]   ;;  %s4385_s2 = inlined_call_operand.vmem [shape: bf16[2048,256], index: 2, kind: input, shape index: {}]   ;;  %s4386_s3 = inlined_call_operand.vmem [shape: bf16[2,2,8,256], index: 3, kind: output, shape index: {0}]   ;;  %s4387_s4 = inlined_call_operand.vmem [shape: f32[1,2,256], index: 4, kind: output, shape index: {1}]  }
   0x1   :  { %v2959_v0 = vld [vmem:[%s4385_s2 + $0x4] ss:$8 sps:$4 sm:$0xff]   ;;  %v2963_v2 = vld [vmem:[%s4385_s2] ss:$8 sps:$4 sm:$0xff]   ;;  %v2965_v4 = vld [vmem:[%s4385_s2 + $0x14] ss:$8 sps:$4 sm:$0xff]  }
   0x2   :  { %v2961_v1 = vld [vmem:[%s4385_s2 + $0x404] ss:$8 sps:$4 sm:$0xff]   ;;  %2022 = vmatprep.subr.bf16.mxu1 %v2959_v0  ;;  %v2964_v3 = vld [vmem:[%s4385_s2 + $0x400] ss:$8 sps:$4 sm:$0xff]   ;;  %v2967_v5 = vld [vmem:[%s4385_s2 + $0x414] ss:$8 sps:$4 sm:$0xff]  }
   0x3   :  { %2234 = vmatprep.subr.bf16.mxu0 %v2961_v1  ;;  %2023 = vmatpush1.bf16.msra.mxu1 %v2963_v2  ;;  %v2969_v6 = vld [vmem:[%s4385_s2 + $0x10] ss:$8 sps:$4 sm:$0xff]   ;;  %v2971_v8 = vld [vmem:[%s4385_s2 + $0x24] ss:$8 sps:$4 sm:$0xff]   ;;  %v2975_v10 = vld [vmem:[%s4385_s2 + $0x20] ss:$8 sps:$4 sm:$0xff]  }
   0x4   :  { %2235 = vmatpush1.bf16.msra.mxu0 %v2964_v3  ;;  %2024 = vmatprep.subr.bf16.mxu1 %v2965_v4  ;;  %v2970_v7 = vld [vmem:[%s4385_s2 + $0x410] ss:$8 sps:$4 sm:$0xff]   ;;  %v2973_v9 = vld [vmem:[%s4385_s2 + $0x424] ss:$8 sps:$4 sm:$0xff]   ;;  %v2976_v11 = vld [vmem:[%s4385_s2 + $0x420] ss:$8 sps:$4 sm:$0xff]  }
   0x5   :  { %2236 = vmatprep.subr.bf16.mxu0 %v2967_v5  ;;  %v2977_v12 = vld [vmem:[%s4385_s2 + $0x34] ss:$8 sps:$4 sm:$0xff]   ;;  %v2981_v14 = vld [vmem:[%s4385_s2 + $0x30] ss:$8 sps:$4 sm:$0xff]   ;;  %v2983_v16 = vld [vmem:[%s4385_s2 + $0x44] ss:$8 sps:$4 sm:$0xff]  }
   0x6   :  { %v2979_v13 = vld [vmem:[%s4385_s2 + $0x434] ss:$8 sps:$4 sm:$0xff]   ;;  %v2982_v15 = vld [vmem:[%s4385_s2 + $0x430] ss:$8 sps:$4 sm:$0xff]   ;;  %v2985_v17 = vld [vmem:[%s4385_s2 + $0x444] ss:$8 sps:$4 sm:$0xff]  }
   0x7   :  { %2025 = vmatpush1.bf16.msra.mxu1 %v2969_v6  ;;  %v2987_v18 = vld [vmem:[%s4385_s2 + $0x40] ss:$8 sps:$4 sm:$0xff]   ;;  %v2989_v20 = vld [vmem:[%s4385_s2 + $0x54] ss:$8 sps:$4 sm:$0xff]   ;;  %v2993_v22 = vld [vmem:[%s4385_s2 + $0x50] ss:$8 sps:$4 sm:$0xff]  }
   0x8   :  { %2237 = vmatpush1.bf16.msra.mxu0 %v2970_v7  ;;  %2026 = vmatprep.subr.bf16.mxu1 %v2971_v8  ;;  %v2988_v19 = vld [vmem:[%s4385_s2 + $0x440] ss:$8 sps:$4 sm:$0xff]   ;;  %v2991_v21 = vld [vmem:[%s4385_s2 + $0x454] ss:$8 sps:$4 sm:$0xff]   ;;  %v2994_v23 = vld [vmem:[%s4385_s2 + $0x450] ss:$8 sps:$4 sm:$0xff]  }
   0x9   :  { %2238 = vmatprep.subr.bf16.mxu0 %v2973_v9  ;;  %v2995_v24 = vld [vmem:[%s4385_s2 + $0x64] ss:$8 sps:$4 sm:$0xff]   ;;  %v2999_v26 = vld [vmem:[%s4385_s2 + $0x60] ss:$8 sps:$4 sm:$0xff]   ;;  %v3001_v28 = vld [vmem:[%s4385_s2 + $0x74] ss:$8 sps:$4 sm:$0xff]  }
   0xa   :  { %v2997_v25 = vld [vmem:[%s4385_s2 + $0x464] ss:$8 sps:$4 sm:$0xff]   ;;  %v3000_v27 = vld [vmem:[%s4385_s2 + $0x460] ss:$8 sps:$4 sm:$0xff]   ;;  %v3003_v29 = vld [vmem:[%s4385_s2 + $0x474] ss:$8 sps:$4 sm:$0xff]  }
   0xb   :  { %2027 = vmatpush1.bf16.msra.mxu1 %v2975_v10  ;;  %v3005_v30 = vld [vmem:[%s4385_s2 + $0x70] ss:$8 sps:$4 sm:$0xff]   ;;  %v3007_v32 = vld [vmem:[%s4385_s2 + $0x84] ss:$8 sps:$4 sm:$0xff]   ;;  %v3011_v34 = vld [vmem:[%s4385_s2 + $0x80] ss:$8 sps:$4 sm:$0xff]  }
   0xc   :  { %2239 = vmatpush1.bf16.msra.mxu0 %v2976_v11  ;;  %2028 = vmatprep.subr.bf16.mxu1 %v2977_v12  ;;  %v3006_v31 = vld [vmem:[%s4385_s2 + $0x470] ss:$8 sps:$4 sm:$0xff]   ;;  %v3009_v33 = vld [vmem:[%s4385_s2 + $0x484] ss:$8 sps:$4 sm:$0xff]   ;;  %v3012_v35 = vld [vmem:[%s4385_s2 + $0x480] ss:$8 sps:$4 sm:$0xff]  }
   0xd   :  { %2240 = vmatprep.subr.bf16.mxu0 %v2979_v13  ;;  %v3013_v36 = vld [vmem:[%s4385_s2 + $0x94] ss:$8 sps:$4 sm:$0xff]   ;;  %v3017_v38 = vld [vmem:[%s4385_s2 + $0x90] ss:$8 sps:$4 sm:$0xff]   ;;  %v3019_v40 = vld [vmem:[%s4385_s2 + $0xa4] ss:$8 sps:$4 sm:$0xff]  }
   0xe   :  { %v3015_v37 = vld [vmem:[%s4385_s2 + $0x494] ss:$8 sps:$4 sm:$0xff]   ;;  %v3018_v39 = vld [vmem:[%s4385_s2 + $0x490] ss:$8 sps:$4 sm:$0xff]   ;;  %v3021_v41 = vld [vmem:[%s4385_s2 + $0x4a4] ss:$8 sps:$4 sm:$0xff]  }
   0xf   :  { %2029 = vmatpush1.bf16.msra.mxu1 %v2981_v14  ;;  %v3023_v42 = vld [vmem:[%s4385_s2 + $0xa0] ss:$8 sps:$4 sm:$0xff]   ;;  %v3025_v44 = vld [vmem:[%s4385_s2 + $0xb4] ss:$8 sps:$4 sm:$0xff]   ;;  %v3029_v46 = vld [vmem:[%s4385_s2 + $0xb0] ss:$8 sps:$4 sm:$0xff]  }
  0x10   :  { %2241 = vmatpush1.bf16.msra.mxu0 %v2982_v15  ;;  %2030 = vmatprep.subr.bf16.mxu1 %v2983_v16  ;;  %v3024_v43 = vld [vmem:[%s4385_s2 + $0x4a0] ss:$8 sps:$4 sm:$0xff]   ;;  %v3027_v45 = vld [vmem:[%s4385_s2 + $0x4b4] ss:$8 sps:$4 sm:$0xff]   ;;  %v3030_v47 = vld [vmem:[%s4385_s2 + $0x4b0] ss:$8 sps:$4 sm:$0xff]  }
  0x11   :  { %2242 = vmatprep.subr.bf16.mxu0 %v2985_v17  ;;  %v3543_v48 = vld [vmem:[%s4383_s0] sm:$0xff]  ;;  %v28_v53 = vld [vmem:[%s4383_s0 + $0x10] sm:$0xff] }
  0x12   :  { %v3548_v49 = vld [vmem:[%s4383_s0 + $0x20] sm:$0xff]  ;;  %v36_v54 = vld [vmem:[%s4383_s0 + $0x30] sm:$0xff]  ;;  %v2582_v55 = vcombine.high %v3543_v48, %v28_v53  ;;  %v2581_v58 = vcombine.low %v3543_v48, %v28_v53 }
  0x13   :  { %2031 = vmatpush1.bf16.msra.mxu1 %v2987_v18  ;;  %v3031_v50 = vld [vmem:[%s4385_s2 + $0xc4] ss:$8 sps:$4 sm:$0xff]   ;;  %v2606_v52 = vcombine.high %v3543_v48, %v3548_v49  ;;  %v2586_v56 = vcombine.high %v3548_v49, %v36_v54  ;;  %v3035_v57 = vld [vmem:[%s4385_s2 + $0xc0] ss:$8 sps:$4 sm:$0xff]   ;;  %v2585_v59 = vcombine.low %v3548_v49, %v36_v54  ;;  %v3037_v1 = vld [vmem:[%s4385_s2 + $0xd4] ss:$8 sps:$4 sm:$0xff]  }
  0x14   :  { %2243 = vmatpush1.bf16.msra.mxu0 %v2988_v19  ;;  %2032 = vmatprep.subr.bf16.mxu1 %v2989_v20  ;;  %v3033_v51 = vld [vmem:[%s4385_s2 + $0x4c4] ss:$8 sps:$4 sm:$0xff]   ;;  %v238_v60 = vshrl.u32 %v2582_v55, 16  ;;  %v240_v61 = vshll.u32 %v2582_v55, 16  ;;  %v3036_v62 = vld [vmem:[%s4385_s2 + $0x4c0] ss:$8 sps:$4 sm:$0xff]  }
  0x15   :  { %2244 = vmatprep.subr.bf16.mxu0 %v2991_v21  ;;  %2054 = vmatprep.mubr.bf16.mxu1 %v2606_v52  ;;  %v266_v63 = vshrl.u32 %v2586_v56, 16  ;;  %v268_v0 = vshll.u32 %v2586_v56, 16  ;;  %v3039_v2 = vld [vmem:[%s4385_s2 + $0x4d4] ss:$8 sps:$4 sm:$0xff]   ;;  %v233_v6 = vshll.u32 %v2581_v58, 16  ;;  %v261_v7 = vshll.u32 %v2585_v59, 16 }
  0x16   :  { %v242_v3 = vrot.slane %v240_v61, 1  ;;  %v3041_v8 = vld [vmem:[%s4385_s2 + $0xd0] ss:$8 sps:$4 sm:$0xff]   ;;  %v3043_v11 = vld [vmem:[%s4385_s2 + $0xe4] ss:$8 sps:$4 sm:$0xff]   ;;  %v231_v14 = vshrl.u32 %v2581_v58, 16 }
  0x17   :  { %2033 = vmatpush1.bf16.msra.mxu1 %v2993_v22  ;;  %v270_v4 = vrot.slane %v268_v0, 1  ;;  %v3042_v9 = vld [vmem:[%s4385_s2 + $0x4d0] ss:$8 sps:$4 sm:$0xff]   ;;  %v3045_v12 = vld [vmem:[%s4385_s2 + $0x4e4] ss:$8 sps:$4 sm:$0xff]   ;;  %v235_v15 = vrot.slane %v233_v6, 1 }
  0x18   :  { %2245 = vmatpush1.bf16.msra.mxu0 %v2994_v23  ;;  %2034 = vmatprep.subr.bf16.mxu1 %v2995_v24  ;;  %v243_v5 = vor.u32 %v242_v3, %v238_v60  ;;  %v259_v16 = vshrl.u32 %v2585_v59, 16  ;;  %v263_v17 = vrot.slane %v261_v7, 1  ;;  %v3047_v18 = vld [vmem:[%s4385_s2 + $0xe0] ss:$8 sps:$4 sm:$0xff]   ;;  %v3049_v20 = vld [vmem:[%s4385_s2 + $0xf4] ss:$8 sps:$4 sm:$0xff]  }
  0x19   :  { %2246 = vmatprep.subr.bf16.mxu0 %v2997_v25  ;;  %v3586_v10 = vor.u32 %v270_v4, %v266_v63  ;;  %v3048_v19 = vld [vmem:[%s4385_s2 + $0x4e0] ss:$8 sps:$4 sm:$0xff]   ;;  %v3051_v21 = vld [vmem:[%s4385_s2 + $0x4f4] ss:$8 sps:$4 sm:$0xff]   ;;  %v236_v22 = vor.u32 %v235_v15, %v231_v14  ;;  %v3053_v24 = vld [vmem:[%s4385_s2 + $0xf0] ss:$8 sps:$4 sm:$0xff]  }
  0x1a   :  { %v3607_v23 = vor.u32 %v263_v17, %v259_v16  ;;  %v3054_v25 = vld [vmem:[%s4385_s2 + $0x4f0] ss:$8 sps:$4 sm:$0xff]   ;;  %v40_v53 = vld [vmem:[%s4383_s0 + $0x60] sm:$0xff]  ;;  %v3104_v3 = vld [vmem:[%s4385_s2 + $0x174] ss:$8 sps:$4 sm:$0xff]  }
  0x1b   :  { %2035 = vmatpush1.bf16.msra.mxu1 %v2999_v26  ;;  %v2614_v13 = vcombine.low %v243_v5, %v3586_v10  ;;  %v3057_v26 = vld [vmem:[%s4385_s2 + $0x104] ss:$8 sps:$4 sm:$0xff]   ;;  %v3093_v52 = vld [vmem:[%s4385_s2 + $0x550] ss:$8 sps:$4 sm:$0xff]   ;;  %v3096_v61 = vld [vmem:[%s4385_s2 + $0x160] ss:$8 sps:$4 sm:$0xff]  }
  0x1c   :  { %2247 = vmatpush1.bf16.msra.mxu0 %v3000_v27  ;;  %2036 = vmatprep.subr.bf16.mxu1 %v3001_v28  ;;  %v3064_v27 = vld [vmem:[%s4385_s2 + $0x504] ss:$8 sps:$4 sm:$0xff]   ;;  %v2605_v28 = vcombine.low %v3543_v48, %v3548_v49  ;;  %v3092_v48 = vld [vmem:[%s4385_s2 + $0x154] ss:$8 sps:$4 sm:$0xff]   ;;  %v3102_v14 = vld [vmem:[%s4385_s2 + $0x170] ss:$8 sps:$4 sm:$0xff]  }
  0x1d   :  { %2248 = vmatprep.subr.bf16.mxu0 %v3003_v29  ;;  %2266 = vmatprep.mubr.bf16.mxu0 %v2614_v13  ;;  %v2613_v29 = vcombine.low %v236_v22, %v3607_v23  ;;  %v3696_v54 = vld [vmem:[%s4383_s0 + $0x80] sm:$0xff]  ;;  %v44_v59 = vld [vmem:[%s4383_s0 + $0x70] sm:$0xff] }
  0x1e   :  { %v3098_v55 = vld [vmem:[%s4385_s2 + $0x164] ss:$8 sps:$4 sm:$0xff]   ;;  %v2622_v56 = vcombine.high %v40_v53, %v3696_v54  ;;  %v52_v60 = vld [vmem:[%s4383_s0 + $0x90] sm:$0xff]  ;;  %v2589_v0 = vcombine.low %v40_v53, %v44_v59 }
  0x1f   :  { %2037 = vmatpush1.bf16.msra.mxu1 %v3005_v30  ;;  %v3055_v30 = vld [vmem:[%s4385_s2 + $0x100] ss:$8 sps:$4 sm:$0xff]   ;;  %v3101_v58 = vld [vmem:[%s4385_s2 + $0x564] ss:$8 sps:$4 sm:$0xff]   ;;  %v2594_v63 = vcombine.high %v3696_v54, %v52_v60  ;;  %v3105_v17 = vld [vmem:[%s4385_s2 + $0x570] ss:$8 sps:$4 sm:$0xff]  }
  0x20   :  { %2249 = vmatpush1.bf16.msra.mxu0 %v3006_v31  ;;  %2038 = vmatprep.subr.bf16.mxu1 %v3007_v32  ;;  %v3062_v31 = vld [vmem:[%s4385_s2 + $0x500] ss:$8 sps:$4 sm:$0xff]   ;;  %v3068_v32 = vld [vmem:[%s4385_s2 + $0x114] ss:$8 sps:$4 sm:$0xff]   ;;  %v3110_v22 = vld [vmem:[%s4385_s2 + $0x184] ss:$8 sps:$4 sm:$0xff]  }
  0x21   :  { %2250 = vmatprep.subr.bf16.mxu0 %v3009_v33  ;;  %v3071_v33 = vld [vmem:[%s4385_s2 + $0x514] ss:$8 sps:$4 sm:$0xff]   ;;  %v350_v6 = vshrl.u32 %v2594_v63, 16  ;;  %v352_v7 = vshll.u32 %v2594_v63, 16 }
  0x23   :  { %2039 = vmatpush1.bf16.msra.mxu1 %v3011_v34  ;;  %v3066_v34 = vld [vmem:[%s4385_s2 + $0x110] ss:$8 sps:$4 sm:$0xff]   ;;  %v354_v16 = vrot.slane %v352_v7, 1 }
  0x24   :  { %2251 = vmatpush1.bf16.msra.mxu0 %v3012_v35  ;;  %2040 = vmatprep.subr.bf16.mxu1 %v3013_v36  ;;  %v3069_v35 = vld [vmem:[%s4385_s2 + $0x510] ss:$8 sps:$4 sm:$0xff]   ;;  %v3074_v36 = vld [vmem:[%s4385_s2 + $0x124] ss:$8 sps:$4 sm:$0xff]  }
  0x25   :  { %2252 = vmatprep.subr.bf16.mxu0 %v3015_v37  ;;  %v3077_v37 = vld [vmem:[%s4385_s2 + $0x524] ss:$8 sps:$4 sm:$0xff]   ;;  %v3138_v7 = vld [vmem:[%s4385_s2 + $0x1d0] ss:$8 sps:$4 sm:$0xff]  }
  0x27   :  { %2041 = vmatpush1.bf16.msra.mxu1 %v3017_v38  ;;  %v3072_v38 = vld [vmem:[%s4385_s2 + $0x120] ss:$8 sps:$4 sm:$0xff]  }
  0x28   :  { %2253 = vmatpush1.bf16.msra.mxu0 %v3018_v39  ;;  %2042 = vmatprep.subr.bf16.mxu1 %v3019_v40  ;;  %v3075_v39 = vld [vmem:[%s4385_s2 + $0x520] ss:$8 sps:$4 sm:$0xff]   ;;  %v3080_v40 = vld [vmem:[%s4385_s2 + $0x134] ss:$8 sps:$4 sm:$0xff]  }
  0x29   :  { %2254 = vmatprep.subr.bf16.mxu0 %v3021_v41  ;;  %v3083_v41 = vld [vmem:[%s4385_s2 + $0x534] ss:$8 sps:$4 sm:$0xff]  }
  0x2b   :  { %2043 = vmatpush1.bf16.msra.mxu1 %v3023_v42  ;;  %v3078_v42 = vld [vmem:[%s4385_s2 + $0x130] ss:$8 sps:$4 sm:$0xff]  }
  0x2c   :  { %2255 = vmatpush1.bf16.msra.mxu0 %v3024_v43  ;;  %2044 = vmatprep.subr.bf16.mxu1 %v3025_v44  ;;  %v3081_v43 = vld [vmem:[%s4385_s2 + $0x530] ss:$8 sps:$4 sm:$0xff]   ;;  %v3086_v44 = vld [vmem:[%s4385_s2 + $0x144] ss:$8 sps:$4 sm:$0xff]  }
  0x2d   :  { %2256 = vmatprep.subr.bf16.mxu0 %v3027_v45  ;;  %v3089_v45 = vld [vmem:[%s4385_s2 + $0x544] ss:$8 sps:$4 sm:$0xff]  }
  0x2f   :  { %2045 = vmatpush1.bf16.msra.mxu1 %v3029_v46  ;;  %v3084_v46 = vld [vmem:[%s4385_s2 + $0x140] ss:$8 sps:$4 sm:$0xff]  }
  0x30   :  { %2257 = vmatpush1.bf16.msra.mxu0 %v3030_v47  ;;  %2046 = vmatprep.subr.bf16.mxu1 %v3031_v50  ;;  %v3087_v47 = vld [vmem:[%s4385_s2 + $0x540] ss:$8 sps:$4 sm:$0xff]   ;;  %v3095_v50 = vld [vmem:[%s4385_s2 + $0x554] ss:$8 sps:$4 sm:$0xff]  }
  0x31   :  { %2258 = vmatprep.subr.bf16.mxu0 %v3033_v51  ;;  %v3090_v51 = vld [vmem:[%s4385_s2 + $0x150] ss:$8 sps:$4 sm:$0xff]  }
  0x33   :  { %2047 = vmatpush1.bf16.msra.mxu1 %v3035_v57  ;;  %v2621_v57 = vcombine.low %v40_v53, %v3696_v54 }
  0x34   :  { %2259 = vmatpush1.bf16.msra.mxu0 %v3036_v62  ;;  %2048 = vmatprep.subr.bf16.mxu1 %v3037_v1  ;;  %v2590_v62 = vcombine.high %v40_v53, %v44_v59  ;;  %v2593_v1 = vcombine.low %v3696_v54, %v52_v60  ;;  %v3126_v59 = vld [vmem:[%s4385_s2 + $0x1b0] ss:$8 sps:$4 sm:$0xff]  }
  0x35   :  { %2260 = vmatprep.subr.bf16.mxu0 %v3039_v2  ;;  %v3099_v2 = vld [vmem:[%s4385_s2 + $0x560] ss:$8 sps:$4 sm:$0xff]   ;;  %v3129_v60 = vld [vmem:[%s4385_s2 + $0x5b0] ss:$8 sps:$4 sm:$0xff]  }
  0x36   :  { %v322_v4 = vshrl.u32 %v2590_v62, 16  ;;  %v324_v5 = vshll.u32 %v2590_v62, 16  ;;  %v345_v13 = vshll.u32 %v2593_v1, 16  ;;  %v3137_v62 = vld [vmem:[%s4385_s2 + $0x5c4] ss:$8 sps:$4 sm:$0xff]  }
  0x37   :  { %2049 = vmatpush1.bf16.msra.mxu1 %v3041_v8  ;;  %v3107_v8 = vld [vmem:[%s4385_s2 + $0x574] ss:$8 sps:$4 sm:$0xff]  }
  0x38   :  { %2261 = vmatpush1.bf16.msra.mxu0 %v3042_v9  ;;  %2050 = vmatprep.subr.bf16.mxu1 %v3043_v11  ;;  %v315_v9 = vshrl.u32 %v2589_v0, 16  ;;  %v317_v11 = vshll.u32 %v2589_v0, 16  ;;  %v326_v15 = vrot.slane %v324_v5, 1 }
  0x39   :  { %2262 = vmatprep.subr.bf16.mxu0 %v3045_v12  ;;  %v343_v12 = vshrl.u32 %v2593_v1, 16  ;;  %v3132_v1 = vld [vmem:[%s4385_s2 + $0x1c0] ss:$8 sps:$4 sm:$0xff]  }
  0x3b   :  { %2051 = vmatpush1.bf16.msra.mxu1 %v3047_v18  ;;  %v319_v18 = vrot.slane %v317_v11, 1  ;;  %v3151_v11 = vld [vmem:[%s4385_s2 + $0x5e4] ss:$8 sps:$4 sm:$0xff]  }
  0x3c   :  { %2263 = vmatpush1.bf16.msra.mxu0 %v3048_v19  ;;  %2052 = vmatprep.subr.bf16.mxu1 %v3049_v20  ;;  %v347_v19 = vrot.slane %v345_v13, 1  ;;  %v3735_v20 = vld [vmem:[%s4383_s0 + $0x8] sm:$0xff] }
  0x3d   :  { %2264 = vmatprep.subr.bf16.mxu0 %v3051_v21  ;;  %v3740_v21 = vld [vmem:[%s4383_s0 + $0x28] sm:$0xff] }
  0x3f   :  { %2053 = vmatpush1.bf16.msra.mxu1 %v3053_v24  ;;  %v327_v24 = vor.u32 %v326_v15, %v322_v4  ;;  %v3143_v4 = vld [vmem:[%s4385_s2 + $0x5d4] ss:$8 sps:$4 sm:$0xff]  }
  0x40   :  { %2265 = vmatpush1.bf16.msra.mxu0 %v3054_v25  ;;  %2075 = vmatprep.subr.bf16.mxu1 %v3057_v26  ;;  %v3745_v25 = vor.u32 %v354_v16, %v350_v6  ;;  %v2608_v26 = vcombine.high %v3735_v20, %v3740_v21  ;;  %v3144_v16 = vld [vmem:[%s4385_s2 + $0x1e0] ss:$8 sps:$4 sm:$0xff]  }
  0x41   :  { %2287 = vmatprep.subr.bf16.mxu0 %v3064_v27  ;;  %v3113_v27 = vld [vmem:[%s4385_s2 + $0x584] ss:$8 sps:$4 sm:$0xff]  }
  0x42   :  { %2055 = vmatmul.mubr.bf16.vlgmr.msra.gmra.mrb[0].mxu1 %v2605_v28  ;;  %v320_v28 = vor.u32 %v319_v18, %v315_v9  ;;  %v3146_v9 = vld [vmem:[%s4385_s2 + $0x1e4] ss:$8 sps:$4 sm:$0xff]   ;;  %v3156_v18 = vld [vmem:[%s4385_s2 + $0x1f4] ss:$8 sps:$4 sm:$0xff]  }
  0x43   :  { %2267 = vmatmul.mubr.bf16.vlgmr.msra.gmra.mrb[0].mxu0 %v2613_v29  ;;  %2076 = vmatpush1.bf16.msra.mxu1 %v3055_v30  ;;  %v3752_v29 = vor.u32 %v347_v19, %v343_v12  ;;  %v30_v30 = vld [vmem:[%s4383_s0 + $0x18] sm:$0xff] }
  0x44   :  { %2288 = vmatpush1.bf16.msra.mxu0 %v3062_v31  ;;  %2077 = vmatprep.subr.bf16.mxu1 %v3068_v32  ;;  %v38_v31 = vld [vmem:[%s4383_s0 + $0x38] sm:$0xff]  ;;  %v2630_v32 = vcombine.low %v327_v24, %v3745_v25  ;;  %v2583_v63 = vcombine.low %v3735_v20, %v30_v30 }
  0x45   :  { %2289 = vmatprep.subr.bf16.mxu0 %v3071_v33  ;;  %2064 = vmatprep.mubr.bf16.mxu1 %v2622_v56  ;;  %v2584_v33 = vcombine.high %v3735_v20, %v30_v30  ;;  %v3123_v56 = vld [vmem:[%s4385_s2 + $0x5a0] ss:$8 sps:$4 sm:$0xff]   ;;  %v2587_v0 = vcombine.low %v3740_v21, %v38_v31  ;;  %v3159_v19 = vld [vmem:[%s4385_s2 + $0x5f4] ss:$8 sps:$4 sm:$0xff]   ;;  %v3162_v30 = vld [vmem:[%s4385_s2 + $0x204] ss:$8 sps:$4 sm:$0xff]  }
  0x46   :  { %2276 = vmatprep.mubr.bf16.mxu0 %v2630_v32  ;;  %v247_v5 = vshll.u32 %v2583_v63, 16  ;;  %v245_v12 = vshrl.u32 %v2583_v63, 16  ;;  %v3875_v32 = vld [vmem:[%s4384_s1 + $0x50] sm:$0xff] }
  0x47   :  { %2078 = vmatpush1.bf16.msra.mxu1 %v3066_v34  ;;  %v2629_v34 = vcombine.low %v320_v28, %v3752_v29  ;;  %v275_v6 = vshll.u32 %v2587_v0, 16  ;;  %v3157_v28 = vld [vmem:[%s4385_s2 + $0x5f0] ss:$8 sps:$4 sm:$0xff]  }
  0x48   :  { %2290 = vmatpush1.bf16.msra.mxu0 %v3069_v35  ;;  %2079 = vmatprep.subr.bf16.mxu1 %v3074_v36  ;;  %v2588_v35 = vcombine.high %v3740_v21, %v38_v31  ;;  %v3108_v36 = vld [vmem:[%s4385_s2 + $0x180] ss:$8 sps:$4 sm:$0xff]   ;;  %v249_v13 = vrot.slane %v247_v5, 1  ;;  %v3169_v31 = vld [vmem:[%s4385_s2 + $0x604] ss:$8 sps:$4 sm:$0xff]  }
  0x49   :  { %2291 = vmatprep.subr.bf16.mxu0 %v3077_v37  ;;  %v3111_v37 = vld [vmem:[%s4385_s2 + $0x580] ss:$8 sps:$4 sm:$0xff]   ;;  %v277_v15 = vrot.slane %v275_v6, 1 }
  0x4a   :  { %2065 = vmatmul.mubr.bf16.gmra.mrb[4].mxu1 %v2621_v57  ;;  %v3128_v57 = vld [vmem:[%s4385_s2 + $0x1b4] ss:$8 sps:$4 sm:$0xff]  }
  0x4b   :  { %2080 = vmatpush1.bf16.msra.mxu1 %v3072_v38  ;;  %2107 = vmatprep.mubr.bf16.mxu1 %v2608_v26  ;;  %v252_v38 = vshrl.u32 %v2584_v33, 16  ;;  %v3858_v26 = vld [vmem:[%s4384_s1 + $0x40] sm:$0xff] }
  0x4c   :  { %2292 = vmatpush1.bf16.msra.mxu0 %v3075_v39  ;;  %2081 = vmatprep.subr.bf16.mxu1 %v3080_v40  ;;  %v254_v39 = vshll.u32 %v2584_v33, 16  ;;  %v3116_v40 = vld [vmem:[%s4385_s2 + $0x194] ss:$8 sps:$4 sm:$0xff]   ;;  %v2607_v33 = vcombine.low %v3735_v20, %v3740_v21 }
  0x4d   :  { %2293 = vmatprep.subr.bf16.mxu0 %v3083_v41  ;;  %v3119_v41 = vld [vmem:[%s4385_s2 + $0x594] ss:$8 sps:$4 sm:$0xff]   ;;  %2277 = vmatmul.mubr.bf16.gmra.mrb[4].mxu0 %v2629_v34 }
  0x4e   :  { %v3175_v20 = vld [vmem:[%s4385_s2 + $0x614] ss:$8 sps:$4 sm:$0xff]  }
  0x4f   :  { %2082 = vmatpush1.bf16.msra.mxu1 %v3078_v42  ;;  %v280_v42 = vshrl.u32 %v2588_v35, 16 }
  0x50   :  { %2294 = vmatpush1.bf16.msra.mxu0 %v3081_v43  ;;  %2083 = vmatprep.subr.bf16.mxu1 %v3086_v44  ;;  %v282_v43 = vshll.u32 %v2588_v35, 16  ;;  %v256_v44 = vrot.slane %v254_v39, 1  ;;  %v3160_v35 = vld [vmem:[%s4385_s2 + $0x200] ss:$8 sps:$4 sm:$0xff]   ;;  %v3170_v39 = vld [vmem:[%s4385_s2 + $0x210] ss:$8 sps:$4 sm:$0xff]  }
  0x51   :  { %2295 = vmatprep.subr.bf16.mxu0 %v3089_v45 }
  0x52   :  { %v284_v45 = vrot.slane %v282_v43, 1  ;;  %v3178_v43 = vld [vmem:[%s4385_s2 + $0x224] ss:$8 sps:$4 sm:$0xff]  }
  0x53   :  { %2084 = vmatpush1.bf16.msra.mxu1 %v3084_v46  ;;  %v3114_v46 = vld [vmem:[%s4385_s2 + $0x190] ss:$8 sps:$4 sm:$0xff]  }
  0x54   :  { %2296 = vmatpush1.bf16.msra.mxu0 %v3087_v47  ;;  %2085 = vmatprep.subr.bf16.mxu1 %v3092_v48  ;;  %v3117_v47 = vld [vmem:[%s4385_s2 + $0x590] ss:$8 sps:$4 sm:$0xff]   ;;  %v257_v48 = vor.u32 %v256_v44, %v252_v38  ;;  %v2598_v38 = vcombine.high %v3858_v26, %v3875_v32 }
  0x55   :  { %2297 = vmatprep.subr.bf16.mxu0 %v3095_v50  ;;  %v3122_v50 = vld [vmem:[%s4385_s2 + $0x1a4] ss:$8 sps:$4 sm:$0xff]  }
  0x57   :  { %2086 = vmatpush1.bf16.msra.mxu1 %v3090_v51  ;;  %v3125_v51 = vld [vmem:[%s4385_s2 + $0x5a4] ss:$8 sps:$4 sm:$0xff]  }
  0x58   :  { %2298 = vmatpush1.bf16.msra.mxu0 %v3093_v52  ;;  %2087 = vmatprep.subr.bf16.mxu1 %v3098_v55  ;;  %v3788_v52 = vor.u32 %v284_v45, %v280_v42  ;;  %v3120_v55 = vld [vmem:[%s4385_s2 + $0x1a0] ss:$8 sps:$4 sm:$0xff]   ;;  %v3181_v45 = vld [vmem:[%s4385_s2 + $0x624] ss:$8 sps:$4 sm:$0xff]  }
  0x59   :  { %2299 = vmatprep.subr.bf16.mxu0 %v3101_v58  ;;  %v3131_v58 = vld [vmem:[%s4385_s2 + $0x5b4] ss:$8 sps:$4 sm:$0xff]   ;;  %v3906_v42 = vld [vmem:[%s4383_s0 + $0x88] sm:$0xff] }
  0x5a   :  { %v2616_v53 = vcombine.low %v257_v48, %v3788_v52  ;;  %v296_v48 = vshll.u32 %v2598_v38, 16 }
  0x5b   :  { %2088 = vmatpush1.bf16.msra.mxu1 %v3096_v61  ;;  %v3134_v61 = vld [vmem:[%s4385_s2 + $0x1c4] ss:$8 sps:$4 sm:$0xff]  }
  0x5c   :  { %2300 = vmatpush1.bf16.msra.mxu0 %v3099_v2  ;;  %2089 = vmatprep.subr.bf16.mxu1 %v3104_v3  ;;  %v3135_v2 = vld [vmem:[%s4385_s2 + $0x5c0] ss:$8 sps:$4 sm:$0xff]   ;;  %v3140_v3 = vld [vmem:[%s4385_s2 + $0x1d4] ss:$8 sps:$4 sm:$0xff]  }
  0x5d   :  { %2301 = vmatprep.subr.bf16.mxu0 %v3107_v8  ;;  %2319 = vmatprep.mubr.bf16.mxu0 %v2616_v53  ;;  %v3141_v8 = vld [vmem:[%s4385_s2 + $0x5d0] ss:$8 sps:$4 sm:$0xff]  }
  0x5f   :  { %2090 = vmatpush1.bf16.msra.mxu1 %v3102_v14  ;;  %v273_v14 = vshrl.u32 %v2587_v0, 16 }
  0x60   :  { %2302 = vmatpush1.bf16.msra.mxu0 %v3105_v17  ;;  %2091 = vmatprep.subr.bf16.mxu1 %v3110_v22  ;;  %v3149_v17 = vld [vmem:[%s4385_s2 + $0x5e0] ss:$8 sps:$4 sm:$0xff]   ;;  %v250_v22 = vor.u32 %v249_v13, %v245_v12  ;;  %v3182_v13 = vld [vmem:[%s4385_s2 + $0x230] ss:$8 sps:$4 sm:$0xff]  }
  0x61   :  { %2303 = vmatprep.subr.bf16.mxu0 %v3113_v27  ;;  %v3853_v24 = vor.u32 %v277_v15, %v273_v14  ;;  %v3154_v27 = vld [vmem:[%s4385_s2 + $0x1f0] ss:$8 sps:$4 sm:$0xff]  }
  0x62   :  { %v3185_v14 = vld [vmem:[%s4385_s2 + $0x630] ss:$8 sps:$4 sm:$0xff]  }
  0x63   :  { %2092 = vmatpush1.bf16.msra.mxu1 %v3108_v36  ;;  %v2615_v34 = vcombine.low %v250_v22, %v3853_v24  ;;  %v3167_v36 = vld [vmem:[%s4385_s2 + $0x600] ss:$8 sps:$4 sm:$0xff]  }
  0x64   :  { %2304 = vmatpush1.bf16.msra.mxu0 %v3111_v37  ;;  %2093 = vmatprep.subr.bf16.mxu1 %v3116_v40  ;;  %v3172_v37 = vld [vmem:[%s4385_s2 + $0x214] ss:$8 sps:$4 sm:$0xff]   ;;  %v3173_v40 = vld [vmem:[%s4385_s2 + $0x610] ss:$8 sps:$4 sm:$0xff]  }
  0x65   :  { %2305 = vmatprep.subr.bf16.mxu0 %v3119_v41  ;;  %v42_v41 = vld [vmem:[%s4383_s0 + $0x68] sm:$0xff] }
  0x66   :  { %v2624_v44 = vcombine.high %v42_v41, %v3906_v42 }
  0x67   :  { %2094 = vmatpush1.bf16.msra.mxu1 %v3114_v46  ;;  %v46_v46 = vld [vmem:[%s4383_s0 + $0x78] sm:$0xff] }
  0x68   :  { %2306 = vmatpush1.bf16.msra.mxu0 %v3117_v47  ;;  %2095 = vmatprep.subr.bf16.mxu1 %v3122_v50  ;;  %v54_v47 = vld [vmem:[%s4383_s0 + $0x98] sm:$0xff]  ;;  %v3176_v50 = vld [vmem:[%s4385_s2 + $0x220] ss:$8 sps:$4 sm:$0xff]  }
  0x69   :  { %2307 = vmatprep.subr.bf16.mxu0 %v3125_v51  ;;  %v2592_v51 = vcombine.high %v42_v41, %v46_v46  ;;  %v2596_v53 = vcombine.high %v3906_v42, %v54_v47 }
  0x6b   :  { %2096 = vmatpush1.bf16.msra.mxu1 %v3120_v55  ;;  %v2591_v55 = vcombine.low %v42_v41, %v46_v46  ;;  %v364_v63 = vshrl.u32 %v2596_v53, 16  ;;  %v366_v0 = vshll.u32 %v2596_v53, 16  ;;  %v3217_v46 = vld [vmem:[%s4385_s2 + $0x684] ss:$8 sps:$4 sm:$0xff]   ;;  %v3218_v53 = vld [vmem:[%s4385_s2 + $0x290] ss:$8 sps:$4 sm:$0xff]  }
  0x6c   :  { %2308 = vmatpush1.bf16.msra.mxu0 %v3123_v56  ;;  %2097 = vmatprep.subr.bf16.mxu1 %v3128_v57  ;;  %v2595_v56 = vcombine.low %v3906_v42, %v54_v47  ;;  %v3179_v57 = vld [vmem:[%s4385_s2 + $0x620] ss:$8 sps:$4 sm:$0xff]  }
  0x6d   :  { %2309 = vmatprep.subr.bf16.mxu0 %v3131_v58  ;;  %v2623_v58 = vcombine.low %v42_v41, %v3906_v42  ;;  %v3211_v41 = vld [vmem:[%s4385_s2 + $0x674] ss:$8 sps:$4 sm:$0xff]   ;;  %v3212_v47 = vld [vmem:[%s4385_s2 + $0x280] ss:$8 sps:$4 sm:$0xff]  }
  0x6e   :  { %v359_v5 = vshll.u32 %v2595_v56, 16 }
  0x6f   :  { %2098 = vmatpush1.bf16.msra.mxu1 %v3126_v59  ;;  %v294_v59 = vshrl.u32 %v2598_v38, 16  ;;  %v3200_v38 = vld [vmem:[%s4385_s2 + $0x260] ss:$8 sps:$4 sm:$0xff]  }
  0x70   :  { %2310 = vmatpush1.bf16.msra.mxu0 %v3129_v60  ;;  %2099 = vmatprep.subr.bf16.mxu1 %v3134_v61  ;;  %v3184_v60 = vld [vmem:[%s4385_s2 + $0x234] ss:$8 sps:$4 sm:$0xff]   ;;  %v336_v61 = vshrl.u32 %v2592_v51, 16  ;;  %v361_v12 = vrot.slane %v359_v5, 1 }
  0x71   :  { %2311 = vmatprep.subr.bf16.mxu0 %v3137_v62  ;;  %v338_v62 = vshll.u32 %v2592_v51, 16  ;;  %v3223_v51 = vld [vmem:[%s4385_s2 + $0x694] ss:$8 sps:$4 sm:$0xff]  }
  0x72   :  { %v3244_v5 = vld [vmem:[%s4385_s2 + $0x2d4] ss:$8 sps:$4 sm:$0xff]  }
  0x73   :  { %2100 = vmatpush1.bf16.msra.mxu1 %v3132_v1  ;;  %v3187_v1 = vld [vmem:[%s4385_s2 + $0x634] ss:$8 sps:$4 sm:$0xff]   ;;  %v340_v6 = vrot.slane %v338_v62, 1  ;;  %v3230_v62 = vld [vmem:[%s4385_s2 + $0x2b0] ss:$8 sps:$4 sm:$0xff]  }
  0x74   :  { %2312 = vmatpush1.bf16.msra.mxu0 %v3135_v2  ;;  %2101 = vmatprep.subr.bf16.mxu1 %v3140_v3  ;;  %v329_v2 = vshrl.u32 %v2591_v55, 16  ;;  %v331_v3 = vshll.u32 %v2591_v55, 16  ;;  %v3221_v55 = vld [vmem:[%s4385_s2 + $0x690] ss:$8 sps:$4 sm:$0xff]  }
  0x75   :  { %2313 = vmatprep.subr.bf16.mxu0 %v3143_v4  ;;  %v357_v4 = vshrl.u32 %v2595_v56, 16  ;;  %v341_v15 = vor.u32 %v340_v6, %v336_v61  ;;  %v3226_v56 = vld [vmem:[%s4385_s2 + $0x2a4] ss:$8 sps:$4 sm:$0xff]   ;;  %v3235_v61 = vld [vmem:[%s4385_s2 + $0x6b4] ss:$8 sps:$4 sm:$0xff]  }
  0x76   :  { %v3247_v6 = vld [vmem:[%s4385_s2 + $0x6d4] ss:$8 sps:$4 sm:$0xff]  }
  0x77   :  { %2102 = vmatpush1.bf16.msra.mxu1 %v3138_v7  ;;  %v368_v7 = vrot.slane %v366_v0, 1  ;;  %v3238_v0 = vld [vmem:[%s4385_s2 + $0x2c4] ss:$8 sps:$4 sm:$0xff]  }
  0x78   :  { %2314 = vmatpush1.bf16.msra.mxu0 %v3141_v8  ;;  %2103 = vmatprep.subr.bf16.mxu1 %v3146_v9  ;;  %v2610_v8 = vcombine.high %v3548_v49, %v3858_v26  ;;  %v298_v9 = vrot.slane %v296_v48, 1  ;;  %v3190_v49 = vld [vmem:[%s4385_s2 + $0x244] ss:$8 sps:$4 sm:$0xff]   ;;  %v3215_v48 = vld [vmem:[%s4385_s2 + $0x680] ss:$8 sps:$4 sm:$0xff]  }
  0x79   :  { %2315 = vmatprep.subr.bf16.mxu0 %v3151_v11  ;;  %v333_v11 = vrot.slane %v331_v3, 1  ;;  %v2597_v3 = vcombine.low %v3858_v26, %v3875_v32  ;;  %v2579_v32 = vld [vmem:[%s4384_s1 + $0xb0] sm:$0xff] }
  0x7b   :  { %2104 = vmatpush1.bf16.msra.mxu1 %v3144_v16  ;;  %v3944_v16 = vor.u32 %v368_v7, %v364_v63  ;;  %v3233_v63 = vld [vmem:[%s4385_s2 + $0x6b0] ss:$8 sps:$4 sm:$0xff]   ;;  %v4070_v7 = vld [vmem:[%s4384_s1 + $0xa0] sm:$0xff] }
  0x7c   :  { %2316 = vmatpush1.bf16.msra.mxu0 %v3149_v17  ;;  %2105 = vmatprep.subr.bf16.mxu1 %v3156_v18  ;;  %v3193_v17 = vld [vmem:[%s4385_s2 + $0x644] ss:$8 sps:$4 sm:$0xff]   ;;  %v334_v18 = vor.u32 %v333_v11, %v329_v2  ;;  %v3236_v2 = vld [vmem:[%s4385_s2 + $0x2c0] ss:$8 sps:$4 sm:$0xff]   ;;  %v3242_v11 = vld [vmem:[%s4385_s2 + $0x2d0] ss:$8 sps:$4 sm:$0xff]  }
  0x7d   :  { %2317 = vmatprep.subr.bf16.mxu0 %v3159_v19  ;;  %v3952_v19 = vor.u32 %v361_v12, %v357_v4  ;;  %v2632_v22 = vcombine.low %v341_v15, %v3944_v16  ;;  %v3239_v4 = vld [vmem:[%s4385_s2 + $0x6c0] ss:$8 sps:$4 sm:$0xff]   ;;  %v3245_v12 = vld [vmem:[%s4385_s2 + $0x6d0] ss:$8 sps:$4 sm:$0xff]  }
  0x7f   :  { %2106 = vmatpush1.bf16.msra.mxu1 %v3154_v27  ;;  %v299_v27 = vor.u32 %v298_v9, %v294_v59  ;;  %v3227_v59 = vld [vmem:[%s4385_s2 + $0x6a0] ss:$8 sps:$4 sm:$0xff]   ;;  %v289_v9 = vshll.u32 %v2597_v3, 16 }
  0x80   :  { %2318 = vmatpush1.bf16.msra.mxu0 %v3157_v28  ;;  %2128 = vmatprep.subr.bf16.mxu1 %v3162_v30  ;;  %v2631_v28 = vcombine.low %v334_v18, %v3952_v19  ;;  %v3188_v30 = vld [vmem:[%s4385_s2 + $0x240] ss:$8 sps:$4 sm:$0xff]   ;;  %v2601_v18 = vcombine.low %v4070_v7, %v2579_v32 }
  0x81   :  { %2340 = vmatprep.subr.bf16.mxu0 %v3169_v31  ;;  %v3191_v31 = vld [vmem:[%s4385_s2 + $0x640] ss:$8 sps:$4 sm:$0xff]  }
  0x82   :  { %2108 = vmatmul.mubr.bf16.vlgmr.msra.gmra.mrb[0].mxu1 %v2607_v33  ;;  %v3196_v33 = vld [vmem:[%s4385_s2 + $0x254] ss:$8 sps:$4 sm:$0xff]  }
  0x83   :  { %2320 = vmatmul.mubr.bf16.vlgmr.msra.gmra.mrb[0].mxu0 %v2615_v34  ;;  %2129 = vmatpush1.bf16.msra.mxu1 %v3160_v35  ;;  %v3199_v34 = vld [vmem:[%s4385_s2 + $0x654] ss:$8 sps:$4 sm:$0xff]   ;;  %v2618_v35 = vcombine.low %v3586_v10, %v299_v27  ;;  %v3205_v10 = vld [vmem:[%s4385_s2 + $0x664] ss:$8 sps:$4 sm:$0xff]  }
  0x84   :  { %2341 = vmatpush1.bf16.msra.mxu0 %v3167_v36  ;;  %2130 = vmatprep.subr.bf16.mxu1 %v3172_v37  ;;  %v3194_v36 = vld [vmem:[%s4385_s2 + $0x250] ss:$8 sps:$4 sm:$0xff]  }
  0x85   :  { %2342 = vmatprep.subr.bf16.mxu0 %v3175_v20  ;;  %2117 = vmatprep.mubr.bf16.mxu1 %v2624_v44  ;;  %v3197_v37 = vld [vmem:[%s4385_s2 + $0x650] ss:$8 sps:$4 sm:$0xff]   ;;  %v3202_v20 = vld [vmem:[%s4385_s2 + $0x264] ss:$8 sps:$4 sm:$0xff]  }
  0x86   :  { %2329 = vmatprep.mubr.bf16.mxu0 %v2632_v22  ;;  %v3209_v44 = vld [vmem:[%s4385_s2 + $0x670] ss:$8 sps:$4 sm:$0xff]   ;;  %v4092_v22 = vld [vmem:[%s4384_s1 + $0x48] sm:$0xff] }
  0x87   :  { %2131 = vmatpush1.bf16.msra.mxu1 %v3170_v39  ;;  %v3203_v39 = vld [vmem:[%s4385_s2 + $0x660] ss:$8 sps:$4 sm:$0xff]   ;;  %v4097_v27 = vld [vmem:[%s4384_s1 + $0x58] sm:$0xff] }
  0x88   :  { %2343 = vmatpush1.bf16.msra.mxu0 %v3173_v40  ;;  %2132 = vmatprep.subr.bf16.mxu1 %v3178_v43  ;;  %v3208_v40 = vld [vmem:[%s4385_s2 + $0x274] ss:$8 sps:$4 sm:$0xff]   ;;  %v3206_v43 = vld [vmem:[%s4385_s2 + $0x270] ss:$8 sps:$4 sm:$0xff]  }
  0x89   :  { %2344 = vmatprep.subr.bf16.mxu0 %v3181_v45  ;;  %v3214_v45 = vld [vmem:[%s4385_s2 + $0x284] ss:$8 sps:$4 sm:$0xff]  }
  0x8a   :  { %2118 = vmatmul.mubr.bf16.gmra.mrb[4].mxu1 %v2623_v58  ;;  %v3224_v58 = vld [vmem:[%s4385_s2 + $0x2a0] ss:$8 sps:$4 sm:$0xff]  }
  0x8b   :  { %2133 = vmatpush1.bf16.msra.mxu1 %v3176_v50  ;;  %2160 = vmatprep.mubr.bf16.mxu1 %v2610_v8  ;;  %v3220_v50 = vld [vmem:[%s4385_s2 + $0x294] ss:$8 sps:$4 sm:$0xff]   ;;  %v2602_v8 = vcombine.high %v4070_v7, %v2579_v32  ;;  %v3292_v32 = vld [vmem:[%s4385_s2 + $0x740] ss:$8 sps:$4 sm:$0xff]  }
  0x8c   :  { %2345 = vmatpush1.bf16.msra.mxu0 %v3179_v57  ;;  %2134 = vmatprep.subr.bf16.mxu1 %v3184_v60  ;;  %v3229_v57 = vld [vmem:[%s4385_s2 + $0x6a4] ss:$8 sps:$4 sm:$0xff]   ;;  %v3232_v60 = vld [vmem:[%s4385_s2 + $0x2b4] ss:$8 sps:$4 sm:$0xff]  }
  0x8d   :  { %2346 = vmatprep.subr.bf16.mxu0 %v3187_v1  ;;  %2330 = vmatmul.mubr.bf16.gmra.mrb[4].mxu0 %v2631_v28  ;;  %v3241_v1 = vld [vmem:[%s4385_s2 + $0x6c4] ss:$8 sps:$4 sm:$0xff]   ;;  %v380_v15 = vshll.u32 %v2602_v8, 16  ;;  %v3248_v28 = vld [vmem:[%s4385_s2 + $0x2e0] ss:$8 sps:$4 sm:$0xff]  }
  0x8e   :  { %2372 = vmatprep.mubr.bf16.mxu0 %v2618_v35 }
  0x8f   :  { %2135 = vmatpush1.bf16.msra.mxu1 %v3182_v13  ;;  %v3250_v13 = vld [vmem:[%s4385_s2 + $0x2e4] ss:$8 sps:$4 sm:$0xff]   ;;  %v382_v35 = vrot.slane %v380_v15, 1  ;;  %v3301_v15 = vld [vmem:[%s4385_s2 + $0x360] ss:$8 sps:$4 sm:$0xff]  }
  0x90   :  { %2347 = vmatpush1.bf16.msra.mxu0 %v3185_v14  ;;  %2136 = vmatprep.subr.bf16.mxu1 %v3190_v49  ;;  %v3255_v14 = vld [vmem:[%s4385_s2 + $0x6e4] ss:$8 sps:$4 sm:$0xff]   ;;  %v287_v49 = vshrl.u32 %v2597_v3, 16  ;;  %v3285_v3 = vld [vmem:[%s4385_s2 + $0x334] ss:$8 sps:$4 sm:$0xff]  }
  0x91   :  { %2348 = vmatprep.subr.bf16.mxu0 %v3193_v17  ;;  %v291_v17 = vrot.slane %v289_v9, 1  ;;  %v3300_v9 = vld [vmem:[%s4385_s2 + $0x754] ss:$8 sps:$4 sm:$0xff]  }
  0x93   :  { %2137 = vmatpush1.bf16.msra.mxu1 %v3188_v30  ;;  %v3253_v30 = vld [vmem:[%s4385_s2 + $0x6e0] ss:$8 sps:$4 sm:$0xff]  }
  0x94   :  { %2349 = vmatpush1.bf16.msra.mxu0 %v3191_v31  ;;  %2138 = vmatprep.subr.bf16.mxu1 %v3196_v33  ;;  %v3260_v31 = vld [vmem:[%s4385_s2 + $0x2f4] ss:$8 sps:$4 sm:$0xff]  }
  0x95   :  { %2350 = vmatprep.subr.bf16.mxu0 %v3199_v34  ;;  %v3263_v33 = vld [vmem:[%s4385_s2 + $0x6f4] ss:$8 sps:$4 sm:$0xff]   ;;  %v378_v34 = vshrl.u32 %v2602_v8, 16 }
  0x96   :  { %v3297_v8 = vld [vmem:[%s4385_s2 + $0x354] ss:$8 sps:$4 sm:$0xff]  }
  0x97   :  { %2139 = vmatpush1.bf16.msra.mxu1 %v3194_v36  ;;  %v2600_v36 = vcombine.high %v4092_v22, %v4097_v27 }
  0x98   :  { %2351 = vmatpush1.bf16.msra.mxu0 %v3197_v37  ;;  %2140 = vmatprep.subr.bf16.mxu1 %v3202_v20  ;;  %v292_v37 = vor.u32 %v291_v17, %v287_v49  ;;  %v373_v20 = vshll.u32 %v2601_v18, 16  ;;  %v3304_v49 = vld [vmem:[%s4385_s2 + $0x760] ss:$8 sps:$4 sm:$0xff]   ;;  %v3309_v17 = vld [vmem:[%s4385_s2 + $0x374] ss:$8 sps:$4 sm:$0xff]  }
  0x99   :  { %2352 = vmatprep.subr.bf16.mxu0 %v3205_v10  ;;  %v3258_v10 = vld [vmem:[%s4385_s2 + $0x2f0] ss:$8 sps:$4 sm:$0xff]  }
  0x9b   :  { %2141 = vmatpush1.bf16.msra.mxu1 %v3200_v38  ;;  %v3261_v38 = vld [vmem:[%s4385_s2 + $0x6f0] ss:$8 sps:$4 sm:$0xff]  }
  0x9c   :  { %2353 = vmatpush1.bf16.msra.mxu0 %v3203_v39  ;;  %2142 = vmatprep.subr.bf16.mxu1 %v3208_v40  ;;  %v3266_v39 = vld [vmem:[%s4385_s2 + $0x304] ss:$8 sps:$4 sm:$0xff]  }
  0x9d   :  { %2354 = vmatprep.subr.bf16.mxu0 %v3211_v41  ;;  %v3270_v40 = vld [vmem:[%s4385_s2 + $0x704] ss:$8 sps:$4 sm:$0xff]   ;;  %v383_v41 = vor.u32 %v382_v35, %v378_v34  ;;  %v3313_v34 = vld [vmem:[%s4385_s2 + $0x380] ss:$8 sps:$4 sm:$0xff]  }
  0x9e   :  { %v3316_v35 = vld [vmem:[%s4385_s2 + $0x780] ss:$8 sps:$4 sm:$0xff]  }
  0x9f   :  { %2143 = vmatpush1.bf16.msra.mxu1 %v3206_v43  ;;  %v310_v43 = vshll.u32 %v2600_v36, 16 }
  0xa0   :  { %2355 = vmatpush1.bf16.msra.mxu0 %v3209_v44  ;;  %2144 = vmatprep.subr.bf16.mxu1 %v3214_v45  ;;  %v2617_v44 = vcombine.low %v3607_v23, %v292_v37  ;;  %v3367_v45 = vld [vmem:[%s4383_s0 + $0x20] sm:$0xff]  ;;  %v3273_v23 = vld [vmem:[%s4385_s2 + $0x314] ss:$8 sps:$4 sm:$0xff]  }
  0xa1   :  { %2356 = vmatprep.subr.bf16.mxu0 %v3217_v46  ;;  %v2609_v46 = vcombine.low %v3367_v45, %v3858_v26  ;;  %v3276_v26 = vld [vmem:[%s4385_s2 + $0x714] ss:$8 sps:$4 sm:$0xff]   ;;  %v3331_v45 = vld [vmem:[%s4385_s2 + $0x3b0] ss:$8 sps:$4 sm:$0xff]  }
  0xa2   :  { %v3324_v37 = vld [vmem:[%s4385_s2 + $0x794] ss:$8 sps:$4 sm:$0xff]  }
  0xa3   :  { %2145 = vmatpush1.bf16.msra.mxu1 %v3212_v47  ;;  %v371_v47 = vshrl.u32 %v2601_v18, 16  ;;  %v3312_v18 = vld [vmem:[%s4385_s2 + $0x774] ss:$8 sps:$4 sm:$0xff]  }
  0xa4   :  { %2357 = vmatpush1.bf16.msra.mxu0 %v3215_v48  ;;  %2146 = vmatprep.subr.bf16.mxu1 %v3220_v50  ;;  %v375_v48 = vrot.slane %v373_v20, 1  ;;  %v3264_v50 = vld [vmem:[%s4385_s2 + $0x300] ss:$8 sps:$4 sm:$0xff]   ;;  %v3319_v20 = vld [vmem:[%s4385_s2 + $0x390] ss:$8 sps:$4 sm:$0xff]  }
  0xa5   :  { %2358 = vmatprep.subr.bf16.mxu0 %v3223_v51  ;;  %v3268_v51 = vld [vmem:[%s4385_s2 + $0x700] ss:$8 sps:$4 sm:$0xff]  }
  0xa7   :  { %2147 = vmatpush1.bf16.msra.mxu1 %v3218_v53  ;;  %v2626_v53 = vcombine.high %v3696_v54, %v4070_v7 }
  0xa8   :  { %2359 = vmatpush1.bf16.msra.mxu0 %v3221_v55  ;;  %2148 = vmatprep.subr.bf16.mxu1 %v3226_v56  ;;  %v2634_v55 = vcombine.low %v3745_v25, %v383_v41  ;;  %v308_v56 = vshrl.u32 %v2600_v36, 16  ;;  %v3279_v25 = vld [vmem:[%s4385_s2 + $0x324] ss:$8 sps:$4 sm:$0xff]   ;;  %v3321_v36 = vld [vmem:[%s4385_s2 + $0x394] ss:$8 sps:$4 sm:$0xff]  }
  0xa9   :  { %2360 = vmatprep.subr.bf16.mxu0 %v3229_v57  ;;  %v312_v57 = vrot.slane %v310_v43, 1  ;;  %v3328_v41 = vld [vmem:[%s4385_s2 + $0x7a0] ss:$8 sps:$4 sm:$0xff]   ;;  %v3333_v43 = vld [vmem:[%s4385_s2 + $0x3b4] ss:$8 sps:$4 sm:$0xff]  }
  0xab   :  { %2149 = vmatpush1.bf16.msra.mxu1 %v3224_v58  ;;  %v376_v58 = vor.u32 %v375_v48, %v371_v47  ;;  %v3339_v47 = vld [vmem:[%s4385_s2 + $0x3c4] ss:$8 sps:$4 sm:$0xff]  }
  0xac   :  { %2361 = vmatpush1.bf16.msra.mxu0 %v3227_v59  ;;  %2150 = vmatprep.subr.bf16.mxu1 %v3232_v60  ;;  %v3271_v59 = vld [vmem:[%s4385_s2 + $0x310] ss:$8 sps:$4 sm:$0xff]   ;;  %v3342_v48 = vld [vmem:[%s4385_s2 + $0x7c4] ss:$8 sps:$4 sm:$0xff]  }
  0xad   :  { %2362 = vmatprep.subr.bf16.mxu0 %v3235_v61  ;;  %v3274_v60 = vld [vmem:[%s4385_s2 + $0x710] ss:$8 sps:$4 sm:$0xff]   ;;  %v3282_v61 = vld [vmem:[%s4385_s2 + $0x724] ss:$8 sps:$4 sm:$0xff]  }
  0xaf   :  { %2151 = vmatpush1.bf16.msra.mxu1 %v3230_v62  ;;  %v313_v62 = vor.u32 %v312_v57, %v308_v56  ;;  %v3345_v56 = vld [vmem:[%s4385_s2 + $0x3d4] ss:$8 sps:$4 sm:$0xff]  }
  0xb0   :  { %2363 = vmatpush1.bf16.msra.mxu0 %v3233_v63  ;;  %2152 = vmatprep.subr.bf16.mxu1 %v3238_v0  ;;  %v2625_v63 = vcombine.low %v3696_v54, %v4070_v7  ;;  %v2633_v0 = vcombine.low %v3752_v29, %v376_v58  ;;  %v3288_v54 = vld [vmem:[%s4385_s2 + $0x734] ss:$8 sps:$4 sm:$0xff]   ;;  %v2612_v29 = vcombine.high %v3740_v21, %v4092_v22  ;;  %v3291_v21 = vld [vmem:[%s4385_s2 + $0x344] ss:$8 sps:$4 sm:$0xff]   ;;  %v3289_v7 = vld [vmem:[%s4385_s2 + $0x340] ss:$8 sps:$4 sm:$0xff]  }
  0xb1   :  { %2364 = vmatprep.subr.bf16.mxu0 %v3241_v1  ;;  %v3277_v1 = vld [vmem:[%s4385_s2 + $0x320] ss:$8 sps:$4 sm:$0xff]   ;;  %v3343_v58 = vld [vmem:[%s4385_s2 + $0x3d0] ss:$8 sps:$4 sm:$0xff]  }
  0xb3   :  { %2153 = vmatpush1.bf16.msra.mxu1 %v3236_v2  ;;  %v3280_v2 = vld [vmem:[%s4385_s2 + $0x720] ss:$8 sps:$4 sm:$0xff]  }
  0xb4   :  { %2365 = vmatpush1.bf16.msra.mxu0 %v3239_v4  ;;  %2154 = vmatprep.subr.bf16.mxu1 %v3244_v5  ;;  %v2620_v4 = vcombine.low %v3788_v52, %v313_v62  ;;  %v3283_v5 = vld [vmem:[%s4385_s2 + $0x330] ss:$8 sps:$4 sm:$0xff]   ;;  %v3294_v52 = vld [vmem:[%s4385_s2 + $0x744] ss:$8 sps:$4 sm:$0xff]  }
  0xb5   :  { %2366 = vmatprep.subr.bf16.mxu0 %v3247_v6  ;;  %v3286_v6 = vld [vmem:[%s4385_s2 + $0x730] ss:$8 sps:$4 sm:$0xff]  }
  0xb7   :  { %2155 = vmatpush1.bf16.msra.mxu1 %v3242_v11  ;;  %v3295_v11 = vld [vmem:[%s4385_s2 + $0x350] ss:$8 sps:$4 sm:$0xff]  }
  0xb8   :  { %2367 = vmatpush1.bf16.msra.mxu0 %v3245_v12  ;;  %2156 = vmatprep.subr.bf16.mxu1 %v3250_v13  ;;  %v3298_v12 = vld [vmem:[%s4385_s2 + $0x750] ss:$8 sps:$4 sm:$0xff]   ;;  %v3303_v13 = vld [vmem:[%s4385_s2 + $0x364] ss:$8 sps:$4 sm:$0xff]  }
  0xb9   :  { %2368 = vmatprep.subr.bf16.mxu0 %v3255_v14  ;;  %v3306_v14 = vld [vmem:[%s4385_s2 + $0x764] ss:$8 sps:$4 sm:$0xff]  }
  0xbb   :  { %2157 = vmatpush1.bf16.msra.mxu1 %v3248_v28  ;;  %v3307_v28 = vld [vmem:[%s4385_s2 + $0x370] ss:$8 sps:$4 sm:$0xff]  }
  0xbc   :  { %2369 = vmatpush1.bf16.msra.mxu0 %v3253_v30  ;;  %2158 = vmatprep.subr.bf16.mxu1 %v3260_v31  ;;  %v3310_v30 = vld [vmem:[%s4385_s2 + $0x770] ss:$8 sps:$4 sm:$0xff]   ;;  %v3315_v31 = vld [vmem:[%s4385_s2 + $0x384] ss:$8 sps:$4 sm:$0xff]  }
  0xbd   :  { %2370 = vmatprep.subr.bf16.mxu0 %v3263_v33  ;;  %v3318_v33 = vld [vmem:[%s4385_s2 + $0x784] ss:$8 sps:$4 sm:$0xff]  }
  0xbf   :  { %2159 = vmatpush1.bf16.msra.mxu1 %v3258_v10  ;;  %v3322_v10 = vld [vmem:[%s4385_s2 + $0x790] ss:$8 sps:$4 sm:$0xff]  }
  0xc0   :  { %2371 = vmatpush1.bf16.msra.mxu0 %v3261_v38  ;;  %2181 = vmatprep.subr.bf16.mxu1 %v3266_v39  ;;  %v3327_v38 = vld [vmem:[%s4385_s2 + $0x3a4] ss:$8 sps:$4 sm:$0xff]  }
  0xc1   :  { %2393 = vmatprep.subr.bf16.mxu0 %v3270_v40  ;;  %v3330_v39 = vld [vmem:[%s4385_s2 + $0x7a4] ss:$8 sps:$4 sm:$0xff]   ;;  %v3325_v40 = vld [vmem:[%s4385_s2 + $0x3a0] ss:$8 sps:$4 sm:$0xff]  }
  0xc2   :  { %2161 = vmatmul.mubr.bf16.vlgmr.msra.gmra.mrb[0].mxu1 %v2609_v46  ;;  %v3334_v46 = vld [vmem:[%s4385_s2 + $0x7b0] ss:$8 sps:$4 sm:$0xff]  }
  0xc3   :  { %2373 = vmatmul.mubr.bf16.vlgmr.msra.gmra.mrb[0].mxu0 %v2617_v44  ;;  %2182 = vmatpush1.bf16.msra.mxu1 %v3264_v50  ;;  %v3336_v44 = vld [vmem:[%s4385_s2 + $0x7b4] ss:$8 sps:$4 sm:$0xff]   ;;  %v2578_v50 = vld [vmem:[%s4384_s1 + $0xa8] sm:$0xff] }
  0xc4   :  { %2394 = vmatpush1.bf16.msra.mxu0 %v3268_v51  ;;  %2183 = vmatprep.subr.bf16.mxu1 %v3273_v23  ;;  %v2580_v51 = vld [vmem:[%s4384_s1 + $0xb8] sm:$0xff]  ;;  %v2599_v23 = vcombine.low %v4092_v22, %v4097_v27 }
  0xc5   :  { %2395 = vmatprep.subr.bf16.mxu0 %v3276_v26  ;;  %2170 = vmatprep.mubr.bf16.mxu1 %v2626_v53  ;;  %v3337_v26 = vld [vmem:[%s4385_s2 + $0x3c0] ss:$8 sps:$4 sm:$0xff]   ;;  %v3348_v27 = vld [vmem:[%s4385_s2 + $0x7d4] ss:$8 sps:$4 sm:$0xff]  }
  0xc6   :  { %2382 = vmatprep.mubr.bf16.mxu0 %v2634_v55  ;;  %v3340_v53 = vld [vmem:[%s4385_s2 + $0x7c0] ss:$8 sps:$4 sm:$0xff]   ;;  %v2604_v55 = vcombine.high %v2578_v50, %v2580_v51  ;;  %v303_v57 = vshll.u32 %v2599_v23, 16  ;;  %v301_v62 = vshrl.u32 %v2599_v23, 16 }
  0xc7   :  { %2184 = vmatpush1.bf16.msra.mxu1 %v3271_v59  ;;  %v3346_v59 = vld [vmem:[%s4385_s2 + $0x7d0] ss:$8 sps:$4 sm:$0xff]  }
  0xc8   :  { %2396 = vmatpush1.bf16.msra.mxu0 %v3274_v60  ;;  %2185 = vmatprep.subr.bf16.mxu1 %v3279_v25  ;;  %v394_v60 = vshll.u32 %v2604_v55, 16  ;;  %v3352_v25 = vld [vmem:[%s4385_s2 + $0x3e4] ss:$8 sps:$4 sm:$0xff]  }
  0xc9   :  { %2397 = vmatprep.subr.bf16.mxu0 %v3282_v61  ;;  %v3356_v61 = vld [vmem:[%s4385_s2 + $0x7e4] ss:$8 sps:$4 sm:$0xff]  }
  0xca   :  { %2171 = vmatmul.mubr.bf16.gmra.mrb[4].mxu1 %v2625_v63  ;;  %v305_v63 = vrot.slane %v303_v57, 1 }
  0xcb   :  { %2383 = vmatmul.mubr.bf16.gmra.mrb[4].mxu0 %v2633_v0  ;;  %2186 = vmatpush1.bf16.msra.mxu1 %v3277_v1  ;;  %v2603_v0 = vcombine.low %v2578_v50, %v2580_v51  ;;  %v3350_v1 = vld [vmem:[%s4385_s2 + $0x3e0] ss:$8 sps:$4 sm:$0xff]  }
  0xcc   :  { %2398 = vmatpush1.bf16.msra.mxu0 %v3280_v2  ;;  %2187 = vmatprep.subr.bf16.mxu1 %v3285_v3  ;;  %v3354_v2 = vld [vmem:[%s4385_s2 + $0x7e0] ss:$8 sps:$4 sm:$0xff]   ;;  %v392_v3 = vshrl.u32 %v2604_v55, 16 }
  0xcd   :  { %2399 = vmatprep.subr.bf16.mxu0 %v3288_v54  ;;  %2213 = vmatprep.mubr.bf16.mxu1 %v2612_v29  ;;  %v396_v54 = vrot.slane %v394_v60, 1  ;;  %v3359_v29 = vld [vmem:[%s4385_s2 + $0x3f4] ss:$8 sps:$4 sm:$0xff]  }
  0xce   :  { %2425 = vmatprep.mubr.bf16.mxu0 %v2620_v4  ;;  %v3362_v4 = vld [vmem:[%s4385_s2 + $0x7f4] ss:$8 sps:$4 sm:$0xff]  }
  0xcf   :  { %2188 = vmatpush1.bf16.msra.mxu1 %v3283_v5  ;;  %v306_v5 = vor.u32 %v305_v63, %v301_v62 }
  0xd0   :  { %2400 = vmatpush1.bf16.msra.mxu0 %v3286_v6  ;;  %2189 = vmatprep.subr.bf16.mxu1 %v3291_v21  ;;  %v387_v6 = vshll.u32 %v2603_v0, 16  ;;  %v3357_v21 = vld [vmem:[%s4385_s2 + $0x3f0] ss:$8 sps:$4 sm:$0xff]  }
  0xd1   :  { %2401 = vmatprep.subr.bf16.mxu0 %v3294_v52  ;;  %v3360_v52 = vld [vmem:[%s4385_s2 + $0x7f0] ss:$8 sps:$4 sm:$0xff]  }
  0xd3   :  { %2190 = vmatpush1.bf16.msra.mxu1 %v3289_v7  ;;  %v397_v7 = vor.u32 %v396_v54, %v392_v3 }
  0xd4   :  { %2402 = vmatpush1.bf16.msra.mxu0 %v3292_v32  ;;  %2191 = vmatprep.subr.bf16.mxu1 %v3297_v8  ;;  %v3368_v32 = vld [vmem:[%s4383_s0 + $0x28] sm:$0xff] }
  0xd5   :  { %2403 = vmatprep.subr.bf16.mxu0 %v3300_v9  ;;  %v2611_v8 = vcombine.low %v3368_v32, %v4092_v22  ;;  %v2619_v9 = vcombine.low %v3853_v24, %v306_v5  ;;  %v3369_v24 = vmov 0.0   ;;  %v2446_v22 = vlaneseq }
  0xd6   :  { %109 = vst [vmem:[%s4387_s4] sm:$0xf] %v3369_v24 }
  0xd7   :  { %2192 = vmatpush1.bf16.msra.mxu1 %v3295_v11  ;;  %v385_v11 = vshrl.u32 %v2603_v0, 16 }
  0xd8   :  { %2404 = vmatpush1.bf16.msra.mxu0 %v3298_v12  ;;  %2193 = vmatprep.subr.bf16.mxu1 %v3303_v13  ;;  %v389_v12 = vrot.slane %v387_v6, 1  ;;  %v2628_v13 = vcombine.high %v3906_v42, %v2578_v50 }
  0xd9   :  { %2405 = vmatprep.subr.bf16.mxu0 %v3306_v14  ;;  %v2636_v14 = vcombine.low %v3944_v16, %v397_v7 }
  0xdb   :  { %2194 = vmatpush1.bf16.msra.mxu1 %v3301_v15  ;;  %v390_v15 = vor.u32 %v389_v12, %v385_v11 }
  0xdc   :  { %2406 = vmatpush1.bf16.msra.mxu0 %v3304_v49  ;;  %2195 = vmatprep.subr.bf16.mxu1 %v3309_v17  ;;  %v2627_v49 = vcombine.low %v3906_v42, %v2578_v50 }
  0xdd   :  { %2407 = vmatprep.subr.bf16.mxu0 %v3312_v18  ;;  %v2635_v17 = vcombine.low %v3952_v19, %v390_v15  ;;  %v4345_v18 = vshrl.u32 %v2446_v22, 7 }
  0xdf   :  { %2196 = vmatpush1.bf16.msra.mxu1 %v3307_v28  ;;  %vm2448_vm0 = vcmp.lt.s32.totalorder %v4345_v18, 1 }
  0xe0   :  { %2408 = vmatpush1.bf16.msra.mxu0 %v3310_v30  ;;  %2197 = vmatprep.subr.bf16.mxu1 %v3315_v31 }
  0xe1   :  { %2409 = vmatprep.subr.bf16.mxu0 %v3318_v33 }
  0xe3   :  { %2198 = vmatpush1.bf16.msra.mxu1 %v3313_v34 }
  0xe4   :  { %2410 = vmatpush1.bf16.msra.mxu0 %v3316_v35  ;;  %2199 = vmatprep.subr.bf16.mxu1 %v3321_v36 }
  0xe5   :  { %2411 = vmatprep.subr.bf16.mxu0 %v3324_v37 }
  0xe7   :  { %2200 = vmatpush1.bf16.msra.mxu1 %v3319_v20 }
  0xe8   :  { %2412 = vmatpush1.bf16.msra.mxu0 %v3322_v10  ;;  %2201 = vmatprep.subr.bf16.mxu1 %v3327_v38 }
  0xe9   :  { %2413 = vmatprep.subr.bf16.mxu0 %v3330_v39 }
  0xeb   :  { %2202 = vmatpush1.bf16.msra.mxu1 %v3325_v40 }
  0xec   :  { %2414 = vmatpush1.bf16.msra.mxu0 %v3328_v41  ;;  %2203 = vmatprep.subr.bf16.mxu1 %v3333_v43 }
  0xed   :  { %2415 = vmatprep.subr.bf16.mxu0 %v3336_v44 }
  0xef   :  { %2204 = vmatpush1.bf16.msra.mxu1 %v3331_v45 }
  0xf0   :  { %2416 = vmatpush1.bf16.msra.mxu0 %v3334_v46  ;;  %2205 = vmatprep.subr.bf16.mxu1 %v3339_v47 }
  0xf1   :  { %2417 = vmatprep.subr.bf16.mxu0 %v3342_v48 }
  0xf3   :  { %2206 = vmatpush1.bf16.msra.mxu1 %v3337_v26 }
  0xf4   :  { %2418 = vmatpush1.bf16.msra.mxu0 %v3340_v53  ;;  %2207 = vmatprep.subr.bf16.mxu1 %v3345_v56 }
  0xf5   :  { %2419 = vmatprep.subr.bf16.mxu0 %v3348_v27 }
  0xf7   :  { %2208 = vmatpush1.bf16.msra.mxu1 %v3343_v58 }
  0xf8   :  { %2420 = vmatpush1.bf16.msra.mxu0 %v3346_v59  ;;  %2209 = vmatprep.subr.bf16.mxu1 %v3352_v25 }
  0xf9   :  { %2421 = vmatprep.subr.bf16.mxu0 %v3356_v61 }
  0xfb   :  { %2210 = vmatpush1.bf16.msra.mxu1 %v3350_v1 }
  0xfc   :  { %2422 = vmatpush1.bf16.msra.mxu0 %v3354_v2  ;;  %2211 = vmatprep.subr.bf16.mxu1 %v3359_v29 }
  0xfd   :  { %2423 = vmatprep.subr.bf16.mxu0 %v3362_v4 }
  0xff   :  { %2212 = vmatpush1.bf16.msra.mxu1 %v3357_v21 }
 0x100   :  { %2424 = vmatpush1.bf16.msra.mxu0 %v3360_v52 }
 0x102   :  { %2214 = vmatmul.mubr.bf16.vlgmr.msra.gmra.mrb[0].mxu1 %v2611_v8 }
 0x103   :  { %2426 = vmatmul.mubr.bf16.vlgmr.msra.gmra.mrb[0].mxu0 %v2619_v9  ;;  %2223 = vmatprep.mubr.bf16.mxu1 %v2628_v13 }
 0x104   :  { %2435 = vmatprep.mubr.bf16.mxu0 %v2636_v14 }
 0x10a   :  { %2224 = vmatmul.mubr.bf16.gmra.mrb[4].mxu1 %v2627_v49 }
 0x10b   :  { %2436 = vmatmul.mubr.bf16.gmra.mrb[4].mxu0 %v2635_v17 }
 0x1d5   :  { %v2215_v16 = vpop.f32.mrb[0].mxu1 }
 0x1d6   :  { %v2427_v28 = vpop.f32.mrb[0].mxu0  ;;  %v2217_v31 = vpop.f32.mrb[1].mxu1 }
 0x1d7   :  { %v2901_v30 = vadd.f32 %v2427_v28, %v2215_v16  ;;  %v2429_v33 = vpop.f32.mrb[1].mxu0  ;;  %v2219_v34 = vpop.f32.mrb[2].mxu1 }
 0x1d8   :  { %v2902_v42 = vadd.f32 %v2429_v33, %v2217_v31  ;;  %v2431_v19 = vpop.f32.mrb[2].mxu0  ;;  %v2221_v37 = vpop.f32.mrb[3].mxu1 }
 0x1d9   :  { %v2451_v35 = vsel %vm2448_vm0, %v2901_v30, 0.0  ;;  %v2903_v36 = vadd.f32 %v2431_v19, %v2219_v34  ;;  %v2433_v20 = vpop.f32.mrb[3].mxu0 }
 0x1da   :  { %v2452_v10 = vsel %vm2448_vm0, %v2902_v42, 0.0  ;;  %v2904_v38 = vadd.f32 %v2433_v20, %v2221_v37  ;;  %v2513_v41 = vmul.f32 %v2451_v35, %v2451_v35  ;;  %v3370_v42 = vmov 1983009808  }
 0x1db   :  { %v2897_v39 = vpack.c.bf16 %v2452_v10, %v2451_v35  ;;  %v2453_v40 = vsel %vm2448_vm0, %v2903_v36, 0.0  ;;  %v2514_v46 = vmul.f32 %v2452_v10, %v2452_v10  ;;  %v2547_v34 = vunpack.c.l.s4 %v3370_v42 }
 0x1dc   :  { %v2495_v43 = vadd.f32 %v2453_v40, %v2451_v35  ;;  %v2515_v44 = vmul.f32 %v2453_v40, %v2453_v40  ;;  %v2454_v45 = vsel %vm2448_vm0, %v2904_v38, 0.0 }
 0x1dd   :  { %2491 = vst [vmem:[%s4386_s3] sm:$0xff] %v2897_v39  ;;  %v2898_v47 = vpack.c.bf16 %v2454_v45, %v2453_v40  ;;  %v2504_v48 = vadd.f32 %v2454_v45, %v2452_v10  ;;  %v2516_v50 = vmul.f32 %v2454_v45, %v2454_v45  ;;  %v2225_v23 = vpop.f32.mrb[4].mxu1  ;;  %v2548_v39 = vunpack.c.0.s8 %v2547_v34 }
 0x1de   :  { %v2521_v51 = vadd.f32 %v2515_v44, %v2513_v41  ;;  %v2437_v26 = vpop.f32.mrb[4].mxu0  ;;  %v2227_v56 = vpop.f32.mrb[5].mxu1 }
 0x1df   :  { %2492 = vst [vmem:[%s4386_s3 + $0x8] sm:$0xff] %v2898_v47  ;;  %v2530_v53 = vadd.f32 %v2516_v50, %v2514_v46  ;;  %v2905_v55 = vadd.f32 %v2437_v26, %v2225_v23  ;;  %v2439_v27 = vpop.f32.mrb[5].mxu0  ;;  %v2229_v58 = vpop.f32.mrb[6].mxu1  ;;  %v2551_v47 = vsub.s32 %v2548_v39, %v4345_v18 }
 0x1e0   :  { %v2906_v57 = vadd.f32 %v2439_v27, %v2227_v56  ;;  %v2441_v59 = vpop.f32.mrb[6].mxu0  ;;  %v2231_v61 = vpop.f32.mrb[7].mxu1 }
 0x1e1   :  { %v2455_v60 = vsel %vm2448_vm0, %v2905_v55, 0.0  ;;  %v2907_v25 = vadd.f32 %v2441_v59, %v2229_v58  ;;  %v2443_v62 = vpop.f32.mrb[7].mxu0 }
 0x1e2   :  { %v2496_v63 = vadd.f32 %v2495_v43, %v2455_v60  ;;  %v2517_v0 = vmul.f32 %v2455_v60, %v2455_v60  ;;  %v2456_v1 = vsel %vm2448_vm0, %v2906_v57, 0.0  ;;  %v2908_v2 = vadd.f32 %v2443_v62, %v2231_v61 }
 0x1e3   :  { %v2899_v3 = vpack.c.bf16 %v2456_v1, %v2455_v60  ;;  %v2505_v54 = vadd.f32 %v2504_v48, %v2456_v1  ;;  %v2518_v29 = vmul.f32 %v2456_v1, %v2456_v1  ;;  %v2457_v4 = vsel %vm2448_vm0, %v2907_v25, 0.0 }
 0x1e4   :  { %v2522_v5 = vadd.f32 %v2521_v51, %v2517_v0  ;;  %v2497_v6 = vadd.f32 %v2496_v63, %v2457_v4  ;;  %v2519_v21 = vmul.f32 %v2457_v4, %v2457_v4  ;;  %v2458_v52 = vsel %vm2448_vm0, %v2908_v2, 0.0  ;;  %v2539_v51 = vld [vmem:[%s4387_s4] sm:$0xf] }
 0x1e5   :  { %2493 = vst [vmem:[%s4386_s3 + $0x10] sm:$0xff] %v2899_v3  ;;  %v2531_v7 = vadd.f32 %v2530_v53, %v2518_v29  ;;  %v2900_v32 = vpack.c.bf16 %v2458_v52, %v2457_v4  ;;  %v2506_v8 = vadd.f32 %v2505_v54, %v2458_v52  ;;  %v2520_v9 = vmul.f32 %v2458_v52, %v2458_v52 }
 0x1e6   :  { %v2498_v11 = vrot.slane %v2497_v6, 4  ;;  %v2523_v12 = vadd.f32 %v2522_v5, %v2519_v21 }
 0x1e7   :  { %2494 = vst [vmem:[%s4386_s3 + $0x18] sm:$0xff] %v2900_v32  ;;  %v2507_v13 = vrot.slane %v2506_v8, 4  ;;  %v2532_v14 = vadd.f32 %v2531_v7, %v2520_v9 }
 0x1e8   :  { %v2499_v15 = vadd.f32 %v2498_v11, %v2497_v6  ;;  %v2524_v49 = vrot.slane %v2523_v12, 4 }
 0x1e9   :  { %v2508_v17 = vadd.f32 %v2507_v13, %v2506_v8  ;;  %v2533_v24 = vrot.slane %v2532_v14, 4 }
 0x1ea   :  { %v2500_v22 = vrot.slane %v2499_v15, 2  ;;  %v2525_v16 = vadd.f32 %v2524_v49, %v2523_v12 }
 0x1eb   :  { %v2509_v28 = vrot.slane %v2508_v17, 2  ;;  %v2534_v30 = vadd.f32 %v2533_v24, %v2532_v14 }
 0x1ec   :  { %v2501_v31 = vadd.f32 %v2500_v22, %v2499_v15  ;;  %v2526_v33 = vrot.slane %v2525_v16, 2 }
 0x1ed   :  { %v2510_v19 = vadd.f32 %v2509_v28, %v2508_v17  ;;  %v2535_v35 = vrot.slane %v2534_v30, 2 }
 0x1ee   :  { %v2502_v36 = vrot.slane %v2501_v31, 1  ;;  %v2527_v37 = vadd.f32 %v2526_v33, %v2525_v16 }
 0x1ef   :  { %v2511_v20 = vrot.slane %v2510_v19, 1  ;;  %v2536_v10 = vadd.f32 %v2535_v35, %v2534_v30 }
 0x1f0   :  { %v2528_v38 = vrot.slane %v2527_v37, 1  ;;  %v2503_v41 = vadd.f32 %v2502_v36, %v2501_v31 }
 0x1f1   :  { %v2537_v40 = vrot.slane %v2536_v10, 1  ;;  %v2512_v44 = vadd.f32 %v2511_v20, %v2510_v19 }
 0x1f2   :  { %v2529_v43 = vadd.f32 %v2528_v38, %v2527_v37 }
 0x1f3   :  { %v2538_v45 = vadd.f32 %v2537_v40, %v2536_v10 }
 0x1f4   :  { %v2541_v46 = vsel %vm2540_vm1, %v2503_v41, %v2529_v43 }
 0x1f5   :  { %v2542_v48 = vsel %vm2540_vm1, %v2512_v44, %v2538_v45 }
 0x1f6   :  { %v2545_v50 = vcombine.low %v2541_v46, %v2542_v48 }
 0x1f8   :  { %v2552_v23 = vrot.slane %v2545_v50, %v2551_v47 }
 0x1fa   :  { %v2554_v26 = vadd.f32 %v2552_v23, %v2539_v51 }
 0x1fc   :  { %2555 = vst [vmem:[%s4387_s4] sm:$0xf] %v2554_v26 }

// kernel: discriminator_forward.19
= control target key start
LH: loop header
LB: loop body
LE: loop exit
PB: predicated region body
PF: predicated region fallthrough
CT: control target
= control target key end

     0   :  { %v28_v0 = vlaneseq  ;;  %s188_s0 = inlined_call_operand.vmem [shape: bf16[2,2,8,256], index: 0, kind: input, shape index: {}]   ;;  %s189_s1 = inlined_call_operand.vmem [shape: f32[1,256], index: 1, kind: input, shape index: {}]   ;;  %s190_s2 = inlined_call_operand.vmem [shape: f32[1,256], index: 2, kind: input, shape index: {}]   ;;  %s191_s3 = inlined_call_operand.vmem [shape: bf16[2,2,8,256], index: 3, kind: output, shape index: {}]  }
   0x1   :  { %v14_v1 = vld [vmem:[%s188_s0] sm:$0xff]  ;;  %v15_v3 = vld [vmem:[%s188_s0 + $0x8] sm:$0xff]  ;;  %v16_v4 = vld [vmem:[%s188_s0 + $0x10] sm:$0xff] }
   0x2   :  { %v29_v2 = vshrl.u32 %v28_v0, 7  ;;  %v17_v5 = vld [vmem:[%s188_s0 + $0x18] sm:$0xff]  ;;  %v18_v6 = vunpack.c.l.bf16 %v14_v1  ;;  %v19_v7 = vunpack.c.h.bf16 %v14_v1  ;;  %v26_v8 = vld [vmem:[%s189_s1] sm:$0x3]  ;;  %v20_v12 = vunpack.c.l.bf16 %v15_v3 }
   0x3   :  { %v46_v9 = vld [vmem:[%s190_s2] sm:$0x3]  ;;  %v21_v13 = vunpack.c.h.bf16 %v15_v3  ;;  %v22_v14 = vunpack.c.l.bf16 %v16_v4  ;;  %v23_v15 = vunpack.c.h.bf16 %v16_v4  ;;  %v24_v16 = vunpack.c.l.bf16 %v17_v5 }
   0x4   :  { %v30_v10 = vsub.s32 0, %v29_v2  ;;  %v34_v11 = vsub.s32 1, %v29_v2  ;;  %v25_v17 = vunpack.c.h.bf16 %v17_v5 }
   0x6   :  { %v31_v18 = vrot.slane %v26_v8, %v30_v10  ;;  %v35_v19 = vrot.slane %v26_v8, %v34_v11  ;;  %v51_v20 = vrot.slane %v46_v9, %v30_v10  ;;  %v55_v21 = vrot.slane %v46_v9, %v34_v11 }
   0x8   :  { %v38_v22 = vmul.f32 %v31_v18, %v18_v6  ;;  %v39_v23 = vmul.f32 %v35_v19, %v19_v7  ;;  %v40_v24 = vmul.f32 %v31_v18, %v20_v12  ;;  %v41_v25 = vmul.f32 %v35_v19, %v21_v13 }
   0x9   :  { %v42_v26 = vmul.f32 %v31_v18, %v22_v14  ;;  %v43_v27 = vmul.f32 %v35_v19, %v23_v15  ;;  %v44_v28 = vmul.f32 %v31_v18, %v24_v16  ;;  %v45_v29 = vmul.f32 %v35_v19, %v25_v17 }
   0xa   :  { %v58_v30 = vadd.f32 %v51_v20, %v38_v22  ;;  %v59_v31 = vadd.f32 %v55_v21, %v39_v23  ;;  %v60_v32 = vadd.f32 %v51_v20, %v40_v24  ;;  %v61_v33 = vadd.f32 %v55_v21, %v41_v25 }
   0xb   :  { %v62_v34 = vadd.f32 %v51_v20, %v42_v26  ;;  %v63_v35 = vadd.f32 %v55_v21, %v43_v27  ;;  %v64_v36 = vadd.f32 %v51_v20, %v44_v28  ;;  %v65_v37 = vadd.f32 %v55_v21, %v45_v29 }
   0xc   :  { %vm66_vm0 = vcmp.ge.f32.partialorder %v58_v30, 0.0  ;;  %vm67_vm1 = vcmp.ge.f32.partialorder %v59_v31, 0.0  ;;  %v74_v38 = vmul.f32 0.2, %v58_v30  ;;  %v75_v39 = vmul.f32 0.2, %v59_v31 }
   0xd   :  { %vm68_vm2 = vcmp.ge.f32.partialorder %v60_v32, 0.0  ;;  %vm69_vm3 = vcmp.ge.f32.partialorder %v61_v33, 0.0  ;;  %v76_v40 = vmul.f32 0.2, %v60_v32  ;;  %v77_v41 = vmul.f32 0.2, %v61_v33 }
   0xe   :  { %v82_v42 = vsel %vm66_vm0, %v58_v30, %v74_v38  ;;  %v83_v43 = vsel %vm67_vm1, %v59_v31, %v75_v39  ;;  %vm70_vm4 = vcmp.ge.f32.partialorder %v62_v34, 0.0  ;;  %vm71_vm5 = vcmp.ge.f32.partialorder %v63_v35, 0.0 }
   0xf   :  { %v134_v44 = vpack.c.bf16 %v83_v43, %v82_v42  ;;  %v84_v45 = vsel %vm68_vm2, %v60_v32, %v76_v40  ;;  %v85_v46 = vsel %vm69_vm3, %v61_v33, %v77_v41  ;;  %v78_v47 = vmul.f32 0.2, %v62_v34 }
  0x10   :  { %v135_v48 = vpack.c.bf16 %v85_v46, %v84_v45  ;;  %v79_v49 = vmul.f32 0.2, %v63_v35  ;;  %vm72_vm6 = vcmp.ge.f32.partialorder %v64_v36, 0.0  ;;  %vm73_vm7 = vcmp.ge.f32.partialorder %v65_v37, 0.0 }
  0x11   :  { %122 = vst [vmem:[%s191_s3] sm:$0xff] %v134_v44  ;;  %v86_v50 = vsel %vm70_vm4, %v62_v34, %v78_v47  ;;  %v80_v51 = vmul.f32 0.2, %v64_v36  ;;  %v81_v52 = vmul.f32 0.2, %v65_v37 }
  0x12   :  { %123 = vst [vmem:[%s191_s3 + $0x8] sm:$0xff] %v135_v48  ;;  %v87_v53 = vsel %vm71_vm5, %v63_v35, %v79_v49 }
  0x13   :  { %v136_v54 = vpack.c.bf16 %v87_v53, %v86_v50  ;;  %v88_v55 = vsel %vm72_vm6, %v64_v36, %v80_v51  ;;  %v89_v56 = vsel %vm73_vm7, %v65_v37, %v81_v52 }
  0x14   :  { %v137_v57 = vpack.c.bf16 %v89_v56, %v88_v55 }
  0x15   :  { %124 = vst [vmem:[%s191_s3 + $0x10] sm:$0xff] %v136_v54 }
  0x16   :  { %125 = vst [vmem:[%s191_s3 + $0x18] sm:$0xff] %v137_v57 }

</bundles_post_ra>
